<compile_context>
chip_gen: v7x
topology: tpu7x:2x2x1
jax: 0.10.0
libtpu: 0.0.40
codegen_flags: <defaults>
</compile_context>

<pallas_src>
import math
import functools

import jax
import jax.numpy as jnp
from jax import lax
from jax.experimental import pallas as pl
from jax.experimental.pallas import tpu as pltpu

# ----------------------------- configuration -------------------------------
INPUT_DIM_V = 128          # video feature dim
HIDDEN_DIM_V = 256         # forced by Linear(256, 512)
D_WORD_EMB = 128           # forced by Linear(128, 512)
NUM_HEADS = 1              # forced by Conv2d(1, 32, ...)
D_K = INPUT_DIM_V // NUM_HEADS
D_HIDDEN_G2P = 500         # forced by Encoder.linear = Linear(1000, 500)
D_EMBED = 32
P_SIZE = 11
G_SIZE = 13
L_P = 6                    # phoneme sequence length
L_G = 7                    # grapheme sequence length
BN_EPS = 1e-5


# ---------------- Pallas matmul kernel with fused affine epilogue ----------------
def _matmul_affine_kernel(a_ref, b_ref, scale_ref, shift_ref, o_ref, *, relu):
    acc = jnp.dot(a_ref[...], b_ref[...], preferred_element_type=jnp.float32)
    acc = acc * scale_ref[...] + shift_ref[...]
    if relu:
        acc = jnp.maximum(acc, 0.0)
    o_ref[...] = acc


def matmul_affine(a, b, scale, shift, relu=False):
    """(M,K) @ (K,N) * scale[N] + shift[N] (optionally ReLU), f32 output.

    No padding: blocks use the full M and K extents (single K step); N is split
    into two parallel blocks only when both halves stay multiples of 128 so the
    second TensorCore on v7x can pick one up."""
    M, K = a.shape
    K2, N = b.shape
    assert K == K2
    if N >= 1024 and (N // 2) % 128 == 0:
        tn = N // 2
    else:
        tn = N
    grid = (N // tn,)

    a16 = a.astype(jnp.bfloat16)
    b16 = b.astype(jnp.bfloat16)
    scale2 = scale.reshape(1, N).astype(jnp.float32)
    shift2 = shift.reshape(1, N).astype(jnp.float32)

    kern = functools.partial(_matmul_affine_kernel, relu=relu)
    return pl.pallas_call(
        kern,
        out_shape=jax.ShapeDtypeStruct((M, N), jnp.float32),
        grid_spec=pltpu.PrefetchScalarGridSpec(
            num_scalar_prefetch=0,
            grid=grid,
            in_specs=[pl.BlockSpec((M, K), lambda j: (0, 0)),
                      pl.BlockSpec((K, tn), lambda j: (0, j)),
                      pl.BlockSpec((1, tn), lambda j: (0, j)),
                      pl.BlockSpec((1, tn), lambda j: (0, j))],
            out_specs=pl.BlockSpec((M, tn), lambda j: (0, j))),
        compiler_params=pltpu.CompilerParams(
            dimension_semantics=("parallel",)),
    )(a16, b16, scale2, shift2)


def linear(x, wb, relu=False, bn=None):
    """PyTorch Linear with weight stored pre-transposed as (in, out).
    If `bn` is given (eval-mode BatchNorm1d params), its affine is fused into the
    matmul epilogue."""
    w, b = wb
    N = w.shape[1]
    shp = x.shape
    if bn is None:
        scale = jnp.ones((N,), jnp.float32)
        shift = b
    else:
        g, beta, rm, rv = bn
        s = g * lax.rsqrt(rv + BN_EPS)
        scale = s
        shift = (b - rm) * s + beta
    y = matmul_affine(x.reshape(-1, shp[-1]), w, scale, shift, relu=relu)
    return y.reshape(shp[:-1] + (N,))


# ------------------------ Pallas attention-score kernel ----------------------
def _attn_score_kernel(q_ref, kt_ref, o_ref, *, scale):
    s = jnp.einsum('bqd,bdk->bqk', q_ref[...], kt_ref[...],
                   preferred_element_type=jnp.float32)
    o_ref[...] = s * scale


def attention_scores(q_bh, kt_bh, d_k):
    """q_bh: (BH, Fq, dk), kt_bh: (BH, dk, Fk) -> (BH, Fq, Fk) = Q.K^T / sqrt(d_k).
    Single launch, full-array blocks, K pre-transposed in the wrapper."""
    BH, Fq, dk = q_bh.shape
    _, _, Fk = kt_bh.shape
    kern = functools.partial(_attn_score_kernel, scale=1.0 / math.sqrt(d_k))
    return pl.pallas_call(
        kern,
        out_shape=jax.ShapeDtypeStruct((BH, Fq, Fk), jnp.float32),
        grid_spec=pltpu.PrefetchScalarGridSpec(
            num_scalar_prefetch=0,
            grid=(1,),
            in_specs=[pl.BlockSpec((BH, Fq, dk), lambda i: (0, 0, 0)),
                      pl.BlockSpec((BH, dk, Fk), lambda i: (0, 0, 0))],
            out_specs=pl.BlockSpec((BH, Fq, Fk), lambda i: (0, 0, 0))),
        compiler_params=pltpu.CompilerParams(dimension_semantics=("parallel",)),
    )(q_bh.astype(jnp.bfloat16), kt_bh.astype(jnp.bfloat16))


# ------------------------- fused MLP head (fc1/fc2/fc3) -----------------------
def _mlp_head_kernel(x_ref, w1_ref, b1_ref, w2_ref, b2_ref, w3t_ref, b3_ref, o_ref):
    h = jnp.dot(x_ref[...], w1_ref[...], preferred_element_type=jnp.float32) + b1_ref[...]
    h = jnp.maximum(h, 0.0)
    h = jnp.dot(h, w2_ref[...], preferred_element_type=jnp.float32) + b2_ref[...]
    h = jnp.maximum(h, 0.0)
    # fc3 has out_features=1: do it as a lane-reduction instead of an N=1 matmul.
    o_ref[...] = jnp.sum(h * w3t_ref[...], axis=-1, keepdims=True) + b3_ref[...]


def mlp_head(x, fc1, fc2, fc3):
    """relu(fc1) -> relu(fc2) -> fc3 fused into a single Pallas launch."""
    w1, b1 = fc1
    w2, b2 = fc2
    w3, b3 = fc3
    M, D1 = x.shape
    H1 = w1.shape[1]
    H2 = w2.shape[1]
    return pl.pallas_call(
        _mlp_head_kernel,
        out_shape=jax.ShapeDtypeStruct((M, 1), jnp.float32),
        grid_spec=pltpu.PrefetchScalarGridSpec(
            num_scalar_prefetch=0,
            grid=(1,),
            in_specs=[pl.BlockSpec((M, D1), lambda i: (0, 0)),
                      pl.BlockSpec((D1, H1), lambda i: (0, 0)),
                      pl.BlockSpec((1, H1), lambda i: (0, 0)),
                      pl.BlockSpec((H1, H2), lambda i: (0, 0)),
                      pl.BlockSpec((1, H2), lambda i: (0, 0)),
                      pl.BlockSpec((1, H2), lambda i: (0, 0)),
                      pl.BlockSpec((1, 1), lambda i: (0, 0))],
            out_specs=pl.BlockSpec((M, 1), lambda i: (0, 0))),
        compiler_params=pltpu.CompilerParams(dimension_semantics=("parallel",)),
    )(x.astype(jnp.float32), w1, b1.reshape(1, H1), w2, b2.reshape(1, H2),
      w3.reshape(1, H2), b3.reshape(1, 1))


# ------------------------------ small JAX glue -------------------------------
def batchnorm1d(x, p):
    """Eval-mode BatchNorm1d on (N, C)."""
    w, b, rm, rv = p
    s = w * lax.rsqrt(rv + BN_EPS)
    return x * s + (b - rm * s)


def conv2d_bn_relu(x, conv_p, bn_p, stride, padding):
    """PyTorch Conv2d(k=5) + eval BatchNorm2d + ReLU, via im2col + fused matmul."""
    wm, b = conv_p                       # wm: (Cin*kh*kw, Cout) pre-im2col layout
    B, C, Hin, Win = x.shape
    kh = kw = 5
    Cout = wm.shape[1]
    sh, sw = stride
    ph, pw = padding
    xp = jnp.pad(x, ((0, 0), (0, 0), (ph, ph), (pw, pw)))
    Hout = (Hin + 2 * ph - kh) // sh + 1
    Wout = (Win + 2 * pw - kw) // sw + 1
    cols = []
    for i in range(kh):
        for j in range(kw):
            cols.append(xp[:, :, i:i + sh * Hout:sh, j:j + sw * Wout:sw])
    col = jnp.stack(cols, axis=2)                                     # (B, C, kh*kw, Ho, Wo)
    col = jnp.transpose(col, (0, 3, 4, 1, 2)).reshape(B * Hout * Wout, C * kh * kw)
    g, beta, rm, rv = bn_p
    s = g * lax.rsqrt(rv + BN_EPS)
    out = matmul_affine(col, wm, s, (b - rm) * s + beta, relu=True)   # conv+BN+ReLU fused
    out = out.reshape(B, Hout, Wout, Cout)
    return jnp.transpose(out, (0, 3, 1, 2))


def max_pool2d(x, kh, kw, sh, sw):
    B, C, H, W = x.shape
    Hout = (H - kh) // sh + 1
    Wout = (W - kw) // sw + 1
    vals = []
    for i in range(kh):
        for j in range(kw):
            vals.append(x[:, :, i:i + sh * Hout:sh, j:j + sw * Wout:sw])
    return jnp.max(jnp.stack(vals, 0), axis=0)


# --------------------------------- LSTMs -------------------------------------
# TODO(synk): the per-timestep h @ W_hh recurrence stays in plain JAX inside lax.scan
# (strictly sequential and tiny); the batched input projections go through the
# Pallas matmul with the bias fused.
def _lstm_scan(gx_tbg, w_hh, h0, c0):
    """gx_tbg: (T, B, 4H) precomputed input gates; w_hh stored as (H, 4H)."""
    def step(carry, gx):
        h, c = carry
        gates = gx + jnp.dot(h, w_hh)
        i, f, g, o = jnp.split(gates, 4, axis=-1)
        c = jax.nn.sigmoid(f) * c + jax.nn.sigmoid(i) * jnp.tanh(g)
        h = jax.nn.sigmoid(o) * jnp.tanh(c)
        return (h, c), h
    (hT, cT), hs = lax.scan(step, (h0, c0), gx_tbg)
    return hs, hT, cT


def lstm_seq(x_tbd, p, h0, c0):
    """Unidirectional LSTM over (T, B, D) with given initial state."""
    T, B, D = x_tbd.shape
    H = p['w_hh'].shape[0]
    ones = jnp.ones((4 * H,), jnp.float32)
    gx = matmul_affine(x_tbd.reshape(T * B, D), p['w_ih'], ones, p['bias'])
    gx = gx.reshape(T, B, 4 * H)
    return _lstm_scan(gx, p['w_hh'], h0, c0)


def bilstm(x, p):
    """Bidirectional LSTM, batch_first x: (B, T, D), zero initial state.
    Forward and backward input projections are fused into ONE matmul."""
    B, T, D = x.shape
    H = p['w_hh_f'].shape[0]
    ones = jnp.ones((8 * H,), jnp.float32)
    gx = matmul_affine(x.reshape(B * T, D), p['w_ih'], ones, p['bias'])   # (B*T, 8H)
    gx = gx.reshape(B, T, 8 * H)
    gx_f = jnp.transpose(gx[..., :4 * H], (1, 0, 2))                      # (T, B, 4H)
    gx_b = jnp.transpose(gx[..., 4 * H:][:, ::-1, :], (1, 0, 2))          # reversed time
    h0 = jnp.zeros((B, H), jnp.float32)
    c0 = jnp.zeros((B, H), jnp.float32)
    hs_f, hf, cf = _lstm_scan(gx_f, p['w_hh_f'], h0, c0)
    hs_b, hb, cb = _lstm_scan(gx_b, p['w_hh_b'], h0, c0)
    out_f = jnp.transpose(hs_f, (1, 0, 2))
    out_b = jnp.transpose(hs_b, (1, 0, 2))[:, ::-1, :]
    out = jnp.concatenate([out_f, out_b], axis=-1)
    hn = jnp.stack([hf, hb], 0)
    cn = jnp.stack([cf, cb], 0)
    return out, hn, cn


# ------------------------------- G2P sub-model --------------------------------
def encoder_forward(P, x_seq):
    """x_seq: (L_p, B) int tokens -> (emb (B, 128), all_emb (B, L_p, 128))."""
    e_seq = P['embedding'][x_seq]                   # (L_p, B, d_embed)
    e_seq = jnp.transpose(e_seq, (1, 0, 2))         # .permute(1, 0, 2) -> (B, L_p, 32)
    output, _hn, cn = bilstm(e_seq, P['lstm'])      # (B, L_p, 1000)

    # linear (on mean(output)) and linear_2 (on output) fused into one matmul:
    # linear(mean(output)) == mean(linear(output)) since Linear is affine.
    z = linear(output, P['linear12'])               # (B, L_p, 1000)
    hidden_state = jnp.mean(z[..., :D_HIDDEN_G2P], axis=1)      # (B, 500)
    all_hidden = z[..., D_HIDDEN_G2P:]                          # (B, L_p, 500)
    cell_state = jnp.mean(cn, axis=0)                           # (B, 500)

    # JHCE on [hidden_state|cell] and on [all_hidden|cell] fused into one matmul.
    Bsz, nb_ph, _ = all_hidden.shape
    rows_h = jnp.concatenate([hidden_state[:, None, :], all_hidden], axis=1)   # (B, 1+L_p, 500)
    rows_c = jnp.broadcast_to(cell_state[:, None, :], (Bsz, 1 + nb_ph, D_HIDDEN_G2P))
    rows = jnp.concatenate([rows_h, rows_c], axis=2)                           # (B, 1+L_p, 1000)
    z2 = linear(rows, P['JHCE'])                                               # (B, 1+L_p, 128)
    emb = z2[:, 0, :]
    all_emb = z2[:, 1:, :]
    return emb, all_emb


def decoder_forward(P, x_seq, emb):
    """x_seq: (L_g, B) int tokens, emb: (B, d_word_emb); projectEmb=True path."""
    e_seq = P['embedding'][x_seq]                   # (L_g, B, d_embed)
    hc = linear(emb, P['JHCE2hc'])                  # JHCE2h + JHCE2c fused -> (B, 1000)
    h = hc[:, :D_HIDDEN_G2P]
    c = hc[:, D_HIDDEN_G2P:]
    hs, hT, cT = lstm_seq(e_seq, P['lstm'], h, c)   # (L_g, B, 500)
    L, B, H = hs.shape
    o = linear(hs.reshape(L * B, H), P['linear'])
    o = jax.nn.log_softmax(o, axis=1)
    return o.reshape(L, B, -1), hT, cT


# ---------------------------- Classifier forward ------------------------------
def classifier_forward(P, x, x_lengths, p_lengths, grapheme, phoneme):
    """Eval-mode forward of Classifier_init (rnn2=False, shortcut=False,
    fixed_length_embedding=True, g2p=False). x_lengths all equal T, so
    pack_padded_sequence is a no-op."""
    B, T, D_in = x.shape

    # G2P encoder / decoder (g2p == False -> encoder(phoneme), decoder(grapheme))
    emb, all_emb = encoder_forward(P['encoder'], phoneme)
    odec, _, __ = decoder_forward(P['decoder'], grapheme, emb)

    # fixed_length_embedding == True
    word_embedding = batchnorm1d(emb, P['wBN'])
    word_embedding = jnp.broadcast_to(word_embedding[:, None, :], (B, T, D_WORD_EMB))

    # input BN (eval), no training-time input dropout
    x = batchnorm1d(x.reshape(-1, D_in), P['inBN']).reshape(B, T, D_in)

    # rnn1 (bidirectional) + linrnn with rnnBN fused into the matmul epilogue
    o, _, _ = bilstm(x, P['rnn1'])                                  # (B, T, 512)
    o = linear(o, P['linrnn'], bn=P['rnnBN'])                       # (B, T, 256)

    # rnn2_present == False: attention with empty `value`
    key = linear(o, P['linear_attn_keys'])                          # (B, T, 512)
    query = linear(word_embedding, P['linear_attn_queries'])        # (B, T, 512)
    H = NUM_HEADS
    keyr = key.reshape(B, -1, H, D_K)                               # (B, Fk, H, dk)
    queryr = query.reshape(B, -1, H, D_K)                           # (B, Fq, H, dk)
    F_k, F_q = keyr.shape[1], queryr.shape[1]
    q_bh = jnp.transpose(queryr, (0, 2, 1, 3)).reshape(B * H, F_q, D_K)
    kt_bh = jnp.transpose(keyr, (0, 2, 3, 1)).reshape(B * H, D_K, F_k)   # pre-transposed K
    scores = attention_scores(q_bh, kt_bh, D_K)                          # (B*H, Fq, Fk)
    # attention(): result after .transpose(-3, -1) has layout (B, Fq, Fk, H)
    attention_mask = jnp.transpose(scores.reshape(B, H, F_q, F_k), (0, 2, 3, 1))
    plotted_mask = attention_mask

    # shortcut == False conv path (NCHW, exactly as PyTorch); conv+BN+ReLU fused.
    conv_in = jnp.swapaxes(jnp.swapaxes(attention_mask, -1, -3), -1, -2)  # (B, 1, Fq, Fk)
    o = conv2d_bn_relu(conv_in, P['conv1'], P['batch1'], (2, 2), (2, 2))
    o = max_pool2d(o, 2, 2, 1, 2)
    o = conv2d_bn_relu(o, P['conv2'], P['batch2'], (1, 2), (2, 2))
    # dropout: eval mode -> identity
    o = jnp.mean(o, axis=-2)                                           # (B, 64, v_dim)
    bs, _, v_dim = o.shape
    o_prelogits = jnp.transpose(o, (0, 2, 1)).reshape(-1, o.shape[1])  # (B*v_dim, 64)
    logits = mlp_head(o_prelogits, P['fc1'], P['fc2'], P['fc3'])       # (B*v_dim, 1)
    logits = logits.reshape(bs, -1, 1)                                 # (B, v_dim, 1)
    o_max = jnp.max(logits, axis=1)                                    # (B, 1)
    indices = jnp.argmax(logits, axis=1)                               # (B, 1)

    o_rnn = None
    return odec, x_lengths, o_max, o_rnn, plotted_mask, logits, indices


# ----------------------------- parameter init ---------------------------------
def init_params(key):
    keys = iter(jax.random.split(key, 64))
    nk = lambda: next(keys)

    def lin(in_f, out_f):
        # weight stored pre-transposed: (in, out)
        bound = 1.0 / math.sqrt(in_f)
        w = jax.random.uniform(nk(), (in_f, out_f), jnp.float32, -bound, bound)
        b = jax.random.uniform(nk(), (out_f,), jnp.float32, -bound, bound)
        return (w, b)

    def lstm_cell(in_f, hid):
        # w_ih: (in, 4H), w_hh: (H, 4H), bias = b_ih + b_hh
        bound = 1.0 / math.sqrt(hid)
        u = lambda shape: jax.random.uniform(nk(), shape, jnp.float32, -bound, bound)
        return dict(w_ih=u((in_f, 4 * hid)),
                    w_hh=u((hid, 4 * hid)),
                    bias=u((4 * hid,)) + u((4 * hid,)))

    def bilstm_p(in_f, hid):
        # fwd/bwd input projections fused: w_ih: (in, 8H), bias: (8H,)
        bound = 1.0 / math.sqrt(hid)
        u = lambda shape: jax.random.uniform(nk(), shape, jnp.float32, -bound, bound)
        return dict(w_ih=u((in_f, 8 * hid)),
                    bias=u((8 * hid,)) + u((8 * hid,)),
                    w_hh_f=u((hid, 4 * hid)),
                    w_hh_b=u((hid, 4 * hid)))

    def bn(c):  # (weight, bias, running_mean, running_var) -- PyTorch defaults
        return (jnp.ones((c,), jnp.float32), jnp.zeros((c,), jnp.float32),
                jnp.zeros((c,), jnp.float32), jnp.ones((c,), jnp.float32))

    def conv(cin, cout, k):
        # stored pre-im2col: (cin*k*k, cout), rows ordered (cin slow, kh*kw fast)
        bound = 1.0 / math.sqrt(cin * k * k)
        w = jax.random.uniform(nk(), (cin * k * k, cout), jnp.float32, -bound, bound)
        b = jax.random.uniform(nk(), (cout,), jnp.float32, -bound, bound)
        return (w, b)

    encoder = dict(
        embedding=jax.random.normal(nk(), (P_SIZE, D_EMBED), jnp.float32),
        lstm=bilstm_p(D_EMBED, D_HIDDEN_G2P),
        linear12=lin(1000, 1000),            # linear (cols 0:500) + linear_2 (cols 500:1000)
        JHCE=lin(2 * D_HIDDEN_G2P, D_WORD_EMB),
    )
    decoder = dict(
        embedding=jax.random.normal(nk(), (G_SIZE, D_EMBED), jnp.float32),
        lstm=lstm_cell(D_EMBED, D_HIDDEN_G2P),
        linear=lin(D_HIDDEN_G2P, G_SIZE),
        JHCE2hc=lin(D_WORD_EMB, 2 * D_HIDDEN_G2P),   # JHCE2h (0:500) + JHCE2c (500:1000)
    )
    P = dict(
        encoder=encoder,
        decoder=decoder,
        rnn1=bilstm_p(INPUT_DIM_V, HIDDEN_DIM_V),
        linrnn=lin(2 * HIDDEN_DIM_V, HIDDEN_DIM_V),
        inBN=bn(INPUT_DIM_V),
        rnnBN=bn(HIDDEN_DIM_V),
        wBN=bn(D_WORD_EMB),
        linear_attn_keys=lin(256, 512),
        linear_attn_queries=lin(128, 512),
        conv1=conv(1, 32, 5),
        conv2=conv(32, 64, 5),
        batch1=bn(32),
        batch2=bn(64),
        fc1=lin(64, 256),
        fc2=lin(256, 128),
        fc3=lin(128, 1),
    )
    # Unused (in this config) module parameters (rnn2, outProj_*, lin_logits,
    # linear_attn_values, linear_baseline, shortcut conv3/batch3, etc.) are not
    # materialized since they do not affect the forward pass taken here.
    return P


# ----------------------------------- main --------------------------------------
if __name__ == "__main__":
    key = jax.random.PRNGKey(0)
    kp, kx, kg, kph = jax.random.split(key, 4)
    params = init_params(kp)

    B, T = 2, 8
    x = jax.random.normal(kx, (B, T, INPUT_DIM_V), jnp.float32)
    x_lengths = jnp.array([T, T], jnp.int32)        # full lengths -> packing is a no-op
    p_lengths = jnp.array([L_P, L_P], jnp.int32)    # unused by the forward pass
    grapheme = jax.random.randint(kg, (L_G, B), 0, G_SIZE)
    phoneme = jax.random.randint(kph, (L_P, B), 0, P_SIZE)

    fwd = jax.jit(classifier_forward)
    out = fwd(params, x, x_lengths, p_lengths, grapheme, phoneme)
    out = jax.block_until_ready(out)

    odec, xl, o, o_rnn, plotted_mask, logits, indices = out
    F = T * 512 // D_K
    assert odec.shape == (L_G, B, G_SIZE)
    assert plotted_mask.shape == (B, F, F, NUM_HEADS)
    assert o.shape == (B, 1)
    assert indices.shape == (B, 1)
    assert logits.shape[0] == B and logits.shape[-1] == 1
    assert o_rnn is None
    print("KERNEL_OK")
</pallas_src>

<mosaic_0001>
module attributes {stable_mosaic.version = 11 : i64} {
  func.func @_matmul_affine_kernel(%arg0: i32, %arg1: memref<12x32xbf16, #tpu.memory_space<vmem>>, %arg2: memref<32x4000xbf16, #tpu.memory_space<vmem>>, %arg3: memref<1x4000xf32, #tpu.memory_space<vmem>>, %arg4: memref<1x4000xf32, #tpu.memory_space<vmem>>, %arg5: memref<12x4000xf32, #tpu.memory_space<vmem>>) attributes {dimension_semantics = [#tpu.dimension_semantics<parallel>], iteration_bounds = array<i64: 1>, scalar_prefetch = 0 : i64, scratch_operands = 0 : i64, tpu.core_type = #tpu.core_type<tc>, window_params = [{pipeline_mode = #tpu.pipeline_mode<synchronous>, transform_indices = @transform_0, window_bounds = array<i64: 12, 32>}, {transform_indices = @transform_1, window_bounds = array<i64: 32, 4000>}, {transform_indices = @transform_2, window_bounds = array<i64: 1, 4000>}, {transform_indices = @transform_3, window_bounds = array<i64: 1, 4000>}, {transform_indices = @transform_4, window_bounds = array<i64: 12, 4000>}]} {
    %c0 = arith.constant 0 : index
    %c0_0 = arith.constant 0 : index
    %0 = vector.load %arg1[%c0, %c0_0] : memref<12x32xbf16, #tpu.memory_space<vmem>>, vector<12x32xbf16>
    %c0_1 = arith.constant 0 : index
    %c0_2 = arith.constant 0 : index
    %1 = vector.load %arg2[%c0_1, %c0_2] : memref<32x4000xbf16, #tpu.memory_space<vmem>>, vector<32x4000xbf16>
    %cst = arith.constant dense<0.000000e+00> : vector<12x4000xf32>
    %2 = tpu.matmul %0, %1, %cst {dimension_numbers = #tpu.dot_dimension_numbers<[1], [0], [0], [1], [0, 0, 1, 1], [], []>} : vector<12x32xbf16>, vector<32x4000xbf16>, vector<12x4000xf32> -> vector<12x4000xf32>
    %c0_3 = arith.constant 0 : index
    %c0_4 = arith.constant 0 : index
    %3 = vector.load %arg3[%c0_3, %c0_4] : memref<1x4000xf32, #tpu.memory_space<vmem>>, vector<1x4000xf32>
    %4 = vector.broadcast %3 : vector<1x4000xf32> to vector<12x4000xf32>
    %5 = arith.mulf %2, %4 : vector<12x4000xf32>
    %c0_5 = arith.constant 0 : index
    %c0_6 = arith.constant 0 : index
    %6 = vector.load %arg4[%c0_5, %c0_6] : memref<1x4000xf32, #tpu.memory_space<vmem>>, vector<1x4000xf32>
    %7 = vector.broadcast %6 : vector<1x4000xf32> to vector<12x4000xf32>
    %8 = arith.addf %5, %7 : vector<12x4000xf32>
    %c0_7 = arith.constant 0 : index
    %c0_8 = arith.constant 0 : index
    %9 = vector.load %arg5[%c0_7, %c0_8] : memref<12x4000xf32, #tpu.memory_space<vmem>>, vector<12x4000xf32>
    tpu.vector_store %arg5[%c0_7, %c0_8], %8 {strides = array<i32>} : memref<12x4000xf32, #tpu.memory_space<vmem>>, vector<12x4000xf32>,
    return
  }
  func.func @transform_0(%arg0: i32) -> (i32, i32) {
    %c0_i32 = arith.constant 0 : i32
    %c0_i32_0 = arith.constant 0 : i32
    %c0_i32_1 = arith.constant 0 : i32
    return %c0_i32, %c0_i32_0 : i32, i32
  }
  func.func @transform_1(%arg0: i32) -> (i32, i32) {
    %c0_i32 = arith.constant 0 : i32
    %c0_i32_0 = arith.constant 0 : i32
    return %c0_i32, %arg0 : i32, i32
  }
  func.func @transform_2(%arg0: i32) -> (i32, i32) {
    %c0_i32 = arith.constant 0 : i32
    %c0_i32_0 = arith.constant 0 : i32
    return %c0_i32, %arg0 : i32, i32
  }
  func.func @transform_3(%arg0: i32) -> (i32, i32) {
    %c0_i32 = arith.constant 0 : i32
    %c0_i32_0 = arith.constant 0 : i32
    return %c0_i32, %arg0 : i32, i32
  }
  func.func @transform_4(%arg0: i32) -> (i32, i32) {
    %c0_i32 = arith.constant 0 : i32
    %c0_i32_0 = arith.constant 0 : i32
    return %c0_i32, %arg0 : i32, i32
  }
}

module attributes {stable_mosaic.version = 11 : i64} {
  func.func @_matmul_affine_kernel(%arg0: i32, %arg1: memref<12x1000xbf16, #tpu.memory_space<vmem>>, %arg2: memref<1000x1000xbf16, #tpu.memory_space<vmem>>, %arg3: memref<1x1000xf32, #tpu.memory_space<vmem>>, %arg4: memref<1x1000xf32, #tpu.memory_space<vmem>>, %arg5: memref<12x1000xf32, #tpu.memory_space<vmem>>) attributes {dimension_semantics = [#tpu.dimension_semantics<parallel>], iteration_bounds = array<i64: 1>, scalar_prefetch = 0 : i64, scratch_operands = 0 : i64, tpu.core_type = #tpu.core_type<tc>, window_params = [{pipeline_mode = #tpu.pipeline_mode<synchronous>, transform_indices = @transform_0, window_bounds = array<i64: 12, 1000>}, {transform_indices = @transform_1, window_bounds = array<i64: 1000, 1000>}, {transform_indices = @transform_2, window_bounds = array<i64: 1, 1000>}, {transform_indices = @transform_3, window_bounds = array<i64: 1, 1000>}, {transform_indices = @transform_4, window_bounds = array<i64: 12, 1000>}]} {
    %c0 = arith.constant 0 : index
    %c0_0 = arith.constant 0 : index
    %0 = vector.load %arg1[%c0, %c0_0] : memref<12x1000xbf16, #tpu.memory_space<vmem>>, vector<12x1000xbf16>
    %c0_1 = arith.constant 0 : index
    %c0_2 = arith.constant 0 : index
    %1 = vector.load %arg2[%c0_1, %c0_2] : memref<1000x1000xbf16, #tpu.memory_space<vmem>>, vector<1000x1000xbf16>
    %cst = arith.constant dense<0.000000e+00> : vector<12x1000xf32>
    %2 = tpu.matmul %0, %1, %cst {dimension_numbers = #tpu.dot_dimension_numbers<[1], [0], [0], [1], [0, 0, 1, 1], [], []>} : vector<12x1000xbf16>, vector<1000x1000xbf16>, vector<12x1000xf32> -> vector<12x1000xf32>
    %c0_3 = arith.constant 0 : index
    %c0_4 = arith.constant 0 : index
    %3 = vector.load %arg3[%c0_3, %c0_4] : memref<1x1000xf32, #tpu.memory_space<vmem>>, vector<1x1000xf32>
    %4 = vector.broadcast %3 : vector<1x1000xf32> to vector<12x1000xf32>
    %5 = arith.mulf %2, %4 : vector<12x1000xf32>
    %c0_5 = arith.constant 0 : index
    %c0_6 = arith.constant 0 : index
    %6 = vector.load %arg4[%c0_5, %c0_6] : memref<1x1000xf32, #tpu.memory_space<vmem>>, vector<1x1000xf32>
    %7 = vector.broadcast %6 : vector<1x1000xf32> to vector<12x1000xf32>
    %8 = arith.addf %5, %7 : vector<12x1000xf32>
    %c0_7 = arith.constant 0 : index
    %c0_8 = arith.constant 0 : index
    %9 = vector.load %arg5[%c0_7, %c0_8] : memref<12x1000xf32, #tpu.memory_space<vmem>>, vector<12x1000xf32>
    tpu.vector_store %arg5[%c0_7, %c0_8], %8 {strides = array<i32>} : memref<12x1000xf32, #tpu.memory_space<vmem>>, vector<12x1000xf32>,
    return
  }
  func.func @transform_0(%arg0: i32) -> (i32, i32) {
    %c0_i32 = arith.constant 0 : i32
    %c0_i32_0 = arith.constant 0 : i32
    %c0_i32_1 = arith.constant 0 : i32
    return %c0_i32, %c0_i32_0 : i32, i32
  }
  func.func @transform_1(%arg0: i32) -> (i32, i32) {
    %c0_i32 = arith.constant 0 : i32
    %c0_i32_0 = arith.constant 0 : i32
    return %c0_i32, %arg0 : i32, i32
  }
  func.func @transform_2(%arg0: i32) -> (i32, i32) {
    %c0_i32 = arith.constant 0 : i32
    %c0_i32_0 = arith.constant 0 : i32
    return %c0_i32, %arg0 : i32, i32
  }
  func.func @transform_3(%arg0: i32) -> (i32, i32) {
    %c0_i32 = arith.constant 0 : i32
    %c0_i32_0 = arith.constant 0 : i32
    return %c0_i32, %arg0 : i32, i32
  }
  func.func @transform_4(%arg0: i32) -> (i32, i32) {
    %c0_i32 = arith.constant 0 : i32
    %c0_i32_0 = arith.constant 0 : i32
    return %c0_i32, %arg0 : i32, i32
  }
}

module attributes {stable_mosaic.version = 11 : i64} {
  func.func @_matmul_affine_kernel(%arg0: i32, %arg1: memref<14x1000xbf16, #tpu.memory_space<vmem>>, %arg2: memref<1000x128xbf16, #tpu.memory_space<vmem>>, %arg3: memref<1x128xf32, #tpu.memory_space<vmem>>, %arg4: memref<1x128xf32, #tpu.memory_space<vmem>>, %arg5: memref<14x128xf32, #tpu.memory_space<vmem>>) attributes {dimension_semantics = [#tpu.dimension_semantics<parallel>], iteration_bounds = array<i64: 1>, scalar_prefetch = 0 : i64, scratch_operands = 0 : i64, tpu.core_type = #tpu.core_type<tc>, window_params = [{pipeline_mode = #tpu.pipeline_mode<synchronous>, transform_indices = @transform_0, window_bounds = array<i64: 14, 1000>}, {transform_indices = @transform_1, window_bounds = array<i64: 1000, 128>}, {transform_indices = @transform_2, window_bounds = array<i64: 1, 128>}, {transform_indices = @transform_3, window_bounds = array<i64: 1, 128>}, {transform_indices = @transform_4, window_bounds = array<i64: 14, 128>}]} {
    %c0 = arith.constant 0 : index
    %c0_0 = arith.constant 0 : index
    %0 = vector.load %arg1[%c0, %c0_0] : memref<14x1000xbf16, #tpu.memory_space<vmem>>, vector<14x1000xbf16>
    %c0_1 = arith.constant 0 : index
    %c0_2 = arith.constant 0 : index
    %1 = vector.load %arg2[%c0_1, %c0_2] : memref<1000x128xbf16, #tpu.memory_space<vmem>>, vector<1000x128xbf16>
    %cst = arith.constant dense<0.000000e+00> : vector<14x128xf32>
    %2 = tpu.matmul %0, %1, %cst {dimension_numbers = #tpu.dot_dimension_numbers<[1], [0], [0], [1], [0, 0, 1, 1], [], []>} : vector<14x1000xbf16>, vector<1000x128xbf16>, vector<14x128xf32> -> vector<14x128xf32>
    %c0_3 = arith.constant 0 : index
    %c0_4 = arith.constant 0 : index
    %3 = vector.load %arg3[%c0_3, %c0_4] : memref<1x128xf32, #tpu.memory_space<vmem>>, vector<1x128xf32>
    %4 = vector.broadcast %3 : vector<1x128xf32> to vector<14x128xf32>
    %5 = arith.mulf %2, %4 : vector<14x128xf32>
    %c0_5 = arith.constant 0 : index
    %c0_6 = arith.constant 0 : index
    %6 = vector.load %arg4[%c0_5, %c0_6] : memref<1x128xf32, #tpu.memory_space<vmem>>, vector<1x128xf32>
    %7 = vector.broadcast %6 : vector<1x128xf32> to vector<14x128xf32>
    %8 = arith.addf %5, %7 : vector<14x128xf32>
    %c0_7 = arith.constant 0 : index
    %c0_8 = arith.constant 0 : index
    %9 = vector.load %arg5[%c0_7, %c0_8] : memref<14x128xf32, #tpu.memory_space<vmem>>, vector<14x128xf32>
    tpu.vector_store %arg5[%c0_7, %c0_8], %8 {strides = array<i32>} : memref<14x128xf32, #tpu.memory_space<vmem>>, vector<14x128xf32>,
    return
  }
  func.func @transform_0(%arg0: i32) -> (i32, i32) {
    %c0_i32 = arith.constant 0 : i32
    %c0_i32_0 = arith.constant 0 : i32
    %c0_i32_1 = arith.constant 0 : i32
    return %c0_i32, %c0_i32_0 : i32, i32
  }
  func.func @transform_1(%arg0: i32) -> (i32, i32) {
    %c0_i32 = arith.constant 0 : i32
    %c0_i32_0 = arith.constant 0 : i32
    return %c0_i32, %arg0 : i32, i32
  }
  func.func @transform_2(%arg0: i32) -> (i32, i32) {
    %c0_i32 = arith.constant 0 : i32
    %c0_i32_0 = arith.constant 0 : i32
    return %c0_i32, %arg0 : i32, i32
  }
  func.func @transform_3(%arg0: i32) -> (i32, i32) {
    %c0_i32 = arith.constant 0 : i32
    %c0_i32_0 = arith.constant 0 : i32
    return %c0_i32, %arg0 : i32, i32
  }
  func.func @transform_4(%arg0: i32) -> (i32, i32) {
    %c0_i32 = arith.constant 0 : i32
    %c0_i32_0 = arith.constant 0 : i32
    return %c0_i32, %arg0 : i32, i32
  }
}

module attributes {stable_mosaic.version = 11 : i64} {
  func.func @_matmul_affine_kernel(%arg0: i32, %arg1: memref<16x128xbf16, #tpu.memory_space<vmem>>, %arg2: memref<128x512xbf16, #tpu.memory_space<vmem>>, %arg3: memref<1x512xf32, #tpu.memory_space<vmem>>, %arg4: memref<1x512xf32, #tpu.memory_space<vmem>>, %arg5: memref<16x512xf32, #tpu.memory_space<vmem>>) attributes {dimension_semantics = [#tpu.dimension_semantics<parallel>], iteration_bounds = array<i64: 1>, scalar_prefetch = 0 : i64, scratch_operands = 0 : i64, tpu.core_type = #tpu.core_type<tc>, window_params = [{pipeline_mode = #tpu.pipeline_mode<synchronous>, transform_indices = @transform_0, window_bounds = array<i64: 16, 128>}, {transform_indices = @transform_1, window_bounds = array<i64: 128, 512>}, {transform_indices = @transform_2, window_bounds = array<i64: 1, 512>}, {transform_indices = @transform_3, window_bounds = array<i64: 1, 512>}, {transform_indices = @transform_4, window_bounds = array<i64: 16, 512>}]} {
    %c0 = arith.constant 0 : index
    %c0_0 = arith.constant 0 : index
    %0 = vector.load %arg1[%c0, %c0_0] : memref<16x128xbf16, #tpu.memory_space<vmem>>, vector<16x128xbf16>
    %c0_1 = arith.constant 0 : index
    %c0_2 = arith.constant 0 : index
    %1 = vector.load %arg2[%c0_1, %c0_2] : memref<128x512xbf16, #tpu.memory_space<vmem>>, vector<128x512xbf16>
    %cst = arith.constant dense<0.000000e+00> : vector<16x512xf32>
    %2 = tpu.matmul %0, %1, %cst {dimension_numbers = #tpu.dot_dimension_numbers<[1], [0], [0], [1], [0, 0, 1, 1], [], []>} : vector<16x128xbf16>, vector<128x512xbf16>, vector<16x512xf32> -> vector<16x512xf32>
    %c0_3 = arith.constant 0 : index
    %c0_4 = arith.constant 0 : index
    %3 = vector.load %arg3[%c0_3, %c0_4] : memref<1x512xf32, #tpu.memory_space<vmem>>, vector<1x512xf32>
    %4 = vector.broadcast %3 : vector<1x512xf32> to vector<16x512xf32>
    %5 = arith.mulf %2, %4 : vector<16x512xf32>
    %c0_5 = arith.constant 0 : index
    %c0_6 = arith.constant 0 : index
    %6 = vector.load %arg4[%c0_5, %c0_6] : memref<1x512xf32, #tpu.memory_space<vmem>>, vector<1x512xf32>
    %7 = vector.broadcast %6 : vector<1x512xf32> to vector<16x512xf32>
    %8 = arith.addf %5, %7 : vector<16x512xf32>
    %c0_7 = arith.constant 0 : index
    %c0_8 = arith.constant 0 : index
    %9 = vector.load %arg5[%c0_7, %c0_8] : memref<16x512xf32, #tpu.memory_space<vmem>>, vector<16x512xf32>
    tpu.vector_store %arg5[%c0_7, %c0_8], %8 {strides = array<i32>} : memref<16x512xf32, #tpu.memory_space<vmem>>, vector<16x512xf32>,
    return
  }
  func.func @transform_0(%arg0: i32) -> (i32, i32) {
    %c0_i32 = arith.constant 0 : i32
    %c0_i32_0 = arith.constant 0 : i32
    %c0_i32_1 = arith.constant 0 : i32
    return %c0_i32, %c0_i32_0 : i32, i32
  }
  func.func @transform_1(%arg0: i32) -> (i32, i32) {
    %c0_i32 = arith.constant 0 : i32
    %c0_i32_0 = arith.constant 0 : i32
    return %c0_i32, %arg0 : i32, i32
  }
  func.func @transform_2(%arg0: i32) -> (i32, i32) {
    %c0_i32 = arith.constant 0 : i32
    %c0_i32_0 = arith.constant 0 : i32
    return %c0_i32, %arg0 : i32, i32
  }
  func.func @transform_3(%arg0: i32) -> (i32, i32) {
    %c0_i32 = arith.constant 0 : i32
    %c0_i32_0 = arith.constant 0 : i32
    return %c0_i32, %arg0 : i32, i32
  }
  func.func @transform_4(%arg0: i32) -> (i32, i32) {
    %c0_i32 = arith.constant 0 : i32
    %c0_i32_0 = arith.constant 0 : i32
    return %c0_i32, %arg0 : i32, i32
  }
}

module attributes {stable_mosaic.version = 11 : i64} {
  func.func @_matmul_affine_kernel(%arg0: i32, %arg1: memref<16x128xbf16, #tpu.memory_space<vmem>>, %arg2: memref<128x1024xbf16, #tpu.memory_space<vmem>>, %arg3: memref<1x1024xf32, #tpu.memory_space<vmem>>, %arg4: memref<1x1024xf32, #tpu.memory_space<vmem>>, %arg5: memref<16x1024xf32, #tpu.memory_space<vmem>>) attributes {dimension_semantics = [#tpu.dimension_semantics<parallel>], iteration_bounds = array<i64: 2>, scalar_prefetch = 0 : i64, scratch_operands = 0 : i64, tpu.core_type = #tpu.core_type<tc>, window_params = [{pipeline_mode = #tpu.pipeline_mode<synchronous>, transform_indices = @transform_0, window_bounds = array<i64: 16, 128>}, {transform_indices = @transform_1, window_bounds = array<i64: 128, 1024>}, {transform_indices = @transform_2, window_bounds = array<i64: 1, 1024>}, {transform_indices = @transform_3, window_bounds = array<i64: 1, 1024>}, {transform_indices = @transform_4, window_bounds = array<i64: 16, 1024>}]} {
    %c0 = arith.constant 0 : index
    %c0_0 = arith.constant 0 : index
    %0 = vector.load %arg1[%c0, %c0_0] : memref<16x128xbf16, #tpu.memory_space<vmem>>, vector<16x128xbf16>
    %c0_1 = arith.constant 0 : index
    %c0_2 = arith.constant 0 : index
    %1 = vector.load %arg2[%c0_1, %c0_2] : memref<128x1024xbf16, #tpu.memory_space<vmem>>, vector<128x1024xbf16>
    %cst = arith.constant dense<0.000000e+00> : vector<16x1024xf32>
    %2 = tpu.matmul %0, %1, %cst {dimension_numbers = #tpu.dot_dimension_numbers<[1], [0], [0], [1], [0, 0, 1, 1], [], []>} : vector<16x128xbf16>, vector<128x1024xbf16>, vector<16x1024xf32> -> vector<16x1024xf32>
    %c0_3 = arith.constant 0 : index
    %c0_4 = arith.constant 0 : index
    %3 = vector.load %arg3[%c0_3, %c0_4] : memref<1x1024xf32, #tpu.memory_space<vmem>>, vector<1x1024xf32>
    %4 = vector.broadcast %3 : vector<1x1024xf32> to vector<16x1024xf32>
    %5 = arith.mulf %2, %4 : vector<16x1024xf32>
    %c0_5 = arith.constant 0 : index
    %c0_6 = arith.constant 0 : index
    %6 = vector.load %arg4[%c0_5, %c0_6] : memref<1x1024xf32, #tpu.memory_space<vmem>>, vector<1x1024xf32>
    %7 = vector.broadcast %6 : vector<1x1024xf32> to vector<16x1024xf32>
    %8 = arith.addf %5, %7 : vector<16x1024xf32>
    %c0_7 = arith.constant 0 : index
    %c0_8 = arith.constant 0 : index
    %9 = vector.load %arg5[%c0_7, %c0_8] : memref<16x1024xf32, #tpu.memory_space<vmem>>, vector<16x1024xf32>
    tpu.vector_store %arg5[%c0_7, %c0_8], %8 {strides = array<i32>} : memref<16x1024xf32, #tpu.memory_space<vmem>>, vector<16x1024xf32>,
    return
  }
  func.func @transform_0(%arg0: i32) -> (i32, i32) {
    %c0_i32 = arith.constant 0 : i32
    %c0_i32_0 = arith.constant 0 : i32
    %c0_i32_1 = arith.constant 0 : i32
    return %c0_i32, %c0_i32_0 : i32, i32
  }
  func.func @transform_1(%arg0: i32) -> (i32, i32) {
    %c0_i32 = arith.constant 0 : i32
    %c0_i32_0 = arith.constant 0 : i32
    return %c0_i32, %arg0 : i32, i32
  }
  func.func @transform_2(%arg0: i32) -> (i32, i32) {
    %c0_i32 = arith.constant 0 : i32
    %c0_i32_0 = arith.constant 0 : i32
    return %c0_i32, %arg0 : i32, i32
  }
  func.func @transform_3(%arg0: i32) -> (i32, i32) {
    %c0_i32 = arith.constant 0 : i32
    %c0_i32_0 = arith.constant 0 : i32
    return %c0_i32, %arg0 : i32, i32
  }
  func.func @transform_4(%arg0: i32) -> (i32, i32) {
    %c0_i32 = arith.constant 0 : i32
    %c0_i32_0 = arith.constant 0 : i32
    return %c0_i32, %arg0 : i32, i32
  }
}

module attributes {stable_mosaic.version = 11 : i64} {
  func.func @_matmul_affine_kernel(%arg0: i32, %arg1: memref<16x256xbf16, #tpu.memory_space<vmem>>, %arg2: memref<256x512xbf16, #tpu.memory_space<vmem>>, %arg3: memref<1x512xf32, #tpu.memory_space<vmem>>, %arg4: memref<1x512xf32, #tpu.memory_space<vmem>>, %arg5: memref<16x512xf32, #tpu.memory_space<vmem>>) attributes {dimension_semantics = [#tpu.dimension_semantics<parallel>], iteration_bounds = array<i64: 1>, scalar_prefetch = 0 : i64, scratch_operands = 0 : i64, tpu.core_type = #tpu.core_type<tc>, window_params = [{pipeline_mode = #tpu.pipeline_mode<synchronous>, transform_indices = @transform_0, window_bounds = array<i64: 16, 256>}, {transform_indices = @transform_1, window_bounds = array<i64: 256, 512>}, {transform_indices = @transform_2, window_bounds = array<i64: 1, 512>}, {transform_indices = @transform_3, window_bounds = array<i64: 1, 512>}, {transform_indices = @transform_4, window_bounds = array<i64: 16, 512>}]} {
    %c0 = arith.constant 0 : index
    %c0_0 = arith.constant 0 : index
    %0 = vector.load %arg1[%c0, %c0_0] : memref<16x256xbf16, #tpu.memory_space<vmem>>, vector<16x256xbf16>
    %c0_1 = arith.constant 0 : index
    %c0_2 = arith.constant 0 : index
    %1 = vector.load %arg2[%c0_1, %c0_2] : memref<256x512xbf16, #tpu.memory_space<vmem>>, vector<256x512xbf16>
    %cst = arith.constant dense<0.000000e+00> : vector<16x512xf32>
    %2 = tpu.matmul %0, %1, %cst {dimension_numbers = #tpu.dot_dimension_numbers<[1], [0], [0], [1], [0, 0, 1, 1], [], []>} : vector<16x256xbf16>, vector<256x512xbf16>, vector<16x512xf32> -> vector<16x512xf32>
    %c0_3 = arith.constant 0 : index
    %c0_4 = arith.constant 0 : index
    %3 = vector.load %arg3[%c0_3, %c0_4] : memref<1x512xf32, #tpu.memory_space<vmem>>, vector<1x512xf32>
    %4 = vector.broadcast %3 : vector<1x512xf32> to vector<16x512xf32>
    %5 = arith.mulf %2, %4 : vector<16x512xf32>
    %c0_5 = arith.constant 0 : index
    %c0_6 = arith.constant 0 : index
    %6 = vector.load %arg4[%c0_5, %c0_6] : memref<1x512xf32, #tpu.memory_space<vmem>>, vector<1x512xf32>
    %7 = vector.broadcast %6 : vector<1x512xf32> to vector<16x512xf32>
    %8 = arith.addf %5, %7 : vector<16x512xf32>
    %c0_7 = arith.constant 0 : index
    %c0_8 = arith.constant 0 : index
    %9 = vector.load %arg5[%c0_7, %c0_8] : memref<16x512xf32, #tpu.memory_space<vmem>>, vector<16x512xf32>
    tpu.vector_store %arg5[%c0_7, %c0_8], %8 {strides = array<i32>} : memref<16x512xf32, #tpu.memory_space<vmem>>, vector<16x512xf32>,
    return
  }
  func.func @transform_0(%arg0: i32) -> (i32, i32) {
    %c0_i32 = arith.constant 0 : i32
    %c0_i32_0 = arith.constant 0 : i32
    %c0_i32_1 = arith.constant 0 : i32
    return %c0_i32, %c0_i32_0 : i32, i32
  }
  func.func @transform_1(%arg0: i32) -> (i32, i32) {
    %c0_i32 = arith.constant 0 : i32
    %c0_i32_0 = arith.constant 0 : i32
    return %c0_i32, %arg0 : i32, i32
  }
  func.func @transform_2(%arg0: i32) -> (i32, i32) {
    %c0_i32 = arith.constant 0 : i32
    %c0_i32_0 = arith.constant 0 : i32
    return %c0_i32, %arg0 : i32, i32
  }
  func.func @transform_3(%arg0: i32) -> (i32, i32) {
    %c0_i32 = arith.constant 0 : i32
    %c0_i32_0 = arith.constant 0 : i32
    return %c0_i32, %arg0 : i32, i32
  }
  func.func @transform_4(%arg0: i32) -> (i32, i32) {
    %c0_i32 = arith.constant 0 : i32
    %c0_i32_0 = arith.constant 0 : i32
    return %c0_i32, %arg0 : i32, i32
  }
}

module attributes {stable_mosaic.version = 11 : i64} {
  func.func @_matmul_affine_kernel(%arg0: i32, %arg1: memref<16x512xbf16, #tpu.memory_space<vmem>>, %arg2: memref<512x256xbf16, #tpu.memory_space<vmem>>, %arg3: memref<1x256xf32, #tpu.memory_space<vmem>>, %arg4: memref<1x256xf32, #tpu.memory_space<vmem>>, %arg5: memref<16x256xf32, #tpu.memory_space<vmem>>) attributes {dimension_semantics = [#tpu.dimension_semantics<parallel>], iteration_bounds = array<i64: 1>, scalar_prefetch = 0 : i64, scratch_operands = 0 : i64, tpu.core_type = #tpu.core_type<tc>, window_params = [{pipeline_mode = #tpu.pipeline_mode<synchronous>, transform_indices = @transform_0, window_bounds = array<i64: 16, 512>}, {transform_indices = @transform_1, window_bounds = array<i64: 512, 256>}, {transform_indices = @transform_2, window_bounds = array<i64: 1, 256>}, {transform_indices = @transform_3, window_bounds = array<i64: 1, 256>}, {transform_indices = @transform_4, window_bounds = array<i64: 16, 256>}]} {
    %c0 = arith.constant 0 : index
    %c0_0 = arith.constant 0 : index
    %0 = vector.load %arg1[%c0, %c0_0] : memref<16x512xbf16, #tpu.memory_space<vmem>>, vector<16x512xbf16>
    %c0_1 = arith.constant 0 : index
    %c0_2 = arith.constant 0 : index
    %1 = vector.load %arg2[%c0_1, %c0_2] : memref<512x256xbf16, #tpu.memory_space<vmem>>, vector<512x256xbf16>
    %cst = arith.constant dense<0.000000e+00> : vector<16x256xf32>
    %2 = tpu.matmul %0, %1, %cst {dimension_numbers = #tpu.dot_dimension_numbers<[1], [0], [0], [1], [0, 0, 1, 1], [], []>} : vector<16x512xbf16>, vector<512x256xbf16>, vector<16x256xf32> -> vector<16x256xf32>
    %c0_3 = arith.constant 0 : index
    %c0_4 = arith.constant 0 : index
    %3 = vector.load %arg3[%c0_3, %c0_4] : memref<1x256xf32, #tpu.memory_space<vmem>>, vector<1x256xf32>
    %4 = vector.broadcast %3 : vector<1x256xf32> to vector<16x256xf32>
    %5 = arith.mulf %2, %4 : vector<16x256xf32>
    %c0_5 = arith.constant 0 : index
    %c0_6 = arith.constant 0 : index
    %6 = vector.load %arg4[%c0_5, %c0_6] : memref<1x256xf32, #tpu.memory_space<vmem>>, vector<1x256xf32>
    %7 = vector.broadcast %6 : vector<1x256xf32> to vector<16x256xf32>
    %8 = arith.addf %5, %7 : vector<16x256xf32>
    %c0_7 = arith.constant 0 : index
    %c0_8 = arith.constant 0 : index
    %9 = vector.load %arg5[%c0_7, %c0_8] : memref<16x256xf32, #tpu.memory_space<vmem>>, vector<16x256xf32>
    tpu.vector_store %arg5[%c0_7, %c0_8], %8 {strides = array<i32>} : memref<16x256xf32, #tpu.memory_space<vmem>>, vector<16x256xf32>,
    return
  }
  func.func @transform_0(%arg0: i32) -> (i32, i32) {
    %c0_i32 = arith.constant 0 : i32
    %c0_i32_0 = arith.constant 0 : i32
    %c0_i32_1 = arith.constant 0 : i32
    return %c0_i32, %c0_i32_0 : i32, i32
  }
  func.func @transform_1(%arg0: i32) -> (i32, i32) {
    %c0_i32 = arith.constant 0 : i32
    %c0_i32_0 = arith.constant 0 : i32
    return %c0_i32, %arg0 : i32, i32
  }
  func.func @transform_2(%arg0: i32) -> (i32, i32) {
    %c0_i32 = arith.constant 0 : i32
    %c0_i32_0 = arith.constant 0 : i32
    return %c0_i32, %arg0 : i32, i32
  }
  func.func @transform_3(%arg0: i32) -> (i32, i32) {
    %c0_i32 = arith.constant 0 : i32
    %c0_i32_0 = arith.constant 0 : i32
    return %c0_i32, %arg0 : i32, i32
  }
  func.func @transform_4(%arg0: i32) -> (i32, i32) {
    %c0_i32 = arith.constant 0 : i32
    %c0_i32_0 = arith.constant 0 : i32
    return %c0_i32, %arg0 : i32, i32
  }
}

module attributes {stable_mosaic.version = 11 : i64} {
  func.func @_attn_score_kernel(%arg0: i32, %arg1: memref<2x32x128xbf16, #tpu.memory_space<vmem>>, %arg2: memref<2x128x32xbf16, #tpu.memory_space<vmem>>, %arg3: memref<2x32x32xf32, #tpu.memory_space<vmem>>) attributes {dimension_semantics = [#tpu.dimension_semantics<parallel>], iteration_bounds = array<i64: 1>, scalar_prefetch = 0 : i64, scratch_operands = 0 : i64, tpu.core_type = #tpu.core_type<tc>, window_params = [{pipeline_mode = #tpu.pipeline_mode<synchronous>, transform_indices = @transform_0, window_bounds = array<i64: 2, 32, 128>}, {pipeline_mode = #tpu.pipeline_mode<synchronous>, transform_indices = @transform_1, window_bounds = array<i64: 2, 128, 32>}, {pipeline_mode = #tpu.pipeline_mode<synchronous>, transform_indices = @transform_2, window_bounds = array<i64: 2, 32, 32>}]} {
    %c0 = arith.constant 0 : index
    %c0_0 = arith.constant 0 : index
    %c0_1 = arith.constant 0 : index
    %0 = vector.load %arg1[%c0, %c0_0, %c0_1] : memref<2x32x128xbf16, #tpu.memory_space<vmem>>, vector<2x32x128xbf16>
    %c0_2 = arith.constant 0 : index
    %c0_3 = arith.constant 0 : index
    %c0_4 = arith.constant 0 : index
    %1 = vector.load %arg2[%c0_2, %c0_3, %c0_4] : memref<2x128x32xbf16, #tpu.memory_space<vmem>>, vector<2x128x32xbf16>
    "tpu.trace_start"() <{level = 10 : i32, message = "bqd,bdk->bqk"}> : () -> ()
    %cst = arith.constant dense<0.000000e+00> : vector<2x32x32xf32>
    %2 = tpu.matmul %0, %1, %cst {dimension_numbers = #tpu.dot_dimension_numbers<[2], [1], [1], [2], [0, 0, 0, 1, 1, 2], [0], [0]>} : vector<2x32x128xbf16>, vector<2x128x32xbf16>, vector<2x32x32xf32> -> vector<2x32x32xf32>
    "tpu.trace_stop"() : () -> ()
    %cst_5 = arith.constant 0.0883883461 : f32
    %3 = vector.broadcast %cst_5 : f32 to vector<2x32x32xf32>
    %4 = arith.mulf %2, %3 : vector<2x32x32xf32>
    %c0_6 = arith.constant 0 : index
    %c0_7 = arith.constant 0 : index
    %c0_8 = arith.constant 0 : index
    %5 = vector.load %arg3[%c0_6, %c0_7, %c0_8] : memref<2x32x32xf32, #tpu.memory_space<vmem>>, vector<2x32x32xf32>
    tpu.vector_store %arg3[%c0_6, %c0_7, %c0_8], %4 {strides = array<i32>} : memref<2x32x32xf32, #tpu.memory_space<vmem>>, vector<2x32x32xf32>,
    return
  }
  func.func @transform_0(%arg0: i32) -> (i32, i32, i32) {
    %c0_i32 = arith.constant 0 : i32
    %c0_i32_0 = arith.constant 0 : i32
    %c0_i32_1 = arith.constant 0 : i32
    %c0_i32_2 = arith.constant 0 : i32
    return %c0_i32, %c0_i32_0, %c0_i32_1 : i32, i32, i32
  }
  func.func @transform_1(%arg0: i32) -> (i32, i32, i32) {
    %c0_i32 = arith.constant 0 : i32
    %c0_i32_0 = arith.constant 0 : i32
    %c0_i32_1 = arith.constant 0 : i32
    %c0_i32_2 = arith.constant 0 : i32
    return %c0_i32, %c0_i32_0, %c0_i32_1 : i32, i32, i32
  }
  func.func @transform_2(%arg0: i32) -> (i32, i32, i32) {
    %c0_i32 = arith.constant 0 : i32
    %c0_i32_0 = arith.constant 0 : i32
    %c0_i32_1 = arith.constant 0 : i32
    %c0_i32_2 = arith.constant 0 : i32
    return %c0_i32, %c0_i32_0, %c0_i32_1 : i32, i32, i32
  }
}

module attributes {stable_mosaic.version = 11 : i64} {
  func.func @_matmul_affine_kernel(%arg0: i32, %arg1: memref<512x25xbf16, #tpu.memory_space<vmem>>, %arg2: memref<25x32xbf16, #tpu.memory_space<vmem>>, %arg3: memref<1x32xf32, #tpu.memory_space<vmem>>, %arg4: memref<1x32xf32, #tpu.memory_space<vmem>>, %arg5: memref<512x32xf32, #tpu.memory_space<vmem>>) attributes {dimension_semantics = [#tpu.dimension_semantics<parallel>], iteration_bounds = array<i64: 1>, scalar_prefetch = 0 : i64, scratch_operands = 0 : i64, tpu.core_type = #tpu.core_type<tc>, window_params = [{pipeline_mode = #tpu.pipeline_mode<synchronous>, transform_indices = @transform_0, window_bounds = array<i64: 512, 25>}, {transform_indices = @transform_1, window_bounds = array<i64: 25, 32>}, {transform_indices = @transform_2, window_bounds = array<i64: 1, 32>}, {transform_indices = @transform_3, window_bounds = array<i64: 1, 32>}, {transform_indices = @transform_4, window_bounds = array<i64: 512, 32>}]} {
    %c0 = arith.constant 0 : index
    %c0_0 = arith.constant 0 : index
    %0 = vector.load %arg1[%c0, %c0_0] : memref<512x25xbf16, #tpu.memory_space<vmem>>, vector<512x25xbf16>
    %c0_1 = arith.constant 0 : index
    %c0_2 = arith.constant 0 : index
    %1 = vector.load %arg2[%c0_1, %c0_2] : memref<25x32xbf16, #tpu.memory_space<vmem>>, vector<25x32xbf16>
    %cst = arith.constant dense<0.000000e+00> : vector<512x32xf32>
    %2 = tpu.matmul %0, %1, %cst {dimension_numbers = #tpu.dot_dimension_numbers<[1], [0], [0], [1], [0, 0, 1, 1], [], []>} : vector<512x25xbf16>, vector<25x32xbf16>, vector<512x32xf32> -> vector<512x32xf32>
    %c0_3 = arith.constant 0 : index
    %c0_4 = arith.constant 0 : index
    %3 = vector.load %arg3[%c0_3, %c0_4] : memref<1x32xf32, #tpu.memory_space<vmem>>, vector<1x32xf32>
    %4 = vector.broadcast %3 : vector<1x32xf32> to vector<512x32xf32>
    %5 = arith.mulf %2, %4 : vector<512x32xf32>
    %c0_5 = arith.constant 0 : index
    %c0_6 = arith.constant 0 : index
    %6 = vector.load %arg4[%c0_5, %c0_6] : memref<1x32xf32, #tpu.memory_space<vmem>>, vector<1x32xf32>
    %7 = vector.broadcast %6 : vector<1x32xf32> to vector<512x32xf32>
    %8 = arith.addf %5, %7 : vector<512x32xf32>
    %cst_7 = arith.constant 0.000000e+00 : f32
    %9 = vector.broadcast %cst_7 : f32 to vector<512x32xf32>
    %10 = arith.maximumf %8, %9 : vector<512x32xf32>
    %c0_8 = arith.constant 0 : index
    %c0_9 = arith.constant 0 : index
    %11 = vector.load %arg5[%c0_8, %c0_9] : memref<512x32xf32, #tpu.memory_space<vmem>>, vector<512x32xf32>
    tpu.vector_store %arg5[%c0_8, %c0_9], %10 {strides = array<i32>} : memref<512x32xf32, #tpu.memory_space<vmem>>, vector<512x32xf32>,
    return
  }
  func.func @transform_0(%arg0: i32) -> (i32, i32) {
    %c0_i32 = arith.constant 0 : i32
    %c0_i32_0 = arith.constant 0 : i32
    %c0_i32_1 = arith.constant 0 : i32
    return %c0_i32, %c0_i32_0 : i32, i32
  }
  func.func @transform_1(%arg0: i32) -> (i32, i32) {
    %c0_i32 = arith.constant 0 : i32
    %c0_i32_0 = arith.constant 0 : i32
    return %c0_i32, %arg0 : i32, i32
  }
  func.func @transform_2(%arg0: i32) -> (i32, i32) {
    %c0_i32 = arith.constant 0 : i32
    %c0_i32_0 = arith.constant 0 : i32
    return %c0_i32, %arg0 : i32, i32
  }
  func.func @transform_3(%arg0: i32) -> (i32, i32) {
    %c0_i32 = arith.constant 0 : i32
    %c0_i32_0 = arith.constant 0 : i32
    return %c0_i32, %arg0 : i32, i32
  }
  func.func @transform_4(%arg0: i32) -> (i32, i32) {
    %c0_i32 = arith.constant 0 : i32
    %c0_i32_0 = arith.constant 0 : i32
    return %c0_i32, %arg0 : i32, i32
  }
}

module attributes {stable_mosaic.version = 11 : i64} {
  func.func @_matmul_affine_kernel(%arg0: i32, %arg1: memref<120x800xbf16, #tpu.memory_space<vmem>>, %arg2: memref<800x64xbf16, #tpu.memory_space<vmem>>, %arg3: memref<1x64xf32, #tpu.memory_space<vmem>>, %arg4: memref<1x64xf32, #tpu.memory_space<vmem>>, %arg5: memref<120x64xf32, #tpu.memory_space<vmem>>) attributes {dimension_semantics = [#tpu.dimension_semantics<parallel>], iteration_bounds = array<i64: 1>, scalar_prefetch = 0 : i64, scratch_operands = 0 : i64, tpu.core_type = #tpu.core_type<tc>, window_params = [{pipeline_mode = #tpu.pipeline_mode<synchronous>, transform_indices = @transform_0, window_bounds = array<i64: 120, 800>}, {transform_indices = @transform_1, window_bounds = array<i64: 800, 64>}, {transform_indices = @transform_2, window_bounds = array<i64: 1, 64>}, {transform_indices = @transform_3, window_bounds = array<i64: 1, 64>}, {transform_indices = @transform_4, window_bounds = array<i64: 120, 64>}]} {
    %c0 = arith.constant 0 : index
    %c0_0 = arith.constant 0 : index
    %0 = vector.load %arg1[%c0, %c0_0] : memref<120x800xbf16, #tpu.memory_space<vmem>>, vector<120x800xbf16>
    %c0_1 = arith.constant 0 : index
    %c0_2 = arith.constant 0 : index
    %1 = vector.load %arg2[%c0_1, %c0_2] : memref<800x64xbf16, #tpu.memory_space<vmem>>, vector<800x64xbf16>
    %cst = arith.constant dense<0.000000e+00> : vector<120x64xf32>
    %2 = tpu.matmul %0, %1, %cst {dimension_numbers = #tpu.dot_dimension_numbers<[1], [0], [0], [1], [0, 0, 1, 1], [], []>} : vector<120x800xbf16>, vector<800x64xbf16>, vector<120x64xf32> -> vector<120x64xf32>
    %c0_3 = arith.constant 0 : index
    %c0_4 = arith.constant 0 : index
    %3 = vector.load %arg3[%c0_3, %c0_4] : memref<1x64xf32, #tpu.memory_space<vmem>>, vector<1x64xf32>
    %4 = vector.broadcast %3 : vector<1x64xf32> to vector<120x64xf32>
    %5 = arith.mulf %2, %4 : vector<120x64xf32>
    %c0_5 = arith.constant 0 : index
    %c0_6 = arith.constant 0 : index
    %6 = vector.load %arg4[%c0_5, %c0_6] : memref<1x64xf32, #tpu.memory_space<vmem>>, vector<1x64xf32>
    %7 = vector.broadcast %6 : vector<1x64xf32> to vector<120x64xf32>
    %8 = arith.addf %5, %7 : vector<120x64xf32>
    %cst_7 = arith.constant 0.000000e+00 : f32
    %9 = vector.broadcast %cst_7 : f32 to vector<120x64xf32>
    %10 = arith.maximumf %8, %9 : vector<120x64xf32>
    %c0_8 = arith.constant 0 : index
    %c0_9 = arith.constant 0 : index
    %11 = vector.load %arg5[%c0_8, %c0_9] : memref<120x64xf32, #tpu.memory_space<vmem>>, vector<120x64xf32>
    tpu.vector_store %arg5[%c0_8, %c0_9], %10 {strides = array<i32>} : memref<120x64xf32, #tpu.memory_space<vmem>>, vector<120x64xf32>,
    return
  }
  func.func @transform_0(%arg0: i32) -> (i32, i32) {
    %c0_i32 = arith.constant 0 : i32
    %c0_i32_0 = arith.constant 0 : i32
    %c0_i32_1 = arith.constant 0 : i32
    return %c0_i32, %c0_i32_0 : i32, i32
  }
  func.func @transform_1(%arg0: i32) -> (i32, i32) {
    %c0_i32 = arith.constant 0 : i32
    %c0_i32_0 = arith.constant 0 : i32
    return %c0_i32, %arg0 : i32, i32
  }
  func.func @transform_2(%arg0: i32) -> (i32, i32) {
    %c0_i32 = arith.constant 0 : i32
    %c0_i32_0 = arith.constant 0 : i32
    return %c0_i32, %arg0 : i32, i32
  }
  func.func @transform_3(%arg0: i32) -> (i32, i32) {
    %c0_i32 = arith.constant 0 : i32
    %c0_i32_0 = arith.constant 0 : i32
    return %c0_i32, %arg0 : i32, i32
  }
  func.func @transform_4(%arg0: i32) -> (i32, i32) {
    %c0_i32 = arith.constant 0 : i32
    %c0_i32_0 = arith.constant 0 : i32
    return %c0_i32, %arg0 : i32, i32
  }
}

module attributes {stable_mosaic.version = 11 : i64} {
  func.func @_mlp_head_kernel(%arg0: i32, %arg1: memref<8x64xf32, #tpu.memory_space<vmem>>, %arg2: memref<64x256xf32, #tpu.memory_space<vmem>>, %arg3: memref<1x256xf32, #tpu.memory_space<vmem>>, %arg4: memref<256x128xf32, #tpu.memory_space<vmem>>, %arg5: memref<1x128xf32, #tpu.memory_space<vmem>>, %arg6: memref<1x128xf32, #tpu.memory_space<vmem>>, %arg7: memref<1x1xf32, #tpu.memory_space<vmem>>, %arg8: memref<8x1xf32, #tpu.memory_space<vmem>>) attributes {dimension_semantics = [#tpu.dimension_semantics<parallel>], iteration_bounds = array<i64: 1>, scalar_prefetch = 0 : i64, scratch_operands = 0 : i64, tpu.core_type = #tpu.core_type<tc>, window_params = [{pipeline_mode = #tpu.pipeline_mode<synchronous>, transform_indices = @transform_0, window_bounds = array<i64: 8, 64>}, {pipeline_mode = #tpu.pipeline_mode<synchronous>, transform_indices = @transform_1, window_bounds = array<i64: 64, 256>}, {pipeline_mode = #tpu.pipeline_mode<synchronous>, transform_indices = @transform_2, window_bounds = array<i64: 1, 256>}, {pipeline_mode = #tpu.pipeline_mode<synchronous>, transform_indices = @transform_3, window_bounds = array<i64: 256, 128>}, {pipeline_mode = #tpu.pipeline_mode<synchronous>, transform_indices = @transform_4, window_bounds = array<i64: 1, 128>}, {pipeline_mode = #tpu.pipeline_mode<synchronous>, transform_indices = @transform_5, window_bounds = array<i64: 1, 128>}, {pipeline_mode = #tpu.pipeline_mode<synchronous>, transform_indices = @transform_6, window_bounds = array<i64: 1, 1>}, {pipeline_mode = #tpu.pipeline_mode<synchronous>, transform_indices = @transform_7, window_bounds = array<i64: 8, 1>}]} {
    %c0 = arith.constant 0 : index
    %c0_0 = arith.constant 0 : index
    %0 = vector.load %arg1[%c0, %c0_0] : memref<8x64xf32, #tpu.memory_space<vmem>>, vector<8x64xf32>
    %c0_1 = arith.constant 0 : index
    %c0_2 = arith.constant 0 : index
    %1 = vector.load %arg2[%c0_1, %c0_2] : memref<64x256xf32, #tpu.memory_space<vmem>>, vector<64x256xf32>
    %cst = arith.constant dense<0.000000e+00> : vector<8x256xf32>
    %2 = tpu.matmul %0, %1, %cst {dimension_numbers = #tpu.dot_dimension_numbers<[1], [0], [0], [1], [0, 0, 1, 1], [], []>} : vector<8x64xf32>, vector<64x256xf32>, vector<8x256xf32> -> vector<8x256xf32>
    %c0_3 = arith.constant 0 : index
    %c0_4 = arith.constant 0 : index
    %3 = vector.load %arg3[%c0_3, %c0_4] : memref<1x256xf32, #tpu.memory_space<vmem>>, vector<1x256xf32>
    %4 = vector.broadcast %3 : vector<1x256xf32> to vector<8x256xf32>
    %5 = arith.addf %2, %4 : vector<8x256xf32>
    %cst_5 = arith.constant 0.000000e+00 : f32
    %6 = vector.broadcast %cst_5 : f32 to vector<8x256xf32>
    %7 = arith.maximumf %5, %6 : vector<8x256xf32>
    %c0_6 = arith.constant 0 : index
    %c0_7 = arith.constant 0 : index
    %8 = vector.load %arg4[%c0_6, %c0_7] : memref<256x128xf32, #tpu.memory_space<vmem>>, vector<256x128xf32>
    %cst_8 = arith.constant dense<0.000000e+00> : vector<8x128xf32>
    %9 = tpu.matmul %7, %8, %cst_8 {dimension_numbers = #tpu.dot_dimension_numbers<[1], [0], [0], [1], [0, 0, 1, 1], [], []>} : vector<8x256xf32>, vector<256x128xf32>, vector<8x128xf32> -> vector<8x128xf32>
    %c0_9 = arith.constant 0 : index
    %c0_10 = arith.constant 0 : index
    %10 = vector.load %arg5[%c0_9, %c0_10] : memref<1x128xf32, #tpu.memory_space<vmem>>, vector<1x128xf32>
    %11 = vector.broadcast %10 : vector<1x128xf32> to vector<8x128xf32>
    %12 = arith.addf %9, %11 : vector<8x128xf32>
    %cst_11 = arith.constant 0.000000e+00 : f32
    %13 = vector.broadcast %cst_11 : f32 to vector<8x128xf32>
    %14 = arith.maximumf %12, %13 : vector<8x128xf32>
    %c0_12 = arith.constant 0 : index
    %c0_13 = arith.constant 0 : index
    %15 = vector.load %arg6[%c0_12, %c0_13] : memref<1x128xf32, #tpu.memory_space<vmem>>, vector<1x128xf32>
    %16 = vector.broadcast %15 : vector<1x128xf32> to vector<8x128xf32>
    %17 = arith.mulf %14, %16 : vector<8x128xf32>
    %cst_14 = arith.constant dense<0.000000e+00> : vector<8xf32>
    %18 = vector.multi_reduction <add>, %17, %cst_14 [1] : vector<8x128xf32> to vector<8xf32>
    %19 = vector.shape_cast %18 : vector<8xf32> to vector<8x1xf32>
    %c0_15 = arith.constant 0 : index
    %c0_16 = arith.constant 0 : index
    %20 = vector.load %arg7[%c0_15, %c0_16] : memref<1x1xf32, #tpu.memory_space<vmem>>, vector<1x1xf32>
    %21 = vector.broadcast %20 : vector<1x1xf32> to vector<8x1xf32>
    %22 = arith.addf %19, %21 : vector<8x1xf32>
    %c0_17 = arith.constant 0 : index
    %c0_18 = arith.constant 0 : index
    %23 = vector.load %arg8[%c0_17, %c0_18] : memref<8x1xf32, #tpu.memory_space<vmem>>, vector<8x1xf32>
    tpu.vector_store %arg8[%c0_17, %c0_18], %22 {strides = array<i32>} : memref<8x1xf32, #tpu.memory_space<vmem>>, vector<8x1xf32>,
    return
  }
  func.func @transform_0(%arg0: i32) -> (i32, i32) {
    %c0_i32 = arith.constant 0 : i32
    %c0_i32_0 = arith.constant 0 : i32
    %c0_i32_1 = arith.constant 0 : i32
    return %c0_i32, %c0_i32_0 : i32, i32
  }
  func.func @transform_1(%arg0: i32) -> (i32, i32) {
    %c0_i32 = arith.constant 0 : i32
    %c0_i32_0 = arith.constant 0 : i32
    %c0_i32_1 = arith.constant 0 : i32
    return %c0_i32, %c0_i32_0 : i32, i32
  }
  func.func @transform_2(%arg0: i32) -> (i32, i32) {
    %c0_i32 = arith.constant 0 : i32
    %c0_i32_0 = arith.constant 0 : i32
    %c0_i32_1 = arith.constant 0 : i32
    return %c0_i32, %c0_i32_0 : i32, i32
  }
  func.func @transform_3(%arg0: i32) -> (i32, i32) {
    %c0_i32 = arith.constant 0 : i32
    %c0_i32_0 = arith.constant 0 : i32
    %c0_i32_1 = arith.constant 0 : i32
    return %c0_i32, %c0_i32_0 : i32, i32
  }
  func.func @transform_4(%arg0: i32) -> (i32, i32) {
    %c0_i32 = arith.constant 0 : i32
    %c0_i32_0 = arith.constant 0 : i32
    %c0_i32_1 = arith.constant 0 : i32
    return %c0_i32, %c0_i32_0 : i32, i32
  }
  func.func @transform_5(%arg0: i32) -> (i32, i32) {
    %c0_i32 = arith.constant 0 : i32
    %c0_i32_0 = arith.constant 0 : i32
    %c0_i32_1 = arith.constant 0 : i32
    return %c0_i32, %c0_i32_0 : i32, i32
  }
  func.func @transform_6(%arg0: i32) -> (i32, i32) {
    %c0_i32 = arith.constant 0 : i32
    %c0_i32_0 = arith.constant 0 : i32
    %c0_i32_1 = arith.constant 0 : i32
    return %c0_i32, %c0_i32_0 : i32, i32
  }
  func.func @transform_7(%arg0: i32) -> (i32, i32) {
    %c0_i32 = arith.constant 0 : i32
    %c0_i32_0 = arith.constant 0 : i32
    %c0_i32_1 = arith.constant 0 : i32
    return %c0_i32, %c0_i32_0 : i32, i32
  }
}

module attributes {stable_mosaic.version = 11 : i64} {
  func.func @_matmul_affine_kernel(%arg0: i32, %arg1: memref<2x128xbf16, #tpu.memory_space<vmem>>, %arg2: memref<128x1000xbf16, #tpu.memory_space<vmem>>, %arg3: memref<1x1000xf32, #tpu.memory_space<vmem>>, %arg4: memref<1x1000xf32, #tpu.memory_space<vmem>>, %arg5: memref<2x1000xf32, #tpu.memory_space<vmem>>) attributes {dimension_semantics = [#tpu.dimension_semantics<parallel>], iteration_bounds = array<i64: 1>, scalar_prefetch = 0 : i64, scratch_operands = 0 : i64, tpu.core_type = #tpu.core_type<tc>, window_params = [{pipeline_mode = #tpu.pipeline_mode<synchronous>, transform_indices = @transform_0, window_bounds = array<i64: 2, 128>}, {transform_indices = @transform_1, window_bounds = array<i64: 128, 1000>}, {transform_indices = @transform_2, window_bounds = array<i64: 1, 1000>}, {transform_indices = @transform_3, window_bounds = array<i64: 1, 1000>}, {transform_indices = @transform_4, window_bounds = array<i64: 2, 1000>}]} {
    %c0 = arith.constant 0 : index
    %c0_0 = arith.constant 0 : index
    %0 = vector.load %arg1[%c0, %c0_0] : memref<2x128xbf16, #tpu.memory_space<vmem>>, vector<2x128xbf16>
    %c0_1 = arith.constant 0 : index
    %c0_2 = arith.constant 0 : index
    %1 = vector.load %arg2[%c0_1, %c0_2] : memref<128x1000xbf16, #tpu.memory_space<vmem>>, vector<128x1000xbf16>
    %cst = arith.constant dense<0.000000e+00> : vector<2x1000xf32>
    %2 = tpu.matmul %0, %1, %cst {dimension_numbers = #tpu.dot_dimension_numbers<[1], [0], [0], [1], [0, 0, 1, 1], [], []>} : vector<2x128xbf16>, vector<128x1000xbf16>, vector<2x1000xf32> -> vector<2x1000xf32>
    %c0_3 = arith.constant 0 : index
    %c0_4 = arith.constant 0 : index
    %3 = vector.load %arg3[%c0_3, %c0_4] : memref<1x1000xf32, #tpu.memory_space<vmem>>, vector<1x1000xf32>
    %4 = vector.broadcast %3 : vector<1x1000xf32> to vector<2x1000xf32>
    %5 = arith.mulf %2, %4 : vector<2x1000xf32>
    %c0_5 = arith.constant 0 : index
    %c0_6 = arith.constant 0 : index
    %6 = vector.load %arg4[%c0_5, %c0_6] : memref<1x1000xf32, #tpu.memory_space<vmem>>, vector<1x1000xf32>
    %7 = vector.broadcast %6 : vector<1x1000xf32> to vector<2x1000xf32>
    %8 = arith.addf %5, %7 : vector<2x1000xf32>
    %c0_7 = arith.constant 0 : index
    %c0_8 = arith.constant 0 : index
    %9 = vector.load %arg5[%c0_7, %c0_8] : memref<2x1000xf32, #tpu.memory_space<vmem>>, vector<2x1000xf32>
    tpu.vector_store %arg5[%c0_7, %c0_8], %8 {strides = array<i32>} : memref<2x1000xf32, #tpu.memory_space<vmem>>, vector<2x1000xf32>,
    return
  }
  func.func @transform_0(%arg0: i32) -> (i32, i32) {
    %c0_i32 = arith.constant 0 : i32
    %c0_i32_0 = arith.constant 0 : i32
    %c0_i32_1 = arith.constant 0 : i32
    return %c0_i32, %c0_i32_0 : i32, i32
  }
  func.func @transform_1(%arg0: i32) -> (i32, i32) {
    %c0_i32 = arith.constant 0 : i32
    %c0_i32_0 = arith.constant 0 : i32
    return %c0_i32, %arg0 : i32, i32
  }
  func.func @transform_2(%arg0: i32) -> (i32, i32) {
    %c0_i32 = arith.constant 0 : i32
    %c0_i32_0 = arith.constant 0 : i32
    return %c0_i32, %arg0 : i32, i32
  }
  func.func @transform_3(%arg0: i32) -> (i32, i32) {
    %c0_i32 = arith.constant 0 : i32
    %c0_i32_0 = arith.constant 0 : i32
    return %c0_i32, %arg0 : i32, i32
  }
  func.func @transform_4(%arg0: i32) -> (i32, i32) {
    %c0_i32 = arith.constant 0 : i32
    %c0_i32_0 = arith.constant 0 : i32
    return %c0_i32, %arg0 : i32, i32
  }
}

module attributes {stable_mosaic.version = 11 : i64} {
  func.func @_matmul_affine_kernel(%arg0: i32, %arg1: memref<14x32xbf16, #tpu.memory_space<vmem>>, %arg2: memref<32x2000xbf16, #tpu.memory_space<vmem>>, %arg3: memref<1x2000xf32, #tpu.memory_space<vmem>>, %arg4: memref<1x2000xf32, #tpu.memory_space<vmem>>, %arg5: memref<14x2000xf32, #tpu.memory_space<vmem>>) attributes {dimension_semantics = [#tpu.dimension_semantics<parallel>], iteration_bounds = array<i64: 1>, scalar_prefetch = 0 : i64, scratch_operands = 0 : i64, tpu.core_type = #tpu.core_type<tc>, window_params = [{pipeline_mode = #tpu.pipeline_mode<synchronous>, transform_indices = @transform_0, window_bounds = array<i64: 14, 32>}, {transform_indices = @transform_1, window_bounds = array<i64: 32, 2000>}, {transform_indices = @transform_2, window_bounds = array<i64: 1, 2000>}, {transform_indices = @transform_3, window_bounds = array<i64: 1, 2000>}, {transform_indices = @transform_4, window_bounds = array<i64: 14, 2000>}]} {
    %c0 = arith.constant 0 : index
    %c0_0 = arith.constant 0 : index
    %0 = vector.load %arg1[%c0, %c0_0] : memref<14x32xbf16, #tpu.memory_space<vmem>>, vector<14x32xbf16>
    %c0_1 = arith.constant 0 : index
    %c0_2 = arith.constant 0 : index
    %1 = vector.load %arg2[%c0_1, %c0_2] : memref<32x2000xbf16, #tpu.memory_space<vmem>>, vector<32x2000xbf16>
    %cst = arith.constant dense<0.000000e+00> : vector<14x2000xf32>
    %2 = tpu.matmul %0, %1, %cst {dimension_numbers = #tpu.dot_dimension_numbers<[1], [0], [0], [1], [0, 0, 1, 1], [], []>} : vector<14x32xbf16>, vector<32x2000xbf16>, vector<14x2000xf32> -> vector<14x2000xf32>
    %c0_3 = arith.constant 0 : index
    %c0_4 = arith.constant 0 : index
    %3 = vector.load %arg3[%c0_3, %c0_4] : memref<1x2000xf32, #tpu.memory_space<vmem>>, vector<1x2000xf32>
    %4 = vector.broadcast %3 : vector<1x2000xf32> to vector<14x2000xf32>
    %5 = arith.mulf %2, %4 : vector<14x2000xf32>
    %c0_5 = arith.constant 0 : index
    %c0_6 = arith.constant 0 : index
    %6 = vector.load %arg4[%c0_5, %c0_6] : memref<1x2000xf32, #tpu.memory_space<vmem>>, vector<1x2000xf32>
    %7 = vector.broadcast %6 : vector<1x2000xf32> to vector<14x2000xf32>
    %8 = arith.addf %5, %7 : vector<14x2000xf32>
    %c0_7 = arith.constant 0 : index
    %c0_8 = arith.constant 0 : index
    %9 = vector.load %arg5[%c0_7, %c0_8] : memref<14x2000xf32, #tpu.memory_space<vmem>>, vector<14x2000xf32>
    tpu.vector_store %arg5[%c0_7, %c0_8], %8 {strides = array<i32>} : memref<14x2000xf32, #tpu.memory_space<vmem>>, vector<14x2000xf32>,
    return
  }
  func.func @transform_0(%arg0: i32) -> (i32, i32) {
    %c0_i32 = arith.constant 0 : i32
    %c0_i32_0 = arith.constant 0 : i32
    %c0_i32_1 = arith.constant 0 : i32
    return %c0_i32, %c0_i32_0 : i32, i32
  }
  func.func @transform_1(%arg0: i32) -> (i32, i32) {
    %c0_i32 = arith.constant 0 : i32
    %c0_i32_0 = arith.constant 0 : i32
    return %c0_i32, %arg0 : i32, i32
  }
  func.func @transform_2(%arg0: i32) -> (i32, i32) {
    %c0_i32 = arith.constant 0 : i32
    %c0_i32_0 = arith.constant 0 : i32
    return %c0_i32, %arg0 : i32, i32
  }
  func.func @transform_3(%arg0: i32) -> (i32, i32) {
    %c0_i32 = arith.constant 0 : i32
    %c0_i32_0 = arith.constant 0 : i32
    return %c0_i32, %arg0 : i32, i32
  }
  func.func @transform_4(%arg0: i32) -> (i32, i32) {
    %c0_i32 = arith.constant 0 : i32
    %c0_i32_0 = arith.constant 0 : i32
    return %c0_i32, %arg0 : i32, i32
  }
}

module attributes {stable_mosaic.version = 11 : i64} {
  func.func @_matmul_affine_kernel(%arg0: i32, %arg1: memref<14x500xbf16, #tpu.memory_space<vmem>>, %arg2: memref<500x13xbf16, #tpu.memory_space<vmem>>, %arg3: memref<1x13xf32, #tpu.memory_space<vmem>>, %arg4: memref<1x13xf32, #tpu.memory_space<vmem>>, %arg5: memref<14x13xf32, #tpu.memory_space<vmem>>) attributes {dimension_semantics = [#tpu.dimension_semantics<parallel>], iteration_bounds = array<i64: 1>, scalar_prefetch = 0 : i64, scratch_operands = 0 : i64, tpu.core_type = #tpu.core_type<tc>, window_params = [{pipeline_mode = #tpu.pipeline_mode<synchronous>, transform_indices = @transform_0, window_bounds = array<i64: 14, 500>}, {transform_indices = @transform_1, window_bounds = array<i64: 500, 13>}, {transform_indices = @transform_2, window_bounds = array<i64: 1, 13>}, {transform_indices = @transform_3, window_bounds = array<i64: 1, 13>}, {transform_indices = @transform_4, window_bounds = array<i64: 14, 13>}]} {
    %c0 = arith.constant 0 : index
    %c0_0 = arith.constant 0 : index
    %0 = vector.load %arg1[%c0, %c0_0] : memref<14x500xbf16, #tpu.memory_space<vmem>>, vector<14x500xbf16>
    %c0_1 = arith.constant 0 : index
    %c0_2 = arith.constant 0 : index
    %1 = vector.load %arg2[%c0_1, %c0_2] : memref<500x13xbf16, #tpu.memory_space<vmem>>, vector<500x13xbf16>
    %cst = arith.constant dense<0.000000e+00> : vector<14x13xf32>
    %2 = tpu.matmul %0, %1, %cst {dimension_numbers = #tpu.dot_dimension_numbers<[1], [0], [0], [1], [0, 0, 1, 1], [], []>} : vector<14x500xbf16>, vector<500x13xbf16>, vector<14x13xf32> -> vector<14x13xf32>
    %c0_3 = arith.constant 0 : index
    %c0_4 = arith.constant 0 : index
    %3 = vector.load %arg3[%c0_3, %c0_4] : memref<1x13xf32, #tpu.memory_space<vmem>>, vector<1x13xf32>
    %4 = vector.broadcast %3 : vector<1x13xf32> to vector<14x13xf32>
    %5 = arith.mulf %2, %4 : vector<14x13xf32>
    %c0_5 = arith.constant 0 : index
    %c0_6 = arith.constant 0 : index
    %6 = vector.load %arg4[%c0_5, %c0_6] : memref<1x13xf32, #tpu.memory_space<vmem>>, vector<1x13xf32>
    %7 = vector.broadcast %6 : vector<1x13xf32> to vector<14x13xf32>
    %8 = arith.addf %5, %7 : vector<14x13xf32>
    %c0_7 = arith.constant 0 : index
    %c0_8 = arith.constant 0 : index
    %9 = vector.load %arg5[%c0_7, %c0_8] : memref<14x13xf32, #tpu.memory_space<vmem>>, vector<14x13xf32>
    tpu.vector_store %arg5[%c0_7, %c0_8], %8 {strides = array<i32>} : memref<14x13xf32, #tpu.memory_space<vmem>>, vector<14x13xf32>,
    return
  }
  func.func @transform_0(%arg0: i32) -> (i32, i32) {
    %c0_i32 = arith.constant 0 : i32
    %c0_i32_0 = arith.constant 0 : i32
    %c0_i32_1 = arith.constant 0 : i32
    return %c0_i32, %c0_i32_0 : i32, i32
  }
  func.func @transform_1(%arg0: i32) -> (i32, i32) {
    %c0_i32 = arith.constant 0 : i32
    %c0_i32_0 = arith.constant 0 : i32
    return %c0_i32, %arg0 : i32, i32
  }
  func.func @transform_2(%arg0: i32) -> (i32, i32) {
    %c0_i32 = arith.constant 0 : i32
    %c0_i32_0 = arith.constant 0 : i32
    return %c0_i32, %arg0 : i32, i32
  }
  func.func @transform_3(%arg0: i32) -> (i32, i32) {
    %c0_i32 = arith.constant 0 : i32
    %c0_i32_0 = arith.constant 0 : i32
    return %c0_i32, %arg0 : i32, i32
  }
  func.func @transform_4(%arg0: i32) -> (i32, i32) {
    %c0_i32 = arith.constant 0 : i32
    %c0_i32_0 = arith.constant 0 : i32
    return %c0_i32, %arg0 : i32, i32
  }
}

</mosaic_0001>

<bundles_post_ra>
// kernel: custom-call.3
= control target key start
LH: loop header
LB: loop body
LE: loop exit
PB: predicated region body
PF: predicated region fallthrough
CT: control target
= control target key end

     0   :  { %s6_s0 = inlined_call_operand.vmem [shape: f32[2,500], index: 0, kind: output, shape index: {}]  }

// kernel: custom-call.2
= control target key start
LH: loop header
LB: loop body
LE: loop exit
PB: predicated region body
PF: predicated region fallthrough
CT: control target
= control target key end

     0   :  { %s6_s0 = inlined_call_operand.vmem [shape: bf16[2,500], index: 0, kind: output, shape index: {}]  }

// kernel: classifier_forward.14
= control target key start
LH: loop header
LB: loop body
LE: loop exit
PB: predicated region body
PF: predicated region fallthrough
CT: control target
= control target key end

     0   :  { %9 = vsyncpa [#allocation3], 0  ;;  %s1755_s15 = smov [#allocation2]   ;;  %s2384_s0 = inlined_call_operand.vmem [shape: bf16[12,32], index: 0, kind: input, shape index: {}]   ;;  %s2385_s1 = inlined_call_operand.vmem [shape: bf16[32,4000], index: 1, kind: input, shape index: {}]   ;;  %s2386_s2 = inlined_call_operand.vmem [shape: f32[1,4000], index: 2, kind: input, shape index: {}]   ;;  %s2387_s3 = inlined_call_operand.hbm [shape: f32[1,4000], index: 3, kind: input, shape index: {}]   ;;  %s2388_s4 = inlined_call_operand.vmem [shape: f32[12,4000], index: 4, kind: output, shape index: {}]  }
   0x1   :  { %s22_s16 = sshll.u32 %s1755_s15, 4  ;;  %s1731_s19 = scalar_lea.hbm %s2387_s3, 512  ;;  %s23_s16 = int_to_ptr.vmem [resolvable:$true] %s22_s16 }
   0x2   :  { %p1732_p0 = scmp.ne.s32.totalorder %s2387_s3, %s1731_s19  ;;  %p1735_p1 = scmp.lt.u32.totalorder %s1731_s19, %s2387_s3 }
   0x4   :  { %p1737_p2 = pnand %p1735_p1, %p1732_p0 }
   0x6   :  { %1740 = shalt.err (!%p1737_p2)
}
   0x7   :  { %s1741_s24 = scalar_lea.vmem %s23_s16, 512  ;;  %p1746_p4 = scmp.lt.s32.totalorder %s23_s16, %s23_s16 }
   0x8   :  { %p1742_p3 = scmp.ne.s32.totalorder %s23_s16, %s1741_s24  ;;  %p1747_p5 = scmp.lt.s32.totalorder %s1741_s24, %s1741_s24 }
   0xa   :  { %p1748_p6 = por %p1747_p5, %p1746_p4 }
   0xc   :  { %p1749_p7 = pnand %p1748_p6, %p1742_p3 }
   0xe   :  { %1752 = shalt.err (!%p1749_p7)
}
   0xf   :  { %25 = dma.hbm_to_vmem [thread:$0]  %s2387_s3, 512, %s23_s16, [#allocation3]  }
  0x10   :  { %1753 = dma.done.wait [#allocation3], 512  }
  0x11   :  { %1754 = vsyncadd [#allocation3], 4294966784  ;;  %v1756_v0 = vmov 0   ;;  %v32_v1 = vld [vmem:[%s2385_s1] sm:$0xff]  ;;  %v33_v3 = vld [vmem:[%s2385_s1 + $0x8] sm:$0xff]  ;;  %vm421_vm0 = vcmask 261120  }
  0x12   :  { %457 = vmatprep.mubr.bf16.mxu0 %v1756_v0  ;;  %500 = vmatprep.mubr.bf16.mxu1 %v1756_v0  ;;  %v48_v2 = vld [vmem:[%s2385_s1 + $0x80] sm:$0xff]  ;;  %v49_v5 = vld [vmem:[%s2385_s1 + $0x88] sm:$0xff]  ;;  %v34_v15 = vld [vmem:[%s2385_s1 + $0x10] sm:$0xff]  ;;  %vm1640_vm1 = vcmask 257024  }
  0x13   :  { %v1649_v4 = vcombine.high %v32_v1, %v48_v2  ;;  %v1648_v6 = vcombine.low %v32_v1, %v48_v2  ;;  %v64_v7 = vld [vmem:[%s2385_s1 + $0x100] sm:$0xff]  ;;  %v1651_v9 = vcombine.high %v33_v3, %v49_v5  ;;  %v1650_v10 = vcombine.low %v33_v3, %v49_v5  ;;  %v65_v12 = vld [vmem:[%s2385_s1 + $0x108] sm:$0xff]  ;;  %v50_v17 = vld [vmem:[%s2385_s1 + $0x90] sm:$0xff] }
  0x14   :  { %v80_v8 = vld [vmem:[%s2385_s1 + $0x180] sm:$0xff]  ;;  %v81_v13 = vld [vmem:[%s2385_s1 + $0x188] sm:$0xff]  ;;  %v35_v18 = vld [vmem:[%s2385_s1 + $0x18] sm:$0xff]  ;;  %v1653_v21 = vcombine.high %v34_v15, %v50_v17  ;;  %v1652_v28 = vcombine.low %v34_v15, %v50_v17 }
  0x15   :  { %v1681_v11 = vcombine.high %v64_v7, %v80_v8  ;;  %425 = vmatprep.subr.bf16.mxu0 %v1649_v4  ;;  %v1683_v14 = vcombine.high %v65_v12, %v81_v13  ;;  %468 = vmatprep.subr.bf16.mxu1 %v1651_v9  ;;  %v1680_v16 = vcombine.low %v64_v7, %v80_v8  ;;  %v51_v19 = vld [vmem:[%s2385_s1 + $0x98] sm:$0xff]  ;;  %v66_v23 = vld [vmem:[%s2385_s1 + $0x110] sm:$0xff]  ;;  %v1841_v25 = vld [vmem:[%s2384_s0] sm:$0x3f]  }
  0x16   :  { %426 = vmatpush1.bf16.msra.mxu0 %v1648_v6  ;;  %469 = vmatpush1.bf16.msra.mxu1 %v1650_v10  ;;  %v1682_v20 = vcombine.low %v65_v12, %v81_v13  ;;  %v1655_v22 = vcombine.high %v35_v18, %v51_v19  ;;  %v82_v24 = vld [vmem:[%s2385_s1 + $0x190] sm:$0xff]  ;;  %v67_v26 = vld [vmem:[%s2385_s1 + $0x118] sm:$0xff]  ;;  %v1654_v29 = vcombine.low %v35_v18, %v51_v19  ;;  %v36_v32 = vld [vmem:[%s2385_s1 + $0x20] sm:$0xff] }
  0x17   :  { %427 = vmatprep.subr.bf16.mxu0 %v1681_v11  ;;  %470 = vmatprep.subr.bf16.mxu1 %v1683_v14  ;;  %v83_v27 = vld [vmem:[%s2385_s1 + $0x198] sm:$0xff]  ;;  %v1685_v30 = vcombine.high %v66_v23, %v82_v24  ;;  %v52_v33 = vld [vmem:[%s2385_s1 + $0xa0] sm:$0xff]  ;;  %v37_v34 = vld [vmem:[%s2385_s1 + $0x28] sm:$0xff]  ;;  %v1684_v36 = vcombine.low %v66_v23, %v82_v24 }
  0x18   :  { %v1687_v31 = vcombine.high %v67_v26, %v83_v27  ;;  %v53_v35 = vld [vmem:[%s2385_s1 + $0xa8] sm:$0xff]  ;;  %v1686_v37 = vcombine.low %v67_v26, %v83_v27  ;;  %v1657_v38 = vcombine.high %v36_v32, %v52_v33  ;;  %v68_v40 = vld [vmem:[%s2385_s1 + $0x120] sm:$0xff]  ;;  %v1656_v44 = vcombine.low %v36_v32, %v52_v33  ;;  %v38_v48 = vld [vmem:[%s2385_s1 + $0x30] sm:$0xff] }
  0x19   :  { %v1659_v39 = vcombine.high %v37_v34, %v53_v35  ;;  %v84_v41 = vld [vmem:[%s2385_s1 + $0x1a0] sm:$0xff]  ;;  %v69_v42 = vld [vmem:[%s2385_s1 + $0x128] sm:$0xff]  ;;  %v1658_v45 = vcombine.low %v37_v34, %v53_v35  ;;  %v54_v49 = vld [vmem:[%s2385_s1 + $0xb0] sm:$0xff] }
  0x1a   :  { %428 = vmatpush1.bf16.msra.mxu0 %v1680_v16  ;;  %471 = vmatpush1.bf16.msra.mxu1 %v1682_v20  ;;  %v85_v43 = vld [vmem:[%s2385_s1 + $0x1a8] sm:$0xff]  ;;  %v1689_v46 = vcombine.high %v68_v40, %v84_v41  ;;  %v39_v50 = vld [vmem:[%s2385_s1 + $0x38] sm:$0xff]  ;;  %v1688_v52 = vcombine.low %v68_v40, %v84_v41  ;;  %v1661_v54 = vcombine.high %v38_v48, %v54_v49  ;;  %v70_v56 = vld [vmem:[%s2385_s1 + $0x130] sm:$0xff] }
  0x1b   :  { %511 = vmatprep.subr.bf16.mxu0 %v1653_v21  ;;  %554 = vmatprep.subr.bf16.mxu1 %v1655_v22  ;;  %v1691_v47 = vcombine.high %v69_v42, %v85_v43  ;;  %v55_v51 = vld [vmem:[%s2385_s1 + $0xb8] sm:$0xff]  ;;  %v1690_v53 = vcombine.low %v69_v42, %v85_v43  ;;  %v86_v57 = vld [vmem:[%s2385_s1 + $0x1b0] sm:$0xff]  ;;  %v1660_v60 = vcombine.low %v38_v48, %v54_v49  ;;  %v40_v1 = vld [vmem:[%s2385_s1 + $0x40] sm:$0xff] }
  0x1c   :  { %v1663_v55 = vcombine.high %v39_v50, %v55_v51  ;;  %v71_v58 = vld [vmem:[%s2385_s1 + $0x138] sm:$0xff]  ;;  %v1662_v61 = vcombine.low %v39_v50, %v55_v51  ;;  %v1693_v62 = vcombine.high %v70_v56, %v86_v57  ;;  %v56_v2 = vld [vmem:[%s2385_s1 + $0xc0] sm:$0xff]  ;;  %v41_v3 = vld [vmem:[%s2385_s1 + $0x48] sm:$0xff]  ;;  %v1692_v5 = vcombine.low %v70_v56, %v86_v57 }
  0x1d   :  { %1712 = vmatmul.mubr.msk.bf16.vlgmr.msra.gmra.mrb[0].mxu0 %vm421_vm0, %v1841_v25  ;;  %1713 = vmatmul.mubr.msk.bf16.vlgmr.msra.gmra.mrb[0].mxu1 %vm421_vm0, %v1841_v25  ;;  %v87_v59 = vld [vmem:[%s2385_s1 + $0x1b8] sm:$0xff]  ;;  %v57_v4 = vld [vmem:[%s2385_s1 + $0xc8] sm:$0xff]  ;;  %v1665_v7 = vcombine.high %v40_v1, %v56_v2  ;;  %v72_v9 = vld [vmem:[%s2385_s1 + $0x140] sm:$0xff]  ;;  %v1664_v13 = vcombine.low %v40_v1, %v56_v2 }
  0x1e   :  { %512 = vmatpush1.bf16.msra.mxu0 %v1652_v28  ;;  %555 = vmatpush1.bf16.msra.mxu1 %v1654_v29  ;;  %v1695_v63 = vcombine.high %v71_v58, %v87_v59  ;;  %v1694_v6 = vcombine.low %v71_v58, %v87_v59  ;;  %v1667_v8 = vcombine.high %v41_v3, %v57_v4  ;;  %v88_v10 = vld [vmem:[%s2385_s1 + $0x1c0] sm:$0xff]  ;;  %v73_v11 = vld [vmem:[%s2385_s1 + $0x148] sm:$0xff]  ;;  %v42_v17 = vld [vmem:[%s2385_s1 + $0x50] sm:$0xff] }
  0x1f   :  { %513 = vmatprep.subr.bf16.mxu0 %v1685_v30  ;;  %556 = vmatprep.subr.bf16.mxu1 %v1687_v31  ;;  %v89_v12 = vld [vmem:[%s2385_s1 + $0x1c8] sm:$0xff]  ;;  %v1666_v14 = vcombine.low %v41_v3, %v57_v4  ;;  %v1697_v15 = vcombine.high %v72_v9, %v88_v10  ;;  %v58_v18 = vld [vmem:[%s2385_s1 + $0xd0] sm:$0xff]  ;;  %v43_v19 = vld [vmem:[%s2385_s1 + $0x58] sm:$0xff]  ;;  %v1696_v21 = vcombine.low %v72_v9, %v88_v10 }
  0x20   :  { %543 = vmatprep.mubr.bf16.mxu0 %v1756_v0  ;;  %586 = vmatprep.mubr.bf16.mxu1 %v1756_v0  ;;  %v1699_v16 = vcombine.high %v73_v11, %v89_v12  ;;  %v59_v20 = vld [vmem:[%s2385_s1 + $0xd8] sm:$0xff]  ;;  %v1698_v22 = vcombine.low %v73_v11, %v89_v12  ;;  %v1669_v23 = vcombine.high %v42_v17, %v58_v18  ;;  %v74_v26 = vld [vmem:[%s2385_s1 + $0x150] sm:$0xff]  ;;  %v44_v34 = vld [vmem:[%s2385_s1 + $0x60] sm:$0xff] }
  0x21   :  { %v1671_v24 = vcombine.high %v43_v19, %v59_v20  ;;  %v90_v27 = vld [vmem:[%s2385_s1 + $0x1d0] sm:$0xff]  ;;  %v75_v28 = vld [vmem:[%s2385_s1 + $0x158] sm:$0xff]  ;;  %v1668_v30 = vcombine.low %v42_v17, %v58_v18  ;;  %v1670_v31 = vcombine.low %v43_v19, %v59_v20  ;;  %v60_v35 = vld [vmem:[%s2385_s1 + $0xe0] sm:$0xff] }
  0x22   :  { %514 = vmatpush1.bf16.msra.mxu0 %v1684_v36  ;;  %557 = vmatpush1.bf16.msra.mxu1 %v1686_v37  ;;  %v91_v29 = vld [vmem:[%s2385_s1 + $0x1d8] sm:$0xff]  ;;  %v1701_v32 = vcombine.high %v74_v26, %v90_v27  ;;  %v45_v36 = vld [vmem:[%s2385_s1 + $0x68] sm:$0xff]  ;;  %v1673_v40 = vcombine.high %v44_v34, %v60_v35  ;;  %v76_v42 = vld [vmem:[%s2385_s1 + $0x160] sm:$0xff] }
  0x23   :  { %597 = vmatprep.subr.bf16.mxu0 %v1657_v38  ;;  %640 = vmatprep.subr.bf16.mxu1 %v1659_v39  ;;  %v1703_v33 = vcombine.high %v75_v28, %v91_v29  ;;  %v61_v37 = vld [vmem:[%s2385_s1 + $0xe8] sm:$0xff]  ;;  %v1700_v38 = vcombine.low %v74_v26, %v90_v27  ;;  %v1702_v39 = vcombine.low %v75_v28, %v91_v29  ;;  %v92_v43 = vld [vmem:[%s2385_s1 + $0x1e0] sm:$0xff]  ;;  %v46_v50 = vld [vmem:[%s2385_s1 + $0x70] sm:$0xff] }
  0x24   :  { %v1675_v41 = vcombine.high %v45_v36, %v61_v37  ;;  %v1705_v48 = vcombine.high %v76_v42, %v92_v43  ;;  %v62_v51 = vld [vmem:[%s2385_s1 + $0xf0] sm:$0xff]  ;;  %v1345_v11 = vld [vmem:[#allocation2] sm:$0xff] }
  0x25   :  { %1714 = vmatmul.mubr.msk.bf16.vlgmr.msra.gmra.mrb[4].mxu0 %vm421_vm0, %v1841_v25  ;;  %1715 = vmatmul.mubr.msk.bf16.vlgmr.msra.gmra.mrb[4].mxu1 %vm421_vm0, %v1841_v25  ;;  %v1677_v56 = vcombine.high %v46_v50, %v62_v51  ;;  %v78_v58 = vld [vmem:[%s2385_s1 + $0x170] sm:$0xff] }
  0x26   :  { %598 = vmatpush1.bf16.msra.mxu0 %v1656_v44  ;;  %641 = vmatpush1.bf16.msra.mxu1 %v1658_v45  ;;  %v77_v44 = vld [vmem:[%s2385_s1 + $0x168] sm:$0xff]  ;;  %v94_v59 = vld [vmem:[%s2385_s1 + $0x1f0] sm:$0xff] }
  0x27   :  { %599 = vmatprep.subr.bf16.mxu0 %v1689_v46  ;;  %642 = vmatprep.subr.bf16.mxu1 %v1691_v47  ;;  %v93_v45 = vld [vmem:[%s2385_s1 + $0x1e8] sm:$0xff]  ;;  %v1672_v46 = vcombine.low %v44_v34, %v60_v35  ;;  %v1674_v47 = vcombine.low %v45_v36, %v61_v37  ;;  %v1709_v1 = vcombine.high %v78_v58, %v94_v59 }
  0x28   :  { %629 = vmatprep.mubr.bf16.mxu0 %v1756_v0  ;;  %672 = vmatprep.mubr.bf16.mxu1 %v1756_v0  ;;  %v1707_v49 = vcombine.high %v77_v44, %v93_v45  ;;  %v1708_v3 = vcombine.low %v78_v58, %v94_v59 }
  0x2a   :  { %600 = vmatpush1.bf16.msra.mxu0 %v1688_v52  ;;  %643 = vmatpush1.bf16.msra.mxu1 %v1690_v53  ;;  %v47_v52 = vld [vmem:[%s2385_s1 + $0x78] sm:$0xff] }
  0x2b   :  { %683 = vmatprep.subr.bf16.mxu0 %v1661_v54  ;;  %726 = vmatprep.subr.bf16.mxu1 %v1663_v55  ;;  %v63_v53 = vld [vmem:[%s2385_s1 + $0xf8] sm:$0xff]  ;;  %v1704_v54 = vcombine.low %v76_v42, %v92_v43  ;;  %v1706_v55 = vcombine.low %v77_v44, %v93_v45 }
  0x2c   :  { %v1679_v57 = vcombine.high %v47_v52, %v63_v53 }
  0x2d   :  { %1716 = vmatmul.mubr.msk.bf16.vlgmr.msra.gmra.mrb[8].mxu0 %vm421_vm0, %v1841_v25  ;;  %1717 = vmatmul.mubr.msk.bf16.vlgmr.msra.gmra.mrb[8].mxu1 %vm421_vm0, %v1841_v25 }
  0x2e   :  { %684 = vmatpush1.bf16.msra.mxu0 %v1660_v60  ;;  %727 = vmatpush1.bf16.msra.mxu1 %v1662_v61  ;;  %v79_v60 = vld [vmem:[%s2385_s1 + $0x178] sm:$0xff] }
  0x2f   :  { %685 = vmatprep.subr.bf16.mxu0 %v1693_v62  ;;  %728 = vmatprep.subr.bf16.mxu1 %v1695_v63  ;;  %v95_v61 = vld [vmem:[%s2385_s1 + $0x1f8] sm:$0xff]  ;;  %v1676_v62 = vcombine.low %v46_v50, %v62_v51  ;;  %v1678_v63 = vcombine.low %v47_v52, %v63_v53 }
  0x30   :  { %715 = vmatprep.mubr.bf16.mxu0 %v1756_v0  ;;  %758 = vmatprep.mubr.bf16.mxu1 %v1756_v0  ;;  %v1711_v2 = vcombine.high %v79_v60, %v95_v61  ;;  %v1710_v4 = vcombine.low %v79_v60, %v95_v61 }
  0x32   :  { %686 = vmatpush1.bf16.msra.mxu0 %v1692_v5  ;;  %729 = vmatpush1.bf16.msra.mxu1 %v1694_v6  ;;  %v1121_v5 = vlaneseq }
  0x33   :  { %769 = vmatprep.subr.bf16.mxu0 %v1665_v7  ;;  %812 = vmatprep.subr.bf16.mxu1 %v1667_v8  ;;  %v1113_v8 = vld [vmem:[%s2386_s2] sm:$0xff] }
  0x34   :  { %v1122_v6 = vshrl.u32 %v1121_v5, 7 }
  0x35   :  { %1718 = vmatmul.mubr.msk.bf16.vlgmr.msra.gmra.mrb[12].mxu0 %vm421_vm0, %v1841_v25  ;;  %1719 = vmatmul.mubr.msk.bf16.vlgmr.msra.gmra.mrb[12].mxu1 %vm421_vm0, %v1841_v25 }
  0x36   :  { %770 = vmatpush1.bf16.msra.mxu0 %v1664_v13  ;;  %813 = vmatpush1.bf16.msra.mxu1 %v1666_v14  ;;  %v2039_v7 = vsub.s32 0, %v1122_v6  ;;  %v2044_v9 = vsub.s32 2, %v1122_v6  ;;  %v2046_v10 = vsub.s32 1, %v1122_v6  ;;  %v2060_v29 = vsub.s32 6, %v1122_v6 }
  0x37   :  { %771 = vmatprep.subr.bf16.mxu0 %v1697_v15  ;;  %814 = vmatprep.subr.bf16.mxu1 %v1699_v16  ;;  %v2064_v36 = vsub.s32 7, %v1122_v6 }
  0x38   :  { %801 = vmatprep.mubr.bf16.mxu0 %v1756_v0  ;;  %844 = vmatprep.mubr.bf16.mxu1 %v1756_v0  ;;  %v1124_v12 = vrot.slane %v1113_v8, %v2039_v7  ;;  %v1132_v13 = vrot.slane %v1113_v8, %v2044_v9  ;;  %v1356_v14 = vrot.slane %v1345_v11, %v2039_v7 }
  0x39   :  { %v1364_v17 = vrot.slane %v1345_v11, %v2044_v9  ;;  %v1360_v18 = vrot.slane %v1345_v11, %v2046_v10  ;;  %v1152_v52 = vrot.slane %v1113_v8, %v2064_v36  ;;  %v1384_v59 = vrot.slane %v1345_v11, %v2064_v36 }
  0x3a   :  { %772 = vmatpush1.bf16.msra.mxu0 %v1696_v21  ;;  %815 = vmatpush1.bf16.msra.mxu1 %v1698_v22 }
  0x3b   :  { %855 = vmatprep.subr.bf16.mxu0 %v1669_v23  ;;  %898 = vmatprep.subr.bf16.mxu1 %v1671_v24  ;;  %v2058_v23 = vsub.s32 4, %v1122_v6 }
  0x3d   :  { %1720 = vmatmul.mubr.msk.bf16.vlgmr.msra.gmra.mrb[16].mxu0 %vm421_vm0, %v1841_v25  ;;  %1721 = vmatmul.mubr.msk.bf16.vlgmr.msra.gmra.mrb[16].mxu1 %vm421_vm0, %v1841_v25  ;;  %v1140_v45 = vrot.slane %v1113_v8, %v2058_v23  ;;  %v1372_v51 = vrot.slane %v1345_v11, %v2058_v23 }
  0x3e   :  { %856 = vmatpush1.bf16.msra.mxu0 %v1668_v30  ;;  %899 = vmatpush1.bf16.msra.mxu1 %v1670_v31  ;;  %v2062_v30 = vsub.s32 5, %v1122_v6 }
  0x3f   :  { %857 = vmatprep.subr.bf16.mxu0 %v1701_v32  ;;  %900 = vmatprep.subr.bf16.mxu1 %v1703_v33 }
  0x40   :  { %887 = vmatprep.mubr.bf16.mxu0 %v1756_v0  ;;  %930 = vmatprep.mubr.bf16.mxu1 %v1756_v0 }
  0x42   :  { %858 = vmatpush1.bf16.msra.mxu0 %v1700_v38  ;;  %901 = vmatpush1.bf16.msra.mxu1 %v1702_v39 }
  0x43   :  { %941 = vmatprep.subr.bf16.mxu0 %v1673_v40  ;;  %984 = vmatprep.subr.bf16.mxu1 %v1675_v41 }
  0x45   :  { %1722 = vmatmul.mubr.msk.bf16.vlgmr.msra.gmra.mrb[20].mxu0 %vm421_vm0, %v1841_v25  ;;  %1723 = vmatmul.mubr.msk.bf16.vlgmr.msra.gmra.mrb[20].mxu1 %vm421_vm0, %v1841_v25 }
  0x46   :  { %942 = vmatpush1.bf16.msra.mxu0 %v1672_v46  ;;  %985 = vmatpush1.bf16.msra.mxu1 %v1674_v47 }
  0x47   :  { %943 = vmatprep.subr.bf16.mxu0 %v1705_v48  ;;  %986 = vmatprep.subr.bf16.mxu1 %v1707_v49  ;;  %v1148_v48 = vrot.slane %v1113_v8, %v2060_v29  ;;  %v1144_v49 = vrot.slane %v1113_v8, %v2062_v30 }
  0x48   :  { %973 = vmatprep.mubr.bf16.mxu0 %v1756_v0  ;;  %1016 = vmatprep.mubr.bf16.mxu1 %v1756_v0 }
  0x4a   :  { %944 = vmatpush1.bf16.msra.mxu0 %v1704_v54  ;;  %987 = vmatpush1.bf16.msra.mxu1 %v1706_v55  ;;  %v1380_v54 = vrot.slane %v1345_v11, %v2060_v29  ;;  %v1376_v55 = vrot.slane %v1345_v11, %v2062_v30 }
  0x4b   :  { %1027 = vmatprep.subr.bf16.mxu0 %v1677_v56  ;;  %1070 = vmatprep.subr.bf16.mxu1 %v1679_v57 }
  0x4d   :  { %1724 = vmatmul.mubr.msk.bf16.vlgmr.msra.gmra.mrb[24].mxu0 %vm421_vm0, %v1841_v25  ;;  %1725 = vmatmul.mubr.msk.bf16.vlgmr.msra.gmra.mrb[24].mxu1 %vm421_vm0, %v1841_v25 }
  0x4e   :  { %1028 = vmatpush1.bf16.msra.mxu0 %v1676_v62  ;;  %1071 = vmatpush1.bf16.msra.mxu1 %v1678_v63 }
  0x4f   :  { %1029 = vmatprep.subr.bf16.mxu0 %v1709_v1  ;;  %1072 = vmatprep.subr.bf16.mxu1 %v1711_v2  ;;  %v2101_v1 = vld [vmem:[%s2386_s2 + $0x8] sm:$0xff] }
  0x50   :  { %1059 = vmatprep.mubr.bf16.mxu0 %v1756_v0  ;;  %1102 = vmatprep.mubr.bf16.mxu1 %v1756_v0  ;;  %v2048_v0 = vsub.s32 3, %v1122_v6 }
  0x52   :  { %1030 = vmatpush1.bf16.msra.mxu0 %v1708_v3  ;;  %1073 = vmatpush1.bf16.msra.mxu1 %v1710_v4  ;;  %v1136_v15 = vrot.slane %v1113_v8, %v2048_v0  ;;  %v1368_v22 = vrot.slane %v1345_v11, %v2048_v0  ;;  %v2103_v11 = vld [vmem:[#allocation2 + $0x8] sm:$0xff] }
  0x55   :  { %1726 = vmatmul.mubr.msk.bf16.vlgmr.msra.gmra.mrb[28].mxu0 %vm421_vm0, %v1841_v25  ;;  %1727 = vmatmul.mubr.msk.bf16.vlgmr.msra.gmra.mrb[28].mxu1 %vm421_vm0, %v1841_v25  ;;  %v1128_v25 = vrot.slane %v1113_v8, %v2046_v10 }
  0xf0   :  { %v459_v16 = vpop.f32.mrb[0].mxu0  ;;  %v502_v20 = vpop.f32.mrb[0].mxu1 }
  0xf1   :  { %v1281_v19 = vmul.f32 %v1124_v12, %v459_v16  ;;  %v461_v21 = vpop.f32.mrb[1].mxu0  ;;  %v1283_v24 = vmul.f32 %v1132_v13, %v502_v20  ;;  %v504_v27 = vpop.f32.mrb[1].mxu1 }
  0xf2   :  { %v1282_v26 = vmul.f32 %v1128_v25, %v461_v21  ;;  %v463_v28 = vpop.f32.mrb[2].mxu0  ;;  %v1284_v32 = vmul.f32 %v1136_v15, %v504_v27  ;;  %v506_v34 = vpop.f32.mrb[2].mxu1  ;;  %v1164_v21 = vrot.slane %v2101_v1, %v2044_v9  ;;  %v1168_v27 = vrot.slane %v2101_v1, %v2048_v0 }
  0xf3   :  { %v1513_v31 = vadd.f32 %v1356_v14, %v1281_v19  ;;  %v1313_v33 = vmul.f32 %v1124_v12, %v463_v28  ;;  %v465_v35 = vpop.f32.mrb[3].mxu0  ;;  %v1515_v37 = vadd.f32 %v1364_v17, %v1283_v24  ;;  %v1315_v39 = vmul.f32 %v1132_v13, %v506_v34  ;;  %v508_v41 = vpop.f32.mrb[3].mxu1 }
  0xf4   :  { %v1514_v38 = vadd.f32 %v1360_v18, %v1282_v26  ;;  %v1314_v40 = vmul.f32 %v1128_v25, %v465_v35  ;;  %v1516_v42 = vadd.f32 %v1368_v22, %v1284_v32  ;;  %v1316_v44 = vmul.f32 %v1136_v15, %v508_v41 }
  0xf5   :  { %1577 = vst [vmem:[%s2388_s4] sm:$0xff] %v1513_v31  ;;  %v1545_v43 = vadd.f32 %v1356_v14, %v1313_v33  ;;  %1579 = vst [vmem:[%s2388_s4 + $0x10] sm:$0xff] %v1515_v37  ;;  %v1547_v46 = vadd.f32 %v1364_v17, %v1315_v39  ;;  %v1388_v26 = vrot.slane %v2103_v11, %v2039_v7 }
  0xf6   :  { %1578 = vst [vmem:[%s2388_s4 + $0x8] sm:$0xff] %v1514_v38  ;;  %v1546_v47 = vadd.f32 %v1360_v18, %v1314_v40  ;;  %1580 = vst [vmem:[%s2388_s4 + $0x18] sm:$0xff] %v1516_v42  ;;  %v1548_v50 = vadd.f32 %v1368_v22, %v1316_v44  ;;  %v1156_v18 = vrot.slane %v2101_v1, %v2039_v7 }
  0xf7   :  { %1609 = vst [vmem:[%s2388_s4 + $0x100] sm:$0xf] %v1545_v43  ;;  %1611 = vst [vmem:[%s2388_s4 + $0x110] sm:$0xf] %v1547_v46  ;;  %v1160_v22 = vrot.slane %v2101_v1, %v2046_v10  ;;  %v1396_v31 = vrot.slane %v2103_v11, %v2044_v9  ;;  %v1392_v32 = vrot.slane %v2103_v11, %v2046_v10 }
  0xf8   :  { %1610 = vst [vmem:[%s2388_s4 + $0x108] sm:$0xf] %v1546_v47  ;;  %v545_v53 = vpop.f32.mrb[4].mxu0  ;;  %1612 = vst [vmem:[%s2388_s4 + $0x118] sm:$0xf] %v1548_v50  ;;  %v588_v57 = vpop.f32.mrb[4].mxu1  ;;  %v1400_v37 = vrot.slane %v2103_v11, %v2048_v0 }
  0xf9   :  { %v1285_v56 = vmul.f32 %v1140_v45, %v545_v53  ;;  %v547_v58 = vpop.f32.mrb[5].mxu0  ;;  %v1287_v60 = vmul.f32 %v1148_v48, %v588_v57  ;;  %v590_v62 = vpop.f32.mrb[5].mxu1 }
  0xfa   :  { %v1286_v61 = vmul.f32 %v1144_v49, %v547_v58  ;;  %v549_v63 = vpop.f32.mrb[6].mxu0  ;;  %v1288_v3 = vmul.f32 %v1152_v52, %v590_v62  ;;  %v592_v5 = vpop.f32.mrb[6].mxu1  ;;  %v1180_v58 = vrot.slane %v2101_v1, %v2060_v29  ;;  %v1184_v62 = vrot.slane %v2101_v1, %v2064_v36 }
  0xfb   :  { %v1517_v2 = vadd.f32 %v1372_v51, %v1285_v56  ;;  %v1317_v4 = vmul.f32 %v1140_v45, %v549_v63  ;;  %v551_v6 = vpop.f32.mrb[7].mxu0  ;;  %v1519_v8 = vadd.f32 %v1380_v54, %v1287_v60  ;;  %v1319_v13 = vmul.f32 %v1148_v48, %v592_v5  ;;  %v594_v14 = vpop.f32.mrb[7].mxu1 }
  0xfc   :  { %v1518_v12 = vadd.f32 %v1376_v55, %v1286_v61  ;;  %v1318_v25 = vmul.f32 %v1144_v49, %v551_v6  ;;  %v1520_v15 = vadd.f32 %v1384_v59, %v1288_v3  ;;  %v1320_v17 = vmul.f32 %v1152_v52, %v594_v14  ;;  %v2188_v14 = vld [vmem:[%s2386_s2 + $0x10] sm:$0xff] }
  0xfd   :  { %1581 = vst [vmem:[%s2388_s4 + $0x20] sm:$0xff] %v1517_v2  ;;  %v1549_v16 = vadd.f32 %v1372_v51, %v1317_v4  ;;  %1583 = vst [vmem:[%s2388_s4 + $0x30] sm:$0xff] %v1519_v8  ;;  %v1551_v19 = vadd.f32 %v1380_v54, %v1319_v13  ;;  %v1404_v61 = vrot.slane %v2103_v11, %v2058_v23 }
  0xfe   :  { %1582 = vst [vmem:[%s2388_s4 + $0x28] sm:$0xff] %v1518_v12  ;;  %v1550_v20 = vadd.f32 %v1376_v55, %v1318_v25  ;;  %1584 = vst [vmem:[%s2388_s4 + $0x38] sm:$0xff] %v1520_v15  ;;  %v1552_v24 = vadd.f32 %v1384_v59, %v1320_v17  ;;  %v1172_v55 = vrot.slane %v2101_v1, %v2058_v23 }
  0xff   :  { %1613 = vst [vmem:[%s2388_s4 + $0x120] sm:$0xf] %v1549_v16  ;;  %1615 = vst [vmem:[%s2388_s4 + $0x130] sm:$0xf] %v1551_v19  ;;  %v1176_v59 = vrot.slane %v2101_v1, %v2062_v30  ;;  %v1412_v2 = vrot.slane %v2103_v11, %v2060_v29  ;;  %v1408_v3 = vrot.slane %v2103_v11, %v2062_v30 }
 0x100   :  { %1614 = vst [vmem:[%s2388_s4 + $0x128] sm:$0xf] %v1550_v20  ;;  %v631_v28 = vpop.f32.mrb[8].mxu0  ;;  %1616 = vst [vmem:[%s2388_s4 + $0x138] sm:$0xf] %v1552_v24  ;;  %v674_v34 = vpop.f32.mrb[8].mxu1  ;;  %v1416_v6 = vrot.slane %v2103_v11, %v2064_v36 }
 0x101   :  { %v1289_v33 = vmul.f32 %v1156_v18, %v631_v28  ;;  %v633_v35 = vpop.f32.mrb[9].mxu0  ;;  %v1291_v38 = vmul.f32 %v1164_v21, %v674_v34  ;;  %v676_v40 = vpop.f32.mrb[9].mxu1  ;;  %v2190_v11 = vld [vmem:[#allocation2 + $0x10] sm:$0xff] }
 0x102   :  { %v1290_v39 = vmul.f32 %v1160_v22, %v633_v35  ;;  %v635_v41 = vpop.f32.mrb[10].mxu0  ;;  %v1292_v43 = vmul.f32 %v1168_v27, %v676_v40  ;;  %v678_v45 = vpop.f32.mrb[10].mxu1  ;;  %v1196_v35 = vrot.slane %v2188_v14, %v2044_v9  ;;  %v1200_v40 = vrot.slane %v2188_v14, %v2048_v0 }
 0x103   :  { %v1521_v42 = vadd.f32 %v1388_v26, %v1289_v33  ;;  %v1321_v44 = vmul.f32 %v1156_v18, %v635_v41  ;;  %v637_v46 = vpop.f32.mrb[11].mxu0  ;;  %v1523_v47 = vadd.f32 %v1396_v31, %v1291_v38  ;;  %v1323_v49 = vmul.f32 %v1164_v21, %v678_v45  ;;  %v680_v51 = vpop.f32.mrb[11].mxu1 }
 0x104   :  { %v1522_v48 = vadd.f32 %v1392_v32, %v1290_v39  ;;  %v1322_v50 = vmul.f32 %v1160_v22, %v637_v46  ;;  %v1524_v52 = vadd.f32 %v1400_v37, %v1292_v43  ;;  %v1324_v54 = vmul.f32 %v1168_v27, %v680_v51 }
 0x105   :  { %1585 = vst [vmem:[%s2388_s4 + $0x40] sm:$0xff] %v1521_v42  ;;  %v1553_v53 = vadd.f32 %v1388_v26, %v1321_v44  ;;  %1587 = vst [vmem:[%s2388_s4 + $0x50] sm:$0xff] %v1523_v47  ;;  %v1555_v56 = vadd.f32 %v1396_v31, %v1323_v49  ;;  %v1420_v39 = vrot.slane %v2190_v11, %v2039_v7 }
 0x106   :  { %1586 = vst [vmem:[%s2388_s4 + $0x48] sm:$0xff] %v1522_v48  ;;  %v1554_v57 = vadd.f32 %v1392_v32, %v1322_v50  ;;  %1588 = vst [vmem:[%s2388_s4 + $0x58] sm:$0xff] %v1524_v52  ;;  %v1556_v60 = vadd.f32 %v1400_v37, %v1324_v54  ;;  %v1188_v32 = vrot.slane %v2188_v14, %v2039_v7 }
 0x107   :  { %1617 = vst [vmem:[%s2388_s4 + $0x140] sm:$0xf] %v1553_v53  ;;  %1619 = vst [vmem:[%s2388_s4 + $0x150] sm:$0xf] %v1555_v56  ;;  %v1192_v37 = vrot.slane %v2188_v14, %v2046_v10  ;;  %v1428_v42 = vrot.slane %v2190_v11, %v2044_v9  ;;  %v1424_v43 = vrot.slane %v2190_v11, %v2046_v10 }
 0x108   :  { %1618 = vst [vmem:[%s2388_s4 + $0x148] sm:$0xf] %v1554_v57  ;;  %v717_v63 = vpop.f32.mrb[12].mxu0  ;;  %1620 = vst [vmem:[%s2388_s4 + $0x158] sm:$0xf] %v1556_v60  ;;  %v760_v4 = vpop.f32.mrb[12].mxu1  ;;  %v1432_v47 = vrot.slane %v2190_v11, %v2048_v0 }
 0x109   :  { %v1293_v1 = vmul.f32 %v1172_v55, %v717_v63  ;;  %v719_v5 = vpop.f32.mrb[13].mxu0  ;;  %v1295_v8 = vmul.f32 %v1180_v58, %v760_v4  ;;  %v762_v13 = vpop.f32.mrb[13].mxu1 }
 0x10a   :  { %v1294_v12 = vmul.f32 %v1176_v59, %v719_v5  ;;  %v721_v25 = vpop.f32.mrb[14].mxu0  ;;  %v1296_v16 = vmul.f32 %v1184_v62, %v762_v13  ;;  %v764_v18 = vpop.f32.mrb[14].mxu1  ;;  %v1212_v5 = vrot.slane %v2188_v14, %v2060_v29  ;;  %v1216_v13 = vrot.slane %v2188_v14, %v2064_v36 }
 0x10b   :  { %v1525_v15 = vadd.f32 %v1404_v61, %v1293_v1  ;;  %v1325_v17 = vmul.f32 %v1172_v55, %v721_v25  ;;  %v723_v19 = vpop.f32.mrb[15].mxu0  ;;  %v1527_v20 = vadd.f32 %v1412_v2, %v1295_v8  ;;  %v1327_v22 = vmul.f32 %v1180_v58, %v764_v18  ;;  %v766_v26 = vpop.f32.mrb[15].mxu1 }
 0x10c   :  { %v1526_v21 = vadd.f32 %v1408_v3, %v1294_v12  ;;  %v1326_v24 = vmul.f32 %v1176_v59, %v723_v19  ;;  %v1528_v27 = vadd.f32 %v1416_v6, %v1296_v16  ;;  %v1328_v31 = vmul.f32 %v1184_v62, %v766_v26  ;;  %v2275_v26 = vld [vmem:[%s2386_s2 + $0x18] sm:$0xff] }
 0x10d   :  { %1589 = vst [vmem:[%s2388_s4 + $0x60] sm:$0xff] %v1525_v15  ;;  %v1557_v28 = vadd.f32 %v1404_v61, %v1325_v17  ;;  %1591 = vst [vmem:[%s2388_s4 + $0x70] sm:$0xff] %v1527_v20  ;;  %v1559_v33 = vadd.f32 %v1412_v2, %v1327_v22  ;;  %v1436_v12 = vrot.slane %v2190_v11, %v2058_v23 }
 0x10e   :  { %1590 = vst [vmem:[%s2388_s4 + $0x68] sm:$0xff] %v1526_v21  ;;  %v1558_v34 = vadd.f32 %v1408_v3, %v1326_v24  ;;  %1592 = vst [vmem:[%s2388_s4 + $0x78] sm:$0xff] %v1528_v27  ;;  %v1560_v38 = vadd.f32 %v1416_v6, %v1328_v31  ;;  %v1204_v3 = vrot.slane %v2188_v14, %v2058_v23 }
 0x10f   :  { %1621 = vst [vmem:[%s2388_s4 + $0x160] sm:$0xf] %v1557_v28  ;;  %1623 = vst [vmem:[%s2388_s4 + $0x170] sm:$0xf] %v1559_v33  ;;  %v1208_v6 = vrot.slane %v2188_v14, %v2062_v30  ;;  %v1444_v15 = vrot.slane %v2190_v11, %v2060_v29  ;;  %v1440_v16 = vrot.slane %v2190_v11, %v2062_v30 }
 0x110   :  { %1622 = vst [vmem:[%s2388_s4 + $0x168] sm:$0xf] %v1558_v34  ;;  %v803_v41 = vpop.f32.mrb[16].mxu0  ;;  %1624 = vst [vmem:[%s2388_s4 + $0x178] sm:$0xf] %v1560_v38  ;;  %v846_v45 = vpop.f32.mrb[16].mxu1  ;;  %v1448_v19 = vrot.slane %v2190_v11, %v2064_v36 }
 0x111   :  { %v1297_v44 = vmul.f32 %v1188_v32, %v803_v41  ;;  %v805_v46 = vpop.f32.mrb[17].mxu0  ;;  %v1299_v48 = vmul.f32 %v1196_v35, %v846_v45  ;;  %v848_v50 = vpop.f32.mrb[17].mxu1  ;;  %v2277_v11 = vld [vmem:[#allocation2 + $0x18] sm:$0xff] }
 0x112   :  { %v1298_v49 = vmul.f32 %v1192_v37, %v805_v46  ;;  %v807_v51 = vpop.f32.mrb[18].mxu0  ;;  %v1300_v53 = vmul.f32 %v1200_v40, %v848_v50  ;;  %v850_v55 = vpop.f32.mrb[18].mxu1  ;;  %v1228_v46 = vrot.slane %v2275_v26, %v2044_v9  ;;  %v1232_v50 = vrot.slane %v2275_v26, %v2048_v0 }
 0x113   :  { %v1529_v52 = vadd.f32 %v1420_v39, %v1297_v44  ;;  %v1329_v54 = vmul.f32 %v1188_v32, %v807_v51  ;;  %v809_v56 = vpop.f32.mrb[19].mxu0  ;;  %v1531_v57 = vadd.f32 %v1428_v42, %v1299_v48  ;;  %v1331_v59 = vmul.f32 %v1196_v35, %v850_v55  ;;  %v852_v61 = vpop.f32.mrb[19].mxu1 }
 0x114   :  { %v1530_v58 = vadd.f32 %v1424_v43, %v1298_v49  ;;  %v1330_v60 = vmul.f32 %v1192_v37, %v809_v56  ;;  %v1532_v62 = vadd.f32 %v1432_v47, %v1300_v53  ;;  %v1332_v2 = vmul.f32 %v1200_v40, %v852_v61 }
 0x115   :  { %1593 = vst [vmem:[%s2388_s4 + $0x80] sm:$0xff] %v1529_v52  ;;  %v1561_v63 = vadd.f32 %v1420_v39, %v1329_v54  ;;  %1595 = vst [vmem:[%s2388_s4 + $0x90] sm:$0xff] %v1531_v57  ;;  %v1563_v1 = vadd.f32 %v1428_v42, %v1331_v59  ;;  %v1452_v49 = vrot.slane %v2277_v11, %v2039_v7 }
 0x116   :  { %1594 = vst [vmem:[%s2388_s4 + $0x88] sm:$0xff] %v1530_v58  ;;  %v1562_v4 = vadd.f32 %v1424_v43, %v1330_v60  ;;  %1596 = vst [vmem:[%s2388_s4 + $0x98] sm:$0xff] %v1532_v62  ;;  %v1564_v8 = vadd.f32 %v1432_v47, %v1332_v2  ;;  %v1220_v43 = vrot.slane %v2275_v26, %v2039_v7 }
 0x117   :  { %1625 = vst [vmem:[%s2388_s4 + $0x180] sm:$0xf] %v1561_v63  ;;  %1627 = vst [vmem:[%s2388_s4 + $0x190] sm:$0xf] %v1563_v1  ;;  %v1224_v47 = vrot.slane %v2275_v26, %v2046_v10  ;;  %v1460_v52 = vrot.slane %v2277_v11, %v2044_v9  ;;  %v1456_v53 = vrot.slane %v2277_v11, %v2046_v10 }
 0x118   :  { %1626 = vst [vmem:[%s2388_s4 + $0x188] sm:$0xf] %v1562_v4  ;;  %v889_v25 = vpop.f32.mrb[20].mxu0  ;;  %1628 = vst [vmem:[%s2388_s4 + $0x198] sm:$0xf] %v1564_v8  ;;  %v932_v17 = vpop.f32.mrb[20].mxu1  ;;  %v1464_v56 = vrot.slane %v2277_v11, %v2048_v0 }
 0x119   :  { %v1301_v14 = vmul.f32 %v1204_v3, %v889_v25  ;;  %v891_v18 = vpop.f32.mrb[21].mxu0  ;;  %v1303_v20 = vmul.f32 %v1212_v5, %v932_v17  ;;  %v934_v22 = vpop.f32.mrb[21].mxu1  ;;  %v1468_v17 = vrot.slane %v2277_v11, %v2058_v23 }
 0x11a   :  { %v1302_v21 = vmul.f32 %v1208_v6, %v891_v18  ;;  %v893_v24 = vpop.f32.mrb[22].mxu0  ;;  %v1304_v28 = vmul.f32 %v1216_v13, %v934_v22  ;;  %v936_v32 = vpop.f32.mrb[22].mxu1  ;;  %v1248_v18 = vrot.slane %v2275_v26, %v2064_v36 }
 0x11b   :  { %v1533_v27 = vadd.f32 %v1436_v12, %v1301_v14  ;;  %v1333_v31 = vmul.f32 %v1204_v3, %v893_v24  ;;  %v895_v33 = vpop.f32.mrb[23].mxu0  ;;  %v1535_v34 = vadd.f32 %v1444_v15, %v1303_v20  ;;  %v1335_v37 = vmul.f32 %v1212_v5, %v936_v32  ;;  %v938_v39 = vpop.f32.mrb[23].mxu1 }
 0x11c   :  { %v1534_v35 = vadd.f32 %v1440_v16, %v1302_v21  ;;  %v1334_v38 = vmul.f32 %v1208_v6, %v895_v33  ;;  %v1536_v40 = vadd.f32 %v1448_v19, %v1304_v28  ;;  %v1336_v42 = vmul.f32 %v1216_v13, %v938_v39 }
 0x11d   :  { %1597 = vst [vmem:[%s2388_s4 + $0xa0] sm:$0xff] %v1533_v27  ;;  %v1565_v41 = vadd.f32 %v1436_v12, %v1333_v31  ;;  %1599 = vst [vmem:[%s2388_s4 + $0xb0] sm:$0xff] %v1535_v34  ;;  %v1567_v44 = vadd.f32 %v1444_v15, %v1335_v37  ;;  %v1236_v12 = vrot.slane %v2275_v26, %v2058_v23 }
 0x11e   :  { %1598 = vst [vmem:[%s2388_s4 + $0xa8] sm:$0xff] %v1534_v35  ;;  %v1566_v45 = vadd.f32 %v1440_v16, %v1334_v38  ;;  %1600 = vst [vmem:[%s2388_s4 + $0xb8] sm:$0xff] %v1536_v40  ;;  %v1568_v48 = vadd.f32 %v1448_v19, %v1336_v42  ;;  %v1244_v15 = vrot.slane %v2275_v26, %v2060_v29 }
 0x11f   :  { %1629 = vst [vmem:[%s2388_s4 + $0x1a0] sm:$0xf] %v1565_v41  ;;  %1631 = vst [vmem:[%s2388_s4 + $0x1b0] sm:$0xf] %v1567_v44  ;;  %v1240_v16 = vrot.slane %v2275_v26, %v2062_v30  ;;  %v1476_v20 = vrot.slane %v2277_v11, %v2060_v29  ;;  %v1472_v21 = vrot.slane %v2277_v11, %v2062_v30 }
 0x120   :  { %1630 = vst [vmem:[%s2388_s4 + $0x1a8] sm:$0xf] %v1566_v45  ;;  %v975_v51 = vpop.f32.mrb[24].mxu0  ;;  %1632 = vst [vmem:[%s2388_s4 + $0x1b8] sm:$0xf] %v1568_v48  ;;  %v1018_v54 = vpop.f32.mrb[24].mxu1  ;;  %v1480_v26 = vrot.slane %v2277_v11, %v2064_v36 }
 0x121   :  { %v1305_v7 = vmul.f32 %v1220_v43, %v975_v51  ;;  %v977_v55 = vpop.f32.mrb[25].mxu0  ;;  %v1307_v57 = vmul.f32 %v1228_v46, %v1018_v54  ;;  %v1020_v59 = vpop.f32.mrb[25].mxu1 }
 0x122   :  { %v1306_v58 = vmul.f32 %v1224_v47, %v977_v55  ;;  %v979_v60 = vpop.f32.mrb[26].mxu0  ;;  %v1308_v62 = vmul.f32 %v1232_v50, %v1020_v59  ;;  %v1022_v63 = vpop.f32.mrb[26].mxu1 }
 0x123   :  { %v1537_v61 = vadd.f32 %v1452_v49, %v1305_v7  ;;  %v1337_v9 = vmul.f32 %v1220_v43, %v979_v60  ;;  %v981_v2 = vpop.f32.mrb[27].mxu0  ;;  %v1539_v10 = vadd.f32 %v1460_v52, %v1307_v57  ;;  %v1339_v1 = vmul.f32 %v1228_v46, %v1022_v63  ;;  %v1024_v5 = vpop.f32.mrb[27].mxu1 }
 0x124   :  { %v1538_v3 = vadd.f32 %v1456_v53, %v1306_v58  ;;  %v1338_v4 = vmul.f32 %v1224_v47, %v981_v2  ;;  %v1540_v6 = vadd.f32 %v1464_v56, %v1308_v62  ;;  %v1340_v8 = vmul.f32 %v1232_v50, %v1024_v5 }
 0x125   :  { %1601 = vst [vmem:[%s2388_s4 + $0xc0] sm:$0xff] %v1537_v61  ;;  %v1569_v0 = vadd.f32 %v1452_v49, %v1337_v9  ;;  %1603 = vst [vmem:[%s2388_s4 + $0xd0] sm:$0xff] %v1539_v10  ;;  %v1571_v13 = vadd.f32 %v1460_v52, %v1339_v1 }
 0x126   :  { %1602 = vst [vmem:[%s2388_s4 + $0xc8] sm:$0xff] %v1538_v3  ;;  %v1570_v25 = vadd.f32 %v1456_v53, %v1338_v4  ;;  %1604 = vst [vmem:[%s2388_s4 + $0xd8] sm:$0xff] %v1540_v6  ;;  %v1572_v14 = vadd.f32 %v1464_v56, %v1340_v8 }
 0x127   :  { %1633 = vst [vmem:[%s2388_s4 + $0x1c0] sm:$0xf] %v1569_v0  ;;  %1635 = vst [vmem:[%s2388_s4 + $0x1d0] sm:$0xf] %v1571_v13 }
 0x128   :  { %1634 = vst [vmem:[%s2388_s4 + $0x1c8] sm:$0xf] %v1570_v25  ;;  %v1061_v19 = vpop.f32.mrb[28].mxu0  ;;  %1636 = vst [vmem:[%s2388_s4 + $0x1d8] sm:$0xf] %v1572_v14  ;;  %v1104_v22 = vpop.f32.mrb[28].mxu1 }
 0x129   :  { %v1309_v23 = vmul.f32 %v1236_v12, %v1061_v19  ;;  %v1063_v24 = vpop.f32.mrb[29].mxu0  ;;  %v1311_v27 = vmul.f32 %v1244_v15, %v1104_v22  ;;  %v1106_v31 = vpop.f32.mrb[29].mxu1 }
 0x12a   :  { %v1310_v28 = vmul.f32 %v1240_v16, %v1063_v24  ;;  %v1065_v32 = vpop.f32.mrb[30].mxu0  ;;  %v1312_v34 = vmul.f32 %v1248_v18, %v1106_v31  ;;  %v1108_v35 = vpop.f32.mrb[30].mxu1 }
 0x12b   :  { %v1541_v33 = vadd.f32 %v1468_v17, %v1309_v23  ;;  %v1341_v29 = vmul.f32 %v1236_v12, %v1065_v32  ;;  %v1067_v37 = vpop.f32.mrb[31].mxu0  ;;  %v1543_v30 = vadd.f32 %v1476_v20, %v1311_v27  ;;  %v1343_v39 = vmul.f32 %v1244_v15, %v1108_v35  ;;  %v1110_v41 = vpop.f32.mrb[31].mxu1 }
 0x12c   :  { %v1542_v38 = vadd.f32 %v1472_v21, %v1310_v28  ;;  %v1342_v40 = vmul.f32 %v1240_v16, %v1067_v37  ;;  %v1544_v42 = vadd.f32 %v1480_v26, %v1312_v34  ;;  %v1344_v11 = vmul.f32 %v1248_v18, %v1110_v41 }
 0x12d   :  { %1605 = vst [vmem:[%s2388_s4 + $0xe0] sm:$0xff] %v1541_v33  ;;  %v1573_v36 = vadd.f32 %v1468_v17, %v1341_v29  ;;  %1607 = vst [vmem:[%s2388_s4 + $0xf0] sm:$0xff] %v1543_v30  ;;  %v1575_v43 = vadd.f32 %v1476_v20, %v1343_v39 }
 0x12e   :  { %1606 = vst [vmem:[%s2388_s4 + $0xe8] sm:$0xff] %v1542_v38  ;;  %v1574_v44 = vadd.f32 %v1472_v21, %v1342_v40  ;;  %1608 = vst.msk [vmem:[%s2388_s4 + $0xf8] sm:$0xff] %vm421_vm0, %v1544_v42  ;;  %v1576_v45 = vadd.f32 %v1480_v26, %v1344_v11 }
 0x12f   :  { %1637 = vst [vmem:[%s2388_s4 + $0x1e0] sm:$0xf] %v1573_v36  ;;  %1639 = vst [vmem:[%s2388_s4 + $0x1f0] sm:$0xf] %v1575_v43 }
 0x130   :  { %1638 = vst [vmem:[%s2388_s4 + $0x1e8] sm:$0xf] %v1574_v44  ;;  %1641 = vst.msk [vmem:[%s2388_s4 + $0x1f8] sm:$0xf] %vm1640_vm1, %v1576_v45 }
 0x131   :  { %1646 = vsyncpa [#allocation3], 1 }

// kernel: classifier_forward.15
= control target key start
LH: loop header
LB: loop body
LE: loop exit
PB: predicated region body
PF: predicated region fallthrough
CT: control target
= control target key end

     0   :  { %vm3065_vm0 = vcmask 850944   ;;  %vm3069_vm1 = vcmask 1043456   ;;  %vm3913_vm2 = vcmask 846848   ;;  %s6249_s1 = inlined_call_operand.vmem [shape: bf16[1000,1000], index: 1, kind: input, shape index: {}]   ;;  %s6250_s0 = inlined_call_operand.vmem [shape: bf16[12,1000], index: 0, kind: input, shape index: {}]   ;;  %s6251_s2 = inlined_call_operand.vmem [shape: f32[1,1000], index: 2, kind: input, shape index: {}]   ;;  %s6252_s3 = inlined_call_operand.vmem [shape: f32[1,1000], index: 3, kind: input, shape index: {}]   ;;  %s6253_s4 = inlined_call_operand.vmem [shape: f32[12,1000], index: 4, kind: output, shape index: {}]  }
   0x1   :  { %v26_v0 = vld [vmem:[%s6249_s1] sm:$0xff]  ;;  %v27_v2 = vld [vmem:[%s6249_s1 + $0x8] sm:$0xff] }
   0x2   :  { %v30_v1 = vld [vmem:[%s6249_s1 + $0x20] sm:$0xff]  ;;  %v31_v4 = vld [vmem:[%s6249_s1 + $0x28] sm:$0xff] }
   0x3   :  { %v3928_v3 = vcombine.high %v26_v0, %v30_v1  ;;  %v3927_v5 = vcombine.low %v26_v0, %v30_v1  ;;  %v34_v6 = vld [vmem:[%s6249_s1 + $0x40] sm:$0xff]  ;;  %v3930_v8 = vcombine.high %v27_v2, %v31_v4  ;;  %v3929_v9 = vcombine.low %v27_v2, %v31_v4  ;;  %v35_v11 = vld [vmem:[%s6249_s1 + $0x48] sm:$0xff] }
   0x4   :  { %v38_v7 = vld [vmem:[%s6249_s1 + $0x60] sm:$0xff]  ;;  %v39_v12 = vld [vmem:[%s6249_s1 + $0x68] sm:$0xff] }
   0x5   :  { %v3936_v10 = vcombine.high %v34_v6, %v38_v7  ;;  %v42_v13 = vld [vmem:[%s6249_s1 + $0x80] sm:$0xff]  ;;  %3094 = vmatprep.subr.bf16.mxu0 %v3928_v3  ;;  %v3938_v14 = vcombine.high %v35_v11, %v39_v12  ;;  %v43_v16 = vld [vmem:[%s6249_s1 + $0x88] sm:$0xff]  ;;  %3266 = vmatprep.subr.bf16.mxu1 %v3930_v8  ;;  %v3935_v18 = vcombine.low %v34_v6, %v38_v7 }
   0x6   :  { %v46_v15 = vld [vmem:[%s6249_s1 + $0xa0] sm:$0xff]  ;;  %v47_v17 = vld [vmem:[%s6249_s1 + $0xa8] sm:$0xff]  ;;  %3095 = vmatpush1.bf16.msra.mxu0 %v3927_v5  ;;  %3267 = vmatpush1.bf16.msra.mxu1 %v3929_v9  ;;  %v3937_v19 = vcombine.low %v35_v11, %v39_v12 }
   0x7   :  { %3096 = vmatprep.subr.bf16.mxu0 %v3936_v10  ;;  %v3944_v20 = vcombine.high %v42_v13, %v46_v15  ;;  %3268 = vmatprep.subr.bf16.mxu1 %v3938_v14  ;;  %v3946_v21 = vcombine.high %v43_v16, %v47_v17  ;;  %v50_v22 = vld [vmem:[%s6249_s1 + $0xc0] sm:$0xff]  ;;  %v51_v24 = vld [vmem:[%s6249_s1 + $0xc8] sm:$0xff]  ;;  %v3943_v26 = vcombine.low %v42_v13, %v46_v15 }
   0x8   :  { %v54_v23 = vld [vmem:[%s6249_s1 + $0xe0] sm:$0xff]  ;;  %v55_v25 = vld [vmem:[%s6249_s1 + $0xe8] sm:$0xff]  ;;  %v3945_v27 = vcombine.low %v43_v16, %v47_v17 }
   0x9   :  { %v3952_v28 = vcombine.high %v50_v22, %v54_v23  ;;  %v3954_v29 = vcombine.high %v51_v24, %v55_v25  ;;  %v58_v30 = vld [vmem:[%s6249_s1 + $0x100] sm:$0xff]  ;;  %v59_v32 = vld [vmem:[%s6249_s1 + $0x108] sm:$0xff]  ;;  %v3951_v34 = vcombine.low %v50_v22, %v54_v23  ;;  %v3953_v35 = vcombine.low %v51_v24, %v55_v25 }
   0xa   :  { %3097 = vmatpush1.bf16.msra.mxu0 %v3935_v18  ;;  %3269 = vmatpush1.bf16.msra.mxu1 %v3937_v19  ;;  %v62_v31 = vld [vmem:[%s6249_s1 + $0x120] sm:$0xff]  ;;  %v63_v33 = vld [vmem:[%s6249_s1 + $0x128] sm:$0xff] }
   0xb   :  { %3098 = vmatprep.subr.bf16.mxu0 %v3944_v20  ;;  %3270 = vmatprep.subr.bf16.mxu1 %v3946_v21  ;;  %v3960_v36 = vcombine.high %v58_v30, %v62_v31  ;;  %v3962_v37 = vcombine.high %v59_v32, %v63_v33  ;;  %v66_v38 = vld [vmem:[%s6249_s1 + $0x140] sm:$0xff]  ;;  %v67_v40 = vld [vmem:[%s6249_s1 + $0x148] sm:$0xff]  ;;  %v3959_v42 = vcombine.low %v58_v30, %v62_v31 }
   0xc   :  { %v70_v39 = vld [vmem:[%s6249_s1 + $0x160] sm:$0xff]  ;;  %v71_v41 = vld [vmem:[%s6249_s1 + $0x168] sm:$0xff]  ;;  %v3961_v43 = vcombine.low %v59_v32, %v63_v33 }
   0xd   :  { %v3968_v44 = vcombine.high %v66_v38, %v70_v39  ;;  %v3970_v45 = vcombine.high %v67_v40, %v71_v41  ;;  %v74_v46 = vld [vmem:[%s6249_s1 + $0x180] sm:$0xff]  ;;  %v75_v48 = vld [vmem:[%s6249_s1 + $0x188] sm:$0xff]  ;;  %v3967_v50 = vcombine.low %v66_v38, %v70_v39  ;;  %v3969_v51 = vcombine.low %v67_v40, %v71_v41 }
   0xe   :  { %3099 = vmatpush1.bf16.msra.mxu0 %v3943_v26  ;;  %3271 = vmatpush1.bf16.msra.mxu1 %v3945_v27  ;;  %v78_v47 = vld [vmem:[%s6249_s1 + $0x1a0] sm:$0xff]  ;;  %v79_v49 = vld [vmem:[%s6249_s1 + $0x1a8] sm:$0xff] }
   0xf   :  { %3100 = vmatprep.subr.bf16.mxu0 %v3952_v28  ;;  %3272 = vmatprep.subr.bf16.mxu1 %v3954_v29  ;;  %v3976_v52 = vcombine.high %v74_v46, %v78_v47  ;;  %v4607_v53 = vld [vmem:[%s6250_s0] sm:$0xff]  ;;  %v3978_v55 = vcombine.high %v75_v48, %v79_v49  ;;  %v83_v59 = vld [vmem:[%s6249_s1 + $0x1c8] sm:$0xff]  ;;  %v3975_v61 = vcombine.low %v74_v46, %v78_v47 }
  0x10   :  { %v4612_v54 = vld [vmem:[%s6250_s0 + $0x20] sm:$0x33]  ;;  %v87_v60 = vld [vmem:[%s6249_s1 + $0x1e8] sm:$0xff]  ;;  %v3977_v62 = vcombine.low %v75_v48, %v79_v49 }
  0x11   :  { %v82_v56 = vld [vmem:[%s6249_s1 + $0x1c0] sm:$0xff]  ;;  %v4622_v58 = vcombine.high %v4607_v53, %v4612_v54  ;;  %v3986_v0 = vcombine.high %v83_v59, %v87_v60  ;;  %v91_v3 = vld [vmem:[%s6249_s1 + $0x208] sm:$0xff]  ;;  %v3985_v6 = vcombine.low %v83_v59, %v87_v60 }
  0x12   :  { %3101 = vmatpush1.bf16.msra.mxu0 %v3951_v34  ;;  %3273 = vmatpush1.bf16.msra.mxu1 %v3953_v35  ;;  %v86_v57 = vld [vmem:[%s6249_s1 + $0x1e0] sm:$0xff]  ;;  %v95_v4 = vld [vmem:[%s6249_s1 + $0x228] sm:$0xff] }
  0x13   :  { %3102 = vmatprep.subr.bf16.mxu0 %v3960_v36  ;;  %3274 = vmatprep.subr.bf16.mxu1 %v3962_v37  ;;  %v3984_v63 = vcombine.high %v82_v56, %v86_v57  ;;  %v90_v1 = vld [vmem:[%s6249_s1 + $0x200] sm:$0xff]  ;;  %v3983_v5 = vcombine.low %v82_v56, %v86_v57  ;;  %v3994_v8 = vcombine.high %v91_v3, %v95_v4  ;;  %v99_v11 = vld [vmem:[%s6249_s1 + $0x248] sm:$0xff] }
  0x14   :  { %3126 = vmatprep.mubr.bf16.mxu0 %v4622_v58  ;;  %v94_v2 = vld [vmem:[%s6249_s1 + $0x220] sm:$0xff]  ;;  %3298 = vmatprep.mubr.bf16.mxu1 %v4622_v58  ;;  %v103_v12 = vld [vmem:[%s6249_s1 + $0x268] sm:$0xff]  ;;  %v3993_v14 = vcombine.low %v91_v3, %v95_v4 }
  0x15   :  { %v3992_v7 = vcombine.high %v90_v1, %v94_v2  ;;  %v98_v9 = vld [vmem:[%s6249_s1 + $0x240] sm:$0xff]  ;;  %v3991_v13 = vcombine.low %v90_v1, %v94_v2  ;;  %v4002_v16 = vcombine.high %v99_v11, %v103_v12  ;;  %v107_v19 = vld [vmem:[%s6249_s1 + $0x288] sm:$0xff]  ;;  %v4001_v22 = vcombine.low %v99_v11, %v103_v12 }
  0x16   :  { %3103 = vmatpush1.bf16.msra.mxu0 %v3959_v42  ;;  %3275 = vmatpush1.bf16.msra.mxu1 %v3961_v43  ;;  %v102_v10 = vld [vmem:[%s6249_s1 + $0x260] sm:$0xff]  ;;  %v111_v20 = vld [vmem:[%s6249_s1 + $0x2a8] sm:$0xff] }
  0x17   :  { %3104 = vmatprep.subr.bf16.mxu0 %v3968_v44  ;;  %3276 = vmatprep.subr.bf16.mxu1 %v3970_v45  ;;  %v4000_v15 = vcombine.high %v98_v9, %v102_v10  ;;  %v106_v17 = vld [vmem:[%s6249_s1 + $0x280] sm:$0xff]  ;;  %v3999_v21 = vcombine.low %v98_v9, %v102_v10  ;;  %v4010_v24 = vcombine.high %v107_v19, %v111_v20  ;;  %v115_v27 = vld [vmem:[%s6249_s1 + $0x2c8] sm:$0xff] }
  0x18   :  { %v110_v18 = vld [vmem:[%s6249_s1 + $0x2a0] sm:$0xff]  ;;  %v119_v28 = vld [vmem:[%s6249_s1 + $0x2e8] sm:$0xff]  ;;  %v4009_v30 = vcombine.low %v107_v19, %v111_v20 }
  0x19   :  { %v4008_v23 = vcombine.high %v106_v17, %v110_v18  ;;  %v114_v25 = vld [vmem:[%s6249_s1 + $0x2c0] sm:$0xff]  ;;  %v4007_v29 = vcombine.low %v106_v17, %v110_v18  ;;  %v4018_v32 = vcombine.high %v115_v27, %v119_v28  ;;  %v123_v35 = vld [vmem:[%s6249_s1 + $0x308] sm:$0xff]  ;;  %v4017_v38 = vcombine.low %v115_v27, %v119_v28 }
  0x1a   :  { %3105 = vmatpush1.bf16.msra.mxu0 %v3967_v50  ;;  %3277 = vmatpush1.bf16.msra.mxu1 %v3969_v51  ;;  %v118_v26 = vld [vmem:[%s6249_s1 + $0x2e0] sm:$0xff]  ;;  %v127_v36 = vld [vmem:[%s6249_s1 + $0x328] sm:$0xff] }
  0x1b   :  { %3106 = vmatprep.subr.bf16.mxu0 %v3976_v52  ;;  %3278 = vmatprep.subr.bf16.mxu1 %v3978_v55  ;;  %v4016_v31 = vcombine.high %v114_v25, %v118_v26  ;;  %v122_v33 = vld [vmem:[%s6249_s1 + $0x300] sm:$0xff]  ;;  %v4015_v37 = vcombine.low %v114_v25, %v118_v26  ;;  %v4026_v40 = vcombine.high %v123_v35, %v127_v36  ;;  %v131_v43 = vld [vmem:[%s6249_s1 + $0x348] sm:$0xff] }
  0x1c   :  { %v126_v34 = vld [vmem:[%s6249_s1 + $0x320] sm:$0xff]  ;;  %v135_v44 = vld [vmem:[%s6249_s1 + $0x368] sm:$0xff]  ;;  %v4025_v46 = vcombine.low %v123_v35, %v127_v36 }
  0x1d   :  { %v4024_v39 = vcombine.high %v122_v33, %v126_v34  ;;  %v130_v41 = vld [vmem:[%s6249_s1 + $0x340] sm:$0xff]  ;;  %v4023_v45 = vcombine.low %v122_v33, %v126_v34  ;;  %v4034_v48 = vcombine.high %v131_v43, %v135_v44  ;;  %v139_v51 = vld [vmem:[%s6249_s1 + $0x388] sm:$0xff]  ;;  %v4033_v56 = vcombine.low %v131_v43, %v135_v44 }
  0x1e   :  { %3107 = vmatpush1.bf16.msra.mxu0 %v3975_v61  ;;  %3279 = vmatpush1.bf16.msra.mxu1 %v3977_v62  ;;  %v134_v42 = vld [vmem:[%s6249_s1 + $0x360] sm:$0xff]  ;;  %v143_v52 = vld [vmem:[%s6249_s1 + $0x3a8] sm:$0xff] }
  0x1f   :  { %3108 = vmatprep.subr.bf16.mxu0 %v3984_v63  ;;  %3280 = vmatprep.subr.bf16.mxu1 %v3986_v0  ;;  %v4032_v47 = vcombine.high %v130_v41, %v134_v42  ;;  %v138_v49 = vld [vmem:[%s6249_s1 + $0x380] sm:$0xff]  ;;  %v4031_v55 = vcombine.low %v130_v41, %v134_v42  ;;  %v4042_v59 = vcombine.high %v139_v51, %v143_v52  ;;  %v147_v62 = vld [vmem:[%s6249_s1 + $0x3c8] sm:$0xff] }
  0x20   :  { %v142_v50 = vld [vmem:[%s6249_s1 + $0x3a0] sm:$0xff]  ;;  %v151_v63 = vld [vmem:[%s6249_s1 + $0x3e8] sm:$0xff]  ;;  %v4041_v1 = vcombine.low %v139_v51, %v143_v52 }
  0x21   :  { %v4040_v57 = vcombine.high %v138_v49, %v142_v50  ;;  %v146_v60 = vld [vmem:[%s6249_s1 + $0x3c0] sm:$0xff]  ;;  %v4039_v0 = vcombine.low %v138_v49, %v142_v50  ;;  %v4050_v3 = vcombine.high %v147_v62, %v151_v63  ;;  %v4049_v9 = vcombine.low %v147_v62, %v151_v63  ;;  %v4759_v17 = vld [vmem:[%s6250_s0 + $0x8] sm:$0xff] }
  0x22   :  { %3109 = vmatpush1.bf16.msra.mxu0 %v3983_v5  ;;  %3281 = vmatpush1.bf16.msra.mxu1 %v3985_v6  ;;  %v150_v61 = vld [vmem:[%s6249_s1 + $0x3e0] sm:$0xff]  ;;  %v155_v6 = vld [vmem:[%s6249_s1 + $0x408] sm:$0xff] }
  0x23   :  { %3110 = vmatprep.subr.bf16.mxu0 %v3992_v7  ;;  %3282 = vmatprep.subr.bf16.mxu1 %v3994_v8  ;;  %v4048_v2 = vcombine.high %v146_v60, %v150_v61  ;;  %v154_v4 = vld [vmem:[%s6249_s1 + $0x400] sm:$0xff]  ;;  %v159_v7 = vld [vmem:[%s6249_s1 + $0x428] sm:$0xff]  ;;  %v4047_v8 = vcombine.low %v146_v60, %v150_v61 }
  0x24   :  { %v158_v5 = vld [vmem:[%s6249_s1 + $0x420] sm:$0xff]  ;;  %v4058_v11 = vcombine.high %v155_v6, %v159_v7  ;;  %v4764_v18 = vld [vmem:[%s6250_s0 + $0x28] sm:$0x33] }
  0x25   :  { %v4056_v10 = vcombine.high %v154_v4, %v158_v5  ;;  %v162_v12 = vld [vmem:[%s6249_s1 + $0x440] sm:$0xff]  ;;  %v4055_v19 = vcombine.low %v154_v4, %v158_v5  ;;  %v175_v25 = vld [vmem:[%s6249_s1 + $0x4a8] sm:$0xff] }
  0x26   :  { %3111 = vmatpush1.bf16.msra.mxu0 %v3991_v13  ;;  %3283 = vmatpush1.bf16.msra.mxu1 %v3993_v14  ;;  %v166_v13 = vld [vmem:[%s6249_s1 + $0x460] sm:$0xff]  ;;  %v163_v14 = vld [vmem:[%s6249_s1 + $0x448] sm:$0xff] }
  0x27   :  { %3112 = vmatprep.subr.bf16.mxu0 %v4000_v15  ;;  %3284 = vmatprep.subr.bf16.mxu1 %v4002_v16  ;;  %v4751_v15 = vcombine.low %v4607_v53, %v4612_v54  ;;  %v167_v16 = vld [vmem:[%s6249_s1 + $0x468] sm:$0xff]  ;;  %v4057_v53 = vcombine.low %v155_v6, %v159_v7  ;;  %v4064_v54 = vcombine.high %v162_v12, %v166_v13 }
  0x28   :  { %v4066_v20 = vcombine.high %v163_v14, %v167_v16  ;;  %v4063_v26 = vcombine.low %v162_v12, %v166_v13  ;;  %v4065_v27 = vcombine.low %v163_v14, %v167_v16  ;;  %v183_v33 = vld [vmem:[%s6249_s1 + $0x4e8] sm:$0xff] }
  0x29   :  { %v191_v41 = vld [vmem:[%s6249_s1 + $0x528] sm:$0xff] }
  0x2a   :  { %3113 = vmatpush1.bf16.msra.mxu0 %v3999_v21  ;;  %3285 = vmatpush1.bf16.msra.mxu1 %v4001_v22  ;;  %v170_v21 = vld [vmem:[%s6249_s1 + $0x480] sm:$0xff]  ;;  %v199_v49 = vld [vmem:[%s6249_s1 + $0x568] sm:$0xff] }
  0x2b   :  { %3114 = vmatprep.subr.bf16.mxu0 %v4008_v23  ;;  %3286 = vmatprep.subr.bf16.mxu1 %v4010_v24  ;;  %v174_v22 = vld [vmem:[%s6249_s1 + $0x4a0] sm:$0xff]  ;;  %v4774_v23 = vcombine.high %v4759_v17, %v4764_v18  ;;  %v171_v24 = vld [vmem:[%s6249_s1 + $0x488] sm:$0xff] }
  0x2c   :  { %v4072_v28 = vcombine.high %v170_v21, %v174_v22  ;;  %v4071_v34 = vcombine.low %v170_v21, %v174_v22  ;;  %v4073_v35 = vcombine.low %v171_v24, %v175_v25  ;;  %v207_v60 = vld [vmem:[%s6249_s1 + $0x5a8] sm:$0xff] }
  0x2d   :  { %v215_v4 = vld [vmem:[%s6249_s1 + $0x5e8] sm:$0xff] }
  0x2e   :  { %3115 = vmatpush1.bf16.msra.mxu0 %v4007_v29  ;;  %3287 = vmatpush1.bf16.msra.mxu1 %v4009_v30  ;;  %v4074_v29 = vcombine.high %v171_v24, %v175_v25  ;;  %v178_v30 = vld [vmem:[%s6249_s1 + $0x4c0] sm:$0xff]  ;;  %v223_v12 = vld [vmem:[%s6249_s1 + $0x628] sm:$0xff] }
  0x2f   :  { %3116 = vmatprep.subr.bf16.mxu0 %v4016_v31  ;;  %3288 = vmatprep.subr.bf16.mxu1 %v4018_v32  ;;  %v182_v31 = vld [vmem:[%s6249_s1 + $0x4e0] sm:$0xff]  ;;  %v179_v32 = vld [vmem:[%s6249_s1 + $0x4c8] sm:$0xff] }
  0x30   :  { %v4080_v36 = vcombine.high %v178_v30, %v182_v31  ;;  %v4079_v42 = vcombine.low %v178_v30, %v182_v31  ;;  %v4081_v43 = vcombine.low %v179_v32, %v183_v33  ;;  %v231_v21 = vld [vmem:[%s6249_s1 + $0x668] sm:$0xff] }
  0x31   :  { %v239_v30 = vld [vmem:[%s6249_s1 + $0x6a8] sm:$0xff] }
  0x32   :  { %3117 = vmatpush1.bf16.msra.mxu0 %v4015_v37  ;;  %3289 = vmatpush1.bf16.msra.mxu1 %v4017_v38  ;;  %v4082_v37 = vcombine.high %v179_v32, %v183_v33  ;;  %v186_v38 = vld [vmem:[%s6249_s1 + $0x500] sm:$0xff] }
  0x33   :  { %3118 = vmatprep.subr.bf16.mxu0 %v4024_v39  ;;  %3290 = vmatprep.subr.bf16.mxu1 %v4026_v40  ;;  %v190_v39 = vld [vmem:[%s6249_s1 + $0x520] sm:$0xff]  ;;  %v187_v40 = vld [vmem:[%s6249_s1 + $0x508] sm:$0xff] }
  0x34   :  { %v4088_v44 = vcombine.high %v186_v38, %v190_v39  ;;  %v4087_v50 = vcombine.low %v186_v38, %v190_v39  ;;  %v4089_v51 = vcombine.low %v187_v40, %v191_v41  ;;  %v247_v38 = vld [vmem:[%s6249_s1 + $0x6e8] sm:$0xff] }
  0x36   :  { %3119 = vmatpush1.bf16.msra.mxu0 %v4023_v45  ;;  %3291 = vmatpush1.bf16.msra.mxu1 %v4025_v46  ;;  %v4090_v45 = vcombine.high %v187_v40, %v191_v41  ;;  %v194_v46 = vld [vmem:[%s6249_s1 + $0x540] sm:$0xff] }
  0x37   :  { %3120 = vmatprep.subr.bf16.mxu0 %v4032_v47  ;;  %3292 = vmatprep.subr.bf16.mxu1 %v4034_v48  ;;  %v198_v47 = vld [vmem:[%s6249_s1 + $0x560] sm:$0xff]  ;;  %v195_v48 = vld [vmem:[%s6249_s1 + $0x548] sm:$0xff] }
  0x38   :  { %v4096_v52 = vcombine.high %v194_v46, %v198_v47  ;;  %v4095_v61 = vcombine.low %v194_v46, %v198_v47  ;;  %v4097_v62 = vcombine.low %v195_v48, %v199_v49  ;;  %v255_v46 = vld [vmem:[%s6249_s1 + $0x728] sm:$0xff] }
  0x3a   :  { %3121 = vmatpush1.bf16.msra.mxu0 %v4031_v55  ;;  %3293 = vmatpush1.bf16.msra.mxu1 %v4033_v56  ;;  %v4098_v55 = vcombine.high %v195_v48, %v199_v49  ;;  %v202_v56 = vld [vmem:[%s6249_s1 + $0x580] sm:$0xff] }
  0x3b   :  { %3122 = vmatprep.subr.bf16.mxu0 %v4040_v57  ;;  %3294 = vmatprep.subr.bf16.mxu1 %v4042_v59  ;;  %v206_v57 = vld [vmem:[%s6249_s1 + $0x5a0] sm:$0xff]  ;;  %v203_v59 = vld [vmem:[%s6249_s1 + $0x588] sm:$0xff] }
  0x3c   :  { %v4104_v63 = vcombine.high %v202_v56, %v206_v57  ;;  %v4103_v5 = vcombine.low %v202_v56, %v206_v57  ;;  %v4105_v6 = vcombine.low %v203_v59, %v207_v60  ;;  %v263_v56 = vld [vmem:[%s6249_s1 + $0x768] sm:$0xff] }
  0x3e   :  { %3123 = vmatpush1.bf16.msra.mxu0 %v4039_v0  ;;  %3295 = vmatpush1.bf16.msra.mxu1 %v4041_v1  ;;  %v4106_v0 = vcombine.high %v203_v59, %v207_v60  ;;  %v210_v1 = vld [vmem:[%s6249_s1 + $0x5c0] sm:$0xff] }
  0x3f   :  { %3124 = vmatprep.subr.bf16.mxu0 %v4048_v2  ;;  %3296 = vmatprep.subr.bf16.mxu1 %v4050_v3  ;;  %v214_v2 = vld [vmem:[%s6249_s1 + $0x5e0] sm:$0xff]  ;;  %v211_v3 = vld [vmem:[%s6249_s1 + $0x5c8] sm:$0xff] }
  0x40   :  { %v4112_v7 = vcombine.high %v210_v1, %v214_v2  ;;  %v4111_v13 = vcombine.low %v210_v1, %v214_v2  ;;  %v4113_v14 = vcombine.low %v211_v3, %v215_v4  ;;  %v271_v1 = vld [vmem:[%s6249_s1 + $0x7a8] sm:$0xff] }
  0x42   :  { %3125 = vmatpush1.bf16.msra.mxu0 %v4047_v8  ;;  %3297 = vmatpush1.bf16.msra.mxu1 %v4049_v9  ;;  %v4114_v8 = vcombine.high %v211_v3, %v215_v4  ;;  %v218_v9 = vld [vmem:[%s6249_s1 + $0x600] sm:$0xff] }
  0x43   :  { %3137 = vmatprep.subr.bf16.mxu0 %v4056_v10  ;;  %3309 = vmatprep.subr.bf16.mxu1 %v4058_v11  ;;  %v222_v10 = vld [vmem:[%s6249_s1 + $0x620] sm:$0xff]  ;;  %v219_v11 = vld [vmem:[%s6249_s1 + $0x608] sm:$0xff] }
  0x44   :  { %v4120_v16 = vcombine.high %v218_v9, %v222_v10  ;;  %v4119_v22 = vcombine.low %v218_v9, %v222_v10  ;;  %v4121_v24 = vcombine.low %v219_v11, %v223_v12  ;;  %v279_v9 = vld [vmem:[%s6249_s1 + $0x7e8] sm:$0xff] }
  0x45   :  { %3127 = vmatmul.mubr.bf16.vlgmr.msra.gmra.mrb[0].mxu0 %v4751_v15  ;;  %3299 = vmatmul.mubr.bf16.vlgmr.msra.gmra.mrb[0].mxu1 %v4751_v15 }
  0x46   :  { %3138 = vmatpush1.bf16.msra.mxu0 %v4055_v19  ;;  %3310 = vmatpush1.bf16.msra.mxu1 %v4057_v53  ;;  %v4122_v19 = vcombine.high %v219_v11, %v223_v12  ;;  %v226_v53 = vld [vmem:[%s6249_s1 + $0x640] sm:$0xff] }
  0x47   :  { %3139 = vmatprep.subr.bf16.mxu0 %v4064_v54  ;;  %3311 = vmatprep.subr.bf16.mxu1 %v4066_v20  ;;  %v230_v54 = vld [vmem:[%s6249_s1 + $0x660] sm:$0xff]  ;;  %v227_v20 = vld [vmem:[%s6249_s1 + $0x648] sm:$0xff] }
  0x48   :  { %3169 = vmatprep.mubr.bf16.mxu0 %v4774_v23  ;;  %3341 = vmatprep.mubr.bf16.mxu1 %v4774_v23  ;;  %v4128_v25 = vcombine.high %v226_v53, %v230_v54  ;;  %v4127_v31 = vcombine.low %v226_v53, %v230_v54  ;;  %v4129_v32 = vcombine.low %v227_v20, %v231_v21  ;;  %v287_v53 = vld [vmem:[%s6249_s1 + $0x828] sm:$0xff] }
  0x4a   :  { %3140 = vmatpush1.bf16.msra.mxu0 %v4063_v26  ;;  %3312 = vmatpush1.bf16.msra.mxu1 %v4065_v27  ;;  %v4130_v26 = vcombine.high %v227_v20, %v231_v21  ;;  %v234_v27 = vld [vmem:[%s6249_s1 + $0x680] sm:$0xff] }
  0x4b   :  { %3141 = vmatprep.subr.bf16.mxu0 %v4072_v28  ;;  %3313 = vmatprep.subr.bf16.mxu1 %v4074_v29  ;;  %v238_v28 = vld [vmem:[%s6249_s1 + $0x6a0] sm:$0xff]  ;;  %v235_v29 = vld [vmem:[%s6249_s1 + $0x688] sm:$0xff] }
  0x4c   :  { %v4136_v33 = vcombine.high %v234_v27, %v238_v28  ;;  %v4135_v39 = vcombine.low %v234_v27, %v238_v28  ;;  %v4137_v40 = vcombine.low %v235_v29, %v239_v30  ;;  %v4965_v27 = vcombine.low %v4759_v17, %v4764_v18  ;;  %v295_v28 = vld [vmem:[%s6249_s1 + $0x868] sm:$0xff] }
  0x4e   :  { %3142 = vmatpush1.bf16.msra.mxu0 %v4071_v34  ;;  %3314 = vmatpush1.bf16.msra.mxu1 %v4073_v35  ;;  %v4138_v34 = vcombine.high %v235_v29, %v239_v30  ;;  %v242_v35 = vld [vmem:[%s6249_s1 + $0x6c0] sm:$0xff]  ;;  %v4973_v29 = vld [vmem:[%s6250_s0 + $0x10] sm:$0xff] }
  0x4f   :  { %3143 = vmatprep.subr.bf16.mxu0 %v4080_v36  ;;  %3315 = vmatprep.subr.bf16.mxu1 %v4082_v37  ;;  %v246_v36 = vld [vmem:[%s6249_s1 + $0x6e0] sm:$0xff]  ;;  %v243_v37 = vld [vmem:[%s6249_s1 + $0x6c8] sm:$0xff]  ;;  %v4978_v30 = vld [vmem:[%s6250_s0 + $0x30] sm:$0x33] }
  0x50   :  { %v4144_v41 = vcombine.high %v242_v35, %v246_v36  ;;  %v4143_v47 = vcombine.low %v242_v35, %v246_v36  ;;  %v4145_v48 = vcombine.low %v243_v37, %v247_v38  ;;  %v4988_v35 = vcombine.high %v4973_v29, %v4978_v30  ;;  %v299_v36 = vld [vmem:[%s6249_s1 + $0x888] sm:$0xff] }
  0x52   :  { %3144 = vmatpush1.bf16.msra.mxu0 %v4079_v42  ;;  %3316 = vmatpush1.bf16.msra.mxu1 %v4081_v43  ;;  %v4146_v42 = vcombine.high %v243_v37, %v247_v38  ;;  %v250_v43 = vld [vmem:[%s6249_s1 + $0x700] sm:$0xff]  ;;  %v303_v37 = vld [vmem:[%s6249_s1 + $0x8a8] sm:$0xff] }
  0x53   :  { %3145 = vmatprep.subr.bf16.mxu0 %v4088_v44  ;;  %3317 = vmatprep.subr.bf16.mxu1 %v4090_v45  ;;  %v254_v44 = vld [vmem:[%s6249_s1 + $0x720] sm:$0xff]  ;;  %v251_v45 = vld [vmem:[%s6249_s1 + $0x708] sm:$0xff] }
  0x54   :  { %v4152_v49 = vcombine.high %v250_v43, %v254_v44  ;;  %v4151_v57 = vcombine.low %v250_v43, %v254_v44  ;;  %v4153_v59 = vcombine.low %v251_v45, %v255_v46  ;;  %v310_v43 = vld [vmem:[%s6249_s1 + $0x8e0] sm:$0xff]  ;;  %v307_v44 = vld [vmem:[%s6249_s1 + $0x8c8] sm:$0xff] }
  0x56   :  { %3146 = vmatpush1.bf16.msra.mxu0 %v4087_v50  ;;  %3318 = vmatpush1.bf16.msra.mxu1 %v4089_v51  ;;  %v4154_v50 = vcombine.high %v251_v45, %v255_v46  ;;  %v258_v51 = vld [vmem:[%s6249_s1 + $0x740] sm:$0xff]  ;;  %v311_v45 = vld [vmem:[%s6249_s1 + $0x8e8] sm:$0xff] }
  0x57   :  { %3147 = vmatprep.subr.bf16.mxu0 %v4096_v52  ;;  %3319 = vmatprep.subr.bf16.mxu1 %v4098_v55  ;;  %v262_v52 = vld [vmem:[%s6249_s1 + $0x760] sm:$0xff]  ;;  %v259_v55 = vld [vmem:[%s6249_s1 + $0x748] sm:$0xff] }
  0x58   :  { %v4160_v60 = vcombine.high %v258_v51, %v262_v52  ;;  %v4159_v2 = vcombine.low %v258_v51, %v262_v52  ;;  %v4161_v3 = vcombine.low %v259_v55, %v263_v56  ;;  %v318_v51 = vld [vmem:[%s6249_s1 + $0x920] sm:$0xff]  ;;  %v315_v52 = vld [vmem:[%s6249_s1 + $0x908] sm:$0xff] }
  0x5a   :  { %3148 = vmatpush1.bf16.msra.mxu0 %v4095_v61  ;;  %3320 = vmatpush1.bf16.msra.mxu1 %v4097_v62  ;;  %v4162_v61 = vcombine.high %v259_v55, %v263_v56  ;;  %v266_v62 = vld [vmem:[%s6249_s1 + $0x780] sm:$0xff]  ;;  %v319_v55 = vld [vmem:[%s6249_s1 + $0x928] sm:$0xff] }
  0x5b   :  { %3149 = vmatprep.subr.bf16.mxu0 %v4104_v63  ;;  %3321 = vmatprep.subr.bf16.mxu1 %v4106_v0  ;;  %v270_v63 = vld [vmem:[%s6249_s1 + $0x7a0] sm:$0xff]  ;;  %v267_v0 = vld [vmem:[%s6249_s1 + $0x788] sm:$0xff] }
  0x5c   :  { %v4168_v4 = vcombine.high %v266_v62, %v270_v63  ;;  %v4167_v10 = vcombine.low %v266_v62, %v270_v63  ;;  %v4169_v11 = vcombine.low %v267_v0, %v271_v1  ;;  %v326_v62 = vld [vmem:[%s6249_s1 + $0x960] sm:$0xff]  ;;  %v323_v63 = vld [vmem:[%s6249_s1 + $0x948] sm:$0xff] }
  0x5e   :  { %3150 = vmatpush1.bf16.msra.mxu0 %v4103_v5  ;;  %3322 = vmatpush1.bf16.msra.mxu1 %v4105_v6  ;;  %v4170_v5 = vcombine.high %v267_v0, %v271_v1  ;;  %v274_v6 = vld [vmem:[%s6249_s1 + $0x7c0] sm:$0xff]  ;;  %v327_v0 = vld [vmem:[%s6249_s1 + $0x968] sm:$0xff] }
  0x5f   :  { %3151 = vmatprep.subr.bf16.mxu0 %v4112_v7  ;;  %3323 = vmatprep.subr.bf16.mxu1 %v4114_v8  ;;  %v278_v7 = vld [vmem:[%s6249_s1 + $0x7e0] sm:$0xff]  ;;  %v275_v8 = vld [vmem:[%s6249_s1 + $0x7c8] sm:$0xff] }
  0x60   :  { %v4176_v12 = vcombine.high %v274_v6, %v278_v7  ;;  %v4175_v54 = vcombine.low %v274_v6, %v278_v7  ;;  %v4177_v20 = vcombine.low %v275_v8, %v279_v9  ;;  %v334_v6 = vld [vmem:[%s6249_s1 + $0x9a0] sm:$0xff]  ;;  %v331_v7 = vld [vmem:[%s6249_s1 + $0x988] sm:$0xff] }
  0x62   :  { %3152 = vmatpush1.bf16.msra.mxu0 %v4111_v13  ;;  %3324 = vmatpush1.bf16.msra.mxu1 %v4113_v14  ;;  %v4178_v13 = vcombine.high %v275_v8, %v279_v9  ;;  %v282_v14 = vld [vmem:[%s6249_s1 + $0x800] sm:$0xff]  ;;  %v335_v8 = vld [vmem:[%s6249_s1 + $0x9a8] sm:$0xff] }
  0x63   :  { %3153 = vmatprep.subr.bf16.mxu0 %v4120_v16  ;;  %3325 = vmatprep.subr.bf16.mxu1 %v4122_v19  ;;  %v286_v16 = vld [vmem:[%s6249_s1 + $0x820] sm:$0xff]  ;;  %v283_v19 = vld [vmem:[%s6249_s1 + $0x808] sm:$0xff] }
  0x64   :  { %v4184_v21 = vcombine.high %v282_v14, %v286_v16  ;;  %v4185_v17 = vcombine.low %v283_v19, %v287_v53 }
  0x66   :  { %3154 = vmatpush1.bf16.msra.mxu0 %v4119_v22  ;;  %3326 = vmatpush1.bf16.msra.mxu1 %v4121_v24  ;;  %v4186_v22 = vcombine.high %v283_v19, %v287_v53  ;;  %v290_v24 = vld [vmem:[%s6249_s1 + $0x840] sm:$0xff]  ;;  %v343_v19 = vld [vmem:[%s6249_s1 + $0x9e8] sm:$0xff] }
  0x67   :  { %3155 = vmatprep.subr.bf16.mxu0 %v4128_v25  ;;  %3327 = vmatprep.subr.bf16.mxu1 %v4130_v26  ;;  %v294_v25 = vld [vmem:[%s6249_s1 + $0x860] sm:$0xff]  ;;  %v291_v26 = vld [vmem:[%s6249_s1 + $0x848] sm:$0xff] }
  0x68   :  { %v4192_v18 = vcombine.high %v290_v24, %v294_v25  ;;  %v4191_v38 = vcombine.low %v290_v24, %v294_v25  ;;  %v350_v24 = vld [vmem:[%s6249_s1 + $0xa20] sm:$0xff]  ;;  %v347_v25 = vld [vmem:[%s6249_s1 + $0xa08] sm:$0xff] }
  0x6a   :  { %3156 = vmatpush1.bf16.msra.mxu0 %v4127_v31  ;;  %3328 = vmatpush1.bf16.msra.mxu1 %v4129_v32  ;;  %v4183_v31 = vcombine.low %v282_v14, %v286_v16  ;;  %v4194_v32 = vcombine.high %v291_v26, %v295_v28  ;;  %v342_v14 = vld [vmem:[%s6249_s1 + $0x9e0] sm:$0xff]  ;;  %v339_v16 = vld [vmem:[%s6249_s1 + $0x9c8] sm:$0xff] }
  0x6b   :  { %3157 = vmatprep.subr.bf16.mxu0 %v4136_v33  ;;  %3329 = vmatprep.subr.bf16.mxu1 %v4138_v34  ;;  %v298_v33 = vld [vmem:[%s6249_s1 + $0x880] sm:$0xff] }
  0x6c   :  { %v302_v34 = vld [vmem:[%s6249_s1 + $0x8a0] sm:$0xff] }
  0x6d   :  { %v4199_v46 = vcombine.low %v298_v33, %v302_v34 }
  0x6e   :  { %3158 = vmatpush1.bf16.msra.mxu0 %v4135_v39  ;;  %3330 = vmatpush1.bf16.msra.mxu1 %v4137_v40  ;;  %v4193_v39 = vcombine.low %v291_v26, %v295_v28  ;;  %v4200_v40 = vcombine.high %v298_v33, %v302_v34  ;;  %v351_v26 = vld [vmem:[%s6249_s1 + $0xa28] sm:$0xff]  ;;  %v358_v33 = vld [vmem:[%s6249_s1 + $0xa60] sm:$0xff] }
  0x6f   :  { %3159 = vmatprep.subr.bf16.mxu0 %v4144_v41  ;;  %3331 = vmatprep.subr.bf16.mxu1 %v4146_v42  ;;  %v4202_v41 = vcombine.high %v299_v36, %v303_v37  ;;  %v306_v42 = vld [vmem:[%s6249_s1 + $0x8c0] sm:$0xff]  ;;  %v355_v34 = vld [vmem:[%s6249_s1 + $0xa48] sm:$0xff] }
  0x70   :  { %v4207_v56 = vcombine.low %v306_v42, %v310_v43 }
  0x72   :  { %3160 = vmatpush1.bf16.msra.mxu0 %v4143_v47  ;;  %3332 = vmatpush1.bf16.msra.mxu1 %v4145_v48  ;;  %v4201_v47 = vcombine.low %v299_v36, %v303_v37  ;;  %v4208_v48 = vcombine.high %v306_v42, %v310_v43  ;;  %v359_v36 = vld [vmem:[%s6249_s1 + $0xa68] sm:$0xff]  ;;  %v366_v42 = vld [vmem:[%s6249_s1 + $0xaa0] sm:$0xff] }
  0x73   :  { %3161 = vmatprep.subr.bf16.mxu0 %v4152_v49  ;;  %3333 = vmatprep.subr.bf16.mxu1 %v4154_v50  ;;  %v4210_v49 = vcombine.high %v307_v44, %v311_v45  ;;  %v314_v50 = vld [vmem:[%s6249_s1 + $0x900] sm:$0xff]  ;;  %v363_v43 = vld [vmem:[%s6249_s1 + $0xa88] sm:$0xff] }
  0x74   :  { %v4215_v1 = vcombine.low %v314_v50, %v318_v51 }
  0x76   :  { %3162 = vmatpush1.bf16.msra.mxu0 %v4151_v57  ;;  %3334 = vmatpush1.bf16.msra.mxu1 %v4153_v59  ;;  %v4209_v57 = vcombine.low %v307_v44, %v311_v45  ;;  %v4216_v59 = vcombine.high %v314_v50, %v318_v51  ;;  %v367_v44 = vld [vmem:[%s6249_s1 + $0xaa8] sm:$0xff]  ;;  %v374_v50 = vld [vmem:[%s6249_s1 + $0xae0] sm:$0xff] }
  0x77   :  { %3163 = vmatprep.subr.bf16.mxu0 %v4160_v60  ;;  %3335 = vmatprep.subr.bf16.mxu1 %v4162_v61  ;;  %v4218_v60 = vcombine.high %v315_v52, %v319_v55  ;;  %v322_v61 = vld [vmem:[%s6249_s1 + $0x940] sm:$0xff]  ;;  %v371_v51 = vld [vmem:[%s6249_s1 + $0xac8] sm:$0xff] }
  0x78   :  { %v4223_v9 = vcombine.low %v322_v61, %v326_v62 }
  0x7a   :  { %3164 = vmatpush1.bf16.msra.mxu0 %v4159_v2  ;;  %3336 = vmatpush1.bf16.msra.mxu1 %v4161_v3  ;;  %v4217_v2 = vcombine.low %v315_v52, %v319_v55  ;;  %v4224_v3 = vcombine.high %v322_v61, %v326_v62  ;;  %v375_v52 = vld [vmem:[%s6249_s1 + $0xae8] sm:$0xff]  ;;  %v382_v61 = vld [vmem:[%s6249_s1 + $0xb20] sm:$0xff] }
  0x7b   :  { %3165 = vmatprep.subr.bf16.mxu0 %v4168_v4  ;;  %3337 = vmatprep.subr.bf16.mxu1 %v4170_v5  ;;  %v4226_v4 = vcombine.high %v323_v63, %v327_v0  ;;  %v330_v5 = vld [vmem:[%s6249_s1 + $0x980] sm:$0xff]  ;;  %v379_v62 = vld [vmem:[%s6249_s1 + $0xb08] sm:$0xff] }
  0x7c   :  { %v4231_v53 = vcombine.low %v330_v5, %v334_v6 }
  0x7e   :  { %3166 = vmatpush1.bf16.msra.mxu0 %v4167_v10  ;;  %3338 = vmatpush1.bf16.msra.mxu1 %v4169_v11  ;;  %v4225_v10 = vcombine.low %v323_v63, %v327_v0  ;;  %v4232_v11 = vcombine.high %v330_v5, %v334_v6  ;;  %v383_v63 = vld [vmem:[%s6249_s1 + $0xb28] sm:$0xff]  ;;  %v390_v5 = vld [vmem:[%s6249_s1 + $0xb60] sm:$0xff] }
  0x7f   :  { %3167 = vmatprep.subr.bf16.mxu0 %v4176_v12  ;;  %3339 = vmatprep.subr.bf16.mxu1 %v4178_v13  ;;  %v4234_v12 = vcombine.high %v331_v7, %v335_v8  ;;  %v338_v13 = vld [vmem:[%s6249_s1 + $0x9c0] sm:$0xff]  ;;  %v387_v6 = vld [vmem:[%s6249_s1 + $0xb48] sm:$0xff] }
  0x80   :  { %v4239_v28 = vcombine.low %v338_v13, %v342_v14 }
  0x82   :  { %3168 = vmatpush1.bf16.msra.mxu0 %v4175_v54  ;;  %3340 = vmatpush1.bf16.msra.mxu1 %v4177_v20  ;;  %v4233_v54 = vcombine.low %v331_v7, %v335_v8  ;;  %v4240_v20 = vcombine.high %v338_v13, %v342_v14  ;;  %v391_v7 = vld [vmem:[%s6249_s1 + $0xb68] sm:$0xff]  ;;  %v398_v13 = vld [vmem:[%s6249_s1 + $0xba0] sm:$0xff] }
  0x83   :  { %3180 = vmatprep.subr.bf16.mxu0 %v4184_v21  ;;  %3352 = vmatprep.subr.bf16.mxu1 %v4186_v22  ;;  %v4242_v21 = vcombine.high %v339_v16, %v343_v19  ;;  %v346_v22 = vld [vmem:[%s6249_s1 + $0xa00] sm:$0xff]  ;;  %v395_v14 = vld [vmem:[%s6249_s1 + $0xb88] sm:$0xff] }
  0x84   :  { %v4247_v37 = vcombine.low %v346_v22, %v350_v24 }
  0x85   :  { %3170 = vmatmul.mubr.bf16.vlgmr.msra.gmra.mrb[0].mxu0 %v4965_v27  ;;  %3342 = vmatmul.mubr.bf16.vlgmr.msra.gmra.mrb[0].mxu1 %v4965_v27 }
  0x86   :  { %3181 = vmatpush1.bf16.msra.mxu0 %v4183_v31  ;;  %3353 = vmatpush1.bf16.msra.mxu1 %v4185_v17  ;;  %v4241_v31 = vcombine.low %v339_v16, %v343_v19  ;;  %v4248_v17 = vcombine.high %v346_v22, %v350_v24  ;;  %v399_v16 = vld [vmem:[%s6249_s1 + $0xba8] sm:$0xff]  ;;  %v406_v22 = vld [vmem:[%s6249_s1 + $0xbe0] sm:$0xff] }
  0x87   :  { %3182 = vmatprep.subr.bf16.mxu0 %v4192_v18  ;;  %3354 = vmatprep.subr.bf16.mxu1 %v4194_v32  ;;  %v4250_v18 = vcombine.high %v347_v25, %v351_v26  ;;  %v354_v32 = vld [vmem:[%s6249_s1 + $0xa40] sm:$0xff]  ;;  %v403_v24 = vld [vmem:[%s6249_s1 + $0xbc8] sm:$0xff] }
  0x88   :  { %3212 = vmatprep.mubr.bf16.mxu0 %v4988_v35  ;;  %3384 = vmatprep.mubr.bf16.mxu1 %v4988_v35  ;;  %v4255_v45 = vcombine.low %v354_v32, %v358_v33 }
  0x8a   :  { %3183 = vmatpush1.bf16.msra.mxu0 %v4191_v38  ;;  %3355 = vmatpush1.bf16.msra.mxu1 %v4193_v39  ;;  %v4249_v38 = vcombine.low %v347_v25, %v351_v26  ;;  %v4256_v39 = vcombine.high %v354_v32, %v358_v33  ;;  %v407_v25 = vld [vmem:[%s6249_s1 + $0xbe8] sm:$0xff]  ;;  %v414_v32 = vld [vmem:[%s6249_s1 + $0xc20] sm:$0xff] }
  0x8b   :  { %3184 = vmatprep.subr.bf16.mxu0 %v4200_v40  ;;  %3356 = vmatprep.subr.bf16.mxu1 %v4202_v41  ;;  %v4258_v40 = vcombine.high %v355_v34, %v359_v36  ;;  %v362_v41 = vld [vmem:[%s6249_s1 + $0xa80] sm:$0xff]  ;;  %v411_v33 = vld [vmem:[%s6249_s1 + $0xc08] sm:$0xff] }
  0x8c   :  { %v4263_v55 = vcombine.low %v362_v41, %v366_v42 }
  0x8e   :  { %3185 = vmatpush1.bf16.msra.mxu0 %v4199_v46  ;;  %3357 = vmatpush1.bf16.msra.mxu1 %v4201_v47  ;;  %v4257_v46 = vcombine.low %v355_v34, %v359_v36  ;;  %v4264_v47 = vcombine.high %v362_v41, %v366_v42  ;;  %v415_v34 = vld [vmem:[%s6249_s1 + $0xc28] sm:$0xff]  ;;  %v422_v41 = vld [vmem:[%s6249_s1 + $0xc60] sm:$0xff] }
  0x8f   :  { %3186 = vmatprep.subr.bf16.mxu0 %v4208_v48  ;;  %3358 = vmatprep.subr.bf16.mxu1 %v4210_v49  ;;  %v4266_v48 = vcombine.high %v363_v43, %v367_v44  ;;  %v370_v49 = vld [vmem:[%s6249_s1 + $0xac0] sm:$0xff]  ;;  %v419_v42 = vld [vmem:[%s6249_s1 + $0xc48] sm:$0xff] }
  0x90   :  { %v4271_v0 = vcombine.low %v370_v49, %v374_v50 }
  0x92   :  { %3187 = vmatpush1.bf16.msra.mxu0 %v4207_v56  ;;  %3359 = vmatpush1.bf16.msra.mxu1 %v4209_v57  ;;  %v4265_v56 = vcombine.low %v363_v43, %v367_v44  ;;  %v4272_v57 = vcombine.high %v370_v49, %v374_v50  ;;  %v5179_v43 = vcombine.low %v4973_v29, %v4978_v30  ;;  %v423_v44 = vld [vmem:[%s6249_s1 + $0xc68] sm:$0xff]  ;;  %v426_v49 = vld [vmem:[%s6249_s1 + $0xc80] sm:$0xff] }
  0x93   :  { %3188 = vmatprep.subr.bf16.mxu0 %v4216_v59  ;;  %3360 = vmatprep.subr.bf16.mxu1 %v4218_v60  ;;  %v4274_v59 = vcombine.high %v371_v51, %v375_v52  ;;  %v378_v60 = vld [vmem:[%s6249_s1 + $0xb00] sm:$0xff]  ;;  %v4313_v29 = vcombine.low %v411_v33, %v415_v34 }
  0x94   :  { %v4279_v8 = vcombine.low %v378_v60, %v382_v61  ;;  %v430_v50 = vld [vmem:[%s6249_s1 + $0xca0] sm:$0xff] }
  0x96   :  { %3189 = vmatpush1.bf16.msra.mxu0 %v4215_v1  ;;  %3361 = vmatpush1.bf16.msra.mxu1 %v4217_v2  ;;  %v4273_v1 = vcombine.low %v371_v51, %v375_v52  ;;  %v4280_v2 = vcombine.high %v378_v60, %v382_v61  ;;  %v427_v52 = vld [vmem:[%s6249_s1 + $0xc88] sm:$0xff]  ;;  %v434_v61 = vld [vmem:[%s6249_s1 + $0xcc0] sm:$0xff] }
  0x97   :  { %3190 = vmatprep.subr.bf16.mxu0 %v4224_v3  ;;  %3362 = vmatprep.subr.bf16.mxu1 %v4226_v4  ;;  %v4282_v3 = vcombine.high %v379_v62, %v383_v63  ;;  %v386_v4 = vld [vmem:[%s6249_s1 + $0xb40] sm:$0xff] }
  0x98   :  { %v4287_v19 = vcombine.low %v386_v4, %v390_v5 }
  0x9a   :  { %3191 = vmatpush1.bf16.msra.mxu0 %v4223_v9  ;;  %3363 = vmatpush1.bf16.msra.mxu1 %v4225_v10  ;;  %v4281_v9 = vcombine.low %v379_v62, %v383_v63  ;;  %v4288_v10 = vcombine.high %v386_v4, %v390_v5  ;;  %v438_v62 = vld [vmem:[%s6249_s1 + $0xce0] sm:$0xff]  ;;  %v435_v63 = vld [vmem:[%s6249_s1 + $0xcc8] sm:$0xff] }
  0x9b   :  { %3192 = vmatprep.subr.bf16.mxu0 %v4232_v11  ;;  %3364 = vmatprep.subr.bf16.mxu1 %v4234_v12  ;;  %v4290_v11 = vcombine.high %v387_v6, %v391_v7  ;;  %v394_v12 = vld [vmem:[%s6249_s1 + $0xb80] sm:$0xff] }
  0x9c   :  { %v4295_v26 = vcombine.low %v394_v12, %v398_v13  ;;  %v442_v5 = vld [vmem:[%s6249_s1 + $0xd00] sm:$0xff] }
  0x9e   :  { %3193 = vmatpush1.bf16.msra.mxu0 %v4231_v53  ;;  %3365 = vmatpush1.bf16.msra.mxu1 %v4233_v54  ;;  %v4289_v53 = vcombine.low %v387_v6, %v391_v7  ;;  %v4296_v54 = vcombine.high %v394_v12, %v398_v13  ;;  %v446_v6 = vld [vmem:[%s6249_s1 + $0xd20] sm:$0xff]  ;;  %v443_v7 = vld [vmem:[%s6249_s1 + $0xd08] sm:$0xff] }
  0x9f   :  { %3194 = vmatprep.subr.bf16.mxu0 %v4240_v20  ;;  %3366 = vmatprep.subr.bf16.mxu1 %v4242_v21  ;;  %v4298_v20 = vcombine.high %v395_v14, %v399_v16  ;;  %v402_v21 = vld [vmem:[%s6249_s1 + $0xbc0] sm:$0xff] }
  0xa0   :  { %v4303_v36 = vcombine.low %v402_v21, %v406_v22  ;;  %v450_v13 = vld [vmem:[%s6249_s1 + $0xd40] sm:$0xff] }
  0xa2   :  { %3195 = vmatpush1.bf16.msra.mxu0 %v4239_v28  ;;  %3367 = vmatpush1.bf16.msra.mxu1 %v4241_v31  ;;  %v4297_v28 = vcombine.low %v395_v14, %v399_v16  ;;  %v4304_v31 = vcombine.high %v402_v21, %v406_v22  ;;  %v454_v14 = vld [vmem:[%s6249_s1 + $0xd60] sm:$0xff]  ;;  %v451_v16 = vld [vmem:[%s6249_s1 + $0xd48] sm:$0xff] }
  0xa3   :  { %3196 = vmatprep.subr.bf16.mxu0 %v4248_v17  ;;  %3368 = vmatprep.subr.bf16.mxu1 %v4250_v18  ;;  %v4306_v17 = vcombine.high %v403_v24, %v407_v25  ;;  %v410_v18 = vld [vmem:[%s6249_s1 + $0xc00] sm:$0xff] }
  0xa4   :  { %v458_v22 = vld [vmem:[%s6249_s1 + $0xd80] sm:$0xff] }
  0xa6   :  { %3197 = vmatpush1.bf16.msra.mxu0 %v4247_v37  ;;  %3369 = vmatpush1.bf16.msra.mxu1 %v4249_v38  ;;  %v4305_v37 = vcombine.low %v403_v24, %v407_v25  ;;  %v4312_v38 = vcombine.high %v410_v18, %v414_v32  ;;  %v462_v24 = vld [vmem:[%s6249_s1 + $0xda0] sm:$0xff]  ;;  %v459_v25 = vld [vmem:[%s6249_s1 + $0xd88] sm:$0xff] }
  0xa7   :  { %3198 = vmatprep.subr.bf16.mxu0 %v4256_v39  ;;  %3370 = vmatprep.subr.bf16.mxu1 %v4258_v40  ;;  %v4314_v39 = vcombine.high %v411_v33, %v415_v34  ;;  %v418_v40 = vld [vmem:[%s6249_s1 + $0xc40] sm:$0xff]  ;;  %v467_v34 = vld [vmem:[%s6249_s1 + $0xdc8] sm:$0xff] }
  0xa8   :  { %v4320_v30 = vcombine.high %v418_v40, %v422_v41  ;;  %v470_v33 = vld [vmem:[%s6249_s1 + $0xde0] sm:$0xff] }
  0xaa   :  { %3199 = vmatpush1.bf16.msra.mxu0 %v4255_v45  ;;  %3371 = vmatpush1.bf16.msra.mxu1 %v4257_v46  ;;  %v5187_v45 = vld [vmem:[%s6250_s0 + $0x18] sm:$0xff] }
  0xab   :  { %3200 = vmatprep.subr.bf16.mxu0 %v4264_v47  ;;  %3372 = vmatprep.subr.bf16.mxu1 %v4266_v48  ;;  %v5192_v46 = vld [vmem:[%s6250_s0 + $0x38] sm:$0x33]  ;;  %v4311_v47 = vcombine.low %v410_v18, %v414_v32  ;;  %v4322_v48 = vcombine.high %v419_v42, %v423_v44  ;;  %v466_v32 = vld [vmem:[%s6249_s1 + $0xdc0] sm:$0xff] }
  0xac   :  { %v5202_v51 = vcombine.high %v5187_v45, %v5192_v46 }
  0xae   :  { %3201 = vmatpush1.bf16.msra.mxu0 %v4263_v55  ;;  %3373 = vmatpush1.bf16.msra.mxu1 %v4265_v56  ;;  %v431_v55 = vld [vmem:[%s6249_s1 + $0xca8] sm:$0xff]  ;;  %v4319_v56 = vcombine.low %v418_v40, %v422_v41  ;;  %v474_v41 = vld [vmem:[%s6249_s1 + $0xe00] sm:$0xff] }
  0xaf   :  { %3202 = vmatprep.subr.bf16.mxu0 %v4272_v57  ;;  %3374 = vmatprep.subr.bf16.mxu1 %v4274_v59  ;;  %v4321_v57 = vcombine.low %v419_v42, %v423_v44  ;;  %v4328_v59 = vcombine.high %v426_v49, %v430_v50  ;;  %v4330_v60 = vcombine.high %v427_v52, %v431_v55  ;;  %v478_v42 = vld [vmem:[%s6249_s1 + $0xe20] sm:$0xff]  ;;  %v475_v44 = vld [vmem:[%s6249_s1 + $0xe08] sm:$0xff] }
  0xb2   :  { %3203 = vmatpush1.bf16.msra.mxu0 %v4271_v0  ;;  %3375 = vmatpush1.bf16.msra.mxu1 %v4273_v1  ;;  %v439_v0 = vld [vmem:[%s6249_s1 + $0xce8] sm:$0xff]  ;;  %v4327_v1 = vcombine.low %v426_v49, %v430_v50  ;;  %v482_v50 = vld [vmem:[%s6249_s1 + $0xe40] sm:$0xff] }
  0xb3   :  { %3204 = vmatprep.subr.bf16.mxu0 %v4280_v2  ;;  %3376 = vmatprep.subr.bf16.mxu1 %v4282_v3  ;;  %v4329_v2 = vcombine.low %v427_v52, %v431_v55  ;;  %v4336_v3 = vcombine.high %v434_v61, %v438_v62  ;;  %v4338_v4 = vcombine.high %v435_v63, %v439_v0  ;;  %v486_v52 = vld [vmem:[%s6249_s1 + $0xe60] sm:$0xff]  ;;  %v483_v55 = vld [vmem:[%s6249_s1 + $0xe48] sm:$0xff] }
  0xb6   :  { %3205 = vmatpush1.bf16.msra.mxu0 %v4279_v8  ;;  %3377 = vmatpush1.bf16.msra.mxu1 %v4281_v9  ;;  %v447_v8 = vld [vmem:[%s6249_s1 + $0xd28] sm:$0xff]  ;;  %v4335_v9 = vcombine.low %v434_v61, %v438_v62  ;;  %v490_v62 = vld [vmem:[%s6249_s1 + $0xe80] sm:$0xff] }
  0xb7   :  { %3206 = vmatprep.subr.bf16.mxu0 %v4288_v10  ;;  %3378 = vmatprep.subr.bf16.mxu1 %v4290_v11  ;;  %v4337_v10 = vcombine.low %v435_v63, %v439_v0  ;;  %v4344_v11 = vcombine.high %v442_v5, %v446_v6  ;;  %v4346_v12 = vcombine.high %v443_v7, %v447_v8  ;;  %v494_v63 = vld [vmem:[%s6249_s1 + $0xea0] sm:$0xff]  ;;  %v491_v0 = vld [vmem:[%s6249_s1 + $0xe88] sm:$0xff] }
  0xba   :  { %3207 = vmatpush1.bf16.msra.mxu0 %v4287_v19  ;;  %3379 = vmatpush1.bf16.msra.mxu1 %v4289_v53  ;;  %v455_v19 = vld [vmem:[%s6249_s1 + $0xd68] sm:$0xff]  ;;  %v4343_v53 = vcombine.low %v442_v5, %v446_v6  ;;  %v498_v6 = vld [vmem:[%s6249_s1 + $0xec0] sm:$0xff] }
  0xbb   :  { %3208 = vmatprep.subr.bf16.mxu0 %v4296_v54  ;;  %3380 = vmatprep.subr.bf16.mxu1 %v4298_v20  ;;  %v4345_v54 = vcombine.low %v443_v7, %v447_v8  ;;  %v4352_v20 = vcombine.high %v450_v13, %v454_v14  ;;  %v4354_v21 = vcombine.high %v451_v16, %v455_v19  ;;  %v502_v7 = vld [vmem:[%s6249_s1 + $0xee0] sm:$0xff]  ;;  %v499_v8 = vld [vmem:[%s6249_s1 + $0xec8] sm:$0xff] }
  0xbe   :  { %3209 = vmatpush1.bf16.msra.mxu0 %v4295_v26  ;;  %3381 = vmatpush1.bf16.msra.mxu1 %v4297_v28  ;;  %v463_v26 = vld [vmem:[%s6249_s1 + $0xda8] sm:$0xff]  ;;  %v4351_v28 = vcombine.low %v450_v13, %v454_v14  ;;  %v506_v14 = vld [vmem:[%s6249_s1 + $0xf00] sm:$0xff] }
  0xbf   :  { %3210 = vmatprep.subr.bf16.mxu0 %v4304_v31  ;;  %3382 = vmatprep.subr.bf16.mxu1 %v4306_v17  ;;  %v4353_v31 = vcombine.low %v451_v16, %v455_v19  ;;  %v4360_v17 = vcombine.high %v458_v22, %v462_v24  ;;  %v4362_v18 = vcombine.high %v459_v25, %v463_v26  ;;  %v510_v16 = vld [vmem:[%s6249_s1 + $0xf20] sm:$0xff]  ;;  %v507_v19 = vld [vmem:[%s6249_s1 + $0xf08] sm:$0xff] }
  0xc2   :  { %3211 = vmatpush1.bf16.msra.mxu0 %v4303_v36  ;;  %3383 = vmatpush1.bf16.msra.mxu1 %v4305_v37  ;;  %v471_v36 = vld [vmem:[%s6249_s1 + $0xde8] sm:$0xff]  ;;  %v4359_v37 = vcombine.low %v458_v22, %v462_v24  ;;  %v514_v24 = vld [vmem:[%s6249_s1 + $0xf40] sm:$0xff] }
  0xc3   :  { %3223 = vmatprep.subr.bf16.mxu0 %v4312_v38  ;;  %3395 = vmatprep.subr.bf16.mxu1 %v4314_v39  ;;  %v4361_v38 = vcombine.low %v459_v25, %v463_v26  ;;  %v4368_v39 = vcombine.high %v466_v32, %v470_v33  ;;  %v4370_v40 = vcombine.high %v467_v34, %v471_v36  ;;  %v518_v25 = vld [vmem:[%s6249_s1 + $0xf60] sm:$0xff]  ;;  %v515_v26 = vld [vmem:[%s6249_s1 + $0xf48] sm:$0xff] }
  0xc5   :  { %3213 = vmatmul.mubr.bf16.vlgmr.msra.gmra.mrb[0].mxu0 %v5179_v43  ;;  %3385 = vmatmul.mubr.bf16.vlgmr.msra.gmra.mrb[0].mxu1 %v5179_v43 }
  0xc6   :  { %3224 = vmatpush1.bf16.msra.mxu0 %v4311_v47  ;;  %3396 = vmatpush1.bf16.msra.mxu1 %v4313_v29  ;;  %v479_v47 = vld [vmem:[%s6249_s1 + $0xe28] sm:$0xff]  ;;  %v4367_v29 = vcombine.low %v466_v32, %v470_v33  ;;  %v522_v33 = vld [vmem:[%s6249_s1 + $0xf80] sm:$0xff] }
  0xc7   :  { %3225 = vmatprep.subr.bf16.mxu0 %v4320_v30  ;;  %3397 = vmatprep.subr.bf16.mxu1 %v4322_v48  ;;  %v4369_v30 = vcombine.low %v467_v34, %v471_v36  ;;  %v4376_v48 = vcombine.high %v474_v41, %v478_v42  ;;  %v4378_v49 = vcombine.high %v475_v44, %v479_v47  ;;  %v523_v34 = vld [vmem:[%s6249_s1 + $0xf88] sm:$0xff] }
  0xc8   :  { %4432 = vmatprep.mubr.msk.bf16.mxu0 %vm3065_vm0, %v5202_v51  ;;  %4434 = vmatprep.mubr.msk.bf16.mxu1 %vm3065_vm0, %v5202_v51  ;;  %v4415_v36 = vcombine.low %v514_v24, %v518_v25 }
  0xca   :  { %3226 = vmatpush1.bf16.msra.mxu0 %v4319_v56  ;;  %3398 = vmatpush1.bf16.msra.mxu1 %v4321_v57  ;;  %v487_v56 = vld [vmem:[%s6249_s1 + $0xe68] sm:$0xff]  ;;  %v4375_v57 = vcombine.low %v474_v41, %v478_v42  ;;  %v4425_v41 = vcombine.low %v523_v34, %v523_v34  ;;  %v28_v42 = vld [vmem:[%s6249_s1 + $0x10] sm:$0xff] }
  0xcb   :  { %3227 = vmatprep.subr.bf16.mxu0 %v4328_v59  ;;  %3399 = vmatprep.subr.bf16.mxu1 %v4330_v60  ;;  %v4377_v59 = vcombine.low %v475_v44, %v479_v47  ;;  %v4384_v60 = vcombine.high %v482_v50, %v486_v52  ;;  %v4386_v61 = vcombine.high %v483_v55, %v487_v56  ;;  %v32_v44 = vld [vmem:[%s6249_s1 + $0x30] sm:$0xff]  ;;  %v29_v47 = vld [vmem:[%s6249_s1 + $0x18] sm:$0xff] }
  0xce   :  { %3228 = vmatpush1.bf16.msra.mxu0 %v4327_v1  ;;  %3400 = vmatpush1.bf16.msra.mxu1 %v4329_v2  ;;  %v495_v1 = vld [vmem:[%s6249_s1 + $0xea8] sm:$0xff]  ;;  %v4383_v2 = vcombine.low %v482_v50, %v486_v52  ;;  %v36_v52 = vld [vmem:[%s6249_s1 + $0x50] sm:$0xff] }
  0xcf   :  { %3229 = vmatprep.subr.bf16.mxu0 %v4336_v3  ;;  %3401 = vmatprep.subr.bf16.mxu1 %v4338_v4  ;;  %v4385_v3 = vcombine.low %v483_v55, %v487_v56  ;;  %v4392_v4 = vcombine.high %v490_v62, %v494_v63  ;;  %v4394_v5 = vcombine.high %v491_v0, %v495_v1  ;;  %v40_v55 = vld [vmem:[%s6249_s1 + $0x70] sm:$0xff] }
  0xd0   :  { %v5378_v56 = vcombine.low %v5187_v45, %v5192_v46  ;;  %v44_v45 = vld [vmem:[%s6249_s1 + $0x90] sm:$0xff] }
  0xd1   :  { %v48_v46 = vld [vmem:[%s6249_s1 + $0xb0] sm:$0xff] }
  0xd2   :  { %3230 = vmatpush1.bf16.msra.mxu0 %v4335_v9  ;;  %3402 = vmatpush1.bf16.msra.mxu1 %v4337_v10  ;;  %v503_v9 = vld [vmem:[%s6249_s1 + $0xee8] sm:$0xff]  ;;  %v4391_v10 = vcombine.low %v490_v62, %v494_v63  ;;  %v3940_v62 = vcombine.high %v36_v52, %v40_v55 }
  0xd3   :  { %3231 = vmatprep.subr.bf16.mxu0 %v4344_v11  ;;  %3403 = vmatprep.subr.bf16.mxu1 %v4346_v12  ;;  %v4393_v11 = vcombine.low %v491_v0, %v495_v1  ;;  %v4400_v12 = vcombine.high %v498_v6, %v502_v7  ;;  %v4402_v13 = vcombine.high %v499_v8, %v503_v9  ;;  %v45_v0 = vld [vmem:[%s6249_s1 + $0x98] sm:$0xff] }
  0xd4   :  { %v49_v1 = vld [vmem:[%s6249_s1 + $0xb8] sm:$0xff] }
  0xd6   :  { %3232 = vmatpush1.bf16.msra.mxu0 %v4343_v53  ;;  %3404 = vmatpush1.bf16.msra.mxu1 %v4345_v54  ;;  %v511_v53 = vld [vmem:[%s6249_s1 + $0xf28] sm:$0xff]  ;;  %v4399_v54 = vcombine.low %v498_v6, %v502_v7  ;;  %v52_v6 = vld [vmem:[%s6249_s1 + $0xd0] sm:$0xff] }
  0xd7   :  { %3233 = vmatprep.subr.bf16.mxu0 %v4352_v20  ;;  %3405 = vmatprep.subr.bf16.mxu1 %v4354_v21  ;;  %v4401_v20 = vcombine.low %v499_v8, %v503_v9  ;;  %v4408_v21 = vcombine.high %v506_v14, %v510_v16  ;;  %v4410_v22 = vcombine.high %v507_v19, %v511_v53  ;;  %v56_v7 = vld [vmem:[%s6249_s1 + $0xf0] sm:$0xff]  ;;  %v53_v8 = vld [vmem:[%s6249_s1 + $0xd8] sm:$0xff] }
  0xd8   :  { %v57_v9 = vld [vmem:[%s6249_s1 + $0xf8] sm:$0xff] }
  0xda   :  { %3234 = vmatpush1.bf16.msra.mxu0 %v4351_v28  ;;  %3406 = vmatpush1.bf16.msra.mxu1 %v4353_v31  ;;  %v519_v28 = vld [vmem:[%s6249_s1 + $0xf68] sm:$0xff]  ;;  %v4407_v31 = vcombine.low %v506_v14, %v510_v16  ;;  %v60_v14 = vld [vmem:[%s6249_s1 + $0x110] sm:$0xff] }
  0xdb   :  { %3235 = vmatprep.subr.bf16.mxu0 %v4360_v17  ;;  %3407 = vmatprep.subr.bf16.mxu1 %v4362_v18  ;;  %v4409_v17 = vcombine.low %v507_v19, %v511_v53  ;;  %v4416_v18 = vcombine.high %v514_v24, %v518_v25  ;;  %v4418_v32 = vcombine.high %v515_v26, %v519_v28  ;;  %v64_v16 = vld [vmem:[%s6249_s1 + $0x130] sm:$0xff]  ;;  %v65_v19 = vld [vmem:[%s6249_s1 + $0x138] sm:$0xff] }
  0xdc   :  { %v3955_v53 = vcombine.low %v52_v6, %v56_v7  ;;  %v72_v24 = vld [vmem:[%s6249_s1 + $0x170] sm:$0xff]  ;;  %v69_v25 = vld [vmem:[%s6249_s1 + $0x158] sm:$0xff] }
  0xde   :  { %3236 = vmatpush1.bf16.msra.mxu0 %v4359_v37  ;;  %3408 = vmatpush1.bf16.msra.mxu1 %v4361_v38  ;;  %v4417_v37 = vcombine.low %v515_v26, %v519_v28  ;;  %v4424_v38 = vcombine.high %v522_v33, %v522_v33  ;;  %v73_v26 = vld [vmem:[%s6249_s1 + $0x178] sm:$0xff]  ;;  %v3963_v28 = vcombine.low %v60_v14, %v64_v16 }
  0xdf   :  { %3237 = vmatprep.subr.bf16.mxu0 %v4368_v39  ;;  %3409 = vmatprep.subr.bf16.mxu1 %v4370_v40  ;;  %v4423_v39 = vcombine.low %v522_v33, %v522_v33  ;;  %v4426_v40 = vcombine.high %v523_v34, %v523_v34  ;;  %v80_v33 = vld [vmem:[%s6249_s1 + $0x1b0] sm:$0xff]  ;;  %v77_v34 = vld [vmem:[%s6249_s1 + $0x198] sm:$0xff] }
  0xe2   :  { %3238 = vmatpush1.bf16.msra.mxu0 %v4367_v29  ;;  %3410 = vmatpush1.bf16.msra.mxu1 %v4369_v30  ;;  %v33_v29 = vld [vmem:[%s6249_s1 + $0x38] sm:$0xff]  ;;  %v3071_v30 = vsel %vm3069_vm1, %v4423_v39, 0 }
  0xe3   :  { %3239 = vmatprep.subr.bf16.mxu0 %v4376_v48  ;;  %3411 = vmatprep.subr.bf16.mxu1 %v4378_v49  ;;  %v3932_v48 = vcombine.high %v28_v42, %v32_v44  ;;  %v3077_v49 = vsel %vm3069_vm1, %v4425_v41, 0  ;;  %v3934_v50 = vcombine.high %v29_v47, %v33_v29  ;;  %v84_v41 = vld [vmem:[%s6249_s1 + $0x1d0] sm:$0xff] }
  0xe6   :  { %3240 = vmatpush1.bf16.msra.mxu0 %v4375_v57  ;;  %3412 = vmatpush1.bf16.msra.mxu1 %v4377_v59  ;;  %v37_v57 = vld [vmem:[%s6249_s1 + $0x58] sm:$0xff] }
  0xe7   :  { %3241 = vmatprep.subr.bf16.mxu0 %v4384_v60  ;;  %3413 = vmatprep.subr.bf16.mxu1 %v4386_v61  ;;  %v41_v59 = vld [vmem:[%s6249_s1 + $0x78] sm:$0xff]  ;;  %v3931_v60 = vcombine.low %v28_v42, %v32_v44  ;;  %v3933_v61 = vcombine.low %v29_v47, %v33_v29  ;;  %v88_v42 = vld [vmem:[%s6249_s1 + $0x1f0] sm:$0xff] }
  0xe8   :  { %v3942_v63 = vcombine.high %v37_v57, %v41_v59  ;;  %v85_v44 = vld [vmem:[%s6249_s1 + $0x1d8] sm:$0xff] }
  0xe9   :  { %v89_v47 = vld [vmem:[%s6249_s1 + $0x1f8] sm:$0xff] }
  0xea   :  { %3242 = vmatpush1.bf16.msra.mxu0 %v4383_v2  ;;  %3414 = vmatpush1.bf16.msra.mxu1 %v4385_v3  ;;  %v3939_v2 = vcombine.low %v36_v52, %v40_v55  ;;  %v3941_v3 = vcombine.low %v37_v57, %v41_v59  ;;  %v96_v52 = vld [vmem:[%s6249_s1 + $0x230] sm:$0xff]  ;;  %v93_v55 = vld [vmem:[%s6249_s1 + $0x218] sm:$0xff]  ;;  %v3987_v59 = vcombine.low %v84_v41, %v88_v42 }
  0xeb   :  { %3243 = vmatprep.subr.bf16.mxu0 %v4392_v4  ;;  %3415 = vmatprep.subr.bf16.mxu1 %v4394_v5  ;;  %v3948_v4 = vcombine.high %v44_v45, %v48_v46  ;;  %v3950_v5 = vcombine.high %v45_v0, %v49_v1  ;;  %v97_v57 = vld [vmem:[%s6249_s1 + $0x238] sm:$0xff] }
  0xee   :  { %3244 = vmatpush1.bf16.msra.mxu0 %v4391_v10  ;;  %3416 = vmatpush1.bf16.msra.mxu1 %v4393_v11  ;;  %v3947_v10 = vcombine.low %v44_v45, %v48_v46  ;;  %v3949_v11 = vcombine.low %v45_v0, %v49_v1  ;;  %v104_v45 = vld [vmem:[%s6249_s1 + $0x270] sm:$0xff]  ;;  %v101_v46 = vld [vmem:[%s6249_s1 + $0x258] sm:$0xff] }
  0xef   :  { %3245 = vmatprep.subr.bf16.mxu0 %v4400_v12  ;;  %3417 = vmatprep.subr.bf16.mxu1 %v4402_v13  ;;  %v3956_v12 = vcombine.high %v52_v6, %v56_v7  ;;  %v3958_v13 = vcombine.high %v53_v8, %v57_v9  ;;  %v105_v0 = vld [vmem:[%s6249_s1 + $0x278] sm:$0xff]  ;;  %v112_v6 = vld [vmem:[%s6249_s1 + $0x2b0] sm:$0xff] }
  0xf0   :  { %v109_v7 = vld [vmem:[%s6249_s1 + $0x298] sm:$0xff] }
  0xf2   :  { %3246 = vmatpush1.bf16.msra.mxu0 %v4399_v54  ;;  %3418 = vmatpush1.bf16.msra.mxu1 %v4401_v20  ;;  %v3957_v54 = vcombine.low %v53_v8, %v57_v9  ;;  %v3964_v20 = vcombine.high %v60_v14, %v64_v16  ;;  %v113_v8 = vld [vmem:[%s6249_s1 + $0x2b8] sm:$0xff]  ;;  %v120_v14 = vld [vmem:[%s6249_s1 + $0x2f0] sm:$0xff] }
  0xf3   :  { %3247 = vmatprep.subr.bf16.mxu0 %v4408_v21  ;;  %3419 = vmatprep.subr.bf16.mxu1 %v4410_v22  ;;  %v68_v22 = vld [vmem:[%s6249_s1 + $0x150] sm:$0xff]  ;;  %v117_v16 = vld [vmem:[%s6249_s1 + $0x2d8] sm:$0xff] }
  0xf6   :  { %3248 = vmatpush1.bf16.msra.mxu0 %v4407_v31  ;;  %3420 = vmatpush1.bf16.msra.mxu1 %v4409_v17  ;;  %v3972_v17 = vcombine.high %v68_v22, %v72_v24 }
  0xf7   :  { %3249 = vmatprep.subr.bf16.mxu0 %v4416_v18  ;;  %3421 = vmatprep.subr.bf16.mxu1 %v4418_v32  ;;  %v3974_v18 = vcombine.high %v69_v25, %v73_v26  ;;  %v76_v32 = vld [vmem:[%s6249_s1 + $0x190] sm:$0xff] }
  0xf8   :  { %v3980_v39 = vcombine.high %v76_v32, %v80_v33  ;;  %v3979_v29 = vcombine.low %v76_v32, %v80_v33  ;;  %v136_v32 = vld [vmem:[%s6249_s1 + $0x370] sm:$0xff]  ;;  %v133_v33 = vld [vmem:[%s6249_s1 + $0x358] sm:$0xff] }
  0xfa   :  { %3250 = vmatpush1.bf16.msra.mxu0 %v4415_v36  ;;  %3422 = vmatpush1.bf16.msra.mxu1 %v4417_v37  ;;  %v81_v36 = vld [vmem:[%s6249_s1 + $0x1b8] sm:$0xff]  ;;  %v3971_v37 = vcombine.low %v68_v22, %v72_v24  ;;  %v128_v22 = vld [vmem:[%s6249_s1 + $0x330] sm:$0xff] }
  0xfb   :  { %4431 = vmatprep.subr.msk.bf16.mxu0 %vm3069_vm1, %v4424_v38  ;;  %4433 = vmatprep.subr.msk.bf16.mxu1 %vm3069_vm1, %v4426_v40  ;;  %v3973_v38 = vcombine.low %v69_v25, %v73_v26  ;;  %v3982_v40 = vcombine.high %v77_v34, %v81_v36  ;;  %v125_v24 = vld [vmem:[%s6249_s1 + $0x318] sm:$0xff] }
  0xfc   :  { %v129_v25 = vld [vmem:[%s6249_s1 + $0x338] sm:$0xff] }
  0xfe   :  { %3252 = vmatpush1.bf16.msra.mxu0 %v3071_v30  ;;  %3424 = vmatpush1.bf16.msra.mxu1 %v3077_v49  ;;  %v3981_v30 = vcombine.low %v77_v34, %v81_v36  ;;  %v3990_v49 = vcombine.high %v85_v44, %v89_v47  ;;  %v137_v34 = vld [vmem:[%s6249_s1 + $0x378] sm:$0xff] }
  0xff   :  { %3438 = vmatprep.subr.bf16.mxu0 %v3932_v48  ;;  %3610 = vmatprep.subr.bf16.mxu1 %v3934_v50  ;;  %v3988_v48 = vcombine.high %v84_v41, %v88_v42  ;;  %v92_v50 = vld [vmem:[%s6249_s1 + $0x210] sm:$0xff]  ;;  %v141_v42 = vld [vmem:[%s6249_s1 + $0x398] sm:$0xff] }
 0x100   :  { %v3995_v1 = vcombine.low %v92_v50, %v96_v52  ;;  %v144_v41 = vld [vmem:[%s6249_s1 + $0x3b0] sm:$0xff] }
 0x101   :  { %3256 = vmatmul.mubr.bf16.vlgmr.msra.gmra.mrb[0].mxu0 %v5378_v56  ;;  %3428 = vmatmul.mubr.bf16.vlgmr.msra.gmra.mrb[0].mxu1 %v5378_v56 }
 0x102   :  { %3439 = vmatpush1.bf16.msra.mxu0 %v3931_v60  ;;  %3611 = vmatpush1.bf16.msra.mxu1 %v3933_v61  ;;  %v3989_v60 = vcombine.low %v85_v44, %v89_v47  ;;  %v3996_v61 = vcombine.high %v92_v50, %v96_v52  ;;  %v145_v44 = vld [vmem:[%s6249_s1 + $0x3b8] sm:$0xff]  ;;  %v152_v50 = vld [vmem:[%s6249_s1 + $0x3f0] sm:$0xff] }
 0x103   :  { %3440 = vmatprep.subr.bf16.mxu0 %v3940_v62  ;;  %3612 = vmatprep.subr.bf16.mxu1 %v3942_v63  ;;  %v3998_v62 = vcombine.high %v93_v55, %v97_v57  ;;  %v100_v63 = vld [vmem:[%s6249_s1 + $0x250] sm:$0xff]  ;;  %v149_v52 = vld [vmem:[%s6249_s1 + $0x3d8] sm:$0xff] }
 0x104   :  { %3470 = vmatprep.mubr.bf16.mxu0 %v4622_v58  ;;  %3642 = vmatprep.mubr.bf16.mxu1 %v4622_v58  ;;  %v61_v58 = vld [vmem:[%s6249_s1 + $0x118] sm:$0xff]  ;;  %v4003_v9 = vcombine.low %v100_v63, %v104_v45 }
 0x105   :  { %v3966_v21 = vcombine.high %v61_v58, %v65_v19  ;;  %v3965_v31 = vcombine.low %v61_v58, %v65_v19  ;;  %v121_v58 = vld [vmem:[%s6249_s1 + $0x2f8] sm:$0xff] }
 0x106   :  { %3441 = vmatpush1.bf16.msra.mxu0 %v3939_v2  ;;  %3613 = vmatpush1.bf16.msra.mxu1 %v3941_v3  ;;  %v3997_v2 = vcombine.low %v93_v55, %v97_v57  ;;  %v4004_v3 = vcombine.high %v100_v63, %v104_v45  ;;  %v153_v55 = vld [vmem:[%s6249_s1 + $0x3f8] sm:$0xff]  ;;  %v160_v63 = vld [vmem:[%s6249_s1 + $0x430] sm:$0xff] }
 0x107   :  { %3442 = vmatprep.subr.bf16.mxu0 %v3948_v4  ;;  %3614 = vmatprep.subr.bf16.mxu1 %v3950_v5  ;;  %v4006_v4 = vcombine.high %v101_v46, %v105_v0  ;;  %v108_v5 = vld [vmem:[%s6249_s1 + $0x290] sm:$0xff]  ;;  %v157_v45 = vld [vmem:[%s6249_s1 + $0x418] sm:$0xff] }
 0x108   :  { %v4011_v19 = vcombine.low %v108_v5, %v112_v6 }
 0x10a   :  { %3443 = vmatpush1.bf16.msra.mxu0 %v3947_v10  ;;  %3615 = vmatpush1.bf16.msra.mxu1 %v3949_v11  ;;  %v4005_v10 = vcombine.low %v101_v46, %v105_v0  ;;  %v4012_v11 = vcombine.high %v108_v5, %v112_v6  ;;  %v161_v46 = vld [vmem:[%s6249_s1 + $0x438] sm:$0xff]  ;;  %v168_v5 = vld [vmem:[%s6249_s1 + $0x470] sm:$0xff] }
 0x10b   :  { %3444 = vmatprep.subr.bf16.mxu0 %v3956_v12  ;;  %3616 = vmatprep.subr.bf16.mxu1 %v3958_v13  ;;  %v4014_v12 = vcombine.high %v109_v7, %v113_v8  ;;  %v116_v13 = vld [vmem:[%s6249_s1 + $0x2d0] sm:$0xff]  ;;  %v165_v6 = vld [vmem:[%s6249_s1 + $0x458] sm:$0xff] }
 0x10c   :  { %v4019_v26 = vcombine.low %v116_v13, %v120_v14 }
 0x10e   :  { %3445 = vmatpush1.bf16.msra.mxu0 %v3955_v53  ;;  %3617 = vmatpush1.bf16.msra.mxu1 %v3957_v54  ;;  %v4013_v53 = vcombine.low %v109_v7, %v113_v8  ;;  %v4020_v54 = vcombine.high %v116_v13, %v120_v14  ;;  %v169_v7 = vld [vmem:[%s6249_s1 + $0x478] sm:$0xff]  ;;  %v176_v13 = vld [vmem:[%s6249_s1 + $0x4b0] sm:$0xff] }
 0x10f   :  { %3446 = vmatprep.subr.bf16.mxu0 %v3964_v20  ;;  %3618 = vmatprep.subr.bf16.mxu1 %v3966_v21  ;;  %v4022_v20 = vcombine.high %v117_v16, %v121_v58  ;;  %v124_v21 = vld [vmem:[%s6249_s1 + $0x310] sm:$0xff]  ;;  %v173_v14 = vld [vmem:[%s6249_s1 + $0x498] sm:$0xff] }
 0x110   :  { %v4027_v36 = vcombine.low %v124_v21, %v128_v22 }
 0x112   :  { %3447 = vmatpush1.bf16.msra.mxu0 %v3963_v28  ;;  %3619 = vmatpush1.bf16.msra.mxu1 %v3965_v31  ;;  %v4021_v28 = vcombine.low %v117_v16, %v121_v58  ;;  %v4028_v31 = vcombine.high %v124_v21, %v128_v22  ;;  %v177_v16 = vld [vmem:[%s6249_s1 + $0x4b8] sm:$0xff]  ;;  %v184_v21 = vld [vmem:[%s6249_s1 + $0x4f0] sm:$0xff] }
 0x113   :  { %3448 = vmatprep.subr.bf16.mxu0 %v3972_v17  ;;  %3620 = vmatprep.subr.bf16.mxu1 %v3974_v18  ;;  %v4030_v17 = vcombine.high %v125_v24, %v129_v25  ;;  %v132_v18 = vld [vmem:[%s6249_s1 + $0x350] sm:$0xff]  ;;  %v185_v22 = vld [vmem:[%s6249_s1 + $0x4f8] sm:$0xff] }
 0x114   :  { %v4035_v47 = vcombine.low %v132_v18, %v136_v32 }
 0x116   :  { %3449 = vmatpush1.bf16.msra.mxu0 %v3971_v37  ;;  %3621 = vmatpush1.bf16.msra.mxu1 %v3973_v38  ;;  %v4029_v37 = vcombine.low %v125_v24, %v129_v25  ;;  %v4036_v38 = vcombine.high %v132_v18, %v136_v32  ;;  %v4077_v25 = vcombine.low %v173_v14, %v177_v16  ;;  %v193_v18 = vld [vmem:[%s6249_s1 + $0x538] sm:$0xff] }
 0x117   :  { %3450 = vmatprep.subr.bf16.mxu0 %v3980_v39  ;;  %3622 = vmatprep.subr.bf16.mxu1 %v3982_v40  ;;  %v4038_v39 = vcombine.high %v133_v33, %v137_v34  ;;  %v140_v40 = vld [vmem:[%s6249_s1 + $0x390] sm:$0xff] }
 0x118   :  { %v4043_v57 = vcombine.low %v140_v40, %v144_v41 }
 0x11a   :  { %3451 = vmatpush1.bf16.msra.mxu0 %v3979_v29  ;;  %3623 = vmatpush1.bf16.msra.mxu1 %v3981_v30  ;;  %v4037_v29 = vcombine.low %v133_v33, %v137_v34  ;;  %v4044_v30 = vcombine.high %v140_v40, %v144_v41  ;;  %v201_v40 = vld [vmem:[%s6249_s1 + $0x578] sm:$0xff] }
 0x11b   :  { %3452 = vmatprep.subr.bf16.mxu0 %v3988_v48  ;;  %3624 = vmatprep.subr.bf16.mxu1 %v3990_v49  ;;  %v4046_v48 = vcombine.high %v141_v42, %v145_v44  ;;  %v148_v49 = vld [vmem:[%s6249_s1 + $0x3d0] sm:$0xff] }
 0x11c   :  { %v4051_v0 = vcombine.low %v148_v49, %v152_v50 }
 0x11e   :  { %3453 = vmatpush1.bf16.msra.mxu0 %v3987_v59  ;;  %3625 = vmatpush1.bf16.msra.mxu1 %v3989_v60  ;;  %v4045_v59 = vcombine.low %v141_v42, %v145_v44  ;;  %v4052_v60 = vcombine.high %v148_v49, %v152_v50  ;;  %v209_v49 = vld [vmem:[%s6249_s1 + $0x5b8] sm:$0xff] }
 0x11f   :  { %3454 = vmatprep.subr.bf16.mxu0 %v3996_v61  ;;  %3626 = vmatprep.subr.bf16.mxu1 %v3998_v62  ;;  %v4054_v61 = vcombine.high %v149_v52, %v153_v55  ;;  %v156_v62 = vld [vmem:[%s6249_s1 + $0x410] sm:$0xff] }
 0x120   :  { %v4059_v8 = vcombine.low %v156_v62, %v160_v63 }
 0x122   :  { %3455 = vmatpush1.bf16.msra.mxu0 %v3995_v1  ;;  %3627 = vmatpush1.bf16.msra.mxu1 %v3997_v2  ;;  %v4053_v1 = vcombine.low %v149_v52, %v153_v55  ;;  %v4060_v2 = vcombine.high %v156_v62, %v160_v63  ;;  %v217_v62 = vld [vmem:[%s6249_s1 + $0x5f8] sm:$0xff] }
 0x123   :  { %3456 = vmatprep.subr.bf16.mxu0 %v4004_v3  ;;  %3628 = vmatprep.subr.bf16.mxu1 %v4006_v4  ;;  %v4062_v3 = vcombine.high %v157_v45, %v161_v46  ;;  %v164_v4 = vld [vmem:[%s6249_s1 + $0x450] sm:$0xff] }
 0x124   :  { %v4067_v58 = vcombine.low %v164_v4, %v168_v5 }
 0x126   :  { %3457 = vmatpush1.bf16.msra.mxu0 %v4003_v9  ;;  %3629 = vmatpush1.bf16.msra.mxu1 %v4005_v10  ;;  %v4061_v9 = vcombine.low %v157_v45, %v161_v46  ;;  %v4068_v10 = vcombine.high %v164_v4, %v168_v5  ;;  %v225_v4 = vld [vmem:[%s6249_s1 + $0x638] sm:$0xff] }
 0x127   :  { %3458 = vmatprep.subr.bf16.mxu0 %v4012_v11  ;;  %3630 = vmatprep.subr.bf16.mxu1 %v4014_v12  ;;  %v4070_v11 = vcombine.high %v165_v6, %v169_v7  ;;  %v172_v12 = vld [vmem:[%s6249_s1 + $0x490] sm:$0xff] }
 0x128   :  { %v4075_v24 = vcombine.low %v172_v12, %v176_v13 }
 0x12a   :  { %3459 = vmatpush1.bf16.msra.mxu0 %v4011_v19  ;;  %3631 = vmatpush1.bf16.msra.mxu1 %v4013_v53  ;;  %v4069_v19 = vcombine.low %v165_v6, %v169_v7  ;;  %v4076_v53 = vcombine.high %v172_v12, %v176_v13  ;;  %v233_v12 = vld [vmem:[%s6249_s1 + $0x678] sm:$0xff] }
 0x12b   :  { %3460 = vmatprep.subr.bf16.mxu0 %v4020_v54  ;;  %3632 = vmatprep.subr.bf16.mxu1 %v4022_v20  ;;  %v4078_v54 = vcombine.high %v173_v14, %v177_v16  ;;  %v180_v20 = vld [vmem:[%s6249_s1 + $0x4d0] sm:$0xff] }
 0x12c   :  { %v4083_v32 = vcombine.low %v180_v20, %v184_v21 }
 0x12e   :  { %3461 = vmatpush1.bf16.msra.mxu0 %v4019_v26  ;;  %3633 = vmatpush1.bf16.msra.mxu1 %v4021_v28  ;;  %v4084_v26 = vcombine.high %v180_v20, %v184_v21  ;;  %v241_v20 = vld [vmem:[%s6249_s1 + $0x6b8] sm:$0xff] }
 0x12f   :  { %3462 = vmatprep.subr.bf16.mxu0 %v4028_v31  ;;  %3634 = vmatprep.subr.bf16.mxu1 %v4030_v17  ;;  %v188_v31 = vld [vmem:[%s6249_s1 + $0x510] sm:$0xff] }
 0x130   :  { %v192_v17 = vld [vmem:[%s6249_s1 + $0x530] sm:$0xff] }
 0x131   :  { %v4092_v34 = vcombine.high %v188_v31, %v192_v17  ;;  %v4091_v41 = vcombine.low %v188_v31, %v192_v17  ;;  %v249_v31 = vld [vmem:[%s6249_s1 + $0x6f8] sm:$0xff] }
 0x132   :  { %3463 = vmatpush1.bf16.msra.mxu0 %v4027_v36  ;;  %3635 = vmatpush1.bf16.msra.mxu1 %v4029_v37  ;;  %v196_v37 = vld [vmem:[%s6249_s1 + $0x550] sm:$0xff] }
 0x133   :  { %3464 = vmatprep.subr.bf16.mxu0 %v4036_v38  ;;  %3636 = vmatprep.subr.bf16.mxu1 %v4038_v39  ;;  %v200_v38 = vld [vmem:[%s6249_s1 + $0x570] sm:$0xff]  ;;  %v197_v39 = vld [vmem:[%s6249_s1 + $0x558] sm:$0xff] }
 0x134   :  { %v4100_v44 = vcombine.high %v196_v37, %v200_v38  ;;  %v4099_v50 = vcombine.low %v196_v37, %v200_v38  ;;  %v4101_v52 = vcombine.low %v197_v39, %v201_v40  ;;  %v257_v37 = vld [vmem:[%s6249_s1 + $0x738] sm:$0xff] }
 0x136   :  { %3465 = vmatpush1.bf16.msra.mxu0 %v4035_v47  ;;  %3637 = vmatpush1.bf16.msra.mxu1 %v4037_v29  ;;  %v4102_v47 = vcombine.high %v197_v39, %v201_v40  ;;  %v204_v29 = vld [vmem:[%s6249_s1 + $0x590] sm:$0xff] }
 0x137   :  { %3466 = vmatprep.subr.bf16.mxu0 %v4044_v30  ;;  %3638 = vmatprep.subr.bf16.mxu1 %v4046_v48  ;;  %v208_v30 = vld [vmem:[%s6249_s1 + $0x5b0] sm:$0xff]  ;;  %v205_v48 = vld [vmem:[%s6249_s1 + $0x598] sm:$0xff] }
 0x138   :  { %v4108_v55 = vcombine.high %v204_v29, %v208_v30  ;;  %v4107_v63 = vcombine.low %v204_v29, %v208_v30  ;;  %v4109_v45 = vcombine.low %v205_v48, %v209_v49  ;;  %v265_v29 = vld [vmem:[%s6249_s1 + $0x778] sm:$0xff] }
 0x13a   :  { %3467 = vmatpush1.bf16.msra.mxu0 %v4043_v57  ;;  %3639 = vmatpush1.bf16.msra.mxu1 %v4045_v59  ;;  %v4110_v57 = vcombine.high %v205_v48, %v209_v49  ;;  %v212_v59 = vld [vmem:[%s6249_s1 + $0x5d0] sm:$0xff] }
 0x13b   :  { %3468 = vmatprep.subr.bf16.mxu0 %v4052_v60  ;;  %3640 = vmatprep.subr.bf16.mxu1 %v4054_v61  ;;  %v216_v60 = vld [vmem:[%s6249_s1 + $0x5f0] sm:$0xff]  ;;  %v213_v61 = vld [vmem:[%s6249_s1 + $0x5d8] sm:$0xff] }
 0x13c   :  { %v4116_v46 = vcombine.high %v212_v59, %v216_v60  ;;  %v4115_v5 = vcombine.low %v212_v59, %v216_v60  ;;  %v4117_v6 = vcombine.low %v213_v61, %v217_v62  ;;  %v273_v59 = vld [vmem:[%s6249_s1 + $0x7b8] sm:$0xff] }
 0x13e   :  { %3469 = vmatpush1.bf16.msra.mxu0 %v4051_v0  ;;  %3641 = vmatpush1.bf16.msra.mxu1 %v4053_v1  ;;  %v4118_v0 = vcombine.high %v213_v61, %v217_v62  ;;  %v220_v1 = vld [vmem:[%s6249_s1 + $0x610] sm:$0xff] }
 0x13f   :  { %3481 = vmatprep.subr.bf16.mxu0 %v4060_v2  ;;  %3653 = vmatprep.subr.bf16.mxu1 %v4062_v3  ;;  %v224_v2 = vld [vmem:[%s6249_s1 + $0x630] sm:$0xff]  ;;  %v221_v3 = vld [vmem:[%s6249_s1 + $0x618] sm:$0xff] }
 0x140   :  { %v4124_v7 = vcombine.high %v220_v1, %v224_v2  ;;  %v4123_v13 = vcombine.low %v220_v1, %v224_v2  ;;  %v4125_v14 = vcombine.low %v221_v3, %v225_v4  ;;  %v281_v1 = vld [vmem:[%s6249_s1 + $0x7f8] sm:$0xff] }
 0x141   :  { %3471 = vmatmul.mubr.bf16.vlgmr.msra.gmra.mrb[4].mxu0 %v4751_v15  ;;  %3643 = vmatmul.mubr.bf16.vlgmr.msra.gmra.mrb[4].mxu1 %v4751_v15  ;;  %v181_v15 = vld [vmem:[%s6249_s1 + $0x4d8] sm:$0xff] }
 0x142   :  { %3482 = vmatpush1.bf16.msra.mxu0 %v4059_v8  ;;  %3654 = vmatpush1.bf16.msra.mxu1 %v4061_v9  ;;  %v4086_v28 = vcombine.high %v181_v15, %v185_v22  ;;  %v4085_v33 = vcombine.low %v181_v15, %v185_v22  ;;  %v4126_v8 = vcombine.high %v221_v3, %v225_v4  ;;  %v228_v9 = vld [vmem:[%s6249_s1 + $0x650] sm:$0xff] }
 0x143   :  { %3483 = vmatprep.subr.bf16.mxu0 %v4068_v10  ;;  %3655 = vmatprep.subr.bf16.mxu1 %v4070_v11  ;;  %v232_v10 = vld [vmem:[%s6249_s1 + $0x670] sm:$0xff]  ;;  %v229_v11 = vld [vmem:[%s6249_s1 + $0x658] sm:$0xff] }
 0x144   :  { %3513 = vmatprep.mubr.bf16.mxu0 %v4774_v23  ;;  %3685 = vmatprep.mubr.bf16.mxu1 %v4774_v23  ;;  %v189_v23 = vld [vmem:[%s6249_s1 + $0x518] sm:$0xff]  ;;  %v4132_v16 = vcombine.high %v228_v9, %v232_v10  ;;  %v4131_v21 = vcombine.low %v228_v9, %v232_v10  ;;  %v4133_v15 = vcombine.low %v229_v11, %v233_v12 }
 0x145   :  { %v4094_v36 = vcombine.high %v189_v23, %v193_v18  ;;  %v4093_v42 = vcombine.low %v189_v23, %v193_v18  ;;  %v289_v9 = vld [vmem:[%s6249_s1 + $0x838] sm:$0xff] }
 0x146   :  { %3484 = vmatpush1.bf16.msra.mxu0 %v4067_v58  ;;  %3656 = vmatpush1.bf16.msra.mxu1 %v4069_v19  ;;  %v4134_v58 = vcombine.high %v229_v11, %v233_v12  ;;  %v236_v19 = vld [vmem:[%s6249_s1 + $0x690] sm:$0xff] }
 0x147   :  { %3485 = vmatprep.subr.bf16.mxu0 %v4076_v53  ;;  %3657 = vmatprep.subr.bf16.mxu1 %v4078_v54  ;;  %v240_v53 = vld [vmem:[%s6249_s1 + $0x6b0] sm:$0xff]  ;;  %v237_v54 = vld [vmem:[%s6249_s1 + $0x698] sm:$0xff] }
 0x148   :  { %v4140_v22 = vcombine.high %v236_v19, %v240_v53  ;;  %v4139_v17 = vcombine.low %v236_v19, %v240_v53  ;;  %v4141_v23 = vcombine.low %v237_v54, %v241_v20  ;;  %v297_v19 = vld [vmem:[%s6249_s1 + $0x878] sm:$0xff] }
 0x14a   :  { %3486 = vmatpush1.bf16.msra.mxu0 %v4075_v24  ;;  %3658 = vmatpush1.bf16.msra.mxu1 %v4077_v25  ;;  %v4142_v24 = vcombine.high %v237_v54, %v241_v20  ;;  %v244_v25 = vld [vmem:[%s6249_s1 + $0x6d0] sm:$0xff] }
 0x14b   :  { %3487 = vmatprep.subr.bf16.mxu0 %v4084_v26  ;;  %3659 = vmatprep.subr.bf16.mxu1 %v4086_v28  ;;  %v248_v26 = vld [vmem:[%s6249_s1 + $0x6f0] sm:$0xff]  ;;  %v245_v28 = vld [vmem:[%s6249_s1 + $0x6d8] sm:$0xff] }
 0x14c   :  { %v4148_v18 = vcombine.high %v244_v25, %v248_v26  ;;  %v4147_v38 = vcombine.low %v244_v25, %v248_v26  ;;  %v4149_v39 = vcombine.low %v245_v28, %v249_v31  ;;  %v305_v25 = vld [vmem:[%s6249_s1 + $0x8b8] sm:$0xff] }
 0x14e   :  { %3488 = vmatpush1.bf16.msra.mxu0 %v4083_v32  ;;  %3660 = vmatpush1.bf16.msra.mxu1 %v4085_v33  ;;  %v4150_v32 = vcombine.high %v245_v28, %v249_v31  ;;  %v252_v33 = vld [vmem:[%s6249_s1 + $0x710] sm:$0xff] }
 0x14f   :  { %3489 = vmatprep.subr.bf16.mxu0 %v4092_v34  ;;  %3661 = vmatprep.subr.bf16.mxu1 %v4094_v36  ;;  %v256_v34 = vld [vmem:[%s6249_s1 + $0x730] sm:$0xff]  ;;  %v253_v36 = vld [vmem:[%s6249_s1 + $0x718] sm:$0xff] }
 0x150   :  { %v4156_v40 = vcombine.high %v252_v33, %v256_v34  ;;  %v4155_v30 = vcombine.low %v252_v33, %v256_v34  ;;  %v4157_v48 = vcombine.low %v253_v36, %v257_v37 }
 0x152   :  { %3490 = vmatpush1.bf16.msra.mxu0 %v4091_v41  ;;  %3662 = vmatpush1.bf16.msra.mxu1 %v4093_v42  ;;  %v4158_v41 = vcombine.high %v253_v36, %v257_v37  ;;  %v260_v42 = vld [vmem:[%s6249_s1 + $0x750] sm:$0xff] }
 0x153   :  { %3491 = vmatprep.subr.bf16.mxu0 %v4100_v44  ;;  %3663 = vmatprep.subr.bf16.mxu1 %v4102_v47  ;;  %v264_v44 = vld [vmem:[%s6249_s1 + $0x770] sm:$0xff]  ;;  %v261_v47 = vld [vmem:[%s6249_s1 + $0x758] sm:$0xff] }
 0x154   :  { %v4164_v49 = vcombine.high %v260_v42, %v264_v44  ;;  %v4163_v60 = vcombine.low %v260_v42, %v264_v44  ;;  %v4165_v61 = vcombine.low %v261_v47, %v265_v29 }
 0x156   :  { %3492 = vmatpush1.bf16.msra.mxu0 %v4099_v50  ;;  %3664 = vmatpush1.bf16.msra.mxu1 %v4101_v52  ;;  %v4166_v50 = vcombine.high %v261_v47, %v265_v29  ;;  %v268_v52 = vld [vmem:[%s6249_s1 + $0x790] sm:$0xff] }
 0x157   :  { %3493 = vmatprep.subr.bf16.mxu0 %v4108_v55  ;;  %3665 = vmatprep.subr.bf16.mxu1 %v4110_v57  ;;  %v272_v55 = vld [vmem:[%s6249_s1 + $0x7b0] sm:$0xff]  ;;  %v269_v57 = vld [vmem:[%s6249_s1 + $0x798] sm:$0xff] }
 0x158   :  { %v4172_v62 = vcombine.high %v268_v52, %v272_v55  ;;  %v4171_v2 = vcombine.low %v268_v52, %v272_v55  ;;  %v4173_v3 = vcombine.low %v269_v57, %v273_v59  ;;  %v324_v29 = vld [vmem:[%s6249_s1 + $0x950] sm:$0xff] }
 0x15a   :  { %3494 = vmatpush1.bf16.msra.mxu0 %v4107_v63  ;;  %3666 = vmatpush1.bf16.msra.mxu1 %v4109_v45  ;;  %v4174_v63 = vcombine.high %v269_v57, %v273_v59  ;;  %v276_v45 = vld [vmem:[%s6249_s1 + $0x7d0] sm:$0xff] }
 0x15b   :  { %3495 = vmatprep.subr.bf16.mxu0 %v4116_v46  ;;  %3667 = vmatprep.subr.bf16.mxu1 %v4118_v0  ;;  %v280_v46 = vld [vmem:[%s6249_s1 + $0x7f0] sm:$0xff]  ;;  %v277_v0 = vld [vmem:[%s6249_s1 + $0x7d8] sm:$0xff] }
 0x15c   :  { %v4180_v4 = vcombine.high %v276_v45, %v280_v46  ;;  %v4179_v10 = vcombine.low %v276_v45, %v280_v46  ;;  %v4181_v11 = vcombine.low %v277_v0, %v281_v1  ;;  %v332_v59 = vld [vmem:[%s6249_s1 + $0x990] sm:$0xff] }
 0x15e   :  { %3496 = vmatpush1.bf16.msra.mxu0 %v4115_v5  ;;  %3668 = vmatpush1.bf16.msra.mxu1 %v4117_v6  ;;  %v4182_v5 = vcombine.high %v277_v0, %v281_v1  ;;  %v284_v6 = vld [vmem:[%s6249_s1 + $0x810] sm:$0xff] }
 0x15f   :  { %3497 = vmatprep.subr.bf16.mxu0 %v4124_v7  ;;  %3669 = vmatprep.subr.bf16.mxu1 %v4126_v8  ;;  %v288_v7 = vld [vmem:[%s6249_s1 + $0x830] sm:$0xff]  ;;  %v285_v8 = vld [vmem:[%s6249_s1 + $0x818] sm:$0xff] }
 0x160   :  { %v4188_v12 = vcombine.high %v284_v6, %v288_v7  ;;  %v4187_v53 = vcombine.low %v284_v6, %v288_v7  ;;  %v4189_v54 = vcombine.low %v285_v8, %v289_v9  ;;  %v340_v1 = vld [vmem:[%s6249_s1 + $0x9d0] sm:$0xff] }
 0x162   :  { %3498 = vmatpush1.bf16.msra.mxu0 %v4123_v13  ;;  %3670 = vmatpush1.bf16.msra.mxu1 %v4125_v14  ;;  %v4190_v13 = vcombine.high %v285_v8, %v289_v9  ;;  %v292_v14 = vld [vmem:[%s6249_s1 + $0x850] sm:$0xff] }
 0x163   :  { %3499 = vmatprep.subr.bf16.mxu0 %v4132_v16  ;;  %3671 = vmatprep.subr.bf16.mxu1 %v4134_v58  ;;  %v296_v16 = vld [vmem:[%s6249_s1 + $0x870] sm:$0xff]  ;;  %v293_v58 = vld [vmem:[%s6249_s1 + $0x858] sm:$0xff] }
 0x164   :  { %v4196_v20 = vcombine.high %v292_v14, %v296_v16  ;;  %v4195_v26 = vcombine.low %v292_v14, %v296_v16  ;;  %v4197_v28 = vcombine.low %v293_v58, %v297_v19  ;;  %v348_v9 = vld [vmem:[%s6249_s1 + $0xa10] sm:$0xff] }
 0x166   :  { %3500 = vmatpush1.bf16.msra.mxu0 %v4131_v21  ;;  %3672 = vmatpush1.bf16.msra.mxu1 %v4133_v15  ;;  %v4198_v21 = vcombine.high %v293_v58, %v297_v19  ;;  %v300_v15 = vld [vmem:[%s6249_s1 + $0x890] sm:$0xff] }
 0x167   :  { %3501 = vmatprep.subr.bf16.mxu0 %v4140_v22  ;;  %3673 = vmatprep.subr.bf16.mxu1 %v4142_v24  ;;  %v304_v22 = vld [vmem:[%s6249_s1 + $0x8b0] sm:$0xff]  ;;  %v301_v24 = vld [vmem:[%s6249_s1 + $0x898] sm:$0xff] }
 0x168   :  { %v4204_v31 = vcombine.high %v300_v15, %v304_v22  ;;  %v4203_v33 = vcombine.low %v300_v15, %v304_v22  ;;  %v4205_v34 = vcombine.low %v301_v24, %v305_v25  ;;  %v356_v19 = vld [vmem:[%s6249_s1 + $0xa50] sm:$0xff] }
 0x16a   :  { %3502 = vmatpush1.bf16.msra.mxu0 %v4139_v17  ;;  %3674 = vmatpush1.bf16.msra.mxu1 %v4141_v23  ;;  %v4206_v17 = vcombine.high %v301_v24, %v305_v25  ;;  %v308_v23 = vld [vmem:[%s6249_s1 + $0x8d0] sm:$0xff] }
 0x16b   :  { %3503 = vmatprep.subr.bf16.mxu0 %v4148_v18  ;;  %3675 = vmatprep.subr.bf16.mxu1 %v4150_v32  ;;  %v312_v18 = vld [vmem:[%s6249_s1 + $0x8f0] sm:$0xff]  ;;  %v313_v32 = vld [vmem:[%s6249_s1 + $0x8f8] sm:$0xff] }
 0x16c   :  { %v4212_v36 = vcombine.high %v308_v23, %v312_v18  ;;  %v364_v25 = vld [vmem:[%s6249_s1 + $0xa90] sm:$0xff] }
 0x16e   :  { %3504 = vmatpush1.bf16.msra.mxu0 %v4147_v38  ;;  %3676 = vmatpush1.bf16.msra.mxu1 %v4149_v39  ;;  %v316_v38 = vld [vmem:[%s6249_s1 + $0x910] sm:$0xff] }
 0x16f   :  { %3505 = vmatprep.subr.bf16.mxu0 %v4156_v40  ;;  %3677 = vmatprep.subr.bf16.mxu1 %v4158_v41  ;;  %v320_v39 = vld [vmem:[%s6249_s1 + $0x930] sm:$0xff]  ;;  %v321_v40 = vld [vmem:[%s6249_s1 + $0x938] sm:$0xff]  ;;  %v4211_v41 = vcombine.low %v308_v23, %v312_v18 }
 0x170   :  { %v4220_v44 = vcombine.high %v316_v38, %v320_v39 }
 0x172   :  { %3506 = vmatpush1.bf16.msra.mxu0 %v4155_v30  ;;  %3678 = vmatpush1.bf16.msra.mxu1 %v4157_v48  ;;  %v328_v30 = vld [vmem:[%s6249_s1 + $0x970] sm:$0xff]  ;;  %v325_v48 = vld [vmem:[%s6249_s1 + $0x958] sm:$0xff] }
 0x173   :  { %3507 = vmatprep.subr.bf16.mxu0 %v4164_v49  ;;  %3679 = vmatprep.subr.bf16.mxu1 %v4166_v50  ;;  %v329_v49 = vld [vmem:[%s6249_s1 + $0x978] sm:$0xff]  ;;  %v4219_v50 = vcombine.low %v316_v38, %v320_v39  ;;  %v4228_v55 = vcombine.high %v324_v29, %v328_v30 }
 0x174   :  { %v4230_v57 = vcombine.high %v325_v48, %v329_v49  ;;  %v4229_v45 = vcombine.low %v325_v48, %v329_v49  ;;  %v388_v49 = vld [vmem:[%s6249_s1 + $0xb50] sm:$0xff] }
 0x176   :  { %3508 = vmatpush1.bf16.msra.mxu0 %v4163_v60  ;;  %3680 = vmatpush1.bf16.msra.mxu1 %v4165_v61  ;;  %v336_v60 = vld [vmem:[%s6249_s1 + $0x9b0] sm:$0xff]  ;;  %v333_v61 = vld [vmem:[%s6249_s1 + $0x998] sm:$0xff] }
 0x177   :  { %3509 = vmatprep.subr.bf16.mxu0 %v4172_v62  ;;  %3681 = vmatprep.subr.bf16.mxu1 %v4174_v63  ;;  %v337_v62 = vld [vmem:[%s6249_s1 + $0x9b8] sm:$0xff]  ;;  %v4227_v63 = vcombine.low %v324_v29, %v328_v30  ;;  %v4236_v46 = vcombine.high %v332_v59, %v336_v60 }
 0x178   :  { %v4238_v0 = vcombine.high %v333_v61, %v337_v62  ;;  %v4237_v6 = vcombine.low %v333_v61, %v337_v62  ;;  %v396_v62 = vld [vmem:[%s6249_s1 + $0xb90] sm:$0xff] }
 0x17a   :  { %3510 = vmatpush1.bf16.msra.mxu0 %v4171_v2  ;;  %3682 = vmatpush1.bf16.msra.mxu1 %v4173_v3  ;;  %v344_v2 = vld [vmem:[%s6249_s1 + $0x9f0] sm:$0xff]  ;;  %v341_v3 = vld [vmem:[%s6249_s1 + $0x9d8] sm:$0xff] }
 0x17b   :  { %3511 = vmatprep.subr.bf16.mxu0 %v4180_v4  ;;  %3683 = vmatprep.subr.bf16.mxu1 %v4182_v5  ;;  %v345_v4 = vld [vmem:[%s6249_s1 + $0x9f8] sm:$0xff]  ;;  %v4235_v5 = vcombine.low %v332_v59, %v336_v60  ;;  %v4244_v7 = vcombine.high %v340_v1, %v344_v2 }
 0x17c   :  { %v4246_v8 = vcombine.high %v341_v3, %v345_v4  ;;  %v4245_v14 = vcombine.low %v341_v3, %v345_v4  ;;  %v404_v4 = vld [vmem:[%s6249_s1 + $0xbd0] sm:$0xff] }
 0x17e   :  { %3512 = vmatpush1.bf16.msra.mxu0 %v4179_v10  ;;  %3684 = vmatpush1.bf16.msra.mxu1 %v4181_v11  ;;  %v352_v10 = vld [vmem:[%s6249_s1 + $0xa30] sm:$0xff]  ;;  %v349_v11 = vld [vmem:[%s6249_s1 + $0xa18] sm:$0xff] }
 0x17f   :  { %3524 = vmatprep.subr.bf16.mxu0 %v4188_v12  ;;  %3696 = vmatprep.subr.bf16.mxu1 %v4190_v13  ;;  %v353_v12 = vld [vmem:[%s6249_s1 + $0xa38] sm:$0xff]  ;;  %v4243_v13 = vcombine.low %v340_v1, %v344_v2  ;;  %v4252_v16 = vcombine.high %v348_v9, %v352_v10 }
 0x180   :  { %v4254_v58 = vcombine.high %v349_v11, %v353_v12  ;;  %v4253_v15 = vcombine.low %v349_v11, %v353_v12  ;;  %v412_v12 = vld [vmem:[%s6249_s1 + $0xc10] sm:$0xff] }
 0x181   :  { %3514 = vmatmul.mubr.bf16.vlgmr.msra.gmra.mrb[4].mxu0 %v4965_v27  ;;  %3686 = vmatmul.mubr.bf16.vlgmr.msra.gmra.mrb[4].mxu1 %v4965_v27  ;;  %v309_v27 = vld [vmem:[%s6249_s1 + $0x8d8] sm:$0xff] }
 0x182   :  { %3525 = vmatpush1.bf16.msra.mxu0 %v4187_v53  ;;  %3697 = vmatpush1.bf16.msra.mxu1 %v4189_v54  ;;  %v4214_v37 = vcombine.high %v309_v27, %v313_v32  ;;  %v4213_v42 = vcombine.low %v309_v27, %v313_v32  ;;  %v360_v53 = vld [vmem:[%s6249_s1 + $0xa70] sm:$0xff]  ;;  %v357_v54 = vld [vmem:[%s6249_s1 + $0xa58] sm:$0xff] }
 0x183   :  { %3526 = vmatprep.subr.bf16.mxu0 %v4196_v20  ;;  %3698 = vmatprep.subr.bf16.mxu1 %v4198_v21  ;;  %v361_v20 = vld [vmem:[%s6249_s1 + $0xa78] sm:$0xff]  ;;  %v4251_v21 = vcombine.low %v348_v9, %v352_v10  ;;  %v4260_v22 = vcombine.high %v356_v19, %v360_v53  ;;  %v372_v32 = vld [vmem:[%s6249_s1 + $0xad0] sm:$0xff] }
 0x184   :  { %3556 = vmatprep.mubr.bf16.mxu0 %v4988_v35  ;;  %3728 = vmatprep.mubr.bf16.mxu1 %v4988_v35  ;;  %v317_v35 = vld [vmem:[%s6249_s1 + $0x918] sm:$0xff]  ;;  %v4262_v24 = vcombine.high %v357_v54, %v361_v20  ;;  %v4261_v23 = vcombine.low %v357_v54, %v361_v20  ;;  %v420_v20 = vld [vmem:[%s6249_s1 + $0xc50] sm:$0xff] }
 0x185   :  { %v4222_v47 = vcombine.high %v317_v35, %v321_v40  ;;  %v4221_v52 = vcombine.low %v317_v35, %v321_v40  ;;  %v380_v40 = vld [vmem:[%s6249_s1 + $0xb10] sm:$0xff] }
 0x186   :  { %3527 = vmatpush1.bf16.msra.mxu0 %v4195_v26  ;;  %3699 = vmatpush1.bf16.msra.mxu1 %v4197_v28  ;;  %v368_v26 = vld [vmem:[%s6249_s1 + $0xab0] sm:$0xff]  ;;  %v365_v28 = vld [vmem:[%s6249_s1 + $0xa98] sm:$0xff] }
 0x187   :  { %3528 = vmatprep.subr.bf16.mxu0 %v4204_v31  ;;  %3700 = vmatprep.subr.bf16.mxu1 %v4206_v17  ;;  %v369_v31 = vld [vmem:[%s6249_s1 + $0xab8] sm:$0xff]  ;;  %v4259_v17 = vcombine.low %v356_v19, %v360_v53  ;;  %v4268_v18 = vcombine.high %v364_v25, %v368_v26 }
 0x188   :  { %v4270_v27 = vcombine.high %v365_v28, %v369_v31  ;;  %v4269_v38 = vcombine.low %v365_v28, %v369_v31  ;;  %v428_v31 = vld [vmem:[%s6249_s1 + $0xc90] sm:$0xff] }
 0x18a   :  { %3529 = vmatpush1.bf16.msra.mxu0 %v4203_v33  ;;  %3701 = vmatpush1.bf16.msra.mxu1 %v4205_v34  ;;  %v376_v33 = vld [vmem:[%s6249_s1 + $0xaf0] sm:$0xff]  ;;  %v373_v34 = vld [vmem:[%s6249_s1 + $0xad8] sm:$0xff] }
 0x18b   :  { %3530 = vmatprep.subr.bf16.mxu0 %v4212_v36  ;;  %3702 = vmatprep.subr.bf16.mxu1 %v4214_v37  ;;  %v377_v36 = vld [vmem:[%s6249_s1 + $0xaf8] sm:$0xff]  ;;  %v4267_v37 = vcombine.low %v364_v25, %v368_v26  ;;  %v4276_v39 = vcombine.high %v372_v32, %v376_v33 }
 0x18c   :  { %v4278_v35 = vcombine.high %v373_v34, %v377_v36  ;;  %v4277_v29 = vcombine.low %v373_v34, %v377_v36  ;;  %v436_v36 = vld [vmem:[%s6249_s1 + $0xcd0] sm:$0xff] }
 0x18e   :  { %3531 = vmatpush1.bf16.msra.mxu0 %v4211_v41  ;;  %3703 = vmatpush1.bf16.msra.mxu1 %v4213_v42  ;;  %v384_v41 = vld [vmem:[%s6249_s1 + $0xb30] sm:$0xff]  ;;  %v381_v42 = vld [vmem:[%s6249_s1 + $0xb18] sm:$0xff] }
 0x18f   :  { %3532 = vmatprep.subr.bf16.mxu0 %v4220_v44  ;;  %3704 = vmatprep.subr.bf16.mxu1 %v4222_v47  ;;  %v385_v44 = vld [vmem:[%s6249_s1 + $0xb38] sm:$0xff]  ;;  %v4275_v47 = vcombine.low %v372_v32, %v376_v33  ;;  %v4284_v30 = vcombine.high %v380_v40, %v384_v41 }
 0x190   :  { %v4286_v48 = vcombine.high %v381_v42, %v385_v44  ;;  %v4285_v59 = vcombine.low %v381_v42, %v385_v44  ;;  %v444_v44 = vld [vmem:[%s6249_s1 + $0xd10] sm:$0xff] }
 0x192   :  { %3533 = vmatpush1.bf16.msra.mxu0 %v4219_v50  ;;  %3705 = vmatpush1.bf16.msra.mxu1 %v4221_v52  ;;  %v392_v50 = vld [vmem:[%s6249_s1 + $0xb70] sm:$0xff]  ;;  %v389_v52 = vld [vmem:[%s6249_s1 + $0xb58] sm:$0xff] }
 0x193   :  { %3534 = vmatprep.subr.bf16.mxu0 %v4228_v55  ;;  %3706 = vmatprep.subr.bf16.mxu1 %v4230_v57  ;;  %v393_v55 = vld [vmem:[%s6249_s1 + $0xb78] sm:$0xff]  ;;  %v4283_v57 = vcombine.low %v380_v40, %v384_v41  ;;  %v4292_v60 = vcombine.high %v388_v49, %v392_v50 }
 0x194   :  { %v4294_v61 = vcombine.high %v389_v52, %v393_v55  ;;  %v4293_v1 = vcombine.low %v389_v52, %v393_v55  ;;  %v452_v55 = vld [vmem:[%s6249_s1 + $0xd50] sm:$0xff] }
 0x196   :  { %3535 = vmatpush1.bf16.msra.mxu0 %v4227_v63  ;;  %3707 = vmatpush1.bf16.msra.mxu1 %v4229_v45  ;;  %v400_v63 = vld [vmem:[%s6249_s1 + $0xbb0] sm:$0xff]  ;;  %v397_v45 = vld [vmem:[%s6249_s1 + $0xb98] sm:$0xff] }
 0x197   :  { %3536 = vmatprep.subr.bf16.mxu0 %v4236_v46  ;;  %3708 = vmatprep.subr.bf16.mxu1 %v4238_v0  ;;  %v401_v46 = vld [vmem:[%s6249_s1 + $0xbb8] sm:$0xff]  ;;  %v4291_v0 = vcombine.low %v388_v49, %v392_v50  ;;  %v4300_v2 = vcombine.high %v396_v62, %v400_v63 }
 0x198   :  { %v4302_v3 = vcombine.high %v397_v45, %v401_v46  ;;  %v4301_v9 = vcombine.low %v397_v45, %v401_v46 }
 0x19a   :  { %3537 = vmatpush1.bf16.msra.mxu0 %v4235_v5  ;;  %3709 = vmatpush1.bf16.msra.mxu1 %v4237_v6  ;;  %v408_v5 = vld [vmem:[%s6249_s1 + $0xbf0] sm:$0xff]  ;;  %v405_v6 = vld [vmem:[%s6249_s1 + $0xbd8] sm:$0xff] }
 0x19b   :  { %3538 = vmatprep.subr.bf16.mxu0 %v4244_v7  ;;  %3710 = vmatprep.subr.bf16.mxu1 %v4246_v8  ;;  %v409_v7 = vld [vmem:[%s6249_s1 + $0xbf8] sm:$0xff]  ;;  %v4299_v8 = vcombine.low %v396_v62, %v400_v63  ;;  %v4308_v10 = vcombine.high %v404_v4, %v408_v5  ;;  %v6034_v63 = vld [vmem:[%s6251_s2] sm:$0xff] }
 0x19c   :  { %v4310_v11 = vcombine.high %v405_v6, %v409_v7  ;;  %v4309_v19 = vcombine.low %v405_v6, %v409_v7  ;;  %v464_v6 = vld [vmem:[%s6249_s1 + $0xdb0] sm:$0xff] }
 0x19e   :  { %3539 = vmatpush1.bf16.msra.mxu0 %v4243_v13  ;;  %3711 = vmatpush1.bf16.msra.mxu1 %v4245_v14  ;;  %v416_v13 = vld [vmem:[%s6249_s1 + $0xc30] sm:$0xff]  ;;  %v413_v14 = vld [vmem:[%s6249_s1 + $0xc18] sm:$0xff] }
 0x19f   :  { %3540 = vmatprep.subr.bf16.mxu0 %v4252_v16  ;;  %3712 = vmatprep.subr.bf16.mxu1 %v4254_v58  ;;  %v417_v16 = vld [vmem:[%s6249_s1 + $0xc38] sm:$0xff]  ;;  %v4307_v58 = vcombine.low %v404_v4, %v408_v5  ;;  %v4316_v53 = vcombine.high %v412_v12, %v416_v13  ;;  %v6047_v5 = vld [vmem:[%s6249_s1 + $0xd90] sm:$0xff] }
 0x1a0   :  { %v4318_v54 = vcombine.high %v413_v14, %v417_v16  ;;  %v4317_v25 = vcombine.low %v413_v14, %v417_v16  ;;  %v6069_v14 = vld [vmem:[%s6249_s1 + $0xdd0] sm:$0xff] }
 0x1a2   :  { %3541 = vmatpush1.bf16.msra.mxu0 %v4251_v21  ;;  %3713 = vmatpush1.bf16.msra.mxu1 %v4253_v15  ;;  %v424_v21 = vld [vmem:[%s6249_s1 + $0xc70] sm:$0xff]  ;;  %v421_v15 = vld [vmem:[%s6249_s1 + $0xc58] sm:$0xff] }
 0x1a3   :  { %3542 = vmatprep.subr.bf16.mxu0 %v4260_v22  ;;  %3714 = vmatprep.subr.bf16.mxu1 %v4262_v24  ;;  %v425_v22 = vld [vmem:[%s6249_s1 + $0xc78] sm:$0xff]  ;;  %v4315_v24 = vcombine.low %v412_v12, %v416_v13  ;;  %v4324_v26 = vcombine.high %v420_v20, %v424_v21 }
 0x1a4   :  { %v4326_v28 = vcombine.high %v421_v15, %v425_v22  ;;  %v4325_v32 = vcombine.low %v421_v15, %v425_v22 }
 0x1a6   :  { %3543 = vmatpush1.bf16.msra.mxu0 %v4259_v17  ;;  %3715 = vmatpush1.bf16.msra.mxu1 %v4261_v23  ;;  %v432_v17 = vld [vmem:[%s6249_s1 + $0xcb0] sm:$0xff]  ;;  %v429_v23 = vld [vmem:[%s6249_s1 + $0xc98] sm:$0xff] }
 0x1a7   :  { %3544 = vmatprep.subr.bf16.mxu0 %v4268_v18  ;;  %3716 = vmatprep.subr.bf16.mxu1 %v4270_v27  ;;  %v433_v18 = vld [vmem:[%s6249_s1 + $0xcb8] sm:$0xff]  ;;  %v4323_v27 = vcombine.low %v420_v20, %v424_v21  ;;  %v4332_v33 = vcombine.high %v428_v31, %v432_v17 }
 0x1a8   :  { %v4334_v34 = vcombine.high %v429_v23, %v433_v18  ;;  %v4333_v40 = vcombine.low %v429_v23, %v433_v18  ;;  %v6086_v20 = vld [vmem:[%s6249_s1 + $0xdf8] sm:$0xff] }
 0x1aa   :  { %3545 = vmatpush1.bf16.msra.mxu0 %v4267_v37  ;;  %3717 = vmatpush1.bf16.msra.mxu1 %v4269_v38  ;;  %v440_v37 = vld [vmem:[%s6249_s1 + $0xcf0] sm:$0xff]  ;;  %v441_v38 = vld [vmem:[%s6249_s1 + $0xcf8] sm:$0xff] }
 0x1ab   :  { %3546 = vmatprep.subr.bf16.mxu0 %v4276_v39  ;;  %3718 = vmatprep.subr.bf16.mxu1 %v4278_v35  ;;  %v3784_v39 = vlaneseq  ;;  %v4331_v35 = vcombine.low %v428_v31, %v432_v17  ;;  %v4340_v41 = vcombine.high %v436_v36, %v440_v37  ;;  %v4363_v17 = vcombine.low %v6047_v5, %v464_v6 }
 0x1ae   :  { %3547 = vmatpush1.bf16.msra.mxu0 %v4275_v47  ;;  %3719 = vmatpush1.bf16.msra.mxu1 %v4277_v29  ;;  %v448_v47 = vld [vmem:[%s6249_s1 + $0xd30] sm:$0xff]  ;;  %v449_v29 = vld [vmem:[%s6249_s1 + $0xd38] sm:$0xff] }
 0x1af   :  { %3548 = vmatprep.subr.bf16.mxu0 %v4284_v30  ;;  %3720 = vmatprep.subr.bf16.mxu1 %v4286_v48  ;;  %v6016_v30 = vshrl.u32 %v3784_v39, 7  ;;  %v4339_v48 = vcombine.low %v436_v36, %v440_v37  ;;  %v4348_v50 = vcombine.high %v444_v44, %v448_v47  ;;  %v4347_v62 = vcombine.low %v444_v44, %v448_v47 }
 0x1b1   :  { %v3794_v45 = vsub.s32 2, %v6016_v30  ;;  %v3790_v46 = vsub.s32 1, %v6016_v30 }
 0x1b2   :  { %3549 = vmatpush1.bf16.msra.mxu0 %v4283_v57  ;;  %3721 = vmatpush1.bf16.msra.mxu1 %v4285_v59  ;;  %v456_v57 = vld [vmem:[%s6249_s1 + $0xd70] sm:$0xff]  ;;  %v3786_v59 = vsub.s32 0, %v6016_v30 }
 0x1b3   :  { %3550 = vmatprep.subr.bf16.mxu0 %v4292_v60  ;;  %3722 = vmatprep.subr.bf16.mxu1 %v4294_v61  ;;  %v453_v60 = vld [vmem:[%s6249_s1 + $0xd58] sm:$0xff]  ;;  %v4355_v13 = vcombine.low %v452_v55, %v456_v57 }
 0x1b4   :  { %v457_v61 = vld [vmem:[%s6249_s1 + $0xd78] sm:$0xff]  ;;  %v3787_v7 = vrot.slane %v6034_v63, %v3786_v59 }
 0x1b5   :  { %v4358_v4 = vcombine.high %v453_v60, %v457_v61 }
 0x1b6   :  { %3551 = vmatpush1.bf16.msra.mxu0 %v4291_v0  ;;  %3723 = vmatpush1.bf16.msra.mxu1 %v4293_v1  ;;  %v3798_v0 = vsub.s32 3, %v6016_v30 }
 0x1b7   :  { %3552 = vmatprep.subr.bf16.mxu0 %v4300_v2  ;;  %3724 = vmatprep.subr.bf16.mxu1 %v4302_v3  ;;  %v4356_v2 = vcombine.high %v452_v55, %v456_v57  ;;  %v6042_v3 = vld [vmem:[%s6252_s3] sm:$0xff]  ;;  %v481_v55 = vld [vmem:[%s6249_s1 + $0xe38] sm:$0xff] }
 0x1b8   :  { %v3799_v12 = vrot.slane %v6034_v63, %v3798_v0  ;;  %v3845_v16 = vrot.slane %v6042_v3, %v3786_v59  ;;  %v3853_v15 = vrot.slane %v6042_v3, %v3794_v45  ;;  %v3849_v22 = vrot.slane %v6042_v3, %v3790_v46 }
 0x1b9   :  { %v3857_v31 = vrot.slane %v6042_v3, %v3798_v0  ;;  %v484_v0 = vld [vmem:[%s6249_s1 + $0xe50] sm:$0xff] }
 0x1ba   :  { %3553 = vmatpush1.bf16.msra.mxu0 %v4299_v8  ;;  %3725 = vmatpush1.bf16.msra.mxu1 %v4301_v9  ;;  %v6056_v8 = vld [vmem:[%s6249_s1 + $0xd98] sm:$0xff] }
 0x1bb   :  { %3554 = vmatprep.subr.bf16.mxu0 %v4308_v10  ;;  %3726 = vmatprep.subr.bf16.mxu1 %v4310_v11  ;;  %v6061_v9 = vld [vmem:[%s6249_s1 + $0xdb8] sm:$0xff]  ;;  %v3795_v10 = vrot.slane %v6034_v63, %v3794_v45  ;;  %v3791_v11 = vrot.slane %v6034_v63, %v3790_v46 }
 0x1bc   :  { %v4365_v23 = vcombine.low %v6056_v8, %v6061_v9 }
 0x1be   :  { %3555 = vmatpush1.bf16.msra.mxu0 %v4307_v58  ;;  %3727 = vmatpush1.bf16.msra.mxu1 %v4309_v19  ;;  %v4357_v58 = vcombine.low %v453_v60, %v457_v61  ;;  %v4364_v19 = vcombine.high %v6047_v5, %v464_v6 }
 0x1bf   :  { %3567 = vmatprep.subr.bf16.mxu0 %v4316_v53  ;;  %3739 = vmatprep.subr.bf16.mxu1 %v4318_v54  ;;  %v6076_v53 = vld [vmem:[%s6249_s1 + $0xdf0] sm:$0xff]  ;;  %v6081_v54 = vld [vmem:[%s6249_s1 + $0xdd8] sm:$0xff] }
 0x1c0   :  { %v4374_v36 = vcombine.high %v6081_v54, %v6086_v20  ;;  %v4371_v60 = vcombine.low %v6069_v14, %v6076_v53 }
 0x1c1   :  { %3557 = vmatmul.mubr.bf16.vlgmr.msra.gmra.mrb[4].mxu0 %v5179_v43  ;;  %3729 = vmatmul.mubr.bf16.vlgmr.msra.gmra.mrb[4].mxu1 %v5179_v43  ;;  %v437_v43 = vld [vmem:[%s6249_s1 + $0xcd8] sm:$0xff] }
 0x1c2   :  { %3568 = vmatpush1.bf16.msra.mxu0 %v4315_v24  ;;  %3740 = vmatpush1.bf16.msra.mxu1 %v4317_v25  ;;  %v4342_v42 = vcombine.high %v437_v43, %v441_v38  ;;  %v4341_v49 = vcombine.low %v437_v43, %v441_v38  ;;  %v4366_v24 = vcombine.high %v6056_v8, %v6061_v9  ;;  %v492_v9 = vld [vmem:[%s6249_s1 + $0xe90] sm:$0xff] }
 0x1c3   :  { %3569 = vmatprep.subr.bf16.mxu0 %v4324_v26  ;;  %3741 = vmatprep.subr.bf16.mxu1 %v4326_v28 }
 0x1c4   :  { %4436 = vmatprep.mubr.msk.bf16.mxu0 %vm3065_vm0, %v5202_v51  ;;  %4438 = vmatprep.mubr.msk.bf16.mxu1 %vm3065_vm0, %v5202_v51  ;;  %v445_v51 = vld [vmem:[%s6249_s1 + $0xd18] sm:$0xff] }
 0x1c5   :  { %v4350_v52 = vcombine.high %v445_v51, %v449_v29  ;;  %v4349_v1 = vcombine.low %v445_v51, %v449_v29  ;;  %v476_v51 = vld [vmem:[%s6249_s1 + $0xe10] sm:$0xff] }
 0x1c6   :  { %3570 = vmatpush1.bf16.msra.mxu0 %v4323_v27  ;;  %3742 = vmatpush1.bf16.msra.mxu1 %v4325_v32  ;;  %v480_v29 = vld [vmem:[%s6249_s1 + $0xe30] sm:$0xff] }
 0x1c7   :  { %3571 = vmatprep.subr.bf16.mxu0 %v4332_v33  ;;  %3743 = vmatprep.subr.bf16.mxu1 %v4334_v34  ;;  %v4372_v34 = vcombine.high %v6069_v14, %v6076_v53  ;;  %v4380_v45 = vcombine.high %v476_v51, %v480_v29  ;;  %v4379_v5 = vcombine.low %v476_v51, %v480_v29  ;;  %v504_v53 = vld [vmem:[%s6249_s1 + $0xef0] sm:$0xff] }
 0x1ca   :  { %3572 = vmatpush1.bf16.msra.mxu0 %v4331_v35  ;;  %3744 = vmatpush1.bf16.msra.mxu1 %v4333_v40 }
 0x1cb   :  { %3573 = vmatprep.subr.bf16.mxu0 %v4340_v41  ;;  %3745 = vmatprep.subr.bf16.mxu1 %v4342_v42 }
 0x1ce   :  { %3574 = vmatpush1.bf16.msra.mxu0 %v4339_v48  ;;  %3746 = vmatpush1.bf16.msra.mxu1 %v4341_v49 }
 0x1cf   :  { %3575 = vmatprep.subr.bf16.mxu0 %v4348_v50  ;;  %3747 = vmatprep.subr.bf16.mxu1 %v4350_v52  ;;  %v477_v52 = vld [vmem:[%s6249_s1 + $0xe18] sm:$0xff] }
 0x1d0   :  { %v4382_v46 = vcombine.high %v477_v52, %v481_v55  ;;  %v4381_v6 = vcombine.low %v477_v52, %v481_v55  ;;  %v3810_v52 = vsub.s32 6, %v6016_v30  ;;  %v3806_v55 = vsub.s32 5, %v6016_v30 }
 0x1d2   :  { %3576 = vmatpush1.bf16.msra.mxu0 %v4347_v62  ;;  %3748 = vmatpush1.bf16.msra.mxu1 %v4349_v1  ;;  %v4373_v62 = vcombine.low %v6081_v54, %v6086_v20  ;;  %v488_v1 = vld [vmem:[%s6249_s1 + $0xe70] sm:$0xff]  ;;  %v501_v54 = vld [vmem:[%s6249_s1 + $0xed8] sm:$0xff] }
 0x1d3   :  { %3577 = vmatprep.subr.bf16.mxu0 %v4356_v2  ;;  %3749 = vmatprep.subr.bf16.mxu1 %v4358_v4  ;;  %v485_v2 = vld [vmem:[%s6249_s1 + $0xe58] sm:$0xff] }
 0x1d4   :  { %v3257_v21 = vpop.f32.mrb[0].mxu0  ;;  %v3429_v26 = vpop.f32.mrb[0].mxu1  ;;  %v489_v4 = vld [vmem:[%s6249_s1 + $0xe78] sm:$0xff] }
 0x1d5   :  { %v3824_v25 = vmul.f32 %v3787_v7, %v3257_v21  ;;  %v3259_v28 = vpop.f32.mrb[1].mxu0  ;;  %v3826_v18 = vmul.f32 %v3795_v10, %v3429_v26  ;;  %v3431_v32 = vpop.f32.mrb[1].mxu1  ;;  %v4390_v8 = vcombine.high %v485_v2, %v489_v4  ;;  %v4389_v14 = vcombine.low %v485_v2, %v489_v4  ;;  %v505_v20 = vld [vmem:[%s6249_s1 + $0xef8] sm:$0xff]  ;;  %v512_v26 = vld [vmem:[%s6249_s1 + $0xf30] sm:$0xff] }
 0x1d6   :  { %v3825_v27 = vmul.f32 %v3791_v11, %v3259_v28  ;;  %v3261_v33 = vpop.f32.mrb[2].mxu0  ;;  %3578 = vmatpush1.bf16.msra.mxu0 %v4355_v13  ;;  %v3827_v43 = vmul.f32 %v3799_v12, %v3431_v32  ;;  %v3433_v39 = vpop.f32.mrb[2].mxu1  ;;  %3750 = vmatpush1.bf16.msra.mxu1 %v4357_v58  ;;  %v4387_v13 = vcombine.low %v484_v0, %v488_v1  ;;  %v509_v28 = vld [vmem:[%s6249_s1 + $0xf18] sm:$0xff]  ;;  %v516_v32 = vld [vmem:[%s6249_s1 + $0xf50] sm:$0xff] }
 0x1d7   :  { %v3882_v37 = vadd.f32 %v3845_v16, %v3824_v25  ;;  %v3832_v38 = vmul.f32 %v3787_v7, %v3261_v33  ;;  %v3263_v35 = vpop.f32.mrb[3].mxu0  ;;  %3579 = vmatprep.subr.bf16.mxu0 %v4364_v19  ;;  %v3884_v40 = vadd.f32 %v3853_v15, %v3826_v18  ;;  %v3834_v42 = vmul.f32 %v3795_v10, %v3433_v39  ;;  %v3435_v47 = vpop.f32.mrb[3].mxu1  ;;  %v496_v10 = vld [vmem:[%s6249_s1 + $0xeb0] sm:$0xff] }
 0x1d8   :  { %v3883_v41 = vadd.f32 %v3849_v22, %v3825_v27  ;;  %v3833_v44 = vmul.f32 %v3791_v11, %v3263_v35  ;;  %3751 = vmatprep.subr.bf16.mxu1 %v4366_v24  ;;  %v3885_v48 = vadd.f32 %v3857_v31, %v3827_v43  ;;  %v3835_v50 = vmul.f32 %v3799_v12, %v3435_v47  ;;  %v493_v11 = vld [vmem:[%s6249_s1 + $0xe98] sm:$0xff]  ;;  %v500_v19 = vld [vmem:[%s6249_s1 + $0xed0] sm:$0xff] }
 0x1d9   :  { %3898 = vst [vmem:[%s6253_s4] sm:$0xff] %v3882_v37  ;;  %v3890_v49 = vadd.f32 %v3845_v16, %v3832_v38  ;;  %3900 = vst [vmem:[%s6253_s4 + $0x10] sm:$0xff] %v3884_v40  ;;  %v3892_v57 = vadd.f32 %v3853_v15, %v3834_v42  ;;  %v4388_v7 = vcombine.high %v484_v0, %v488_v1  ;;  %v497_v12 = vld [vmem:[%s6249_s1 + $0xeb8] sm:$0xff]  ;;  %v508_v25 = vld [vmem:[%s6249_s1 + $0xf10] sm:$0xff] }
 0x1da   :  { %3899 = vst [vmem:[%s6253_s4 + $0x8] sm:$0xff] %v3883_v41  ;;  %v3891_v59 = vadd.f32 %v3849_v22, %v3833_v44  ;;  %3580 = vmatpush1.bf16.msra.mxu0 %v4363_v17  ;;  %3901 = vst [vmem:[%s6253_s4 + $0x18] sm:$0xff] %v3885_v48  ;;  %v3893_v61 = vadd.f32 %v3857_v31, %v3835_v50  ;;  %3752 = vmatpush1.bf16.msra.mxu1 %v4365_v23  ;;  %v513_v31 = vld [vmem:[%s6249_s1 + $0xf38] sm:$0xff]  ;;  %v520_v33 = vld [vmem:[%s6249_s1 + $0xf70] sm:$0xff]  ;;  %v3802_v50 = vsub.s32 4, %v6016_v30 }
 0x1db   :  { %3906 = vst [vmem:[%s6253_s4 + $0x40] sm:$0xf] %v3890_v49  ;;  %3581 = vmatprep.subr.bf16.mxu0 %v4372_v34  ;;  %3908 = vst [vmem:[%s6253_s4 + $0x50] sm:$0xf] %v3892_v57  ;;  %3753 = vmatprep.subr.bf16.mxu1 %v4374_v36  ;;  %v4396_v16 = vcombine.high %v492_v9, %v496_v10  ;;  %v4398_v58 = vcombine.high %v493_v11, %v497_v12  ;;  %v517_v34 = vld [vmem:[%s6249_s1 + $0xf58] sm:$0xff]  ;;  %v524_v35 = vld [vmem:[%s6249_s1 + $0xf90] sm:$0xff] }
 0x1dc   :  { %3907 = vst [vmem:[%s6253_s4 + $0x48] sm:$0xf] %v3891_v59  ;;  %3909 = vst [vmem:[%s6253_s4 + $0x58] sm:$0xf] %v3893_v61  ;;  %v4395_v21 = vcombine.low %v492_v9, %v496_v10  ;;  %v4397_v15 = vcombine.low %v493_v11, %v497_v12  ;;  %v4404_v22 = vcombine.high %v500_v19, %v504_v53  ;;  %v521_v36 = vld [vmem:[%s6249_s1 + $0xf78] sm:$0xff]  ;;  %v3814_v57 = vsub.s32 7, %v6016_v30 }
 0x1dd   :  { %v4406_v24 = vcombine.high %v501_v54, %v505_v20  ;;  %v4403_v17 = vcombine.low %v500_v19, %v504_v53  ;;  %v4405_v23 = vcombine.low %v501_v54, %v505_v20  ;;  %v4412_v18 = vcombine.high %v508_v25, %v512_v26  ;;  %v525_v40 = vld [vmem:[%s6249_s1 + $0xf98] sm:$0xff] }
 0x1de   :  { %3582 = vmatpush1.bf16.msra.mxu0 %v4371_v60  ;;  %3754 = vmatpush1.bf16.msra.mxu1 %v4373_v62  ;;  %v4414_v27 = vcombine.high %v509_v28, %v513_v31  ;;  %v4411_v37 = vcombine.low %v508_v25, %v512_v26  ;;  %v4413_v43 = vcombine.low %v509_v28, %v513_v31 }
 0x1df   :  { %3583 = vmatprep.subr.bf16.mxu0 %v4380_v45  ;;  %3755 = vmatprep.subr.bf16.mxu1 %v4382_v46  ;;  %v4420_v38 = vcombine.high %v516_v32, %v520_v33  ;;  %v4422_v39 = vcombine.high %v517_v34, %v521_v36  ;;  %v4419_v41 = vcombine.low %v516_v32, %v520_v33 }
 0x1e0   :  { %v4421_v42 = vcombine.low %v517_v34, %v521_v36  ;;  %v4428_v44 = vcombine.high %v524_v35, %v524_v35  ;;  %v4427_v47 = vcombine.low %v524_v35, %v524_v35  ;;  %v4430_v51 = vcombine.high %v525_v40, %v525_v40 }
 0x1e1   :  { %v4429_v29 = vcombine.low %v525_v40, %v525_v40  ;;  %v3803_v59 = vrot.slane %v6034_v63, %v3802_v50  ;;  %v3811_v60 = vrot.slane %v6034_v63, %v3810_v52  ;;  %v3807_v61 = vrot.slane %v6034_v63, %v3806_v55 }
 0x1e2   :  { %3584 = vmatpush1.bf16.msra.mxu0 %v4379_v5  ;;  %3756 = vmatpush1.bf16.msra.mxu1 %v4381_v6  ;;  %v3083_v48 = vsel %vm3069_vm1, %v4427_v47, 0  ;;  %v3861_v62 = vrot.slane %v6042_v3, %v3802_v50  ;;  %v3815_v45 = vrot.slane %v6034_v63, %v3814_v57  ;;  %v3865_v0 = vrot.slane %v6042_v3, %v3806_v55 }
 0x1e3   :  { %3585 = vmatprep.subr.bf16.mxu0 %v4388_v7  ;;  %3757 = vmatprep.subr.bf16.mxu1 %v4390_v8  ;;  %v3089_v49 = vsel %vm3069_vm1, %v4429_v29, 0  ;;  %v3873_v30 = vrot.slane %v6042_v3, %v3814_v57 }
 0x1e6   :  { %3586 = vmatpush1.bf16.msra.mxu0 %v4387_v13  ;;  %3758 = vmatpush1.bf16.msra.mxu1 %v4389_v14 }
 0x1e7   :  { %3587 = vmatprep.subr.bf16.mxu0 %v4396_v16  ;;  %3759 = vmatprep.subr.bf16.mxu1 %v4398_v58 }
 0x1ea   :  { %3588 = vmatpush1.bf16.msra.mxu0 %v4395_v21  ;;  %3760 = vmatpush1.bf16.msra.mxu1 %v4397_v15 }
 0x1eb   :  { %3589 = vmatprep.subr.bf16.mxu0 %v4404_v22  ;;  %3761 = vmatprep.subr.bf16.mxu1 %v4406_v24 }
 0x1ee   :  { %3590 = vmatpush1.bf16.msra.mxu0 %v4403_v17  ;;  %3762 = vmatpush1.bf16.msra.mxu1 %v4405_v23 }
 0x1ef   :  { %3591 = vmatprep.subr.bf16.mxu0 %v4412_v18  ;;  %3763 = vmatprep.subr.bf16.mxu1 %v4414_v27 }
 0x1f2   :  { %3592 = vmatpush1.bf16.msra.mxu0 %v4411_v37  ;;  %3764 = vmatpush1.bf16.msra.mxu1 %v4413_v43 }
 0x1f3   :  { %3593 = vmatprep.subr.bf16.mxu0 %v4420_v38  ;;  %3765 = vmatprep.subr.bf16.mxu1 %v4422_v39 }
 0x1f6   :  { %3594 = vmatpush1.bf16.msra.mxu0 %v4419_v41  ;;  %3766 = vmatpush1.bf16.msra.mxu1 %v4421_v42 }
 0x1f7   :  { %4435 = vmatprep.subr.msk.bf16.mxu0 %vm3069_vm1, %v4428_v44  ;;  %4437 = vmatprep.subr.msk.bf16.mxu1 %vm3069_vm1, %v4430_v51 }
 0x1fa   :  { %3596 = vmatpush1.bf16.msra.mxu0 %v3083_v48  ;;  %3768 = vmatpush1.bf16.msra.mxu1 %v3089_v49 }
 0x1fd   :  { %3600 = vmatmul.mubr.bf16.vlgmr.msra.gmra.mrb[4].mxu0 %v5378_v56  ;;  %3772 = vmatmul.mubr.bf16.vlgmr.msra.gmra.mrb[4].mxu1 %v5378_v56  ;;  %v3869_v56 = vrot.slane %v6042_v3, %v3810_v52 }
 0x2d0   :  { %v3601_v46 = vpop.f32.mrb[4].mxu0  ;;  %v3773_v2 = vpop.f32.mrb[4].mxu1 }
 0x2d1   :  { %v3828_v1 = vmul.f32 %v3803_v59, %v3601_v46  ;;  %v3603_v4 = vpop.f32.mrb[5].mxu0  ;;  %v3830_v5 = vmul.f32 %v3811_v60, %v3773_v2  ;;  %v3775_v7 = vpop.f32.mrb[5].mxu1 }
 0x2d2   :  { %v3829_v6 = vmul.f32 %v3807_v61, %v3603_v4  ;;  %v3605_v8 = vpop.f32.mrb[6].mxu0  ;;  %v3831_v10 = vmul.f32 %v3815_v45, %v3775_v7  ;;  %v3777_v12 = vpop.f32.mrb[6].mxu1 }
 0x2d3   :  { %v3886_v9 = vadd.f32 %v3861_v62, %v3828_v1  ;;  %v3836_v11 = vmul.f32 %v3803_v59, %v3605_v8  ;;  %v3607_v13 = vpop.f32.mrb[7].mxu0  ;;  %v3888_v63 = vadd.f32 %v3869_v56, %v3830_v5  ;;  %v3838_v16 = vmul.f32 %v3811_v60, %v3777_v12  ;;  %v3779_v19 = vpop.f32.mrb[7].mxu1 }
 0x2d4   :  { %v3887_v14 = vadd.f32 %v3865_v0, %v3829_v6  ;;  %v3837_v58 = vmul.f32 %v3807_v61, %v3607_v13  ;;  %v3889_v53 = vadd.f32 %v3873_v30, %v3831_v10  ;;  %v3839_v54 = vmul.f32 %v3815_v45, %v3779_v19 }
 0x2d5   :  { %3902 = vst [vmem:[%s6253_s4 + $0x20] sm:$0xff] %v3886_v9  ;;  %v3894_v3 = vadd.f32 %v3861_v62, %v3836_v11  ;;  %3904 = vst [vmem:[%s6253_s4 + $0x30] sm:$0xff] %v3888_v63  ;;  %v3896_v20 = vadd.f32 %v3869_v56, %v3838_v16 }
 0x2d6   :  { %3903 = vst [vmem:[%s6253_s4 + $0x28] sm:$0xff] %v3887_v14  ;;  %v3895_v21 = vadd.f32 %v3865_v0, %v3837_v58  ;;  %3905 = vst.msk [vmem:[%s6253_s4 + $0x38] sm:$0xff] %vm3065_vm0, %v3889_v53  ;;  %v3897_v15 = vadd.f32 %v3873_v30, %v3839_v54 }
 0x2d7   :  { %3910 = vst [vmem:[%s6253_s4 + $0x60] sm:$0xf] %v3894_v3  ;;  %3912 = vst [vmem:[%s6253_s4 + $0x70] sm:$0xf] %v3896_v20 }
 0x2d8   :  { %3911 = vst [vmem:[%s6253_s4 + $0x68] sm:$0xf] %v3895_v21  ;;  %3914 = vst.msk [vmem:[%s6253_s4 + $0x78] sm:$0xf] %vm3913_vm2, %v3897_v15 }

// kernel: classifier_forward.23
= control target key start
LH: loop header
LB: loop body
LE: loop exit
PB: predicated region body
PF: predicated region fallthrough
CT: control target
= control target key end

     0   :  { %v459_v1 = vmov 0   ;;  %v306_v34 = vlaneseq  ;;  %s614_s1 = inlined_call_operand.vmem [shape: bf16[128,512], index: 1, kind: input, shape index: {}]   ;;  %s615_s0 = inlined_call_operand.vmem [shape: bf16[16,128], index: 0, kind: input, shape index: {}]   ;;  %s616_s2 = inlined_call_operand.vmem [shape: f32[1,512], index: 2, kind: input, shape index: {}]   ;;  %s617_s3 = inlined_call_operand.vmem [shape: f32[1,512], index: 3, kind: input, shape index: {}]   ;;  %s618_s4 = inlined_call_operand.vmem [shape: f32[16,512], index: 4, kind: output, shape index: {}]  }
   0x1   :  { %v410_v0 = vld [vmem:[%s614_s1 + $0x4] ss:$16 sps:$4 sm:$0xff]   ;;  %250 = vmatprep.mubr.bf16.mxu0 %v459_v1  ;;  %293 = vmatprep.mubr.bf16.mxu1 %v459_v1  ;;  %v412_v2 = vld [vmem:[%s614_s1 + $0xc] ss:$16 sps:$4 sm:$0xff]   ;;  %v414_v3 = vld [vmem:[%s614_s1] ss:$16 sps:$4 sm:$0xff]  }
   0x2   :  { %218 = vmatprep.subr.bf16.mxu0 %v410_v0  ;;  %v415_v4 = vld [vmem:[%s614_s1 + $0x8] ss:$16 sps:$4 sm:$0xff]   ;;  %261 = vmatprep.subr.bf16.mxu1 %v412_v2  ;;  %v416_v5 = vld [vmem:[%s614_s1 + $0x24] ss:$16 sps:$4 sm:$0xff]   ;;  %v418_v6 = vld [vmem:[%s614_s1 + $0x2c] ss:$16 sps:$4 sm:$0xff]  }
   0x3   :  { %219 = vmatpush1.bf16.msra.mxu0 %v414_v3  ;;  %262 = vmatpush1.bf16.msra.mxu1 %v415_v4  ;;  %v420_v7 = vld [vmem:[%s614_s1 + $0x20] ss:$16 sps:$4 sm:$0xff]   ;;  %v421_v8 = vld [vmem:[%s614_s1 + $0x28] ss:$16 sps:$4 sm:$0xff]   ;;  %v422_v9 = vld [vmem:[%s614_s1 + $0x44] ss:$16 sps:$4 sm:$0xff]  }
   0x4   :  { %220 = vmatprep.subr.bf16.mxu0 %v416_v5  ;;  %263 = vmatprep.subr.bf16.mxu1 %v418_v6  ;;  %v424_v10 = vld [vmem:[%s614_s1 + $0x4c] ss:$16 sps:$4 sm:$0xff]   ;;  %v426_v11 = vld [vmem:[%s614_s1 + $0x40] ss:$16 sps:$4 sm:$0xff]   ;;  %v427_v12 = vld [vmem:[%s614_s1 + $0x48] ss:$16 sps:$4 sm:$0xff]  }
   0x5   :  { %v428_v13 = vld [vmem:[%s614_s1 + $0x64] ss:$16 sps:$4 sm:$0xff]   ;;  %v430_v14 = vld [vmem:[%s614_s1 + $0x6c] ss:$16 sps:$4 sm:$0xff]   ;;  %v432_v15 = vld [vmem:[%s614_s1 + $0x60] ss:$16 sps:$4 sm:$0xff]  }
   0x6   :  { %v433_v16 = vld [vmem:[%s614_s1 + $0x68] ss:$16 sps:$4 sm:$0xff]   ;;  %v434_v17 = vld [vmem:[%s614_s1 + $0x84] ss:$16 sps:$4 sm:$0xff]   ;;  %v436_v18 = vld [vmem:[%s614_s1 + $0x8c] ss:$16 sps:$4 sm:$0xff]  }
   0x7   :  { %221 = vmatpush1.bf16.msra.mxu0 %v420_v7  ;;  %264 = vmatpush1.bf16.msra.mxu1 %v421_v8  ;;  %v438_v19 = vld [vmem:[%s614_s1 + $0x80] ss:$16 sps:$4 sm:$0xff]   ;;  %v439_v20 = vld [vmem:[%s614_s1 + $0x88] ss:$16 sps:$4 sm:$0xff]   ;;  %v440_v21 = vld [vmem:[%s614_s1 + $0xa4] ss:$16 sps:$4 sm:$0xff]  }
   0x8   :  { %222 = vmatprep.subr.bf16.mxu0 %v422_v9  ;;  %265 = vmatprep.subr.bf16.mxu1 %v424_v10  ;;  %v442_v22 = vld [vmem:[%s614_s1 + $0xac] ss:$16 sps:$4 sm:$0xff]   ;;  %v444_v23 = vld [vmem:[%s614_s1 + $0xa0] ss:$16 sps:$4 sm:$0xff]   ;;  %v445_v24 = vld [vmem:[%s614_s1 + $0xa8] ss:$16 sps:$4 sm:$0xff]  }
   0x9   :  { %v446_v25 = vld [vmem:[%s614_s1 + $0xc4] ss:$16 sps:$4 sm:$0xff]   ;;  %v448_v26 = vld [vmem:[%s614_s1 + $0xcc] ss:$16 sps:$4 sm:$0xff]   ;;  %v450_v27 = vld [vmem:[%s614_s1 + $0xc0] ss:$16 sps:$4 sm:$0xff]  }
   0xa   :  { %v451_v28 = vld [vmem:[%s614_s1 + $0xc8] ss:$16 sps:$4 sm:$0xff]   ;;  %v452_v29 = vld [vmem:[%s614_s1 + $0xe4] ss:$16 sps:$4 sm:$0xff]   ;;  %v454_v30 = vld [vmem:[%s614_s1 + $0xec] ss:$16 sps:$4 sm:$0xff]  }
   0xb   :  { %223 = vmatpush1.bf16.msra.mxu0 %v426_v11  ;;  %266 = vmatpush1.bf16.msra.mxu1 %v427_v12  ;;  %v456_v31 = vld [vmem:[%s614_s1 + $0xe0] ss:$16 sps:$4 sm:$0xff]   ;;  %v457_v32 = vld [vmem:[%s614_s1 + $0xe8] ss:$16 sps:$4 sm:$0xff]   ;;  %v307_v35 = vshrl.u32 %v306_v34, 7 }
   0xc   :  { %224 = vmatprep.subr.bf16.mxu0 %v428_v13  ;;  %267 = vmatprep.subr.bf16.mxu1 %v430_v14  ;;  %v458_v33 = vld [vmem:[%s615_s0] sm:$0xff]  }
   0xd   :  { %v308_v36 = vsub.s32 0, %v307_v35  ;;  %v316_v37 = vsub.s32 2, %v307_v35  ;;  %v304_v38 = vld [vmem:[%s616_s2] sm:$0xf]  ;;  %v312_v39 = vsub.s32 1, %v307_v35  ;;  %v320_v40 = vsub.s32 3, %v307_v35 }
   0xe   :  { %v334_v41 = vld [vmem:[%s617_s3] sm:$0xf] }
   0xf   :  { %225 = vmatpush1.bf16.msra.mxu0 %v432_v15  ;;  %268 = vmatpush1.bf16.msra.mxu1 %v433_v16  ;;  %v309_v42 = vrot.slane %v304_v38, %v308_v36  ;;  %v317_v43 = vrot.slane %v304_v38, %v316_v37  ;;  %v313_v44 = vrot.slane %v304_v38, %v312_v39 }
  0x10   :  { %226 = vmatprep.subr.bf16.mxu0 %v434_v17  ;;  %269 = vmatprep.subr.bf16.mxu1 %v436_v18  ;;  %v321_v45 = vrot.slane %v304_v38, %v320_v40  ;;  %v339_v46 = vrot.slane %v334_v41, %v308_v36  ;;  %v347_v47 = vrot.slane %v334_v41, %v316_v37 }
  0x11   :  { %v343_v50 = vrot.slane %v334_v41, %v312_v39  ;;  %v351_v51 = vrot.slane %v334_v41, %v320_v40 }
  0x13   :  { %227 = vmatpush1.bf16.msra.mxu0 %v438_v19  ;;  %270 = vmatpush1.bf16.msra.mxu1 %v439_v20 }
  0x14   :  { %228 = vmatprep.subr.bf16.mxu0 %v440_v21  ;;  %271 = vmatprep.subr.bf16.mxu1 %v442_v22 }
  0x17   :  { %229 = vmatpush1.bf16.msra.mxu0 %v444_v23  ;;  %272 = vmatpush1.bf16.msra.mxu1 %v445_v24 }
  0x18   :  { %230 = vmatprep.subr.bf16.mxu0 %v446_v25  ;;  %273 = vmatprep.subr.bf16.mxu1 %v448_v26 }
  0x1b   :  { %231 = vmatpush1.bf16.msra.mxu0 %v450_v27  ;;  %274 = vmatpush1.bf16.msra.mxu1 %v451_v28 }
  0x1c   :  { %232 = vmatprep.subr.bf16.mxu0 %v452_v29  ;;  %275 = vmatprep.subr.bf16.mxu1 %v454_v30 }
  0x1f   :  { %233 = vmatpush1.bf16.msra.mxu0 %v456_v31  ;;  %276 = vmatpush1.bf16.msra.mxu1 %v457_v32 }
  0x22   :  { %251 = vmatmul.mubr.bf16.vlgmr.msra.gmra.mrb[0].mxu0 %v458_v33  ;;  %294 = vmatmul.mubr.bf16.vlgmr.msra.gmra.mrb[0].mxu1 %v458_v33 }
  0xf5   :  { %v252_v48 = vpop.f32.mrb[0].mxu0  ;;  %v295_v49 = vpop.f32.mrb[0].mxu1 }
  0xf6   :  { %v326_v52 = vmul.f32 %v309_v42, %v252_v48  ;;  %v328_v53 = vmul.f32 %v317_v43, %v295_v49  ;;  %v254_v54 = vpop.f32.mrb[1].mxu0  ;;  %v297_v55 = vpop.f32.mrb[1].mxu1 }
  0xf7   :  { %v327_v56 = vmul.f32 %v313_v44, %v254_v54  ;;  %v329_v57 = vmul.f32 %v321_v45, %v297_v55  ;;  %v256_v58 = vpop.f32.mrb[2].mxu0  ;;  %v299_v59 = vpop.f32.mrb[2].mxu1 }
  0xf8   :  { %v356_v60 = vadd.f32 %v339_v46, %v326_v52  ;;  %v358_v61 = vadd.f32 %v347_v47, %v328_v53  ;;  %v330_v62 = vmul.f32 %v309_v42, %v256_v58  ;;  %v332_v63 = vmul.f32 %v317_v43, %v299_v59  ;;  %v258_v0 = vpop.f32.mrb[3].mxu0  ;;  %v301_v1 = vpop.f32.mrb[3].mxu1 }
  0xf9   :  { %v357_v2 = vadd.f32 %v343_v50, %v327_v56  ;;  %v359_v3 = vadd.f32 %v351_v51, %v329_v57  ;;  %v331_v4 = vmul.f32 %v313_v44, %v258_v0  ;;  %v333_v5 = vmul.f32 %v321_v45, %v301_v1 }
  0xfa   :  { %364 = vst [vmem:[%s618_s4] sm:$0xff] %v356_v60  ;;  %366 = vst [vmem:[%s618_s4 + $0x10] sm:$0xff] %v358_v61  ;;  %v360_v6 = vadd.f32 %v339_v46, %v330_v62  ;;  %v362_v7 = vadd.f32 %v347_v47, %v332_v63 }
  0xfb   :  { %365 = vst [vmem:[%s618_s4 + $0x8] sm:$0xff] %v357_v2  ;;  %367 = vst [vmem:[%s618_s4 + $0x18] sm:$0xff] %v359_v3  ;;  %v361_v8 = vadd.f32 %v343_v50, %v331_v4  ;;  %v363_v9 = vadd.f32 %v351_v51, %v333_v5 }
  0xfc   :  { %368 = vst [vmem:[%s618_s4 + $0x20] sm:$0xff] %v360_v6  ;;  %370 = vst [vmem:[%s618_s4 + $0x30] sm:$0xff] %v362_v7 }
  0xfd   :  { %369 = vst [vmem:[%s618_s4 + $0x28] sm:$0xff] %v361_v8  ;;  %371 = vst [vmem:[%s618_s4 + $0x38] sm:$0xff] %v363_v9 }

// kernel: classifier_forward.16
= control target key start
LH: loop header
LB: loop body
LE: loop exit
PB: predicated region body
PF: predicated region fallthrough
CT: control target
= control target key end

     0   :  { %v965_v41 = vmov 0   ;;  %vm565_vm0 = vcmask 850944   ;;  %vm569_vm1 = vcmask 1043456   ;;  %s1231_s1 = inlined_call_operand.vmem [shape: bf16[1000,128], index: 1, kind: input, shape index: {}]   ;;  %s1232_s0 = inlined_call_operand.vmem [shape: bf16[14,1000], index: 0, kind: input, shape index: {}]   ;;  %s1233_s2 = inlined_call_operand.vmem [shape: f32[1,128], index: 2, kind: input, shape index: {}]   ;;  %s1234_s3 = inlined_call_operand.vmem [shape: f32[1,128], index: 3, kind: input, shape index: {}]   ;;  %s1235_s4 = inlined_call_operand.vmem [shape: f32[14,128], index: 4, kind: output, shape index: {}]  }
   0x1   :  { %v902_v0 = vld [vmem:[%s1231_s1 + $0x40] sm:$0xff]   ;;  %v906_v4 = vld [vmem:[%s1231_s1 + $0x48] sm:$0xff]   ;;  %v910_v8 = vld [vmem:[%s1231_s1 + $0x50] sm:$0xff]  }
   0x2   :  { %v903_v1 = vld [vmem:[%s1231_s1 + $0xc0] sm:$0xff]   ;;  %835 = vmatprep.subr.bf16.mxu0 %v902_v0  ;;  %v907_v5 = vld [vmem:[%s1231_s1 + $0xc8] sm:$0xff]   ;;  %v911_v9 = vld [vmem:[%s1231_s1 + $0xd0] sm:$0xff]  }
   0x3   :  { %v904_v2 = vld [vmem:[%s1231_s1] sm:$0xff]   ;;  %857 = vmatprep.subr.bf16.mxu1 %v903_v1  ;;  %v908_v6 = vld [vmem:[%s1231_s1 + $0x8] sm:$0xff]   ;;  %v912_v10 = vld [vmem:[%s1231_s1 + $0x10] sm:$0xff]  }
   0x4   :  { %v905_v3 = vld [vmem:[%s1231_s1 + $0x80] sm:$0xff]   ;;  %836 = vmatpush3.bf16.msra.mxu0 %v904_v2  ;;  %v909_v7 = vld [vmem:[%s1231_s1 + $0x88] sm:$0xff]   ;;  %v913_v11 = vld [vmem:[%s1231_s1 + $0x90] sm:$0xff]  }
   0x5   :  { %858 = vmatpush3.bf16.msra.mxu1 %v905_v3  ;;  %837 = vmatprep.subr.bf16.mxu0 %v906_v4  ;;  %v914_v12 = vld [vmem:[%s1231_s1 + $0x58] sm:$0xff]   ;;  %v918_v16 = vld [vmem:[%s1231_s1 + $0x60] sm:$0xff]   ;;  %v922_v20 = vld [vmem:[%s1231_s1 + $0x68] sm:$0xff]  }
   0x6   :  { %859 = vmatprep.subr.bf16.mxu1 %v907_v5  ;;  %v915_v13 = vld [vmem:[%s1231_s1 + $0xd8] sm:$0xff]   ;;  %v919_v17 = vld [vmem:[%s1231_s1 + $0xe0] sm:$0xff]   ;;  %v923_v21 = vld [vmem:[%s1231_s1 + $0xe8] sm:$0xff]  }
   0x7   :  { %v916_v14 = vld [vmem:[%s1231_s1 + $0x18] sm:$0xff]   ;;  %v920_v18 = vld [vmem:[%s1231_s1 + $0x20] sm:$0xff]   ;;  %v924_v22 = vld [vmem:[%s1231_s1 + $0x28] sm:$0xff]  }
   0x8   :  { %838 = vmatpush3.bf16.msra.mxu0 %v908_v6  ;;  %v917_v15 = vld [vmem:[%s1231_s1 + $0x98] sm:$0xff]   ;;  %v921_v19 = vld [vmem:[%s1231_s1 + $0xa0] sm:$0xff]   ;;  %v925_v23 = vld [vmem:[%s1231_s1 + $0xa8] sm:$0xff]  }
   0x9   :  { %860 = vmatpush3.bf16.msra.mxu1 %v909_v7  ;;  %839 = vmatprep.subr.bf16.mxu0 %v910_v8  ;;  %v926_v24 = vld [vmem:[%s1231_s1 + $0x70] sm:$0xff]   ;;  %v930_v28 = vld [vmem:[%s1231_s1 + $0x78] sm:$0xff]   ;;  %v18_v32 = vld [vmem:[%s1232_s0] sm:$0xff] }
   0xa   :  { %861 = vmatprep.subr.bf16.mxu1 %v911_v9  ;;  %v927_v25 = vld [vmem:[%s1231_s1 + $0xf0] sm:$0xff]   ;;  %v931_v29 = vld [vmem:[%s1231_s1 + $0xf8] sm:$0xff]   ;;  %v22_v33 = vld [vmem:[%s1232_s0 + $0x20] sm:$0x77] }
   0xb   :  { %v928_v26 = vld [vmem:[%s1231_s1 + $0x30] sm:$0xff]   ;;  %v932_v30 = vld [vmem:[%s1231_s1 + $0x38] sm:$0xff]   ;;  %v19_v34 = vld [vmem:[%s1232_s0 + $0x8] sm:$0xff]  ;;  %v761_v35 = vcombine.low %v18_v32, %v22_v33  ;;  %v762_v36 = vcombine.high %v18_v32, %v22_v33 }
   0xc   :  { %840 = vmatpush3.bf16.msra.mxu0 %v912_v10  ;;  %v929_v27 = vld [vmem:[%s1231_s1 + $0xb0] sm:$0xff]   ;;  %v933_v31 = vld [vmem:[%s1231_s1 + $0xb8] sm:$0xff]   ;;  %v23_v37 = vld [vmem:[%s1232_s0 + $0x28] sm:$0x77] }
   0xd   :  { %862 = vmatpush3.bf16.msra.mxu1 %v913_v11  ;;  %841 = vmatprep.subr.bf16.mxu0 %v914_v12  ;;  %v763_v38 = vcombine.low %v19_v34, %v23_v37  ;;  %v764_v39 = vcombine.high %v19_v34, %v23_v37  ;;  %v934_v40 = vld [vmem:[%s1231_s1 + $0x140] sm:$0xff]   ;;  %v937_v44 = vld [vmem:[%s1231_s1 + $0x148] sm:$0xff]   ;;  %v940_v47 = vld [vmem:[%s1231_s1 + $0x150] sm:$0xff]  }
   0xe   :  { %863 = vmatprep.subr.bf16.mxu1 %v915_v13  ;;  %605 = vmatprep.mubr.bf16.mxu0 %v762_v36  ;;  %v935_v42 = vld [vmem:[%s1231_s1 + $0x100] sm:$0xff]   ;;  %v938_v45 = vld [vmem:[%s1231_s1 + $0x108] sm:$0xff]   ;;  %v941_v48 = vld [vmem:[%s1231_s1 + $0x110] sm:$0xff]  }
   0xf   :  { %646 = vmatprep.mubr.bf16.mxu1 %v764_v39  ;;  %v936_v43 = vld [vmem:[%s1231_s1 + $0x180] sm:$0xff]   ;;  %v939_v46 = vld [vmem:[%s1231_s1 + $0x188] sm:$0xff]   ;;  %v942_v49 = vld [vmem:[%s1231_s1 + $0x190] sm:$0xff]  }
  0x10   :  { %842 = vmatpush3.bf16.msra.mxu0 %v916_v14  ;;  %v943_v50 = vld [vmem:[%s1231_s1 + $0x158] sm:$0xff]   ;;  %v946_v53 = vld [vmem:[%s1231_s1 + $0x160] sm:$0xff]   ;;  %v949_v56 = vld [vmem:[%s1231_s1 + $0x168] sm:$0xff]  }
  0x11   :  { %864 = vmatpush3.bf16.msra.mxu1 %v917_v15  ;;  %843 = vmatprep.subr.bf16.mxu0 %v918_v16  ;;  %v944_v51 = vld [vmem:[%s1231_s1 + $0x118] sm:$0xff]   ;;  %v947_v54 = vld [vmem:[%s1231_s1 + $0x120] sm:$0xff]   ;;  %v950_v57 = vld [vmem:[%s1231_s1 + $0x128] sm:$0xff]  }
  0x12   :  { %865 = vmatprep.subr.bf16.mxu1 %v919_v17  ;;  %v945_v52 = vld [vmem:[%s1231_s1 + $0x198] sm:$0xff]   ;;  %v948_v55 = vld [vmem:[%s1231_s1 + $0x1a0] sm:$0xff]   ;;  %v951_v58 = vld [vmem:[%s1231_s1 + $0x1a8] sm:$0xff]  }
  0x13   :  { %v952_v59 = vld [vmem:[%s1231_s1 + $0x170] sm:$0xff]   ;;  %v955_v1 = vld [vmem:[%s1231_s1 + $0x178] sm:$0xff]   ;;  %v958_v7 = vld [vmem:[%s1231_s1 + $0x1c0] sm:$0xff]  }
  0x14   :  { %844 = vmatpush3.bf16.msra.mxu0 %v920_v18  ;;  %v953_v60 = vld [vmem:[%s1231_s1 + $0x130] sm:$0xff]   ;;  %v956_v2 = vld [vmem:[%s1231_s1 + $0x138] sm:$0xff]   ;;  %v959_v9 = vld [vmem:[%s1231_s1 + $0x1c8] sm:$0xff]  }
  0x15   :  { %866 = vmatpush3.bf16.msra.mxu1 %v921_v19  ;;  %845 = vmatprep.subr.bf16.mxu0 %v922_v20  ;;  %v20_v61 = vld [vmem:[%s1232_s0 + $0x10] sm:$0xff]  ;;  %v957_v3 = vld [vmem:[%s1231_s1 + $0x1b8] sm:$0xff]   ;;  %v962_v12 = vld [vmem:[%s1231_s1 + $0x1e0] sm:$0xff]  }
  0x16   :  { %867 = vmatprep.subr.bf16.mxu1 %v923_v21  ;;  %v24_v62 = vld [vmem:[%s1232_s0 + $0x30] sm:$0x77]  ;;  %v21_v4 = vld [vmem:[%s1232_s0 + $0x18] sm:$0xff]  ;;  %v963_v13 = vld [vmem:[%s1231_s1 + $0x1e8] sm:$0xff]  }
  0x17   :  { %v954_v63 = vld [vmem:[%s1231_s1 + $0x1b0] sm:$0xff]   ;;  %v766_v0 = vcombine.high %v20_v61, %v24_v62  ;;  %v765_v5 = vcombine.low %v20_v61, %v24_v62  ;;  %v25_v6 = vld [vmem:[%s1232_s0 + $0x38] sm:$0x77] }
  0x18   :  { %846 = vmatpush3.bf16.msra.mxu0 %v924_v22  ;;  %v768_v8 = vcombine.high %v21_v4, %v25_v6  ;;  %v960_v10 = vld [vmem:[%s1231_s1 + $0x1d0] sm:$0xff]   ;;  %v961_v11 = vld [vmem:[%s1231_s1 + $0x1d8] sm:$0xff]   ;;  %v767_v16 = vcombine.low %v21_v4, %v25_v6 }
  0x19   :  { %868 = vmatpush3.bf16.msra.mxu1 %v925_v23  ;;  %847 = vmatprep.subr.bf16.mxu0 %v926_v24  ;;  %v964_v14 = vld [vmem:[%s1231_s1 + $0x1f0] ss:$0 sps:$4 sm:$0xff]  }
  0x1a   :  { %869 = vmatprep.subr.bf16.mxu1 %v927_v25  ;;  %v571_v15 = vsel %vm569_vm1, %v964_v14, 0 }
  0x1c   :  { %848 = vmatpush3.bf16.msra.mxu0 %v928_v26 }
  0x1d   :  { %870 = vmatpush3.bf16.msra.mxu1 %v929_v27  ;;  %849 = vmatprep.subr.bf16.mxu0 %v930_v28 }
  0x1e   :  { %871 = vmatprep.subr.bf16.mxu1 %v931_v29 }
  0x20   :  { %850 = vmatpush3.bf16.msra.mxu0 %v932_v30 }
  0x21   :  { %872 = vmatpush3.bf16.msra.mxu1 %v933_v31  ;;  %879 = vmatprep.subr.bf16.mxu0 %v934_v40  ;;  %v833_v40 = vld [vmem:[%s1233_s2] ss:$0 sm:$0xff] }
  0x22   :  { %696 = vmatprep.subr.bf16.mxu1 %v965_v41 }
  0x23   :  { %606 = vmatmul.mubr.bf16.vlgmr.msra.gmra.mrb[0].mxu0 %v761_v35 }
  0x24   :  { %647 = vmatmul.mubr.bf16.vlgmr.msra.gmra.mrb[0].mxu1 %v763_v38  ;;  %880 = vmatpush3.bf16.msra.mxu0 %v935_v42 }
  0x25   :  { %697 = vmatpush1.bf16.msra.mxu1 %v936_v43  ;;  %881 = vmatprep.subr.bf16.mxu0 %v937_v44  ;;  %v834_v43 = vld [vmem:[%s1234_s3] ss:$0 sm:$0xff] }
  0x26   :  { %698 = vmatprep.subr.bf16.mxu1 %v965_v41  ;;  %687 = vmatprep.mubr.bf16.mxu0 %v766_v0 }
  0x27   :  { %832 = vmatprep.mubr.msk.bf16.mxu1 %vm565_vm0, %v768_v8 }
  0x28   :  { %882 = vmatpush3.bf16.msra.mxu0 %v938_v45 }
  0x29   :  { %699 = vmatpush1.bf16.msra.mxu1 %v939_v46  ;;  %883 = vmatprep.subr.bf16.mxu0 %v940_v47 }
  0x2a   :  { %700 = vmatprep.subr.bf16.mxu1 %v965_v41 }
  0x2c   :  { %884 = vmatpush3.bf16.msra.mxu0 %v941_v48 }
  0x2d   :  { %701 = vmatpush1.bf16.msra.mxu1 %v942_v49  ;;  %885 = vmatprep.subr.bf16.mxu0 %v943_v50 }
  0x2e   :  { %702 = vmatprep.subr.bf16.mxu1 %v965_v41 }
  0x30   :  { %886 = vmatpush3.bf16.msra.mxu0 %v944_v51 }
  0x31   :  { %703 = vmatpush1.bf16.msra.mxu1 %v945_v52  ;;  %887 = vmatprep.subr.bf16.mxu0 %v946_v53 }
  0x32   :  { %704 = vmatprep.subr.bf16.mxu1 %v965_v41 }
  0x34   :  { %888 = vmatpush3.bf16.msra.mxu0 %v947_v54 }
  0x35   :  { %705 = vmatpush1.bf16.msra.mxu1 %v948_v55  ;;  %889 = vmatprep.subr.bf16.mxu0 %v949_v56 }
  0x36   :  { %706 = vmatprep.subr.bf16.mxu1 %v965_v41 }
  0x38   :  { %890 = vmatpush3.bf16.msra.mxu0 %v950_v57 }
  0x39   :  { %707 = vmatpush1.bf16.msra.mxu1 %v951_v58  ;;  %891 = vmatprep.subr.bf16.mxu0 %v952_v59 }
  0x3a   :  { %708 = vmatprep.subr.bf16.mxu1 %v965_v41 }
  0x3c   :  { %892 = vmatpush3.bf16.msra.mxu0 %v953_v60 }
  0x3d   :  { %709 = vmatpush1.bf16.msra.mxu1 %v954_v63  ;;  %893 = vmatprep.subr.bf16.mxu0 %v955_v1 }
  0x3e   :  { %710 = vmatprep.subr.bf16.mxu1 %v965_v41 }
  0x40   :  { %894 = vmatpush3.bf16.msra.mxu0 %v956_v2 }
  0x41   :  { %711 = vmatpush1.bf16.msra.mxu1 %v957_v3 }
  0x42   :  { %712 = vmatprep.subr.bf16.mxu1 %v965_v41 }
  0x43   :  { %688 = vmatmul.mubr.bf16.vlgmr.msra.gmra.mrb[4].mxu0 %v765_v5 }
  0x45   :  { %713 = vmatpush1.bf16.msra.mxu1 %v958_v7 }
  0x46   :  { %714 = vmatprep.subr.bf16.mxu1 %v965_v41 }
  0x49   :  { %715 = vmatpush1.bf16.msra.mxu1 %v959_v9 }
  0x4a   :  { %716 = vmatprep.subr.bf16.mxu1 %v965_v41 }
  0x4d   :  { %717 = vmatpush1.bf16.msra.mxu1 %v960_v10 }
  0x4e   :  { %718 = vmatprep.subr.bf16.mxu1 %v965_v41 }
  0x51   :  { %719 = vmatpush1.bf16.msra.mxu1 %v961_v11 }
  0x52   :  { %720 = vmatprep.subr.bf16.mxu1 %v965_v41 }
  0x55   :  { %721 = vmatpush1.bf16.msra.mxu1 %v962_v12 }
  0x56   :  { %722 = vmatprep.subr.bf16.mxu1 %v965_v41 }
  0x59   :  { %723 = vmatpush1.bf16.msra.mxu1 %v963_v13 }
  0x5a   :  { %724 = vmatprep.subr.bf16.mxu1 %v965_v41 }
  0x5d   :  { %725 = vmatpush1.bf16.msra.mxu1 %v571_v15 }
  0x60   :  { %729 = vmatmul.mubr.bf16.vlgmr.msra.gmra.mrb[4].mxu1 %v767_v16 }
  0xf6   :  { %v851_v17 = vpop.f32.mrb[0].mxu0 }
  0xf7   :  { %v873_v18 = vpop.f32.mrb[0].mxu1  ;;  %v852_v19 = vpop.f32.mrb[1].mxu0 }
  0xf8   :  { %v853_v20 = vadd.f32 %v852_v19, %v851_v17  ;;  %v874_v21 = vpop.f32.mrb[1].mxu1  ;;  %v854_v22 = vpop.f32.mrb[2].mxu0 }
  0xf9   :  { %v875_v23 = vadd.f32 %v874_v21, %v873_v18  ;;  %v876_v24 = vpop.f32.mrb[2].mxu1  ;;  %v855_v25 = vpop.f32.mrb[3].mxu0 }
  0xfa   :  { %v856_v26 = vadd.f32 %v855_v25, %v854_v22  ;;  %v877_v27 = vpop.f32.mrb[3].mxu1 }
  0xfb   :  { %v649_v28 = vadd.f32 %v875_v23, %v853_v20  ;;  %v878_v29 = vadd.f32 %v877_v27, %v876_v24 }
  0xfd   :  { %v652_v30 = vadd.f32 %v878_v29, %v856_v26 }
 0x116   :  { %v895_v31 = vpop.f32.mrb[4].mxu0 }
 0x117   :  { %v896_v32 = vpop.f32.mrb[5].mxu0 }
 0x118   :  { %v897_v33 = vadd.f32 %v896_v32, %v895_v31  ;;  %v898_v34 = vpop.f32.mrb[6].mxu0 }
 0x119   :  { %v899_v35 = vpop.f32.mrb[7].mxu0 }
 0x11a   :  { %v900_v36 = vadd.f32 %v899_v35, %v898_v34  ;;  %v690_v37 = vadd.f32 %v897_v33, %v649_v28 }
 0x11c   :  { %v693_v38 = vadd.f32 %v900_v36, %v652_v30 }
 0x133   :  { %v730_v39 = vpop.f32.mrb[4].mxu1 }
 0x134   :  { %v731_v41 = vadd.f32 %v730_v39, %v690_v37  ;;  %v732_v42 = vpop.f32.mrb[5].mxu1 }
 0x135   :  { %v733_v44 = vpop.f32.mrb[6].mxu1 }
 0x136   :  { %v744_v45 = vmul.f32 %v833_v40, %v731_v41  ;;  %v734_v46 = vadd.f32 %v733_v44, %v693_v38  ;;  %v735_v47 = vpop.f32.mrb[7].mxu1 }
 0x138   :  { %v753_v48 = vadd.f32 %v834_v43, %v744_v45  ;;  %v745_v49 = vmul.f32 %v833_v40, %v734_v46 }
 0x13a   :  { %755 = vst [vmem:[%s1235_s4] sm:$0xff] %v753_v48  ;;  %v754_v50 = vadd.f32 %v834_v43, %v745_v49 }
 0x13c   :  { %756 = vst [vmem:[%s1235_s4 + $0x8] sm:$0x3f] %v754_v50 }

// kernel: custom-call.7
= control target key start
LH: loop header
LB: loop body
LE: loop exit
PB: predicated region body
PF: predicated region fallthrough
CT: control target
= control target key end

     0   :  { %s6_s0 = inlined_call_operand.vmem [shape: f32[2,256], index: 0, kind: output, shape index: {}]  }

// kernel: custom-call.6
= control target key start
LH: loop header
LB: loop body
LE: loop exit
PB: predicated region body
PF: predicated region fallthrough
CT: control target
= control target key end

     0   :  { %s6_s0 = inlined_call_operand.vmem [shape: bf16[2,256], index: 0, kind: output, shape index: {}]  }

// kernel: classifier_forward.20
= control target key start
LH: loop header
LB: loop body
LE: loop exit
PB: predicated region body
PF: predicated region fallthrough
CT: control target
= control target key end

     0   :  { %s1366_s15 = smov 0   ;;  %s1368_s16 = smov 0   ;;  %s1692_s0 = inlined_call_operand.vmem [shape: bf16[16,128], index: 0, kind: input, shape index: {}]   ;;  %s1693_s1 = inlined_call_operand.vmem [shape: bf16[128,2048], index: 1, kind: input, shape index: {}]   ;;  %s1694_s2 = inlined_call_operand.vmem [shape: f32[1,2048], index: 2, kind: input, shape index: {}]   ;;  %s1695_s3 = inlined_call_operand.vmem [shape: f32[1,2048], index: 3, kind: input, shape index: {}]   ;;  %s1696_s4 = inlined_call_operand.vmem [shape: f32[16,2048], index: 4, kind: output, shape index: {}]  }
   0x1   :  { %s1370_s17 = smov 0  }
   0x2 LB: > { %s1382_s18 = sadd.s32 4294967295, %s1338_s17   ;;  %s1385_s19 = sadd.s32 1, %s1338_s17   ;;  %s1338_s17 = sphi %s1370_s17, %s1700_s17   ;;  %s1334_s16 = sphi %s1368_s16, %s1699_s16   ;;  %s1330_s15 = sphi %s1366_s15, %s1698_s15  }
   0x3   : > { %s39_s20 = ssub.s32 %s1338_s17, %s1385_s19  ;;  %s42_s21 = sadd.s32 1, %s1334_s16 }
   0x4   : > { %p40_p0 = scmp.eq.s32.totalorder %s39_s20, 0  ;;  %p49_p1 = scmp.ne.s32.totalorder %s1334_s16, %s1330_s15 }
   0x5   : > { %p50_p2 = scmp.eq.s32.totalorder %s1338_s17, 0  ;;  %p131_p3 = scmp.eq.s32.totalorder %s1382_s18, 1 }
   0x6   : > { %s1395_s22 = scalar_select %p40_p0, %s1334_s16, %s42_s21  }
   0x7   : > { %p51_p4 = por %p50_p2, %p49_p1  ;;  %p1397_p5 = por %p131_p3, %p49_p1 }
   0x8   : > { %p1209_p6 = scmp.ge.s32.totalorder %s1338_s17, 2 }
   0xa   : > { %156 = sbr.rel (%p1209_p6) target bundleno = 53 (0x35), region = 20 }
  0x11   : > { %159 = sbr.rel (!%p51_p4) target bundleno = 53 (0x35), region = 24  ;;  %s161_s24 = sand.u32 (%p51_p4), 1, %s1334_s16  }
  0x12   : > { %s1288_s25 = sshll.u32 (%p51_p4), %s1338_s17, 5  ;;  %s1210_s26 = sshll.u32 (%p51_p4), %s161_s24, 9 }
  0x13   : > { %s1407_s29 = scalar_lea.vmem (%p51_p4), %s1693_s1, %s1288_s25  ;;  %s1412_s30 = scalar_lea.vmem (%p51_p4), [#allocation2], %s1210_s26 }
  0x14   : > { %v179_v0 = vld [vmem:[%s1407_s29] sm:$0xff] (%p51_p4)  ;;  %v181_v1 = vld [vmem:[%s1407_s29 + $0x8] sm:$0xff] (%p51_p4)  ;;  %v183_v2 = vld [vmem:[%s1407_s29 + $0x10] sm:$0xff] (%p51_p4) }
  0x15   : > { %180 = vst [vmem:[%s1412_s30] sm:$0xff] (%p51_p4), %v179_v0  ;;  %182 = vst [vmem:[%s1412_s30 + $0x8] sm:$0xff] (%p51_p4), %v181_v1  ;;  %v185_v3 = vld [vmem:[%s1407_s29 + $0x18] sm:$0xff] (%p51_p4)  ;;  %v187_v4 = vld [vmem:[%s1407_s29 + $0x40] sm:$0xff] (%p51_p4) }
  0x16   : > { %184 = vst [vmem:[%s1412_s30 + $0x10] sm:$0xff] (%p51_p4), %v183_v2  ;;  %v189_v5 = vld [vmem:[%s1407_s29 + $0x48] sm:$0xff] (%p51_p4)  ;;  %186 = vst [vmem:[%s1412_s30 + $0x18] sm:$0xff] (%p51_p4), %v185_v3  ;;  %v191_v6 = vld [vmem:[%s1407_s29 + $0x50] sm:$0xff] (%p51_p4) }
  0x17   : > { %188 = vst [vmem:[%s1412_s30 + $0x20] sm:$0xff] (%p51_p4), %v187_v4  ;;  %190 = vst [vmem:[%s1412_s30 + $0x28] sm:$0xff] (%p51_p4), %v189_v5  ;;  %v193_v7 = vld [vmem:[%s1407_s29 + $0x58] sm:$0xff] (%p51_p4)  ;;  %v195_v8 = vld [vmem:[%s1407_s29 + $0x80] sm:$0xff] (%p51_p4) }
  0x18   : > { %192 = vst [vmem:[%s1412_s30 + $0x30] sm:$0xff] %v191_v6  ;;  %194 = vst [vmem:[%s1412_s30 + $0x38] sm:$0xff] %v193_v7  ;;  %v197_v9 = vld [vmem:[%s1407_s29 + $0x88] sm:$0xff]  ;;  %v199_v10 = vld [vmem:[%s1407_s29 + $0x90] sm:$0xff] }
  0x19   : > { %196 = vst [vmem:[%s1412_s30 + $0x40] sm:$0xff] %v195_v8  ;;  %v201_v11 = vld [vmem:[%s1407_s29 + $0x98] sm:$0xff]  ;;  %198 = vst [vmem:[%s1412_s30 + $0x48] sm:$0xff] %v197_v9  ;;  %v203_v12 = vld [vmem:[%s1407_s29 + $0xc0] sm:$0xff] }
  0x1a   : > { %200 = vst [vmem:[%s1412_s30 + $0x50] sm:$0xff] %v199_v10  ;;  %202 = vst [vmem:[%s1412_s30 + $0x58] sm:$0xff] %v201_v11  ;;  %v205_v13 = vld [vmem:[%s1407_s29 + $0xc8] sm:$0xff]  ;;  %v207_v14 = vld [vmem:[%s1407_s29 + $0xd0] sm:$0xff] }
  0x1b   : > { %204 = vst [vmem:[%s1412_s30 + $0x60] sm:$0xff] %v203_v12  ;;  %206 = vst [vmem:[%s1412_s30 + $0x68] sm:$0xff] %v205_v13  ;;  %v209_v15 = vld [vmem:[%s1407_s29 + $0xd8] sm:$0xff]  ;;  %v211_v16 = vld [vmem:[%s1407_s29 + $0x100] sm:$0xff] }
  0x1c   : > { %208 = vst [vmem:[%s1412_s30 + $0x70] sm:$0xff] %v207_v14  ;;  %v213_v17 = vld [vmem:[%s1407_s29 + $0x108] sm:$0xff]  ;;  %210 = vst [vmem:[%s1412_s30 + $0x78] sm:$0xff] %v209_v15  ;;  %v215_v18 = vld [vmem:[%s1407_s29 + $0x110] sm:$0xff] }
  0x1d   : > { %212 = vst [vmem:[%s1412_s30 + $0x80] sm:$0xff] %v211_v16  ;;  %214 = vst [vmem:[%s1412_s30 + $0x88] sm:$0xff] %v213_v17  ;;  %v217_v19 = vld [vmem:[%s1407_s29 + $0x118] sm:$0xff]  ;;  %v219_v20 = vld [vmem:[%s1407_s29 + $0x140] sm:$0xff] }
  0x1e   : > { %216 = vst [vmem:[%s1412_s30 + $0x90] sm:$0xff] %v215_v18  ;;  %218 = vst [vmem:[%s1412_s30 + $0x98] sm:$0xff] %v217_v19  ;;  %v221_v21 = vld [vmem:[%s1407_s29 + $0x148] sm:$0xff]  ;;  %v223_v22 = vld [vmem:[%s1407_s29 + $0x150] sm:$0xff] }
  0x1f   : > { %220 = vst [vmem:[%s1412_s30 + $0xa0] sm:$0xff] %v219_v20  ;;  %v225_v23 = vld [vmem:[%s1407_s29 + $0x158] sm:$0xff]  ;;  %222 = vst [vmem:[%s1412_s30 + $0xa8] sm:$0xff] %v221_v21  ;;  %v227_v24 = vld [vmem:[%s1407_s29 + $0x180] sm:$0xff] }
  0x20   : > { %224 = vst [vmem:[%s1412_s30 + $0xb0] sm:$0xff] %v223_v22  ;;  %226 = vst [vmem:[%s1412_s30 + $0xb8] sm:$0xff] %v225_v23  ;;  %v229_v25 = vld [vmem:[%s1407_s29 + $0x188] sm:$0xff]  ;;  %v231_v26 = vld [vmem:[%s1407_s29 + $0x190] sm:$0xff] }
  0x21   : > { %228 = vst [vmem:[%s1412_s30 + $0xc0] sm:$0xff] %v227_v24  ;;  %230 = vst [vmem:[%s1412_s30 + $0xc8] sm:$0xff] %v229_v25  ;;  %v233_v27 = vld [vmem:[%s1407_s29 + $0x198] sm:$0xff]  ;;  %v235_v28 = vld [vmem:[%s1407_s29 + $0x1c0] sm:$0xff] }
  0x22   : > { %232 = vst [vmem:[%s1412_s30 + $0xd0] sm:$0xff] %v231_v26  ;;  %v237_v29 = vld [vmem:[%s1407_s29 + $0x1c8] sm:$0xff]  ;;  %234 = vst [vmem:[%s1412_s30 + $0xd8] sm:$0xff] %v233_v27  ;;  %v239_v30 = vld [vmem:[%s1407_s29 + $0x1d0] sm:$0xff] }
  0x23   : > { %236 = vst [vmem:[%s1412_s30 + $0xe0] sm:$0xff] %v235_v28  ;;  %238 = vst [vmem:[%s1412_s30 + $0xe8] sm:$0xff] %v237_v29  ;;  %v241_v31 = vld [vmem:[%s1407_s29 + $0x1d8] sm:$0xff]  ;;  %v243_v32 = vld [vmem:[%s1407_s29 + $0x200] sm:$0xff] }
  0x24   : > { %240 = vst [vmem:[%s1412_s30 + $0xf0] sm:$0xff] %v239_v30  ;;  %242 = vst [vmem:[%s1412_s30 + $0xf8] sm:$0xff] %v241_v31  ;;  %v245_v33 = vld [vmem:[%s1407_s29 + $0x208] sm:$0xff]  ;;  %v247_v34 = vld [vmem:[%s1407_s29 + $0x210] sm:$0xff] }
  0x25   : > { %244 = vst [vmem:[%s1412_s30 + $0x100] sm:$0xff] %v243_v32  ;;  %v249_v35 = vld [vmem:[%s1407_s29 + $0x218] sm:$0xff]  ;;  %246 = vst [vmem:[%s1412_s30 + $0x108] sm:$0xff] %v245_v33  ;;  %v251_v36 = vld [vmem:[%s1407_s29 + $0x240] sm:$0xff] }
  0x26   : > { %248 = vst [vmem:[%s1412_s30 + $0x110] sm:$0xff] %v247_v34  ;;  %250 = vst [vmem:[%s1412_s30 + $0x118] sm:$0xff] %v249_v35  ;;  %v253_v37 = vld [vmem:[%s1407_s29 + $0x248] sm:$0xff]  ;;  %v255_v38 = vld [vmem:[%s1407_s29 + $0x250] sm:$0xff] }
  0x27   : > { %252 = vst [vmem:[%s1412_s30 + $0x120] sm:$0xff] %v251_v36  ;;  %254 = vst [vmem:[%s1412_s30 + $0x128] sm:$0xff] %v253_v37  ;;  %v257_v39 = vld [vmem:[%s1407_s29 + $0x258] sm:$0xff]  ;;  %v259_v40 = vld [vmem:[%s1407_s29 + $0x280] sm:$0xff] }
  0x28   : > { %256 = vst [vmem:[%s1412_s30 + $0x130] sm:$0xff] %v255_v38  ;;  %v261_v41 = vld [vmem:[%s1407_s29 + $0x288] sm:$0xff]  ;;  %258 = vst [vmem:[%s1412_s30 + $0x138] sm:$0xff] %v257_v39  ;;  %v263_v42 = vld [vmem:[%s1407_s29 + $0x290] sm:$0xff] }
  0x29   : > { %260 = vst [vmem:[%s1412_s30 + $0x140] sm:$0xff] %v259_v40  ;;  %262 = vst [vmem:[%s1412_s30 + $0x148] sm:$0xff] %v261_v41  ;;  %v265_v43 = vld [vmem:[%s1407_s29 + $0x298] sm:$0xff]  ;;  %v267_v44 = vld [vmem:[%s1407_s29 + $0x2c0] sm:$0xff] }
  0x2a   : > { %264 = vst [vmem:[%s1412_s30 + $0x150] sm:$0xff] %v263_v42  ;;  %266 = vst [vmem:[%s1412_s30 + $0x158] sm:$0xff] %v265_v43  ;;  %v269_v45 = vld [vmem:[%s1407_s29 + $0x2c8] sm:$0xff]  ;;  %v271_v46 = vld [vmem:[%s1407_s29 + $0x2d0] sm:$0xff] }
  0x2b   : > { %268 = vst [vmem:[%s1412_s30 + $0x160] sm:$0xff] %v267_v44  ;;  %v273_v47 = vld [vmem:[%s1407_s29 + $0x2d8] sm:$0xff]  ;;  %270 = vst [vmem:[%s1412_s30 + $0x168] sm:$0xff] %v269_v45  ;;  %v275_v48 = vld [vmem:[%s1407_s29 + $0x300] sm:$0xff] }
  0x2c   : > { %272 = vst [vmem:[%s1412_s30 + $0x170] sm:$0xff] %v271_v46  ;;  %274 = vst [vmem:[%s1412_s30 + $0x178] sm:$0xff] %v273_v47  ;;  %v277_v49 = vld [vmem:[%s1407_s29 + $0x308] sm:$0xff]  ;;  %v279_v50 = vld [vmem:[%s1407_s29 + $0x310] sm:$0xff] }
  0x2d   : > { %276 = vst [vmem:[%s1412_s30 + $0x180] sm:$0xff] %v275_v48  ;;  %278 = vst [vmem:[%s1412_s30 + $0x188] sm:$0xff] %v277_v49  ;;  %v281_v51 = vld [vmem:[%s1407_s29 + $0x318] sm:$0xff]  ;;  %v283_v52 = vld [vmem:[%s1407_s29 + $0x340] sm:$0xff] }
  0x2e   : > { %280 = vst [vmem:[%s1412_s30 + $0x190] sm:$0xff] %v279_v50  ;;  %v285_v53 = vld [vmem:[%s1407_s29 + $0x348] sm:$0xff]  ;;  %282 = vst [vmem:[%s1412_s30 + $0x198] sm:$0xff] %v281_v51  ;;  %v287_v54 = vld [vmem:[%s1407_s29 + $0x350] sm:$0xff] }
  0x2f   : > { %284 = vst [vmem:[%s1412_s30 + $0x1a0] sm:$0xff] %v283_v52  ;;  %286 = vst [vmem:[%s1412_s30 + $0x1a8] sm:$0xff] %v285_v53  ;;  %v289_v55 = vld [vmem:[%s1407_s29 + $0x358] sm:$0xff]  ;;  %v291_v56 = vld [vmem:[%s1407_s29 + $0x380] sm:$0xff] }
  0x30   : > { %288 = vst [vmem:[%s1412_s30 + $0x1b0] sm:$0xff] %v287_v54  ;;  %290 = vst [vmem:[%s1412_s30 + $0x1b8] sm:$0xff] %v289_v55  ;;  %v293_v57 = vld [vmem:[%s1407_s29 + $0x388] sm:$0xff]  ;;  %v295_v58 = vld [vmem:[%s1407_s29 + $0x390] sm:$0xff] }
  0x31   : > { %292 = vst [vmem:[%s1412_s30 + $0x1c0] sm:$0xff] %v291_v56  ;;  %v297_v59 = vld [vmem:[%s1407_s29 + $0x398] sm:$0xff]  ;;  %294 = vst [vmem:[%s1412_s30 + $0x1c8] sm:$0xff] %v293_v57  ;;  %v299_v60 = vld [vmem:[%s1407_s29 + $0x3c0] sm:$0xff] }
  0x32   : > { %296 = vst [vmem:[%s1412_s30 + $0x1d0] sm:$0xff] %v295_v58  ;;  %298 = vst [vmem:[%s1412_s30 + $0x1d8] sm:$0xff] %v297_v59  ;;  %v301_v61 = vld [vmem:[%s1407_s29 + $0x3c8] sm:$0xff]  ;;  %v303_v62 = vld [vmem:[%s1407_s29 + $0x3d0] sm:$0xff] }
  0x33   : > { %300 = vst [vmem:[%s1412_s30 + $0x1e0] sm:$0xff] %v299_v60  ;;  %302 = vst [vmem:[%s1412_s30 + $0x1e8] sm:$0xff] %v301_v61  ;;  %v305_v63 = vld [vmem:[%s1407_s29 + $0x3d8] sm:$0xff] }
  0x34   : > { %304 = vst [vmem:[%s1412_s30 + $0x1f0] sm:$0xff] %v303_v62  ;;  %306 = vst [vmem:[%s1412_s30 + $0x1f8] sm:$0xff] %v305_v63 }
  0x35 PF: > { %p1213_p7 = scmp.ge.s32.totalorder %s1338_s17, 1  ;;  %p327_p8 = scmp.lt.s32.totalorder %s1338_s17, 3 }
  0x37   : > { %p328_p9 = pnand %p1213_p7, %p327_p8 }
  0x38   : > { %s334_s5 = sand.u32 (!%p328_p9), 1, %s1330_s15   ;;  %v1340_v0 = vmov (!%p328_p9), 0   ;;  %s1216_s10 = sshll.u32 (!%p328_p9), %s1382_s18, 3 }
  0x39   : > { %331 = sbr.rel (%p328_p9) target bundleno = 355 (0x163), region = 55  ;;  %s1214_s6 = sshll.u32 (!%p328_p9), %s334_s5, 9  ;;  %803 = vmatprep.mubr.bf16.mxu0 (!%p328_p9), %v1340_v0  ;;  %846 = vmatprep.mubr.bf16.mxu1 (!%p328_p9), %v1340_v0 }
  0x3a   : > { %s1546_s7 = scalar_lea.vmem (!%p328_p9), [#allocation2], %s1214_s6  ;;  %p368_p10 = scmp.lt.s32.totalorder (!%p328_p9), %s1216_s10, 15 }
  0x3b   : > { %v381_v1 = vld [vmem:[%s1546_s7] sm:$0xff] (!%p328_p9)  ;;  %v382_v3 = vld [vmem:[%s1546_s7 + $0x8] sm:$0xff] (!%p328_p9)  ;;  %v383_v63 = vld [vmem:[%s1546_s7 + $0x10] sm:$0xff] (!%p328_p9)  ;;  %s1215_s21 = sshll.u32 (!%p328_p9), %s334_s5, 7 }
  0x3c   : > { %v385_v2 = vld [vmem:[%s1546_s7 + $0x20] sm:$0xff] (!%p328_p9)  ;;  %v386_v5 = vld [vmem:[%s1546_s7 + $0x28] sm:$0xff] (!%p328_p9)  ;;  %s1638_s15 = scalar_lea.vmem (!%p328_p9), [#allocation3], %s1215_s21 }
  0x3d   : > { %v1220_v4 = vcombine.high (!%p328_p9), %v381_v1, %v385_v2  ;;  %v1219_v6 = vcombine.low (!%p328_p9), %v381_v1, %v385_v2  ;;  %v389_v7 = vld [vmem:[%s1546_s7 + $0x40] sm:$0xff] (!%p328_p9)  ;;  %v1222_v9 = vcombine.high (!%p328_p9), %v382_v3, %v386_v5  ;;  %v1221_v10 = vcombine.low (!%p328_p9), %v382_v3, %v386_v5  ;;  %v390_v12 = vld [vmem:[%s1546_s7 + $0x48] sm:$0xff] (!%p328_p9)  ;;  %v387_v1 = vld [vmem:[%s1546_s7 + $0x30] sm:$0xff] (!%p328_p9) }
  0x3e   : > { %v393_v8 = vld [vmem:[%s1546_s7 + $0x60] sm:$0xff] (!%p328_p9)  ;;  %v394_v13 = vld [vmem:[%s1546_s7 + $0x68] sm:$0xff] (!%p328_p9)  ;;  %v384_v2 = vld [vmem:[%s1546_s7 + $0x18] sm:$0xff] (!%p328_p9) }
  0x3f   : > { %v1228_v11 = vcombine.high (!%p328_p9), %v389_v7, %v393_v8  ;;  %v397_v14 = vld [vmem:[%s1546_s7 + $0x80] sm:$0xff] (!%p328_p9)  ;;  %771 = vmatprep.subr.bf16.mxu0 (!%p328_p9), %v1220_v4  ;;  %v1230_v15 = vcombine.high (!%p328_p9), %v390_v12, %v394_v13  ;;  %v398_v17 = vld [vmem:[%s1546_s7 + $0x88] sm:$0xff] (!%p328_p9)  ;;  %814 = vmatprep.subr.bf16.mxu1 (!%p328_p9), %v1222_v9  ;;  %v1227_v19 = vcombine.low (!%p328_p9), %v389_v7, %v393_v8  ;;  %v388_v3 = vld [vmem:[%s1546_s7 + $0x38] sm:$0xff] (!%p328_p9) }
  0x40   : > { %v401_v16 = vld [vmem:[%s1546_s7 + $0xa0] sm:$0xff]  ;;  %v402_v18 = vld [vmem:[%s1546_s7 + $0xa8] sm:$0xff]  ;;  %772 = vmatpush1.bf16.msra.mxu0 %v1219_v6  ;;  %815 = vmatpush1.bf16.msra.mxu1 %v1221_v10  ;;  %v1229_v20 = vcombine.low %v390_v12, %v394_v13  ;;  %v1224_v6 = vcombine.high %v383_v63, %v387_v1  ;;  %v1226_v7 = vcombine.high %v384_v2, %v388_v3  ;;  %v391_v8 = vld [vmem:[%s1546_s7 + $0x50] sm:$0xff]  ;;  %s1702_s10 = smov (!%p368_p10, %s1216_s10), 15  ;;  %s1289_s24 = sshll.u32 (%p1397_p5), %s1382_s18, 6 }
  0x41   : > { %773 = vmatprep.subr.bf16.mxu0 %v1228_v11  ;;  %v1236_v21 = vcombine.high %v397_v14, %v401_v16  ;;  %816 = vmatprep.subr.bf16.mxu1 %v1230_v15  ;;  %v1238_v22 = vcombine.high %v398_v17, %v402_v18  ;;  %v405_v23 = vld [vmem:[%s1546_s7 + $0xc0] sm:$0xff]  ;;  %v406_v25 = vld [vmem:[%s1546_s7 + $0xc8] sm:$0xff]  ;;  %v1235_v27 = vcombine.low %v397_v14, %v401_v16  ;;  %v395_v9 = vld [vmem:[%s1546_s7 + $0x70] sm:$0xff]  ;;  %s370_s13 = scalar_lea.vmem %s1694_s2, %s1702_s10  ;;  %s375_s20 = scalar_lea.vmem %s1695_s3, %s1702_s10 }
  0x42   : > { %v409_v24 = vld [vmem:[%s1546_s7 + $0xe0] sm:$0xff]  ;;  %v410_v26 = vld [vmem:[%s1546_s7 + $0xe8] sm:$0xff]  ;;  %v1237_v28 = vcombine.low %v398_v17, %v402_v18  ;;  %v392_v11 = vld [vmem:[%s1546_s7 + $0x58] sm:$0xff]  ;;  %v1223_v13 = vcombine.low %v383_v63, %v387_v1  ;;  %v1225_v14 = vcombine.low %v384_v2, %v388_v3  ;;  %v1232_v15 = vcombine.high %v391_v8, %v395_v9  ;;  %s1084_s27 = scalar_lea.vmem (%p1397_p5), %s1696_s4, %s1289_s24 }
  0x43   : > { %v1244_v29 = vcombine.high %v405_v23, %v409_v24  ;;  %v1246_v30 = vcombine.high %v406_v25, %v410_v26  ;;  %v413_v31 = vld [vmem:[%s1546_s7 + $0x100] sm:$0xff]  ;;  %v414_v33 = vld [vmem:[%s1546_s7 + $0x108] sm:$0xff]  ;;  %v1243_v35 = vcombine.low %v405_v23, %v409_v24  ;;  %v1245_v36 = vcombine.low %v406_v25, %v410_v26  ;;  %v396_v12 = vld [vmem:[%s1546_s7 + $0x78] sm:$0xff] }
  0x44   : > { %774 = vmatpush1.bf16.msra.mxu0 %v1227_v19  ;;  %817 = vmatpush1.bf16.msra.mxu1 %v1229_v20  ;;  %v417_v32 = vld [vmem:[%s1546_s7 + $0x120] sm:$0xff]  ;;  %v418_v34 = vld [vmem:[%s1546_s7 + $0x128] sm:$0xff]  ;;  %v1234_v16 = vcombine.high %v392_v11, %v396_v12  ;;  %v399_v17 = vld [vmem:[%s1546_s7 + $0x90] sm:$0xff]  ;;  %v945_v3 = vlaneseq }
  0x45   : > { %775 = vmatprep.subr.bf16.mxu0 %v1236_v21  ;;  %818 = vmatprep.subr.bf16.mxu1 %v1238_v22  ;;  %v1252_v37 = vcombine.high %v413_v31, %v417_v32  ;;  %v1254_v38 = vcombine.high %v414_v33, %v418_v34  ;;  %v421_v39 = vld [vmem:[%s1546_s7 + $0x140] sm:$0xff]  ;;  %v422_v41 = vld [vmem:[%s1546_s7 + $0x148] sm:$0xff]  ;;  %v1251_v43 = vcombine.low %v413_v31, %v417_v32  ;;  %v403_v18 = vld [vmem:[%s1546_s7 + $0xb0] sm:$0xff] }
  0x46   : > { %v425_v40 = vld [vmem:[%s1546_s7 + $0x160] sm:$0xff]  ;;  %v426_v42 = vld [vmem:[%s1546_s7 + $0x168] sm:$0xff]  ;;  %v1253_v44 = vcombine.low %v414_v33, %v418_v34  ;;  %v400_v19 = vld [vmem:[%s1546_s7 + $0x98] sm:$0xff]  ;;  %v1231_v21 = vcombine.low %v391_v8, %v395_v9  ;;  %v1233_v22 = vcombine.low %v392_v11, %v396_v12  ;;  %v1240_v23 = vcombine.high %v399_v17, %v403_v18 }
  0x47   : > { %v1260_v45 = vcombine.high %v421_v39, %v425_v40  ;;  %v1262_v46 = vcombine.high %v422_v41, %v426_v42  ;;  %v429_v47 = vld [vmem:[%s1546_s7 + $0x180] sm:$0xff]  ;;  %v430_v49 = vld [vmem:[%s1546_s7 + $0x188] sm:$0xff]  ;;  %v1259_v51 = vcombine.low %v421_v39, %v425_v40  ;;  %v1261_v52 = vcombine.low %v422_v41, %v426_v42  ;;  %v404_v20 = vld [vmem:[%s1546_s7 + $0xb8] sm:$0xff] }
  0x48   : > { %776 = vmatpush1.bf16.msra.mxu0 %v1235_v27  ;;  %819 = vmatpush1.bf16.msra.mxu1 %v1237_v28  ;;  %v433_v48 = vld [vmem:[%s1546_s7 + $0x1a0] sm:$0xff]  ;;  %v434_v50 = vld [vmem:[%s1546_s7 + $0x1a8] sm:$0xff]  ;;  %v1242_v24 = vcombine.high %v400_v19, %v404_v20  ;;  %v407_v25 = vld [vmem:[%s1546_s7 + $0xd0] sm:$0xff] }
  0x49   : > { %777 = vmatprep.subr.bf16.mxu0 %v1244_v29  ;;  %820 = vmatprep.subr.bf16.mxu1 %v1246_v30  ;;  %v1268_v53 = vcombine.high %v429_v47, %v433_v48  ;;  %v1270_v54 = vcombine.high %v430_v49, %v434_v50  ;;  %v437_v55 = vld [vmem:[%s1546_s7 + $0x1c0] sm:$0xff]  ;;  %v438_v57 = vld [vmem:[%s1546_s7 + $0x1c8] sm:$0xff]  ;;  %v1267_v59 = vcombine.low %v429_v47, %v433_v48  ;;  %v411_v26 = vld [vmem:[%s1546_s7 + $0xf0] sm:$0xff] }
  0x4a   : > { %v441_v56 = vld [vmem:[%s1546_s7 + $0x1e0] sm:$0xff]  ;;  %v442_v58 = vld [vmem:[%s1546_s7 + $0x1e8] sm:$0xff]  ;;  %v1269_v60 = vcombine.low %v430_v49, %v434_v50  ;;  %v408_v27 = vld [vmem:[%s1546_s7 + $0xd8] sm:$0xff]  ;;  %v1239_v29 = vcombine.low %v399_v17, %v403_v18  ;;  %v1241_v30 = vcombine.low %v400_v19, %v404_v20  ;;  %v1248_v31 = vcombine.high %v407_v25, %v411_v26 }
  0x4b   : > { %v1276_v61 = vcombine.high %v437_v55, %v441_v56  ;;  %v1278_v62 = vcombine.high %v438_v57, %v442_v58  ;;  %v1275_v4 = vcombine.low %v437_v55, %v441_v56  ;;  %v1277_v5 = vcombine.low %v438_v57, %v442_v58  ;;  %v1589_v10 = vld [vmem:[%s1692_s0] sm:$0xff]   ;;  %v412_v28 = vld [vmem:[%s1546_s7 + $0xf8] sm:$0xff]  ;;  %v415_v33 = vld [vmem:[%s1546_s7 + $0x110] sm:$0xff] }
  0x4c   : > { %778 = vmatpush1.bf16.msra.mxu0 %v1243_v35  ;;  %821 = vmatpush1.bf16.msra.mxu1 %v1245_v36  ;;  %v1250_v32 = vcombine.high %v408_v27, %v412_v28  ;;  %v419_v34 = vld [vmem:[%s1546_s7 + $0x130] sm:$0xff]  ;;  %v416_v35 = vld [vmem:[%s1546_s7 + $0x118] sm:$0xff] }
  0x4d   : > { %779 = vmatprep.subr.bf16.mxu0 %v1252_v37  ;;  %822 = vmatprep.subr.bf16.mxu1 %v1254_v38  ;;  %v420_v36 = vld [vmem:[%s1546_s7 + $0x138] sm:$0xff]  ;;  %v1247_v37 = vcombine.low %v407_v25, %v411_v26  ;;  %v1256_v38 = vcombine.high %v415_v33, %v419_v34  ;;  %v423_v40 = vld [vmem:[%s1546_s7 + $0x150] sm:$0xff] }
  0x4e   : > { %v1258_v39 = vcombine.high %v416_v35, %v420_v36  ;;  %v427_v41 = vld [vmem:[%s1546_s7 + $0x170] sm:$0xff]  ;;  %v424_v42 = vld [vmem:[%s1546_s7 + $0x158] sm:$0xff] }
  0x4f   : > { %v431_v48 = vld [vmem:[%s1546_s7 + $0x190] sm:$0xff]  ;;  %v432_v50 = vld [vmem:[%s1546_s7 + $0x198] sm:$0xff] }
  0x50   : > { %780 = vmatpush1.bf16.msra.mxu0 %v1251_v43  ;;  %823 = vmatpush1.bf16.msra.mxu1 %v1253_v44  ;;  %v428_v43 = vld [vmem:[%s1546_s7 + $0x178] sm:$0xff]  ;;  %v1255_v44 = vcombine.low %v415_v33, %v419_v34  ;;  %v435_v49 = vld [vmem:[%s1546_s7 + $0x1b0] sm:$0xff] }
  0x51   : > { %781 = vmatprep.subr.bf16.mxu0 %v1260_v45  ;;  %824 = vmatprep.subr.bf16.mxu1 %v1262_v46  ;;  %v1257_v45 = vcombine.low %v416_v35, %v420_v36  ;;  %v1264_v46 = vcombine.high %v423_v40, %v427_v41  ;;  %v1266_v47 = vcombine.high %v424_v42, %v428_v43  ;;  %v439_v56 = vld [vmem:[%s1546_s7 + $0x1d0] sm:$0xff]  ;;  %v440_v58 = vld [vmem:[%s1546_s7 + $0x1d8] sm:$0xff] }
  0x52   : > { %v443_v57 = vld [vmem:[%s1546_s7 + $0x1f0] sm:$0xff] }
  0x53   : > { %v1279_v1 = vcombine.low %v439_v56, %v443_v57 }
  0x54   : > { %782 = vmatpush1.bf16.msra.mxu0 %v1259_v51  ;;  %825 = vmatpush1.bf16.msra.mxu1 %v1261_v52  ;;  %v436_v51 = vld [vmem:[%s1546_s7 + $0x1b8] sm:$0xff]  ;;  %v1263_v52 = vcombine.low %v423_v40, %v427_v41 }
  0x55   : > { %783 = vmatprep.subr.bf16.mxu0 %v1268_v53  ;;  %826 = vmatprep.subr.bf16.mxu1 %v1270_v54  ;;  %v1265_v53 = vcombine.low %v424_v42, %v428_v43  ;;  %v1272_v54 = vcombine.high %v431_v48, %v435_v49  ;;  %v1274_v55 = vcombine.high %v432_v50, %v436_v51 }
  0x58   : > { %784 = vmatpush1.bf16.msra.mxu0 %v1267_v59  ;;  %827 = vmatpush1.bf16.msra.mxu1 %v1269_v60  ;;  %v444_v59 = vld [vmem:[%s1546_s7 + $0x1f8] sm:$0xff]  ;;  %v1271_v60 = vcombine.low %v431_v48, %v435_v49 }
  0x59   : > { %785 = vmatprep.subr.bf16.mxu0 %v1276_v61  ;;  %828 = vmatprep.subr.bf16.mxu1 %v1278_v62  ;;  %v1273_v61 = vcombine.low %v432_v50, %v436_v51  ;;  %v1280_v62 = vcombine.high %v439_v56, %v443_v57  ;;  %v1282_v63 = vcombine.high %v440_v58, %v444_v59 }
  0x5a   : > { %v1281_v2 = vcombine.low %v440_v58, %v444_v59 }
  0x5c   : > { %786 = vmatpush1.bf16.msra.mxu0 %v1275_v4  ;;  %829 = vmatpush1.bf16.msra.mxu1 %v1277_v5  ;;  %v1624_v4 = vshrl.u32 %v945_v3, 7 }
  0x5d   : > { %857 = vmatprep.subr.bf16.mxu0 %v1224_v6  ;;  %900 = vmatprep.subr.bf16.mxu1 %v1226_v7  ;;  %v943_v6 = vld [vmem:[%s370_s13] sm:$0xff] }
  0x5e   : > { %v947_v5 = vsub.s32 0, %v1624_v4  ;;  %v955_v7 = vsub.s32 2, %v1624_v4  ;;  %v951_v8 = vsub.s32 1, %v1624_v4  ;;  %v959_v9 = vsub.s32 3, %v1624_v4 }
  0x5f   : > { %804 = vmatmul.mubr.bf16.vlgmr.msra.gmra.mrb[0].mxu0 %v1589_v10  ;;  %847 = vmatmul.mubr.bf16.vlgmr.msra.gmra.mrb[0].mxu1 %v1589_v10  ;;  %v963_v42 = vsub.s32 4, %v1624_v4  ;;  %v971_v43 = vsub.s32 6, %v1624_v4 }
  0x60   : > { %858 = vmatpush1.bf16.msra.mxu0 %v1223_v13  ;;  %901 = vmatpush1.bf16.msra.mxu1 %v1225_v14  ;;  %v948_v11 = vrot.slane %v943_v6, %v947_v5  ;;  %v956_v12 = vrot.slane %v943_v6, %v955_v7  ;;  %v952_v13 = vrot.slane %v943_v6, %v951_v8 }
  0x61   : > { %859 = vmatprep.subr.bf16.mxu0 %v1232_v15  ;;  %902 = vmatprep.subr.bf16.mxu1 %v1234_v16  ;;  %v960_v15 = vrot.slane %v943_v6, %v959_v9 }
  0x62   : > { %889 = vmatprep.mubr.bf16.mxu0 %v1340_v0  ;;  %932 = vmatprep.mubr.bf16.mxu1 %v1340_v0  ;;  %v1249_v0 = vcombine.low %v408_v27, %v412_v28 }
  0x64   : > { %860 = vmatpush1.bf16.msra.mxu0 %v1231_v21  ;;  %903 = vmatpush1.bf16.msra.mxu1 %v1233_v22 }
  0x65   : > { %861 = vmatprep.subr.bf16.mxu0 %v1240_v23  ;;  %904 = vmatprep.subr.bf16.mxu1 %v1242_v24 }
  0x68   : > { %862 = vmatpush1.bf16.msra.mxu0 %v1239_v29  ;;  %905 = vmatpush1.bf16.msra.mxu1 %v1241_v30 }
  0x69   : > { %863 = vmatprep.subr.bf16.mxu0 %v1248_v31  ;;  %906 = vmatprep.subr.bf16.mxu1 %v1250_v32 }
  0x6c   : > { %864 = vmatpush1.bf16.msra.mxu0 %v1247_v37  ;;  %907 = vmatpush1.bf16.msra.mxu1 %v1249_v0 }
  0x6d   : > { %865 = vmatprep.subr.bf16.mxu0 %v1256_v38  ;;  %908 = vmatprep.subr.bf16.mxu1 %v1258_v39 }
  0x70   : > { %866 = vmatpush1.bf16.msra.mxu0 %v1255_v44  ;;  %909 = vmatpush1.bf16.msra.mxu1 %v1257_v45  ;;  %v967_v44 = vsub.s32 5, %v1624_v4  ;;  %v975_v45 = vsub.s32 7, %v1624_v4 }
  0x71   : > { %867 = vmatprep.subr.bf16.mxu0 %v1264_v46  ;;  %910 = vmatprep.subr.bf16.mxu1 %v1266_v47  ;;  %v964_v46 = vrot.slane %v943_v6, %v963_v42  ;;  %v972_v47 = vrot.slane %v943_v6, %v971_v43 }
  0x72   : > { %v968_v48 = vrot.slane %v943_v6, %v967_v44  ;;  %v976_v50 = vrot.slane %v943_v6, %v975_v45 }
  0x74   : > { %868 = vmatpush1.bf16.msra.mxu0 %v1263_v52  ;;  %911 = vmatpush1.bf16.msra.mxu1 %v1265_v53 }
  0x75   : > { %869 = vmatprep.subr.bf16.mxu0 %v1272_v54  ;;  %912 = vmatprep.subr.bf16.mxu1 %v1274_v55 }
  0x78   : > { %870 = vmatpush1.bf16.msra.mxu0 %v1271_v60  ;;  %913 = vmatpush1.bf16.msra.mxu1 %v1273_v61 }
  0x79   : > { %871 = vmatprep.subr.bf16.mxu0 %v1280_v62  ;;  %914 = vmatprep.subr.bf16.mxu1 %v1282_v63 }
  0x7c   : > { %872 = vmatpush1.bf16.msra.mxu0 %v1279_v1  ;;  %915 = vmatpush1.bf16.msra.mxu1 %v1281_v2 }
  0x7f   : > { %890 = vmatmul.mubr.bf16.vlgmr.msra.gmra.mrb[4].mxu0 %v1589_v10  ;;  %933 = vmatmul.mubr.bf16.vlgmr.msra.gmra.mrb[4].mxu1 %v1589_v10  ;;  %v1001_v10 = vld [vmem:[%s375_s20] sm:$0xff] }
  0x80   : > { %v1006_v14 = vrot.slane %v1001_v10, %v947_v5  ;;  %v1014_v17 = vrot.slane %v1001_v10, %v955_v7  ;;  %v1010_v18 = vrot.slane %v1001_v10, %v951_v8  ;;  %v1018_v22 = vrot.slane %v1001_v10, %v959_v9 }
  0x81   : > { %v1022_v49 = vrot.slane %v1001_v10, %v963_v42  ;;  %v1030_v52 = vrot.slane %v1001_v10, %v971_v43  ;;  %v1026_v53 = vrot.slane %v1001_v10, %v967_v44  ;;  %v1034_v57 = vrot.slane %v1001_v10, %v975_v45 }
 0x132   : > { %v805_v16 = vpop.f32.mrb[0].mxu0  ;;  %v848_v20 = vpop.f32.mrb[0].mxu1 }
 0x133   : > { %v985_v19 = vmul.f32 %v948_v11, %v805_v16  ;;  %v807_v21 = vpop.f32.mrb[1].mxu0  ;;  %v987_v23 = vmul.f32 %v956_v12, %v848_v20  ;;  %v850_v25 = vpop.f32.mrb[1].mxu1 }
 0x134   : > { %v986_v24 = vmul.f32 %v952_v13, %v807_v21  ;;  %v809_v26 = vpop.f32.mrb[2].mxu0  ;;  %v988_v28 = vmul.f32 %v960_v15, %v850_v25  ;;  %v852_v30 = vpop.f32.mrb[2].mxu1 }
 0x135   : > { %v1043_v27 = vadd.f32 %v1006_v14, %v985_v19  ;;  %v993_v29 = vmul.f32 %v948_v11, %v809_v26  ;;  %v811_v31 = vpop.f32.mrb[3].mxu0  ;;  %v1045_v32 = vadd.f32 %v1014_v17, %v987_v23  ;;  %v995_v34 = vmul.f32 %v956_v12, %v852_v30  ;;  %v854_v36 = vpop.f32.mrb[3].mxu1 }
 0x136   : > { %v1044_v33 = vadd.f32 %v1010_v18, %v986_v24  ;;  %v994_v35 = vmul.f32 %v952_v13, %v811_v31  ;;  %v1046_v37 = vadd.f32 %v1018_v22, %v988_v28  ;;  %v996_v38 = vmul.f32 %v960_v15, %v854_v36 }
 0x137   : > { %1059 = vst [vmem:[%s1638_s15] sm:$0xff] %v1043_v27  ;;  %v1051_v0 = vadd.f32 %v1006_v14, %v993_v29  ;;  %1061 = vst [vmem:[%s1638_s15 + $0x10] sm:$0xff] %v1045_v32  ;;  %v1053_v39 = vadd.f32 %v1014_v17, %v995_v34 }
 0x138   : > { %1060 = vst [vmem:[%s1638_s15 + $0x8] sm:$0xff] %v1044_v33  ;;  %v1052_v40 = vadd.f32 %v1010_v18, %v994_v35  ;;  %1062 = vst [vmem:[%s1638_s15 + $0x18] sm:$0xff] %v1046_v37  ;;  %v1054_v41 = vadd.f32 %v1018_v22, %v996_v38 }
 0x139   : > { %1067 = vst [vmem:[%s1638_s15 + $0x40] sm:$0xff] %v1051_v0  ;;  %1069 = vst [vmem:[%s1638_s15 + $0x50] sm:$0xff] %v1053_v39 }
 0x13a   : > { %1068 = vst [vmem:[%s1638_s15 + $0x48] sm:$0xff] %v1052_v40  ;;  %1070 = vst [vmem:[%s1638_s15 + $0x58] sm:$0xff] %v1054_v41 }
 0x13e   : > { %v1097_v15 = vld [vmem:[%s1638_s15] sm:$0xff] (%p1397_p5)  ;;  %v1101_v17 = vld [vmem:[%s1638_s15 + $0x10] sm:$0xff] (%p1397_p5) }
 0x13f   : > { %v1099_v16 = vld [vmem:[%s1638_s15 + $0x8] sm:$0xff] (%p1397_p5)  ;;  %v1103_v18 = vld [vmem:[%s1638_s15 + $0x18] sm:$0xff] (%p1397_p5)  ;;  %1098 = vst [vmem:[%s1084_s27] sm:$0xff] (%p1397_p5), %v1097_v15  ;;  %1102 = vst [vmem:[%s1084_s27 + $0x10] sm:$0xff] (%p1397_p5), %v1101_v17 }
 0x140   : > { %1100 = vst [vmem:[%s1084_s27 + $0x8] sm:$0xff] (%p1397_p5), %v1099_v16  ;;  %1104 = vst [vmem:[%s1084_s27 + $0x18] sm:$0xff] (%p1397_p5), %v1103_v18  ;;  %v1113_v23 = vld [vmem:[%s1638_s15 + $0x40] sm:$0xff] (%p1397_p5)  ;;  %v1117_v25 = vld [vmem:[%s1638_s15 + $0x50] sm:$0xff] (%p1397_p5) }
 0x141   : > { %1114 = vst [vmem:[%s1084_s27 + $0x80] sm:$0xff] (%p1397_p5), %v1113_v23  ;;  %v1115_v24 = vld [vmem:[%s1638_s15 + $0x48] sm:$0xff] (%p1397_p5)  ;;  %v1119_v26 = vld [vmem:[%s1638_s15 + $0x58] sm:$0xff] (%p1397_p5)  ;;  %1118 = vst [vmem:[%s1084_s27 + $0x90] sm:$0xff] (%p1397_p5), %v1117_v25 }
 0x142   : > { %1116 = vst [vmem:[%s1084_s27 + $0x88] sm:$0xff] (%p1397_p5), %v1115_v24  ;;  %1120 = vst [vmem:[%s1084_s27 + $0x98] sm:$0xff] (%p1397_p5), %v1119_v26 }
 0x152   : > { %v891_v51 = vpop.f32.mrb[4].mxu0  ;;  %v934_v55 = vpop.f32.mrb[4].mxu1 }
 0x153   : > { %v989_v54 = vmul.f32 %v964_v46, %v891_v51  ;;  %v893_v56 = vpop.f32.mrb[5].mxu0  ;;  %v991_v58 = vmul.f32 %v972_v47, %v934_v55  ;;  %v936_v60 = vpop.f32.mrb[5].mxu1 }
 0x154   : > { %v990_v59 = vmul.f32 %v968_v48, %v893_v56  ;;  %v895_v61 = vpop.f32.mrb[6].mxu0  ;;  %v992_v63 = vmul.f32 %v976_v50, %v936_v60  ;;  %v938_v2 = vpop.f32.mrb[6].mxu1  ;;  %1081 = sbr.rel (!%p1397_p5) target bundleno = 355 (0x163), region = 63 }
 0x155   : > { %v1047_v62 = vadd.f32 %v1022_v49, %v989_v54  ;;  %v997_v1 = vmul.f32 %v964_v46, %v895_v61  ;;  %v897_v3 = vpop.f32.mrb[7].mxu0  ;;  %v1049_v4 = vadd.f32 %v1030_v52, %v991_v58  ;;  %v999_v6 = vmul.f32 %v972_v47, %v938_v2  ;;  %v940_v8 = vpop.f32.mrb[7].mxu1 }
 0x156   : > { %v1048_v5 = vadd.f32 %v1026_v53, %v990_v59  ;;  %v998_v7 = vmul.f32 %v968_v48, %v897_v3  ;;  %v1050_v9 = vadd.f32 %v1034_v57, %v992_v63  ;;  %v1000_v11 = vmul.f32 %v976_v50, %v940_v8 }
 0x157   : > { %1063 = vst [vmem:[%s1638_s15 + $0x20] sm:$0xff] %v1047_v62  ;;  %v1055_v10 = vadd.f32 %v1022_v49, %v997_v1  ;;  %1065 = vst [vmem:[%s1638_s15 + $0x30] sm:$0xff] %v1049_v4  ;;  %v1057_v12 = vadd.f32 %v1030_v52, %v999_v6 }
 0x158   : > { %1064 = vst [vmem:[%s1638_s15 + $0x28] sm:$0xff] %v1048_v5  ;;  %v1056_v13 = vadd.f32 %v1026_v53, %v998_v7  ;;  %1066 = vst [vmem:[%s1638_s15 + $0x38] sm:$0xff] %v1050_v9  ;;  %v1058_v14 = vadd.f32 %v1034_v57, %v1000_v11 }
 0x159   : > { %1071 = vst [vmem:[%s1638_s15 + $0x60] sm:$0xff] %v1055_v10  ;;  %1073 = vst [vmem:[%s1638_s15 + $0x70] sm:$0xff] %v1057_v12 }
 0x15a   : > { %1072 = vst [vmem:[%s1638_s15 + $0x68] sm:$0xff] %v1056_v13  ;;  %1074 = vst [vmem:[%s1638_s15 + $0x78] sm:$0xff] %v1058_v14 }
 0x15e   : > { %v1105_v19 = vld [vmem:[%s1638_s15 + $0x20] sm:$0xff]  ;;  %v1109_v21 = vld [vmem:[%s1638_s15 + $0x30] sm:$0xff] }
 0x15f   : > { %v1107_v20 = vld [vmem:[%s1638_s15 + $0x28] sm:$0xff]  ;;  %1106 = vst [vmem:[%s1084_s27 + $0x20] sm:$0xff] %v1105_v19  ;;  %v1111_v22 = vld [vmem:[%s1638_s15 + $0x38] sm:$0xff]  ;;  %1110 = vst [vmem:[%s1084_s27 + $0x30] sm:$0xff] %v1109_v21 }
 0x160   : > { %1108 = vst [vmem:[%s1084_s27 + $0x28] sm:$0xff] %v1107_v20  ;;  %1112 = vst [vmem:[%s1084_s27 + $0x38] sm:$0xff] %v1111_v22  ;;  %v1121_v27 = vld [vmem:[%s1638_s15 + $0x60] sm:$0xff]  ;;  %v1125_v29 = vld [vmem:[%s1638_s15 + $0x70] sm:$0xff] }
 0x161   : > { %v1123_v28 = vld [vmem:[%s1638_s15 + $0x68] sm:$0xff]  ;;  %1122 = vst [vmem:[%s1084_s27 + $0xa0] sm:$0xff] %v1121_v27  ;;  %1126 = vst [vmem:[%s1084_s27 + $0xb0] sm:$0xff] %v1125_v29  ;;  %v1127_v30 = vld [vmem:[%s1638_s15 + $0x78] sm:$0xff] }
 0x162   : > { %1124 = vst [vmem:[%s1084_s27 + $0xa8] sm:$0xff] %v1123_v28  ;;  %1128 = vst [vmem:[%s1084_s27 + $0xb8] sm:$0xff] %v1127_v30 }
 0x163 PF: > { %p11_p11 = scmp.ge.s32.totalorder %s1385_s19, 4   ;;  %s1698_s15 = smov %s1334_s16 }
 0x164   : > { %s1699_s16 = smov %s1395_s22  ;;  %s1700_s17 = smov %s1385_s19 }
 0x165   :  { %13 = sbr.rel (!%p11_p11) target bundleno = 2 (0x2), region = 123 }

// kernel: classifier_forward.22
= control target key start
LH: loop header
LB: loop body
LE: loop exit
PB: predicated region body
PF: predicated region fallthrough
CT: control target
= control target key end

     0   :  { %s989_s1 = inlined_call_operand.vmem [shape: bf16[256,512], index: 1, kind: input, shape index: {}]   ;;  %s990_s0 = inlined_call_operand.vmem [shape: bf16[16,256], index: 0, kind: input, shape index: {}]   ;;  %s991_s2 = inlined_call_operand.vmem [shape: f32[1,512], index: 2, kind: input, shape index: {}]   ;;  %s992_s3 = inlined_call_operand.vmem [shape: f32[1,512], index: 3, kind: input, shape index: {}]   ;;  %s993_s4 = inlined_call_operand.vmem [shape: f32[16,512], index: 4, kind: output, shape index: {}]  }
   0x1   :  { %v637_v0 = vld [vmem:[%s989_s1 + $0x4] ss:$16 sps:$4 sm:$0xff]   ;;  %v639_v1 = vld [vmem:[%s989_s1 + $0xc] ss:$16 sps:$4 sm:$0xff]   ;;  %v641_v2 = vld [vmem:[%s989_s1] ss:$16 sps:$4 sm:$0xff]  }
   0x2   :  { %413 = vmatprep.subr.bf16.mxu0 %v637_v0  ;;  %v642_v3 = vld [vmem:[%s989_s1 + $0x8] ss:$16 sps:$4 sm:$0xff]   ;;  %456 = vmatprep.subr.bf16.mxu1 %v639_v1  ;;  %v643_v4 = vld [vmem:[%s989_s1 + $0x24] ss:$16 sps:$4 sm:$0xff]   ;;  %v645_v5 = vld [vmem:[%s989_s1 + $0x2c] ss:$16 sps:$4 sm:$0xff]  }
   0x3   :  { %414 = vmatpush1.bf16.msra.mxu0 %v641_v2  ;;  %457 = vmatpush1.bf16.msra.mxu1 %v642_v3  ;;  %v647_v6 = vld [vmem:[%s989_s1 + $0x20] ss:$16 sps:$4 sm:$0xff]   ;;  %v648_v7 = vld [vmem:[%s989_s1 + $0x28] ss:$16 sps:$4 sm:$0xff]   ;;  %v649_v8 = vld [vmem:[%s989_s1 + $0x44] ss:$16 sps:$4 sm:$0xff]   ;;  %v501_v2 = vlaneseq }
   0x4   :  { %415 = vmatprep.subr.bf16.mxu0 %v643_v4  ;;  %458 = vmatprep.subr.bf16.mxu1 %v645_v5  ;;  %v651_v9 = vld [vmem:[%s989_s1 + $0x4c] ss:$16 sps:$4 sm:$0xff]   ;;  %v653_v10 = vld [vmem:[%s989_s1 + $0x40] ss:$16 sps:$4 sm:$0xff]   ;;  %v654_v11 = vld [vmem:[%s989_s1 + $0x48] ss:$16 sps:$4 sm:$0xff]  }
   0x5   :  { %v655_v12 = vld [vmem:[%s989_s1 + $0x64] ss:$16 sps:$4 sm:$0xff]   ;;  %v657_v13 = vld [vmem:[%s989_s1 + $0x6c] ss:$16 sps:$4 sm:$0xff]   ;;  %v659_v14 = vld [vmem:[%s989_s1 + $0x60] ss:$16 sps:$4 sm:$0xff]  }
   0x6   :  { %v660_v15 = vld [vmem:[%s989_s1 + $0x68] ss:$16 sps:$4 sm:$0xff]   ;;  %v661_v16 = vld [vmem:[%s989_s1 + $0x84] ss:$16 sps:$4 sm:$0xff]   ;;  %v663_v17 = vld [vmem:[%s989_s1 + $0x8c] ss:$16 sps:$4 sm:$0xff]  }
   0x7   :  { %416 = vmatpush1.bf16.msra.mxu0 %v647_v6  ;;  %459 = vmatpush1.bf16.msra.mxu1 %v648_v7  ;;  %v665_v18 = vld [vmem:[%s989_s1 + $0x80] ss:$16 sps:$4 sm:$0xff]   ;;  %v666_v19 = vld [vmem:[%s989_s1 + $0x88] ss:$16 sps:$4 sm:$0xff]   ;;  %v667_v20 = vld [vmem:[%s989_s1 + $0xa4] ss:$16 sps:$4 sm:$0xff]  }
   0x8   :  { %417 = vmatprep.subr.bf16.mxu0 %v649_v8  ;;  %460 = vmatprep.subr.bf16.mxu1 %v651_v9  ;;  %v669_v21 = vld [vmem:[%s989_s1 + $0xac] ss:$16 sps:$4 sm:$0xff]   ;;  %v671_v22 = vld [vmem:[%s989_s1 + $0xa0] ss:$16 sps:$4 sm:$0xff]   ;;  %v672_v23 = vld [vmem:[%s989_s1 + $0xa8] ss:$16 sps:$4 sm:$0xff]  }
   0x9   :  { %v673_v24 = vld [vmem:[%s989_s1 + $0xc4] ss:$16 sps:$4 sm:$0xff]   ;;  %v675_v25 = vld [vmem:[%s989_s1 + $0xcc] ss:$16 sps:$4 sm:$0xff]   ;;  %v677_v26 = vld [vmem:[%s989_s1 + $0xc0] ss:$16 sps:$4 sm:$0xff]  }
   0xa   :  { %v678_v27 = vld [vmem:[%s989_s1 + $0xc8] ss:$16 sps:$4 sm:$0xff]   ;;  %v679_v28 = vld [vmem:[%s989_s1 + $0xe4] ss:$16 sps:$4 sm:$0xff]   ;;  %v681_v29 = vld [vmem:[%s989_s1 + $0xec] ss:$16 sps:$4 sm:$0xff]  }
   0xb   :  { %418 = vmatpush1.bf16.msra.mxu0 %v653_v10  ;;  %461 = vmatpush1.bf16.msra.mxu1 %v654_v11  ;;  %v683_v30 = vld [vmem:[%s989_s1 + $0xe0] ss:$16 sps:$4 sm:$0xff]   ;;  %v684_v31 = vld [vmem:[%s989_s1 + $0xe8] ss:$16 sps:$4 sm:$0xff]   ;;  %v685_v32 = vld [vmem:[%s989_s1 + $0x104] ss:$16 sps:$4 sm:$0xff]  }
   0xc   :  { %419 = vmatprep.subr.bf16.mxu0 %v655_v12  ;;  %462 = vmatprep.subr.bf16.mxu1 %v657_v13  ;;  %v687_v33 = vld [vmem:[%s989_s1 + $0x10c] ss:$16 sps:$4 sm:$0xff]   ;;  %v689_v34 = vld [vmem:[%s989_s1 + $0x100] ss:$16 sps:$4 sm:$0xff]   ;;  %v690_v35 = vld [vmem:[%s989_s1 + $0x108] ss:$16 sps:$4 sm:$0xff]  }
   0xd   :  { %v691_v36 = vld [vmem:[%s989_s1 + $0x124] ss:$16 sps:$4 sm:$0xff]   ;;  %v693_v37 = vld [vmem:[%s989_s1 + $0x12c] ss:$16 sps:$4 sm:$0xff]   ;;  %v695_v38 = vld [vmem:[%s989_s1 + $0x120] ss:$16 sps:$4 sm:$0xff]  }
   0xe   :  { %v696_v39 = vld [vmem:[%s989_s1 + $0x128] ss:$16 sps:$4 sm:$0xff]   ;;  %v697_v40 = vld [vmem:[%s989_s1 + $0x144] ss:$16 sps:$4 sm:$0xff]   ;;  %v699_v41 = vld [vmem:[%s989_s1 + $0x14c] ss:$16 sps:$4 sm:$0xff]  }
   0xf   :  { %420 = vmatpush1.bf16.msra.mxu0 %v659_v14  ;;  %463 = vmatpush1.bf16.msra.mxu1 %v660_v15  ;;  %v701_v42 = vld [vmem:[%s989_s1 + $0x140] ss:$16 sps:$4 sm:$0xff]   ;;  %v702_v43 = vld [vmem:[%s989_s1 + $0x148] ss:$16 sps:$4 sm:$0xff]   ;;  %v703_v44 = vld [vmem:[%s989_s1 + $0x164] ss:$16 sps:$4 sm:$0xff]  }
  0x10   :  { %421 = vmatprep.subr.bf16.mxu0 %v661_v16  ;;  %464 = vmatprep.subr.bf16.mxu1 %v663_v17  ;;  %v705_v45 = vld [vmem:[%s989_s1 + $0x16c] ss:$16 sps:$4 sm:$0xff]   ;;  %v707_v47 = vld [vmem:[%s989_s1 + $0x160] ss:$16 sps:$4 sm:$0xff]   ;;  %v708_v48 = vld [vmem:[%s989_s1 + $0x168] ss:$16 sps:$4 sm:$0xff]  }
  0x11   :  { %v735_v46 = vld [vmem:[%s990_s0 + $0x4] ss:$8 sps:$4 sm:$0xff]   ;;  %v713_v51 = vld [vmem:[%s989_s1 + $0x180] ss:$16 sps:$4 sm:$0xff]   ;;  %v714_v52 = vld [vmem:[%s989_s1 + $0x188] ss:$16 sps:$4 sm:$0xff]  }
  0x12   :  { %v709_v49 = vld [vmem:[%s989_s1 + $0x184] ss:$16 sps:$4 sm:$0xff]   ;;  %v711_v50 = vld [vmem:[%s989_s1 + $0x18c] ss:$16 sps:$4 sm:$0xff]   ;;  %445 = vmatprep.mubr.bf16.mxu0 %v735_v46  ;;  %488 = vmatprep.mubr.bf16.mxu1 %v735_v46  ;;  %v719_v55 = vld [vmem:[%s989_s1 + $0x1a0] ss:$16 sps:$4 sm:$0xff]  }
  0x13   :  { %422 = vmatpush1.bf16.msra.mxu0 %v665_v18  ;;  %465 = vmatpush1.bf16.msra.mxu1 %v666_v19  ;;  %v715_v53 = vld [vmem:[%s989_s1 + $0x1a4] ss:$16 sps:$4 sm:$0xff]   ;;  %v717_v54 = vld [vmem:[%s989_s1 + $0x1ac] ss:$16 sps:$4 sm:$0xff]   ;;  %v720_v56 = vld [vmem:[%s989_s1 + $0x1a8] ss:$16 sps:$4 sm:$0xff]  }
  0x14   :  { %423 = vmatprep.subr.bf16.mxu0 %v667_v20  ;;  %466 = vmatprep.subr.bf16.mxu1 %v669_v21  ;;  %v721_v57 = vld [vmem:[%s989_s1 + $0x1c4] ss:$16 sps:$4 sm:$0xff]   ;;  %v723_v58 = vld [vmem:[%s989_s1 + $0x1cc] ss:$16 sps:$4 sm:$0xff]   ;;  %v725_v59 = vld [vmem:[%s989_s1 + $0x1c0] ss:$16 sps:$4 sm:$0xff]  }
  0x15   :  { %v726_v60 = vld [vmem:[%s989_s1 + $0x1c8] ss:$16 sps:$4 sm:$0xff]   ;;  %v727_v61 = vld [vmem:[%s989_s1 + $0x1e4] ss:$16 sps:$4 sm:$0xff]   ;;  %v729_v62 = vld [vmem:[%s989_s1 + $0x1ec] ss:$16 sps:$4 sm:$0xff]  }
  0x16   :  { %v731_v63 = vld [vmem:[%s989_s1 + $0x1e0] ss:$16 sps:$4 sm:$0xff]   ;;  %v732_v0 = vld [vmem:[%s989_s1 + $0x1e8] ss:$16 sps:$4 sm:$0xff]   ;;  %v502_v3 = vshrl.u32 %v501_v2, 7 }
  0x17   :  { %424 = vmatpush1.bf16.msra.mxu0 %v671_v22  ;;  %467 = vmatpush1.bf16.msra.mxu1 %v672_v23  ;;  %v733_v1 = vld [vmem:[%s990_s0] ss:$8 sps:$4 sm:$0xff]  }
  0x18   :  { %425 = vmatprep.subr.bf16.mxu0 %v673_v24  ;;  %468 = vmatprep.subr.bf16.mxu1 %v675_v25  ;;  %v503_v4 = vsub.s32 0, %v502_v3  ;;  %v511_v5 = vsub.s32 2, %v502_v3  ;;  %v499_v6 = vld [vmem:[%s991_s2] sm:$0xf]  ;;  %v507_v7 = vsub.s32 1, %v502_v3  ;;  %v515_v8 = vsub.s32 3, %v502_v3 }
  0x19   :  { %v529_v9 = vld [vmem:[%s992_s3] sm:$0xf] }
  0x1a   :  { %v504_v10 = vrot.slane %v499_v6, %v503_v4  ;;  %v512_v11 = vrot.slane %v499_v6, %v511_v5  ;;  %v508_v12 = vrot.slane %v499_v6, %v507_v7  ;;  %v516_v13 = vrot.slane %v499_v6, %v515_v8 }
  0x1b   :  { %426 = vmatpush1.bf16.msra.mxu0 %v677_v26  ;;  %469 = vmatpush1.bf16.msra.mxu1 %v678_v27  ;;  %v534_v14 = vrot.slane %v529_v9, %v503_v4  ;;  %v542_v15 = vrot.slane %v529_v9, %v511_v5  ;;  %v538_v18 = vrot.slane %v529_v9, %v507_v7 }
  0x1c   :  { %427 = vmatprep.subr.bf16.mxu0 %v679_v28  ;;  %470 = vmatprep.subr.bf16.mxu1 %v681_v29  ;;  %v546_v19 = vrot.slane %v529_v9, %v515_v8 }
  0x1f   :  { %428 = vmatpush1.bf16.msra.mxu0 %v683_v30  ;;  %471 = vmatpush1.bf16.msra.mxu1 %v684_v31 }
  0x20   :  { %429 = vmatprep.subr.bf16.mxu0 %v685_v32  ;;  %472 = vmatprep.subr.bf16.mxu1 %v687_v33 }
  0x23   :  { %430 = vmatpush1.bf16.msra.mxu0 %v689_v34  ;;  %473 = vmatpush1.bf16.msra.mxu1 %v690_v35 }
  0x24   :  { %431 = vmatprep.subr.bf16.mxu0 %v691_v36  ;;  %474 = vmatprep.subr.bf16.mxu1 %v693_v37 }
  0x27   :  { %432 = vmatpush1.bf16.msra.mxu0 %v695_v38  ;;  %475 = vmatpush1.bf16.msra.mxu1 %v696_v39 }
  0x28   :  { %433 = vmatprep.subr.bf16.mxu0 %v697_v40  ;;  %476 = vmatprep.subr.bf16.mxu1 %v699_v41 }
  0x2b   :  { %434 = vmatpush1.bf16.msra.mxu0 %v701_v42  ;;  %477 = vmatpush1.bf16.msra.mxu1 %v702_v43 }
  0x2c   :  { %435 = vmatprep.subr.bf16.mxu0 %v703_v44  ;;  %478 = vmatprep.subr.bf16.mxu1 %v705_v45 }
  0x2f   :  { %436 = vmatpush1.bf16.msra.mxu0 %v707_v47  ;;  %479 = vmatpush1.bf16.msra.mxu1 %v708_v48 }
  0x30   :  { %437 = vmatprep.subr.bf16.mxu0 %v709_v49  ;;  %480 = vmatprep.subr.bf16.mxu1 %v711_v50 }
  0x33   :  { %438 = vmatpush1.bf16.msra.mxu0 %v713_v51  ;;  %481 = vmatpush1.bf16.msra.mxu1 %v714_v52 }
  0x34   :  { %439 = vmatprep.subr.bf16.mxu0 %v715_v53  ;;  %482 = vmatprep.subr.bf16.mxu1 %v717_v54 }
  0x37   :  { %440 = vmatpush1.bf16.msra.mxu0 %v719_v55  ;;  %483 = vmatpush1.bf16.msra.mxu1 %v720_v56 }
  0x38   :  { %441 = vmatprep.subr.bf16.mxu0 %v721_v57  ;;  %484 = vmatprep.subr.bf16.mxu1 %v723_v58 }
  0x3b   :  { %442 = vmatpush1.bf16.msra.mxu0 %v725_v59  ;;  %485 = vmatpush1.bf16.msra.mxu1 %v726_v60 }
  0x3c   :  { %443 = vmatprep.subr.bf16.mxu0 %v727_v61  ;;  %486 = vmatprep.subr.bf16.mxu1 %v729_v62 }
  0x3f   :  { %444 = vmatpush1.bf16.msra.mxu0 %v731_v63  ;;  %487 = vmatpush1.bf16.msra.mxu1 %v732_v0 }
  0x42   :  { %446 = vmatmul.mubr.bf16.vlgmr.msra.gmra.mrb[0].mxu0 %v733_v1  ;;  %489 = vmatmul.mubr.bf16.vlgmr.msra.gmra.mrb[0].mxu1 %v733_v1 }
 0x115   :  { %v447_v16 = vpop.f32.mrb[0].mxu0  ;;  %v490_v17 = vpop.f32.mrb[0].mxu1 }
 0x116   :  { %v521_v20 = vmul.f32 %v504_v10, %v447_v16  ;;  %v523_v21 = vmul.f32 %v512_v11, %v490_v17  ;;  %v449_v22 = vpop.f32.mrb[1].mxu0  ;;  %v492_v23 = vpop.f32.mrb[1].mxu1 }
 0x117   :  { %v522_v24 = vmul.f32 %v508_v12, %v449_v22  ;;  %v524_v25 = vmul.f32 %v516_v13, %v492_v23  ;;  %v451_v26 = vpop.f32.mrb[2].mxu0  ;;  %v494_v27 = vpop.f32.mrb[2].mxu1 }
 0x118   :  { %v551_v28 = vadd.f32 %v534_v14, %v521_v20  ;;  %v553_v29 = vadd.f32 %v542_v15, %v523_v21  ;;  %v525_v30 = vmul.f32 %v504_v10, %v451_v26  ;;  %v527_v31 = vmul.f32 %v512_v11, %v494_v27  ;;  %v453_v32 = vpop.f32.mrb[3].mxu0  ;;  %v496_v33 = vpop.f32.mrb[3].mxu1 }
 0x119   :  { %v552_v34 = vadd.f32 %v538_v18, %v522_v24  ;;  %v554_v35 = vadd.f32 %v546_v19, %v524_v25  ;;  %v526_v36 = vmul.f32 %v508_v12, %v453_v32  ;;  %v528_v37 = vmul.f32 %v516_v13, %v496_v33 }
 0x11a   :  { %559 = vst [vmem:[%s993_s4] sm:$0xff] %v551_v28  ;;  %561 = vst [vmem:[%s993_s4 + $0x10] sm:$0xff] %v553_v29  ;;  %v555_v38 = vadd.f32 %v534_v14, %v525_v30  ;;  %v557_v39 = vadd.f32 %v542_v15, %v527_v31 }
 0x11b   :  { %560 = vst [vmem:[%s993_s4 + $0x8] sm:$0xff] %v552_v34  ;;  %562 = vst [vmem:[%s993_s4 + $0x18] sm:$0xff] %v554_v35  ;;  %v556_v40 = vadd.f32 %v538_v18, %v526_v36  ;;  %v558_v41 = vadd.f32 %v546_v19, %v528_v37 }
 0x11c   :  { %563 = vst [vmem:[%s993_s4 + $0x20] sm:$0xff] %v555_v38  ;;  %565 = vst [vmem:[%s993_s4 + $0x30] sm:$0xff] %v557_v39 }
 0x11d   :  { %564 = vst [vmem:[%s993_s4 + $0x28] sm:$0xff] %v556_v40  ;;  %566 = vst [vmem:[%s993_s4 + $0x38] sm:$0xff] %v558_v41 }

// kernel: classifier_forward.21
= control target key start
LH: loop header
LB: loop body
LE: loop exit
PB: predicated region body
PF: predicated region fallthrough
CT: control target
= control target key end

     0   :  { %s972_s1 = inlined_call_operand.vmem [shape: bf16[512,256], index: 1, kind: input, shape index: {}]   ;;  %s973_s0 = inlined_call_operand.vmem [shape: bf16[16,512], index: 0, kind: input, shape index: {}]   ;;  %s974_s2 = inlined_call_operand.vmem [shape: f32[1,256], index: 2, kind: input, shape index: {}]   ;;  %s975_s3 = inlined_call_operand.vmem [shape: f32[1,256], index: 3, kind: input, shape index: {}]   ;;  %s976_s4 = inlined_call_operand.vmem [shape: f32[16,256], index: 4, kind: output, shape index: {}]  }
   0x1   :  { %v623_v0 = vld [vmem:[%s972_s1 + $0x4] ss:$8 sps:$4 sm:$0xff]   ;;  %v627_v2 = vld [vmem:[%s972_s1] ss:$8 sps:$4 sm:$0xff]   ;;  %v629_v4 = vld [vmem:[%s972_s1 + $0x14] ss:$8 sps:$4 sm:$0xff]  }
   0x2   :  { %v625_v1 = vld [vmem:[%s972_s1 + $0x104] ss:$8 sps:$4 sm:$0xff]   ;;  %425 = vmatprep.subr.bf16.mxu1 %v623_v0  ;;  %v628_v3 = vld [vmem:[%s972_s1 + $0x100] ss:$8 sps:$4 sm:$0xff]   ;;  %v631_v5 = vld [vmem:[%s972_s1 + $0x114] ss:$8 sps:$4 sm:$0xff]  }
   0x3   :  { %468 = vmatprep.subr.bf16.mxu0 %v625_v1  ;;  %426 = vmatpush1.bf16.msra.mxu1 %v627_v2  ;;  %v633_v6 = vld [vmem:[%s972_s1 + $0x10] ss:$8 sps:$4 sm:$0xff]   ;;  %v635_v8 = vld [vmem:[%s972_s1 + $0x24] ss:$8 sps:$4 sm:$0xff]   ;;  %v639_v10 = vld [vmem:[%s972_s1 + $0x20] ss:$8 sps:$4 sm:$0xff]  }
   0x4   :  { %469 = vmatpush1.bf16.msra.mxu0 %v628_v3  ;;  %427 = vmatprep.subr.bf16.mxu1 %v629_v4  ;;  %v634_v7 = vld [vmem:[%s972_s1 + $0x110] ss:$8 sps:$4 sm:$0xff]   ;;  %v637_v9 = vld [vmem:[%s972_s1 + $0x124] ss:$8 sps:$4 sm:$0xff]   ;;  %v640_v11 = vld [vmem:[%s972_s1 + $0x120] ss:$8 sps:$4 sm:$0xff]   ;;  %v513_v4 = vlaneseq }
   0x5   :  { %470 = vmatprep.subr.bf16.mxu0 %v631_v5  ;;  %v641_v12 = vld [vmem:[%s972_s1 + $0x34] ss:$8 sps:$4 sm:$0xff]   ;;  %v645_v14 = vld [vmem:[%s972_s1 + $0x30] ss:$8 sps:$4 sm:$0xff]   ;;  %v647_v16 = vld [vmem:[%s972_s1 + $0x44] ss:$8 sps:$4 sm:$0xff]  }
   0x6   :  { %v643_v13 = vld [vmem:[%s972_s1 + $0x134] ss:$8 sps:$4 sm:$0xff]   ;;  %v646_v15 = vld [vmem:[%s972_s1 + $0x130] ss:$8 sps:$4 sm:$0xff]   ;;  %v649_v17 = vld [vmem:[%s972_s1 + $0x144] ss:$8 sps:$4 sm:$0xff]  }
   0x7   :  { %428 = vmatpush1.bf16.msra.mxu1 %v633_v6  ;;  %v651_v18 = vld [vmem:[%s972_s1 + $0x40] ss:$8 sps:$4 sm:$0xff]   ;;  %v653_v20 = vld [vmem:[%s972_s1 + $0x54] ss:$8 sps:$4 sm:$0xff]   ;;  %v657_v22 = vld [vmem:[%s972_s1 + $0x50] ss:$8 sps:$4 sm:$0xff]  }
   0x8   :  { %471 = vmatpush1.bf16.msra.mxu0 %v634_v7  ;;  %429 = vmatprep.subr.bf16.mxu1 %v635_v8  ;;  %v652_v19 = vld [vmem:[%s972_s1 + $0x140] ss:$8 sps:$4 sm:$0xff]   ;;  %v655_v21 = vld [vmem:[%s972_s1 + $0x154] ss:$8 sps:$4 sm:$0xff]   ;;  %v658_v23 = vld [vmem:[%s972_s1 + $0x150] ss:$8 sps:$4 sm:$0xff]  }
   0x9   :  { %472 = vmatprep.subr.bf16.mxu0 %v637_v9  ;;  %v659_v24 = vld [vmem:[%s972_s1 + $0x64] ss:$8 sps:$4 sm:$0xff]   ;;  %v663_v26 = vld [vmem:[%s972_s1 + $0x60] ss:$8 sps:$4 sm:$0xff]   ;;  %v665_v28 = vld [vmem:[%s972_s1 + $0x74] ss:$8 sps:$4 sm:$0xff]  }
   0xa   :  { %v661_v25 = vld [vmem:[%s972_s1 + $0x164] ss:$8 sps:$4 sm:$0xff]   ;;  %v664_v27 = vld [vmem:[%s972_s1 + $0x160] ss:$8 sps:$4 sm:$0xff]   ;;  %v667_v29 = vld [vmem:[%s972_s1 + $0x174] ss:$8 sps:$4 sm:$0xff]  }
   0xb   :  { %430 = vmatpush1.bf16.msra.mxu1 %v639_v10  ;;  %v669_v30 = vld [vmem:[%s972_s1 + $0x70] ss:$8 sps:$4 sm:$0xff]   ;;  %v671_v32 = vld [vmem:[%s972_s1 + $0x84] ss:$8 sps:$4 sm:$0xff]   ;;  %v675_v34 = vld [vmem:[%s972_s1 + $0x80] ss:$8 sps:$4 sm:$0xff]  }
   0xc   :  { %473 = vmatpush1.bf16.msra.mxu0 %v640_v11  ;;  %431 = vmatprep.subr.bf16.mxu1 %v641_v12  ;;  %v670_v31 = vld [vmem:[%s972_s1 + $0x170] ss:$8 sps:$4 sm:$0xff]   ;;  %v673_v33 = vld [vmem:[%s972_s1 + $0x184] ss:$8 sps:$4 sm:$0xff]   ;;  %v676_v35 = vld [vmem:[%s972_s1 + $0x180] ss:$8 sps:$4 sm:$0xff]  }
   0xd   :  { %474 = vmatprep.subr.bf16.mxu0 %v643_v13  ;;  %v677_v36 = vld [vmem:[%s972_s1 + $0x94] ss:$8 sps:$4 sm:$0xff]   ;;  %v681_v38 = vld [vmem:[%s972_s1 + $0x90] ss:$8 sps:$4 sm:$0xff]   ;;  %v683_v40 = vld [vmem:[%s972_s1 + $0xa4] ss:$8 sps:$4 sm:$0xff]  }
   0xe   :  { %v679_v37 = vld [vmem:[%s972_s1 + $0x194] ss:$8 sps:$4 sm:$0xff]   ;;  %v682_v39 = vld [vmem:[%s972_s1 + $0x190] ss:$8 sps:$4 sm:$0xff]   ;;  %v685_v41 = vld [vmem:[%s972_s1 + $0x1a4] ss:$8 sps:$4 sm:$0xff]  }
   0xf   :  { %432 = vmatpush1.bf16.msra.mxu1 %v645_v14  ;;  %v687_v42 = vld [vmem:[%s972_s1 + $0xa0] ss:$8 sps:$4 sm:$0xff]   ;;  %v689_v44 = vld [vmem:[%s972_s1 + $0xb4] ss:$8 sps:$4 sm:$0xff]   ;;  %v693_v46 = vld [vmem:[%s972_s1 + $0xb0] ss:$8 sps:$4 sm:$0xff]  }
  0x10   :  { %475 = vmatpush1.bf16.msra.mxu0 %v646_v15  ;;  %433 = vmatprep.subr.bf16.mxu1 %v647_v16  ;;  %v688_v43 = vld [vmem:[%s972_s1 + $0x1a0] ss:$8 sps:$4 sm:$0xff]   ;;  %v691_v45 = vld [vmem:[%s972_s1 + $0x1b4] ss:$8 sps:$4 sm:$0xff]   ;;  %v694_v48 = vld [vmem:[%s972_s1 + $0x1b0] ss:$8 sps:$4 sm:$0xff]  }
  0x11   :  { %476 = vmatprep.subr.bf16.mxu0 %v649_v17  ;;  %v721_v47 = vld [vmem:[%s973_s0 + $0x4] ss:$16 sps:$4 sm:$0xff]   ;;  %v724_v51 = vld [vmem:[%s973_s0 + $0xc] ss:$16 sps:$4 sm:$0xff]   ;;  %v699_v52 = vld [vmem:[%s972_s1 + $0xc0] ss:$8 sps:$4 sm:$0xff]  }
  0x12   :  { %v695_v49 = vld [vmem:[%s972_s1 + $0xc4] ss:$8 sps:$4 sm:$0xff]   ;;  %457 = vmatprep.mubr.bf16.mxu1 %v721_v47  ;;  %500 = vmatprep.mubr.bf16.mxu0 %v724_v51  ;;  %v700_v53 = vld [vmem:[%s972_s1 + $0x1c0] ss:$8 sps:$4 sm:$0xff]   ;;  %v701_v54 = vld [vmem:[%s972_s1 + $0xd4] ss:$8 sps:$4 sm:$0xff]  }
  0x13   :  { %434 = vmatpush1.bf16.msra.mxu1 %v651_v18  ;;  %v697_v50 = vld [vmem:[%s972_s1 + $0x1c4] ss:$8 sps:$4 sm:$0xff]   ;;  %v703_v55 = vld [vmem:[%s972_s1 + $0x1d4] ss:$8 sps:$4 sm:$0xff]   ;;  %v705_v56 = vld [vmem:[%s972_s1 + $0xd0] ss:$8 sps:$4 sm:$0xff]  }
  0x14   :  { %477 = vmatpush1.bf16.msra.mxu0 %v652_v19  ;;  %435 = vmatprep.subr.bf16.mxu1 %v653_v20  ;;  %v706_v57 = vld [vmem:[%s972_s1 + $0x1d0] ss:$8 sps:$4 sm:$0xff]   ;;  %v707_v58 = vld [vmem:[%s972_s1 + $0xe4] ss:$8 sps:$4 sm:$0xff]   ;;  %v711_v60 = vld [vmem:[%s972_s1 + $0xe0] ss:$8 sps:$4 sm:$0xff]  }
  0x15   :  { %478 = vmatprep.subr.bf16.mxu0 %v655_v21  ;;  %v709_v59 = vld [vmem:[%s972_s1 + $0x1e4] ss:$8 sps:$4 sm:$0xff]   ;;  %v712_v61 = vld [vmem:[%s972_s1 + $0x1e0] ss:$8 sps:$4 sm:$0xff]   ;;  %v713_v62 = vld [vmem:[%s972_s1 + $0xf4] ss:$8 sps:$4 sm:$0xff]  }
  0x16   :  { %v715_v63 = vld [vmem:[%s972_s1 + $0x1f4] ss:$8 sps:$4 sm:$0xff]   ;;  %v717_v0 = vld [vmem:[%s972_s1 + $0xf0] ss:$8 sps:$4 sm:$0xff]   ;;  %v514_v5 = vshrl.u32 %v513_v4, 7 }
  0x17   :  { %436 = vmatpush1.bf16.msra.mxu1 %v657_v22  ;;  %v718_v1 = vld [vmem:[%s972_s1 + $0x1f0] ss:$8 sps:$4 sm:$0xff]   ;;  %v511_v7 = vld [vmem:[%s974_s2] sm:$0x3] }
  0x18   :  { %479 = vmatpush1.bf16.msra.mxu0 %v658_v23  ;;  %437 = vmatprep.subr.bf16.mxu1 %v659_v24  ;;  %v719_v2 = vld [vmem:[%s973_s0] ss:$16 sps:$4 sm:$0xff]   ;;  %v722_v3 = vld [vmem:[%s973_s0 + $0x8] ss:$16 sps:$4 sm:$0xff]   ;;  %v515_v6 = vsub.s32 0, %v514_v5  ;;  %v519_v8 = vsub.s32 1, %v514_v5 }
  0x19   :  { %480 = vmatprep.subr.bf16.mxu0 %v661_v25  ;;  %v527_v9 = vld [vmem:[%s975_s3] sm:$0x3] }
  0x1a   :  { %v516_v10 = vrot.slane %v511_v7, %v515_v6  ;;  %v520_v13 = vrot.slane %v511_v7, %v519_v8  ;;  %v532_v15 = vrot.slane %v527_v9, %v515_v6  ;;  %v536_v19 = vrot.slane %v527_v9, %v519_v8 }
  0x1b   :  { %438 = vmatpush1.bf16.msra.mxu1 %v663_v26 }
  0x1c   :  { %481 = vmatpush1.bf16.msra.mxu0 %v664_v27  ;;  %439 = vmatprep.subr.bf16.mxu1 %v665_v28 }
  0x1d   :  { %482 = vmatprep.subr.bf16.mxu0 %v667_v29 }
  0x1f   :  { %440 = vmatpush1.bf16.msra.mxu1 %v669_v30 }
  0x20   :  { %483 = vmatpush1.bf16.msra.mxu0 %v670_v31  ;;  %441 = vmatprep.subr.bf16.mxu1 %v671_v32 }
  0x21   :  { %484 = vmatprep.subr.bf16.mxu0 %v673_v33 }
  0x23   :  { %442 = vmatpush1.bf16.msra.mxu1 %v675_v34 }
  0x24   :  { %485 = vmatpush1.bf16.msra.mxu0 %v676_v35  ;;  %443 = vmatprep.subr.bf16.mxu1 %v677_v36 }
  0x25   :  { %486 = vmatprep.subr.bf16.mxu0 %v679_v37 }
  0x27   :  { %444 = vmatpush1.bf16.msra.mxu1 %v681_v38 }
  0x28   :  { %487 = vmatpush1.bf16.msra.mxu0 %v682_v39  ;;  %445 = vmatprep.subr.bf16.mxu1 %v683_v40 }
  0x29   :  { %488 = vmatprep.subr.bf16.mxu0 %v685_v41 }
  0x2b   :  { %446 = vmatpush1.bf16.msra.mxu1 %v687_v42 }
  0x2c   :  { %489 = vmatpush1.bf16.msra.mxu0 %v688_v43  ;;  %447 = vmatprep.subr.bf16.mxu1 %v689_v44 }
  0x2d   :  { %490 = vmatprep.subr.bf16.mxu0 %v691_v45 }
  0x2f   :  { %448 = vmatpush1.bf16.msra.mxu1 %v693_v46 }
  0x30   :  { %491 = vmatpush1.bf16.msra.mxu0 %v694_v48  ;;  %449 = vmatprep.subr.bf16.mxu1 %v695_v49 }
  0x31   :  { %492 = vmatprep.subr.bf16.mxu0 %v697_v50 }
  0x33   :  { %450 = vmatpush1.bf16.msra.mxu1 %v699_v52 }
  0x34   :  { %493 = vmatpush1.bf16.msra.mxu0 %v700_v53  ;;  %451 = vmatprep.subr.bf16.mxu1 %v701_v54 }
  0x35   :  { %494 = vmatprep.subr.bf16.mxu0 %v703_v55 }
  0x37   :  { %452 = vmatpush1.bf16.msra.mxu1 %v705_v56 }
  0x38   :  { %495 = vmatpush1.bf16.msra.mxu0 %v706_v57  ;;  %453 = vmatprep.subr.bf16.mxu1 %v707_v58 }
  0x39   :  { %496 = vmatprep.subr.bf16.mxu0 %v709_v59 }
  0x3b   :  { %454 = vmatpush1.bf16.msra.mxu1 %v711_v60 }
  0x3c   :  { %497 = vmatpush1.bf16.msra.mxu0 %v712_v61  ;;  %455 = vmatprep.subr.bf16.mxu1 %v713_v62 }
  0x3d   :  { %498 = vmatprep.subr.bf16.mxu0 %v715_v63 }
  0x3f   :  { %456 = vmatpush1.bf16.msra.mxu1 %v717_v0 }
  0x40   :  { %499 = vmatpush1.bf16.msra.mxu0 %v718_v1 }
  0x42   :  { %458 = vmatmul.mubr.bf16.vlgmr.msra.gmra.mrb[0].mxu1 %v719_v2 }
  0x43   :  { %501 = vmatmul.mubr.bf16.vlgmr.msra.gmra.mrb[0].mxu0 %v722_v3 }
 0x115   :  { %v459_v11 = vpop.f32.mrb[0].mxu1 }
 0x116   :  { %v502_v12 = vpop.f32.mrb[0].mxu0  ;;  %v461_v16 = vpop.f32.mrb[1].mxu1 }
 0x117   :  { %v503_v14 = vadd.f32 %v502_v12, %v459_v11  ;;  %v504_v17 = vpop.f32.mrb[1].mxu0  ;;  %v463_v20 = vpop.f32.mrb[2].mxu1 }
 0x118   :  { %v505_v18 = vadd.f32 %v504_v17, %v461_v16  ;;  %v506_v21 = vpop.f32.mrb[2].mxu0  ;;  %v465_v24 = vpop.f32.mrb[3].mxu1 }
 0x119   :  { %v523_v22 = vmul.f32 %v516_v10, %v503_v14  ;;  %v507_v23 = vadd.f32 %v506_v21, %v463_v20  ;;  %v508_v25 = vpop.f32.mrb[3].mxu0 }
 0x11a   :  { %v524_v26 = vmul.f32 %v520_v13, %v505_v18  ;;  %v509_v27 = vadd.f32 %v508_v25, %v465_v24 }
 0x11b   :  { %v539_v28 = vadd.f32 %v532_v15, %v523_v22  ;;  %v525_v29 = vmul.f32 %v516_v10, %v507_v23 }
 0x11c   :  { %v540_v30 = vadd.f32 %v536_v19, %v524_v26  ;;  %v526_v31 = vmul.f32 %v520_v13, %v509_v27 }
 0x11d   :  { %543 = vst [vmem:[%s976_s4] sm:$0xff] %v539_v28  ;;  %v541_v32 = vadd.f32 %v532_v15, %v525_v29 }
 0x11e   :  { %544 = vst [vmem:[%s976_s4 + $0x8] sm:$0xff] %v540_v30  ;;  %v542_v33 = vadd.f32 %v536_v19, %v526_v31 }
 0x11f   :  { %545 = vst [vmem:[%s976_s4 + $0x10] sm:$0xff] %v541_v32 }
 0x120   :  { %546 = vst [vmem:[%s976_s4 + $0x18] sm:$0xff] %v542_v33 }

// kernel: classifier_forward.24
= control target key start
LH: loop header
LB: loop body
LE: loop exit
PB: predicated region body
PF: predicated region fallthrough
CT: control target
= control target key end

     0   :  { %vm278_vm0 = vcmask 261120   ;;  %s498_s1 = inlined_call_operand.vmem [shape: bf16[2,128,32], index: 1, kind: input, shape index: {}]   ;;  %s499_s0 = inlined_call_operand.vmem [shape: bf16[2,32,128], index: 0, kind: input, shape index: {}]   ;;  %s500_s2 = inlined_call_operand.vmem [shape: f32[2,32,32], index: 2, kind: output, shape index: {}]  }
   0x1   :  { %v371_v0 = vld [vmem:[%s498_s1] sm:$0xff]   ;;  %v373_v2 = vld [vmem:[%s498_s1 + $0x8] sm:$0xff]   ;;  %v375_v4 = vld [vmem:[%s498_s1 + $0x10] sm:$0xff]  }
   0x2   :  { %v372_v1 = vld [vmem:[%s498_s1 + $0x40] sm:$0xff]   ;;  %331 = vmatprep.subr.bf16.mxu0 %v371_v0  ;;  %v374_v3 = vld [vmem:[%s498_s1 + $0x48] sm:$0xff]   ;;  %v376_v5 = vld [vmem:[%s498_s1 + $0x50] sm:$0xff]  }
   0x3   :  { %351 = vmatprep.subr.bf16.mxu1 %v372_v1  ;;  %332 = vmatpush3.bf16.msra.mxu0 %v371_v0  ;;  %v377_v6 = vld [vmem:[%s498_s1 + $0x18] sm:$0xff]   ;;  %v379_v8 = vld [vmem:[%s498_s1 + $0x20] sm:$0xff]   ;;  %v381_v10 = vld [vmem:[%s498_s1 + $0x28] sm:$0xff]  }
   0x4   :  { %352 = vmatpush3.bf16.msra.mxu1 %v372_v1  ;;  %333 = vmatprep.subr.bf16.mxu0 %v373_v2  ;;  %v378_v7 = vld [vmem:[%s498_s1 + $0x58] sm:$0xff]   ;;  %v380_v9 = vld [vmem:[%s498_s1 + $0x60] sm:$0xff]   ;;  %v382_v11 = vld [vmem:[%s498_s1 + $0x68] sm:$0xff]  }
   0x5   :  { %353 = vmatprep.subr.bf16.mxu1 %v374_v3  ;;  %v387_v12 = vld [vmem:[%s499_s0] sm:$0xff]   ;;  %v388_v13 = vld [vmem:[%s499_s0 + $0x10] sm:$0xff]   ;;  %v385_v16 = vld [vmem:[%s498_s1 + $0x38] sm:$0xff]  }
   0x6   :  { %347 = vmatprep.mubr.bf16.mxu0 %v387_v12  ;;  %367 = vmatprep.mubr.bf16.mxu1 %v388_v13  ;;  %v383_v14 = vld [vmem:[%s498_s1 + $0x30] sm:$0xff]   ;;  %v386_v17 = vld [vmem:[%s498_s1 + $0x78] sm:$0xff]   ;;  %v389_v18 = vld [vmem:[%s499_s0 + $0x8] sm:$0xff]  }
   0x7   :  { %334 = vmatpush3.bf16.msra.mxu0 %v373_v2  ;;  %v384_v15 = vld [vmem:[%s498_s1 + $0x70] sm:$0xff]   ;;  %v390_v19 = vld [vmem:[%s499_s0 + $0x18] sm:$0xff]  }
   0x8   :  { %354 = vmatpush3.bf16.msra.mxu1 %v374_v3  ;;  %335 = vmatprep.subr.bf16.mxu0 %v375_v4 }
   0x9   :  { %355 = vmatprep.subr.bf16.mxu1 %v376_v5 }
   0xb   :  { %336 = vmatpush3.bf16.msra.mxu0 %v375_v4 }
   0xc   :  { %356 = vmatpush3.bf16.msra.mxu1 %v376_v5  ;;  %337 = vmatprep.subr.bf16.mxu0 %v377_v6 }
   0xd   :  { %357 = vmatprep.subr.bf16.mxu1 %v378_v7 }
   0xf   :  { %338 = vmatpush3.bf16.msra.mxu0 %v377_v6 }
  0x10   :  { %358 = vmatpush3.bf16.msra.mxu1 %v378_v7  ;;  %339 = vmatprep.subr.bf16.mxu0 %v379_v8 }
  0x11   :  { %359 = vmatprep.subr.bf16.mxu1 %v380_v9 }
  0x13   :  { %340 = vmatpush3.bf16.msra.mxu0 %v379_v8 }
  0x14   :  { %360 = vmatpush3.bf16.msra.mxu1 %v380_v9  ;;  %341 = vmatprep.subr.bf16.mxu0 %v381_v10 }
  0x15   :  { %361 = vmatprep.subr.bf16.mxu1 %v382_v11 }
  0x17   :  { %342 = vmatpush3.bf16.msra.mxu0 %v381_v10 }
  0x18   :  { %362 = vmatpush3.bf16.msra.mxu1 %v382_v11  ;;  %343 = vmatprep.subr.bf16.mxu0 %v383_v14 }
  0x19   :  { %363 = vmatprep.subr.bf16.mxu1 %v384_v15 }
  0x1b   :  { %344 = vmatpush3.bf16.msra.mxu0 %v383_v14 }
  0x1c   :  { %364 = vmatpush3.bf16.msra.mxu1 %v384_v15  ;;  %345 = vmatprep.subr.bf16.mxu0 %v385_v16 }
  0x1d   :  { %365 = vmatprep.subr.bf16.mxu1 %v386_v17 }
  0x1f   :  { %346 = vmatpush3.bf16.msra.mxu0 %v385_v16 }
  0x20   :  { %366 = vmatpush3.bf16.msra.mxu1 %v386_v17 }
  0x22   :  { %348 = vmatmul.mubr.bf16.vlgmr.msra.gmra.mrb[0].mxu0 %v389_v18 }
  0x23   :  { %368 = vmatmul.mubr.bf16.vlgmr.msra.gmra.mrb[0].mxu1 %v390_v19 }
  0xf5   :  { %v349_v20 = vpop.f32.mrb[0].mxu0 }
  0xf6   :  { %v272_v21 = vmul.f32 0.088388346, %v349_v20  ;;  %v369_v22 = vpop.f32.mrb[0].mxu1  ;;  %v146_v23 = vpop.f32.mrb[1].mxu0 }
  0xf7   :  { %v276_v24 = vmul.f32 0.088388346, %v369_v22  ;;  %v270_v25 = vmul.f32 0.088388346, %v146_v23  ;;  %v255_v26 = vpop.f32.mrb[1].mxu1  ;;  %v350_v27 = vpop.f32.mrb[2].mxu0 }
  0xf8   :  { %281 = vst.msk [vmem:[%s500_s2 + $0x10] sm:$0xff] %vm278_vm0, %v272_v21  ;;  %v274_v28 = vmul.f32 0.088388346, %v255_v26  ;;  %v273_v29 = vmul.f32 0.088388346, %v350_v27  ;;  %v370_v30 = vpop.f32.mrb[2].mxu1 }
  0xf9   :  { %v149_v31 = vpop.f32.mrb[3].mxu0  ;;  %285 = vst.msk [vmem:[%s500_s2 + $0x30] sm:$0xff] %vm278_vm0, %v276_v24  ;;  %279 = vst.msk [vmem:[%s500_s2] sm:$0xff] %vm278_vm0, %v270_v25  ;;  %v277_v32 = vmul.f32 0.088388346, %v370_v30  ;;  %v258_v34 = vpop.f32.mrb[3].mxu1 }
  0xfa   :  { %v271_v33 = vmul.f32 0.088388346, %v149_v31  ;;  %283 = vst.msk [vmem:[%s500_s2 + $0x20] sm:$0xff] %vm278_vm0, %v274_v28  ;;  %282 = vst.msk [vmem:[%s500_s2 + $0x18] sm:$0xff] %vm278_vm0, %v273_v29  ;;  %v275_v35 = vmul.f32 0.088388346, %v258_v34 }
  0xfb   :  { %286 = vst.msk [vmem:[%s500_s2 + $0x38] sm:$0xff] %vm278_vm0, %v277_v32 }
  0xfc   :  { %280 = vst.msk [vmem:[%s500_s2 + $0x8] sm:$0xff] %vm278_vm0, %v271_v33  ;;  %284 = vst.msk [vmem:[%s500_s2 + $0x28] sm:$0xff] %vm278_vm0, %v275_v35 }

// kernel: classifier_forward.25
= control target key start
LH: loop header
LB: loop body
LE: loop exit
PB: predicated region body
PF: predicated region fallthrough
CT: control target
= control target key end

     0   :  { %vm354_vm0 = vcmask 1043456   ;;  %vm355_vm1 = vcmask 1044480   ;;  %vm257_vm2 = vcmask 203776   ;;  %v1134_v1 = vmov 65535   ;;  %s1688_s1 = inlined_call_operand.vmem [shape: bf16[25,32], index: 1, kind: input, shape index: {}]   ;;  %s1689_s0 = inlined_call_operand.vmem [shape: bf16[512,25], index: 0, kind: input, shape index: {}]   ;;  %s1690_s2 = inlined_call_operand.vmem [shape: f32[1,32], index: 2, kind: input, shape index: {}]   ;;  %s1691_s3 = inlined_call_operand.vmem [shape: f32[1,32], index: 3, kind: input, shape index: {}]   ;;  %s1692_s4 = inlined_call_operand.vmem [shape: f32[512,32], index: 4, kind: output, shape index: {}]  }
   0x1   :  { %v1100_v0 = vld [vmem:[%s1688_s1] sm:$0xff]   ;;  %v356_v2 = vsel %vm354_vm0, 4294967295, %v1134_v1  ;;  %v1101_v3 = vld [vmem:[%s1688_s1 + $0x8] sm:$0x1f]   ;;  %v1106_v10 = vld [vmem:[%s1689_s0 + $0x10] sm:$0xff]   ;;  %vm856_vm3 = vcmask 261120  }
   0x2   :  { %1027 = vmatprep.subr.bf16.mxu0 %v1100_v0  ;;  %1095 = vmatprep.subr.bf16.mxu1 %v1100_v0  ;;  %v357_v4 = vsel %vm355_vm1, %v356_v2, 0  ;;  %v1102_v5 = vld [vmem:[%s1689_s0] sm:$0xff]   ;;  %v1104_v8 = vld [vmem:[%s1689_s0 + $0x8] sm:$0xff]   ;;  %v1107_v11 = vld [vmem:[%s1689_s0 + $0x90] sm:$0xff]  }
   0x3   :  { %1028 = vmatpush3.bf16.msra.mxu0 %v1100_v0  ;;  %1097 = vmatpush3.bf16.msra.mxu1 %v1100_v0  ;;  %v359_v6 = vand.u32 %v1101_v3, %v357_v4  ;;  %v1103_v7 = vld [vmem:[%s1689_s0 + $0x80] sm:$0xff]   ;;  %v1105_v9 = vld [vmem:[%s1689_s0 + $0x88] sm:$0xff]   ;;  %v1108_v12 = vld [vmem:[%s1689_s0 + $0x18] sm:$0xff]  }
   0x4   :  { %1031 = vmatprep.mubr.msk.bf16.mxu0 %vm257_vm2, %v1102_v5  ;;  %1063 = vmatprep.mubr.msk.bf16.mxu1 %vm257_vm2, %v1103_v7  ;;  %v1109_v13 = vld [vmem:[%s1689_s0 + $0x98] sm:$0xff]   ;;  %v1110_v14 = vld [vmem:[%s1689_s0 + $0x20] sm:$0xff]   ;;  %v1112_v16 = vld [vmem:[%s1689_s0 + $0x28] sm:$0xff]  }
   0x5   :  { %1029 = vmatprep.subr.bf16.mxu0 %v359_v6  ;;  %1096 = vmatprep.subr.bf16.mxu1 %v359_v6  ;;  %v1111_v15 = vld [vmem:[%s1689_s0 + $0xa0] sm:$0xff]   ;;  %v1113_v17 = vld [vmem:[%s1689_s0 + $0xa8] sm:$0xff]   ;;  %v1114_v18 = vld [vmem:[%s1689_s0 + $0x30] sm:$0xff]  }
   0x6   :  { %v1115_v19 = vld [vmem:[%s1689_s0 + $0xb0] sm:$0xff]   ;;  %v1116_v20 = vld [vmem:[%s1689_s0 + $0x38] sm:$0xff]   ;;  %v1118_v22 = vld [vmem:[%s1689_s0 + $0x40] sm:$0xff]  }
   0x7   :  { %1030 = vmatpush3.bf16.msra.mxu0 %v359_v6  ;;  %1098 = vmatpush3.bf16.msra.mxu1 %v359_v6  ;;  %v1117_v21 = vld [vmem:[%s1689_s0 + $0xb8] sm:$0xff]   ;;  %v1119_v23 = vld [vmem:[%s1689_s0 + $0xc0] sm:$0xff]   ;;  %v1120_v24 = vld [vmem:[%s1689_s0 + $0x48] sm:$0xff]  }
   0x8   :  { %v1121_v25 = vld [vmem:[%s1689_s0 + $0xc8] sm:$0xff]   ;;  %v1122_v26 = vld [vmem:[%s1689_s0 + $0x50] sm:$0xff]   ;;  %v1124_v28 = vld [vmem:[%s1689_s0 + $0x58] sm:$0xff]  }
   0x9   :  { %v1123_v27 = vld [vmem:[%s1689_s0 + $0xd0] sm:$0xff]   ;;  %v1125_v29 = vld [vmem:[%s1689_s0 + $0xd8] sm:$0xff]   ;;  %v1126_v30 = vld [vmem:[%s1689_s0 + $0x60] sm:$0xff]  }
   0xa   :  { %1032 = vmatmul.mubr.msk.bf16.vlgmr.msra.gmra.mrb[0].mxu0 %vm257_vm2, %v1104_v8  ;;  %1064 = vmatmul.mubr.msk.bf16.vlgmr.msra.gmra.mrb[0].mxu1 %vm257_vm2, %v1105_v9  ;;  %v1127_v31 = vld [vmem:[%s1689_s0 + $0xe0] sm:$0xff]   ;;  %v1128_v32 = vld [vmem:[%s1689_s0 + $0x68] sm:$0xff]   ;;  %v1130_v34 = vld [vmem:[%s1689_s0 + $0x70] sm:$0xff]  }
   0xb   :  { %1035 = vmatprep.mubr.msk.bf16.mxu0 %vm257_vm2, %v1106_v10  ;;  %1067 = vmatprep.mubr.msk.bf16.mxu1 %vm257_vm2, %v1107_v11  ;;  %v1129_v33 = vld [vmem:[%s1689_s0 + $0xe8] sm:$0xff]   ;;  %v1131_v35 = vld [vmem:[%s1689_s0 + $0xf0] sm:$0xff]   ;;  %v1132_v36 = vld [vmem:[%s1689_s0 + $0x78] sm:$0xff]  }
   0xc   :  { %v1133_v37 = vld [vmem:[%s1689_s0 + $0xf8] sm:$0xff]   ;;  %v1297_v38 = vld [vmem:[%s1690_s2] ss:$0 sm:$0xff] }
   0xd   :  { %v1302_v40 = vld [vmem:[%s1691_s3] ss:$0 sm:$0xff] }
  0x12   :  { %1036 = vmatmul.mubr.msk.bf16.gmra.mrb[4].mxu0 %vm257_vm2, %v1108_v12  ;;  %1068 = vmatmul.mubr.msk.bf16.gmra.mrb[4].mxu1 %vm257_vm2, %v1109_v13 }
  0x13   :  { %1039 = vmatprep.mubr.msk.bf16.mxu0 %vm257_vm2, %v1110_v14  ;;  %1071 = vmatprep.mubr.msk.bf16.mxu1 %vm257_vm2, %v1111_v15 }
  0x1a   :  { %1040 = vmatmul.mubr.msk.bf16.gmra.mrb[8].mxu0 %vm257_vm2, %v1112_v16  ;;  %1072 = vmatmul.mubr.msk.bf16.gmra.mrb[8].mxu1 %vm257_vm2, %v1113_v17 }
  0x1b   :  { %1043 = vmatprep.mubr.msk.bf16.mxu0 %vm257_vm2, %v1114_v18  ;;  %1075 = vmatprep.mubr.msk.bf16.mxu1 %vm257_vm2, %v1115_v19 }
  0x22   :  { %1044 = vmatmul.mubr.msk.bf16.gmra.mrb[12].mxu0 %vm257_vm2, %v1116_v20  ;;  %1076 = vmatmul.mubr.msk.bf16.gmra.mrb[12].mxu1 %vm257_vm2, %v1117_v21 }
  0x23   :  { %1047 = vmatprep.mubr.msk.bf16.mxu0 %vm257_vm2, %v1118_v22  ;;  %1079 = vmatprep.mubr.msk.bf16.mxu1 %vm257_vm2, %v1119_v23 }
  0x2a   :  { %1048 = vmatmul.mubr.msk.bf16.gmra.mrb[16].mxu0 %vm257_vm2, %v1120_v24  ;;  %1080 = vmatmul.mubr.msk.bf16.gmra.mrb[16].mxu1 %vm257_vm2, %v1121_v25 }
  0x2b   :  { %1051 = vmatprep.mubr.msk.bf16.mxu0 %vm257_vm2, %v1122_v26  ;;  %1083 = vmatprep.mubr.msk.bf16.mxu1 %vm257_vm2, %v1123_v27 }
  0x32   :  { %1052 = vmatmul.mubr.msk.bf16.gmra.mrb[20].mxu0 %vm257_vm2, %v1124_v28  ;;  %1084 = vmatmul.mubr.msk.bf16.gmra.mrb[20].mxu1 %vm257_vm2, %v1125_v29 }
  0x33   :  { %1055 = vmatprep.mubr.msk.bf16.mxu0 %vm257_vm2, %v1126_v30  ;;  %1087 = vmatprep.mubr.msk.bf16.mxu1 %vm257_vm2, %v1127_v31 }
  0x3a   :  { %1056 = vmatmul.mubr.msk.bf16.gmra.mrb[24].mxu0 %vm257_vm2, %v1128_v32  ;;  %1088 = vmatmul.mubr.msk.bf16.gmra.mrb[24].mxu1 %vm257_vm2, %v1129_v33 }
  0x3b   :  { %1059 = vmatprep.mubr.msk.bf16.mxu0 %vm257_vm2, %v1130_v34  ;;  %1091 = vmatprep.mubr.msk.bf16.mxu1 %vm257_vm2, %v1131_v35 }
  0x42   :  { %1060 = vmatmul.mubr.msk.bf16.gmra.mrb[28].mxu0 %vm257_vm2, %v1132_v36  ;;  %1092 = vmatmul.mubr.msk.bf16.gmra.mrb[28].mxu1 %vm257_vm2, %v1133_v37 }
  0xdd   :  { %v1033_v39 = vpop.f32.mrb[0].mxu0  ;;  %v1065_v41 = vpop.f32.mrb[0].mxu1 }
  0xde   :  { %v659_v42 = vmul.f32 %v1033_v39, %v1297_v38  ;;  %v691_v43 = vmul.f32 %v1065_v41, %v1297_v38  ;;  %v395_v44 = vpop.f32.mrb[1].mxu0  ;;  %v523_v45 = vpop.f32.mrb[1].mxu1 }
  0xdf   :  { %v657_v46 = vmul.f32 %v1297_v38, %v395_v44  ;;  %v689_v47 = vmul.f32 %v1297_v38, %v523_v45  ;;  %v1034_v48 = vpop.f32.mrb[2].mxu0  ;;  %v1066_v49 = vpop.f32.mrb[2].mxu1 }
  0xe0   :  { %v730_v50 = vadd.f32 %v1302_v40, %v659_v42  ;;  %v762_v51 = vadd.f32 %v1302_v40, %v691_v43  ;;  %v660_v52 = vmul.f32 %v1034_v48, %v1297_v38  ;;  %v692_v53 = vmul.f32 %v1066_v49, %v1297_v38  ;;  %v398_v54 = vpop.f32.mrb[3].mxu0  ;;  %v526_v55 = vpop.f32.mrb[3].mxu1 }
  0xe1   :  { %v728_v56 = vadd.f32 %v1302_v40, %v657_v46  ;;  %v760_v57 = vadd.f32 %v1302_v40, %v689_v47  ;;  %v658_v58 = vmul.f32 %v1297_v38, %v398_v54  ;;  %v690_v59 = vmul.f32 %v1297_v38, %v526_v55 }
  0xe2   :  { %v794_v60 = vmax.f32 %v730_v50, 0.0  ;;  %v826_v61 = vmax.f32 %v762_v51, 0.0  ;;  %v731_v62 = vadd.f32 %v1302_v40, %v660_v52  ;;  %v763_v63 = vadd.f32 %v1302_v40, %v692_v53 }
  0xe3   :  { %v792_v0 = vmax.f32 %v728_v56, 0.0  ;;  %v824_v1 = vmax.f32 %v760_v57, 0.0  ;;  %v729_v2 = vadd.f32 %v1302_v40, %v658_v58  ;;  %v761_v3 = vadd.f32 %v1302_v40, %v690_v59 }
  0xe4   :  { %859 = vst.msk [vmem:[%s1692_s4 + $0x10] sm:$0xff] %vm856_vm3, %v794_v60  ;;  %891 = vst.msk [vmem:[%s1692_s4 + $0x110] sm:$0xff] %vm856_vm3, %v826_v61  ;;  %v795_v4 = vmax.f32 %v731_v62, 0.0  ;;  %v827_v5 = vmax.f32 %v763_v63, 0.0 }
  0xe5   :  { %857 = vst.msk [vmem:[%s1692_s4] sm:$0xff] %vm856_vm3, %v792_v0  ;;  %889 = vst.msk [vmem:[%s1692_s4 + $0x100] sm:$0xff] %vm856_vm3, %v824_v1  ;;  %v793_v6 = vmax.f32 %v729_v2, 0.0  ;;  %v825_v7 = vmax.f32 %v761_v3, 0.0  ;;  %v1037_v8 = vpop.f32.mrb[4].mxu0  ;;  %v1069_v9 = vpop.f32.mrb[4].mxu1 }
  0xe6   :  { %860 = vst.msk [vmem:[%s1692_s4 + $0x18] sm:$0xff] %vm856_vm3, %v795_v4  ;;  %892 = vst.msk [vmem:[%s1692_s4 + $0x118] sm:$0xff] %vm856_vm3, %v827_v5  ;;  %v663_v10 = vmul.f32 %v1037_v8, %v1297_v38  ;;  %v695_v11 = vmul.f32 %v1069_v9, %v1297_v38  ;;  %v411_v12 = vpop.f32.mrb[5].mxu0  ;;  %v539_v13 = vpop.f32.mrb[5].mxu1 }
  0xe7   :  { %858 = vst.msk [vmem:[%s1692_s4 + $0x8] sm:$0xff] %vm856_vm3, %v793_v6  ;;  %890 = vst.msk [vmem:[%s1692_s4 + $0x108] sm:$0xff] %vm856_vm3, %v825_v7  ;;  %v661_v14 = vmul.f32 %v1297_v38, %v411_v12  ;;  %v693_v15 = vmul.f32 %v1297_v38, %v539_v13  ;;  %v1038_v16 = vpop.f32.mrb[6].mxu0  ;;  %v1070_v17 = vpop.f32.mrb[6].mxu1 }
  0xe8   :  { %v734_v18 = vadd.f32 %v1302_v40, %v663_v10  ;;  %v766_v19 = vadd.f32 %v1302_v40, %v695_v11  ;;  %v664_v20 = vmul.f32 %v1038_v16, %v1297_v38  ;;  %v696_v21 = vmul.f32 %v1070_v17, %v1297_v38  ;;  %v414_v22 = vpop.f32.mrb[7].mxu0  ;;  %v542_v23 = vpop.f32.mrb[7].mxu1 }
  0xe9   :  { %v732_v24 = vadd.f32 %v1302_v40, %v661_v14  ;;  %v764_v25 = vadd.f32 %v1302_v40, %v693_v15  ;;  %v662_v26 = vmul.f32 %v1297_v38, %v414_v22  ;;  %v694_v27 = vmul.f32 %v1297_v38, %v542_v23 }
  0xea   :  { %v798_v28 = vmax.f32 %v734_v18, 0.0  ;;  %v830_v29 = vmax.f32 %v766_v19, 0.0  ;;  %v735_v30 = vadd.f32 %v1302_v40, %v664_v20  ;;  %v767_v31 = vadd.f32 %v1302_v40, %v696_v21 }
  0xeb   :  { %v796_v32 = vmax.f32 %v732_v24, 0.0  ;;  %v828_v33 = vmax.f32 %v764_v25, 0.0  ;;  %v733_v34 = vadd.f32 %v1302_v40, %v662_v26  ;;  %v765_v35 = vadd.f32 %v1302_v40, %v694_v27 }
  0xec   :  { %863 = vst.msk [vmem:[%s1692_s4 + $0x30] sm:$0xff] %vm856_vm3, %v798_v28  ;;  %895 = vst.msk [vmem:[%s1692_s4 + $0x130] sm:$0xff] %vm856_vm3, %v830_v29  ;;  %v799_v36 = vmax.f32 %v735_v30, 0.0  ;;  %v831_v37 = vmax.f32 %v767_v31, 0.0 }
  0xed   :  { %861 = vst.msk [vmem:[%s1692_s4 + $0x20] sm:$0xff] %vm856_vm3, %v796_v32  ;;  %893 = vst.msk [vmem:[%s1692_s4 + $0x120] sm:$0xff] %vm856_vm3, %v828_v33  ;;  %v797_v39 = vmax.f32 %v733_v34, 0.0  ;;  %v829_v41 = vmax.f32 %v765_v35, 0.0  ;;  %v1041_v42 = vpop.f32.mrb[8].mxu0  ;;  %v1073_v43 = vpop.f32.mrb[8].mxu1 }
  0xee   :  { %864 = vst.msk [vmem:[%s1692_s4 + $0x38] sm:$0xff] %vm856_vm3, %v799_v36  ;;  %896 = vst.msk [vmem:[%s1692_s4 + $0x138] sm:$0xff] %vm856_vm3, %v831_v37  ;;  %v667_v44 = vmul.f32 %v1041_v42, %v1297_v38  ;;  %v699_v45 = vmul.f32 %v1073_v43, %v1297_v38  ;;  %v427_v46 = vpop.f32.mrb[9].mxu0  ;;  %v555_v47 = vpop.f32.mrb[9].mxu1 }
  0xef   :  { %862 = vst.msk [vmem:[%s1692_s4 + $0x28] sm:$0xff] %vm856_vm3, %v797_v39  ;;  %894 = vst.msk [vmem:[%s1692_s4 + $0x128] sm:$0xff] %vm856_vm3, %v829_v41  ;;  %v665_v48 = vmul.f32 %v1297_v38, %v427_v46  ;;  %v697_v49 = vmul.f32 %v1297_v38, %v555_v47  ;;  %v1042_v50 = vpop.f32.mrb[10].mxu0  ;;  %v1074_v51 = vpop.f32.mrb[10].mxu1 }
  0xf0   :  { %v738_v52 = vadd.f32 %v1302_v40, %v667_v44  ;;  %v770_v53 = vadd.f32 %v1302_v40, %v699_v45  ;;  %v668_v54 = vmul.f32 %v1042_v50, %v1297_v38  ;;  %v700_v55 = vmul.f32 %v1074_v51, %v1297_v38  ;;  %v430_v56 = vpop.f32.mrb[11].mxu0  ;;  %v558_v57 = vpop.f32.mrb[11].mxu1 }
  0xf1   :  { %v736_v58 = vadd.f32 %v1302_v40, %v665_v48  ;;  %v768_v59 = vadd.f32 %v1302_v40, %v697_v49  ;;  %v666_v60 = vmul.f32 %v1297_v38, %v430_v56  ;;  %v698_v61 = vmul.f32 %v1297_v38, %v558_v57 }
  0xf2   :  { %v802_v62 = vmax.f32 %v738_v52, 0.0  ;;  %v834_v63 = vmax.f32 %v770_v53, 0.0  ;;  %v739_v0 = vadd.f32 %v1302_v40, %v668_v54  ;;  %v771_v1 = vadd.f32 %v1302_v40, %v700_v55 }
  0xf3   :  { %v800_v2 = vmax.f32 %v736_v58, 0.0  ;;  %v832_v3 = vmax.f32 %v768_v59, 0.0  ;;  %v737_v4 = vadd.f32 %v1302_v40, %v666_v60  ;;  %v769_v5 = vadd.f32 %v1302_v40, %v698_v61 }
  0xf4   :  { %867 = vst.msk [vmem:[%s1692_s4 + $0x50] sm:$0xff] %vm856_vm3, %v802_v62  ;;  %899 = vst.msk [vmem:[%s1692_s4 + $0x150] sm:$0xff] %vm856_vm3, %v834_v63  ;;  %v803_v6 = vmax.f32 %v739_v0, 0.0  ;;  %v835_v7 = vmax.f32 %v771_v1, 0.0 }
  0xf5   :  { %865 = vst.msk [vmem:[%s1692_s4 + $0x40] sm:$0xff] %vm856_vm3, %v800_v2  ;;  %897 = vst.msk [vmem:[%s1692_s4 + $0x140] sm:$0xff] %vm856_vm3, %v832_v3  ;;  %v801_v8 = vmax.f32 %v737_v4, 0.0  ;;  %v833_v9 = vmax.f32 %v769_v5, 0.0  ;;  %v1045_v10 = vpop.f32.mrb[12].mxu0  ;;  %v1077_v11 = vpop.f32.mrb[12].mxu1 }
  0xf6   :  { %868 = vst.msk [vmem:[%s1692_s4 + $0x58] sm:$0xff] %vm856_vm3, %v803_v6  ;;  %900 = vst.msk [vmem:[%s1692_s4 + $0x158] sm:$0xff] %vm856_vm3, %v835_v7  ;;  %v671_v12 = vmul.f32 %v1045_v10, %v1297_v38  ;;  %v703_v13 = vmul.f32 %v1077_v11, %v1297_v38  ;;  %v443_v14 = vpop.f32.mrb[13].mxu0  ;;  %v571_v15 = vpop.f32.mrb[13].mxu1 }
  0xf7   :  { %866 = vst.msk [vmem:[%s1692_s4 + $0x48] sm:$0xff] %vm856_vm3, %v801_v8  ;;  %898 = vst.msk [vmem:[%s1692_s4 + $0x148] sm:$0xff] %vm856_vm3, %v833_v9  ;;  %v669_v16 = vmul.f32 %v1297_v38, %v443_v14  ;;  %v701_v17 = vmul.f32 %v1297_v38, %v571_v15  ;;  %v1046_v18 = vpop.f32.mrb[14].mxu0  ;;  %v1078_v19 = vpop.f32.mrb[14].mxu1 }
  0xf8   :  { %v742_v20 = vadd.f32 %v1302_v40, %v671_v12  ;;  %v774_v21 = vadd.f32 %v1302_v40, %v703_v13  ;;  %v672_v22 = vmul.f32 %v1046_v18, %v1297_v38  ;;  %v704_v23 = vmul.f32 %v1078_v19, %v1297_v38  ;;  %v446_v24 = vpop.f32.mrb[15].mxu0  ;;  %v574_v25 = vpop.f32.mrb[15].mxu1 }
  0xf9   :  { %v740_v26 = vadd.f32 %v1302_v40, %v669_v16  ;;  %v772_v27 = vadd.f32 %v1302_v40, %v701_v17  ;;  %v670_v28 = vmul.f32 %v1297_v38, %v446_v24  ;;  %v702_v29 = vmul.f32 %v1297_v38, %v574_v25 }
  0xfa   :  { %v806_v30 = vmax.f32 %v742_v20, 0.0  ;;  %v838_v31 = vmax.f32 %v774_v21, 0.0  ;;  %v743_v32 = vadd.f32 %v1302_v40, %v672_v22  ;;  %v775_v33 = vadd.f32 %v1302_v40, %v704_v23 }
  0xfb   :  { %v804_v34 = vmax.f32 %v740_v26, 0.0  ;;  %v836_v35 = vmax.f32 %v772_v27, 0.0  ;;  %v741_v36 = vadd.f32 %v1302_v40, %v670_v28  ;;  %v773_v37 = vadd.f32 %v1302_v40, %v702_v29 }
  0xfc   :  { %871 = vst.msk [vmem:[%s1692_s4 + $0x70] sm:$0xff] %vm856_vm3, %v806_v30  ;;  %903 = vst.msk [vmem:[%s1692_s4 + $0x170] sm:$0xff] %vm856_vm3, %v838_v31  ;;  %v807_v39 = vmax.f32 %v743_v32, 0.0  ;;  %v839_v41 = vmax.f32 %v775_v33, 0.0 }
  0xfd   :  { %869 = vst.msk [vmem:[%s1692_s4 + $0x60] sm:$0xff] %vm856_vm3, %v804_v34  ;;  %901 = vst.msk [vmem:[%s1692_s4 + $0x160] sm:$0xff] %vm856_vm3, %v836_v35  ;;  %v805_v42 = vmax.f32 %v741_v36, 0.0  ;;  %v837_v43 = vmax.f32 %v773_v37, 0.0  ;;  %v1049_v44 = vpop.f32.mrb[16].mxu0  ;;  %v1081_v45 = vpop.f32.mrb[16].mxu1 }
  0xfe   :  { %872 = vst.msk [vmem:[%s1692_s4 + $0x78] sm:$0xff] %vm856_vm3, %v807_v39  ;;  %904 = vst.msk [vmem:[%s1692_s4 + $0x178] sm:$0xff] %vm856_vm3, %v839_v41  ;;  %v675_v46 = vmul.f32 %v1049_v44, %v1297_v38  ;;  %v707_v47 = vmul.f32 %v1081_v45, %v1297_v38  ;;  %v459_v48 = vpop.f32.mrb[17].mxu0  ;;  %v587_v49 = vpop.f32.mrb[17].mxu1 }
  0xff   :  { %870 = vst.msk [vmem:[%s1692_s4 + $0x68] sm:$0xff] %vm856_vm3, %v805_v42  ;;  %902 = vst.msk [vmem:[%s1692_s4 + $0x168] sm:$0xff] %vm856_vm3, %v837_v43  ;;  %v673_v50 = vmul.f32 %v1297_v38, %v459_v48  ;;  %v705_v51 = vmul.f32 %v1297_v38, %v587_v49  ;;  %v1050_v52 = vpop.f32.mrb[18].mxu0  ;;  %v1082_v53 = vpop.f32.mrb[18].mxu1 }
 0x100   :  { %v746_v54 = vadd.f32 %v1302_v40, %v675_v46  ;;  %v778_v55 = vadd.f32 %v1302_v40, %v707_v47  ;;  %v676_v56 = vmul.f32 %v1050_v52, %v1297_v38  ;;  %v708_v57 = vmul.f32 %v1082_v53, %v1297_v38  ;;  %v462_v58 = vpop.f32.mrb[19].mxu0  ;;  %v590_v59 = vpop.f32.mrb[19].mxu1 }
 0x101   :  { %v744_v60 = vadd.f32 %v1302_v40, %v673_v50  ;;  %v776_v61 = vadd.f32 %v1302_v40, %v705_v51  ;;  %v674_v62 = vmul.f32 %v1297_v38, %v462_v58  ;;  %v706_v63 = vmul.f32 %v1297_v38, %v590_v59 }
 0x102   :  { %v810_v0 = vmax.f32 %v746_v54, 0.0  ;;  %v842_v1 = vmax.f32 %v778_v55, 0.0  ;;  %v747_v2 = vadd.f32 %v1302_v40, %v676_v56  ;;  %v779_v3 = vadd.f32 %v1302_v40, %v708_v57 }
 0x103   :  { %v808_v4 = vmax.f32 %v744_v60, 0.0  ;;  %v840_v5 = vmax.f32 %v776_v61, 0.0  ;;  %v745_v6 = vadd.f32 %v1302_v40, %v674_v62  ;;  %v777_v7 = vadd.f32 %v1302_v40, %v706_v63 }
 0x104   :  { %875 = vst.msk [vmem:[%s1692_s4 + $0x90] sm:$0xff] %vm856_vm3, %v810_v0  ;;  %907 = vst.msk [vmem:[%s1692_s4 + $0x190] sm:$0xff] %vm856_vm3, %v842_v1  ;;  %v811_v8 = vmax.f32 %v747_v2, 0.0  ;;  %v843_v9 = vmax.f32 %v779_v3, 0.0 }
 0x105   :  { %873 = vst.msk [vmem:[%s1692_s4 + $0x80] sm:$0xff] %vm856_vm3, %v808_v4  ;;  %905 = vst.msk [vmem:[%s1692_s4 + $0x180] sm:$0xff] %vm856_vm3, %v840_v5  ;;  %v809_v10 = vmax.f32 %v745_v6, 0.0  ;;  %v841_v11 = vmax.f32 %v777_v7, 0.0  ;;  %v1053_v12 = vpop.f32.mrb[20].mxu0  ;;  %v1085_v13 = vpop.f32.mrb[20].mxu1 }
 0x106   :  { %876 = vst.msk [vmem:[%s1692_s4 + $0x98] sm:$0xff] %vm856_vm3, %v811_v8  ;;  %908 = vst.msk [vmem:[%s1692_s4 + $0x198] sm:$0xff] %vm856_vm3, %v843_v9  ;;  %v679_v14 = vmul.f32 %v1053_v12, %v1297_v38  ;;  %v711_v15 = vmul.f32 %v1085_v13, %v1297_v38  ;;  %v475_v16 = vpop.f32.mrb[21].mxu0  ;;  %v603_v17 = vpop.f32.mrb[21].mxu1 }
 0x107   :  { %874 = vst.msk [vmem:[%s1692_s4 + $0x88] sm:$0xff] %vm856_vm3, %v809_v10  ;;  %906 = vst.msk [vmem:[%s1692_s4 + $0x188] sm:$0xff] %vm856_vm3, %v841_v11  ;;  %v677_v18 = vmul.f32 %v1297_v38, %v475_v16  ;;  %v709_v19 = vmul.f32 %v1297_v38, %v603_v17  ;;  %v1054_v20 = vpop.f32.mrb[22].mxu0  ;;  %v1086_v21 = vpop.f32.mrb[22].mxu1 }
 0x108   :  { %v750_v22 = vadd.f32 %v1302_v40, %v679_v14  ;;  %v782_v23 = vadd.f32 %v1302_v40, %v711_v15  ;;  %v680_v24 = vmul.f32 %v1054_v20, %v1297_v38  ;;  %v712_v25 = vmul.f32 %v1086_v21, %v1297_v38  ;;  %v478_v26 = vpop.f32.mrb[23].mxu0  ;;  %v606_v27 = vpop.f32.mrb[23].mxu1 }
 0x109   :  { %v748_v28 = vadd.f32 %v1302_v40, %v677_v18  ;;  %v780_v29 = vadd.f32 %v1302_v40, %v709_v19  ;;  %v678_v30 = vmul.f32 %v1297_v38, %v478_v26  ;;  %v710_v31 = vmul.f32 %v1297_v38, %v606_v27 }
 0x10a   :  { %v814_v32 = vmax.f32 %v750_v22, 0.0  ;;  %v846_v33 = vmax.f32 %v782_v23, 0.0  ;;  %v751_v34 = vadd.f32 %v1302_v40, %v680_v24  ;;  %v783_v35 = vadd.f32 %v1302_v40, %v712_v25 }
 0x10b   :  { %v812_v36 = vmax.f32 %v748_v28, 0.0  ;;  %v844_v37 = vmax.f32 %v780_v29, 0.0  ;;  %v749_v39 = vadd.f32 %v1302_v40, %v678_v30  ;;  %v781_v41 = vadd.f32 %v1302_v40, %v710_v31 }
 0x10c   :  { %879 = vst.msk [vmem:[%s1692_s4 + $0xb0] sm:$0xff] %vm856_vm3, %v814_v32  ;;  %911 = vst.msk [vmem:[%s1692_s4 + $0x1b0] sm:$0xff] %vm856_vm3, %v846_v33  ;;  %v815_v42 = vmax.f32 %v751_v34, 0.0  ;;  %v847_v43 = vmax.f32 %v783_v35, 0.0 }
 0x10d   :  { %877 = vst.msk [vmem:[%s1692_s4 + $0xa0] sm:$0xff] %vm856_vm3, %v812_v36  ;;  %909 = vst.msk [vmem:[%s1692_s4 + $0x1a0] sm:$0xff] %vm856_vm3, %v844_v37  ;;  %v813_v44 = vmax.f32 %v749_v39, 0.0  ;;  %v845_v45 = vmax.f32 %v781_v41, 0.0  ;;  %v1057_v46 = vpop.f32.mrb[24].mxu0  ;;  %v1089_v47 = vpop.f32.mrb[24].mxu1 }
 0x10e   :  { %880 = vst.msk [vmem:[%s1692_s4 + $0xb8] sm:$0xff] %vm856_vm3, %v815_v42  ;;  %912 = vst.msk [vmem:[%s1692_s4 + $0x1b8] sm:$0xff] %vm856_vm3, %v847_v43  ;;  %v683_v48 = vmul.f32 %v1057_v46, %v1297_v38  ;;  %v715_v49 = vmul.f32 %v1089_v47, %v1297_v38  ;;  %v491_v50 = vpop.f32.mrb[25].mxu0  ;;  %v619_v51 = vpop.f32.mrb[25].mxu1 }
 0x10f   :  { %878 = vst.msk [vmem:[%s1692_s4 + $0xa8] sm:$0xff] %vm856_vm3, %v813_v44  ;;  %910 = vst.msk [vmem:[%s1692_s4 + $0x1a8] sm:$0xff] %vm856_vm3, %v845_v45  ;;  %v681_v52 = vmul.f32 %v1297_v38, %v491_v50  ;;  %v713_v53 = vmul.f32 %v1297_v38, %v619_v51  ;;  %v1058_v54 = vpop.f32.mrb[26].mxu0  ;;  %v1090_v55 = vpop.f32.mrb[26].mxu1 }
 0x110   :  { %v754_v56 = vadd.f32 %v1302_v40, %v683_v48  ;;  %v786_v57 = vadd.f32 %v1302_v40, %v715_v49  ;;  %v684_v58 = vmul.f32 %v1058_v54, %v1297_v38  ;;  %v716_v59 = vmul.f32 %v1090_v55, %v1297_v38  ;;  %v494_v60 = vpop.f32.mrb[27].mxu0  ;;  %v622_v61 = vpop.f32.mrb[27].mxu1 }
 0x111   :  { %v752_v62 = vadd.f32 %v1302_v40, %v681_v52  ;;  %v784_v63 = vadd.f32 %v1302_v40, %v713_v53  ;;  %v682_v0 = vmul.f32 %v1297_v38, %v494_v60  ;;  %v714_v1 = vmul.f32 %v1297_v38, %v622_v61 }
 0x112   :  { %v818_v2 = vmax.f32 %v754_v56, 0.0  ;;  %v850_v3 = vmax.f32 %v786_v57, 0.0  ;;  %v755_v4 = vadd.f32 %v1302_v40, %v684_v58  ;;  %v787_v5 = vadd.f32 %v1302_v40, %v716_v59 }
 0x113   :  { %v816_v6 = vmax.f32 %v752_v62, 0.0  ;;  %v848_v7 = vmax.f32 %v784_v63, 0.0  ;;  %v753_v8 = vadd.f32 %v1302_v40, %v682_v0  ;;  %v785_v9 = vadd.f32 %v1302_v40, %v714_v1 }
 0x114   :  { %883 = vst.msk [vmem:[%s1692_s4 + $0xd0] sm:$0xff] %vm856_vm3, %v818_v2  ;;  %915 = vst.msk [vmem:[%s1692_s4 + $0x1d0] sm:$0xff] %vm856_vm3, %v850_v3  ;;  %v819_v10 = vmax.f32 %v755_v4, 0.0  ;;  %v851_v11 = vmax.f32 %v787_v5, 0.0 }
 0x115   :  { %881 = vst.msk [vmem:[%s1692_s4 + $0xc0] sm:$0xff] %vm856_vm3, %v816_v6  ;;  %913 = vst.msk [vmem:[%s1692_s4 + $0x1c0] sm:$0xff] %vm856_vm3, %v848_v7  ;;  %v817_v12 = vmax.f32 %v753_v8, 0.0  ;;  %v849_v13 = vmax.f32 %v785_v9, 0.0  ;;  %v1061_v14 = vpop.f32.mrb[28].mxu0  ;;  %v1093_v15 = vpop.f32.mrb[28].mxu1 }
 0x116   :  { %884 = vst.msk [vmem:[%s1692_s4 + $0xd8] sm:$0xff] %vm856_vm3, %v819_v10  ;;  %916 = vst.msk [vmem:[%s1692_s4 + $0x1d8] sm:$0xff] %vm856_vm3, %v851_v11  ;;  %v687_v16 = vmul.f32 %v1061_v14, %v1297_v38  ;;  %v719_v17 = vmul.f32 %v1093_v15, %v1297_v38  ;;  %v507_v18 = vpop.f32.mrb[29].mxu0  ;;  %v635_v19 = vpop.f32.mrb[29].mxu1 }
 0x117   :  { %882 = vst.msk [vmem:[%s1692_s4 + $0xc8] sm:$0xff] %vm856_vm3, %v817_v12  ;;  %914 = vst.msk [vmem:[%s1692_s4 + $0x1c8] sm:$0xff] %vm856_vm3, %v849_v13  ;;  %v685_v20 = vmul.f32 %v1297_v38, %v507_v18  ;;  %v717_v21 = vmul.f32 %v1297_v38, %v635_v19  ;;  %v1062_v22 = vpop.f32.mrb[30].mxu0  ;;  %v1094_v23 = vpop.f32.mrb[30].mxu1 }
 0x118   :  { %v758_v24 = vadd.f32 %v1302_v40, %v687_v16  ;;  %v790_v25 = vadd.f32 %v1302_v40, %v719_v17  ;;  %v688_v26 = vmul.f32 %v1062_v22, %v1297_v38  ;;  %v720_v27 = vmul.f32 %v1094_v23, %v1297_v38  ;;  %v510_v28 = vpop.f32.mrb[31].mxu0  ;;  %v638_v29 = vpop.f32.mrb[31].mxu1 }
 0x119   :  { %v756_v30 = vadd.f32 %v1302_v40, %v685_v20  ;;  %v788_v31 = vadd.f32 %v1302_v40, %v717_v21  ;;  %v686_v32 = vmul.f32 %v1297_v38, %v510_v28  ;;  %v718_v33 = vmul.f32 %v1297_v38, %v638_v29 }
 0x11a   :  { %v822_v34 = vmax.f32 %v758_v24, 0.0  ;;  %v854_v35 = vmax.f32 %v790_v25, 0.0  ;;  %v759_v36 = vadd.f32 %v1302_v40, %v688_v26  ;;  %v791_v37 = vadd.f32 %v1302_v40, %v720_v27 }
 0x11b   :  { %v820_v39 = vmax.f32 %v756_v30, 0.0  ;;  %v852_v41 = vmax.f32 %v788_v31, 0.0  ;;  %v757_v42 = vadd.f32 %v1302_v40, %v686_v32  ;;  %v789_v43 = vadd.f32 %v1302_v40, %v718_v33 }
 0x11c   :  { %887 = vst.msk [vmem:[%s1692_s4 + $0xf0] sm:$0xff] %vm856_vm3, %v822_v34  ;;  %919 = vst.msk [vmem:[%s1692_s4 + $0x1f0] sm:$0xff] %vm856_vm3, %v854_v35  ;;  %v823_v38 = vmax.f32 %v759_v36, 0.0  ;;  %v855_v44 = vmax.f32 %v791_v37, 0.0 }
 0x11d   :  { %885 = vst.msk [vmem:[%s1692_s4 + $0xe0] sm:$0xff] %vm856_vm3, %v820_v39  ;;  %917 = vst.msk [vmem:[%s1692_s4 + $0x1e0] sm:$0xff] %vm856_vm3, %v852_v41  ;;  %v821_v40 = vmax.f32 %v757_v42, 0.0  ;;  %v853_v45 = vmax.f32 %v789_v43, 0.0 }
 0x11e   :  { %888 = vst.msk [vmem:[%s1692_s4 + $0xf8] sm:$0xff] %vm856_vm3, %v823_v38  ;;  %920 = vst.msk [vmem:[%s1692_s4 + $0x1f8] sm:$0xff] %vm856_vm3, %v855_v44 }
 0x11f   :  { %886 = vst.msk [vmem:[%s1692_s4 + $0xe8] sm:$0xff] %vm856_vm3, %v821_v40  ;;  %918 = vst.msk [vmem:[%s1692_s4 + $0x1e8] sm:$0xff] %vm856_vm3, %v853_v45 }

// kernel: classifier_forward.26
= control target key start
LH: loop header
LB: loop body
LE: loop exit
PB: predicated region body
PF: predicated region fallthrough
CT: control target
= control target key end

     0   :  { %vm747_vm0 = vcmask 261120   ;;  %vm1215_vm1 = vcmask 523264   ;;  %s2203_s1 = inlined_call_operand.vmem [shape: bf16[800,64], index: 1, kind: input, shape index: {}]   ;;  %s2204_s0 = inlined_call_operand.vmem [shape: bf16[120,800], index: 0, kind: input, shape index: {}]   ;;  %s2205_s2 = inlined_call_operand.vmem [shape: f32[1,64], index: 2, kind: input, shape index: {}]   ;;  %s2206_s3 = inlined_call_operand.vmem [shape: f32[1,64], index: 3, kind: input, shape index: {}]   ;;  %s2207_s4 = inlined_call_operand.vmem [shape: f32[120,64], index: 4, kind: output, shape index: {}]  }
   0x1   :  { %v1589_v0 = vld [vmem:[%s2203_s1 + $0x40] sm:$0xff]   ;;  %v1593_v4 = vld [vmem:[%s2203_s1 + $0x48] sm:$0xff]   ;;  %v1597_v8 = vld [vmem:[%s2203_s1 + $0x50] sm:$0xff]  }
   0x2   :  { %v1590_v1 = vld [vmem:[%s2203_s1 + $0xc0] sm:$0xff]   ;;  %1351 = vmatprep.subr.bf16.mxu0 %v1589_v0  ;;  %v1594_v5 = vld [vmem:[%s2203_s1 + $0xc8] sm:$0xff]   ;;  %v1598_v9 = vld [vmem:[%s2203_s1 + $0xd0] sm:$0xff]  }
   0x3   :  { %v1591_v2 = vld [vmem:[%s2203_s1] sm:$0xff]   ;;  %1415 = vmatprep.subr.bf16.mxu1 %v1590_v1  ;;  %v1595_v6 = vld [vmem:[%s2203_s1 + $0x8] sm:$0xff]   ;;  %v1599_v10 = vld [vmem:[%s2203_s1 + $0x10] sm:$0xff]  }
   0x4   :  { %v1592_v3 = vld [vmem:[%s2203_s1 + $0x80] sm:$0xff]   ;;  %1352 = vmatpush3.bf16.msra.mxu0 %v1591_v2  ;;  %v1596_v7 = vld [vmem:[%s2203_s1 + $0x88] sm:$0xff]   ;;  %v1600_v11 = vld [vmem:[%s2203_s1 + $0x90] sm:$0xff]  }
   0x5   :  { %1416 = vmatpush3.bf16.msra.mxu1 %v1592_v3  ;;  %1353 = vmatprep.subr.bf16.mxu0 %v1593_v4  ;;  %v1601_v12 = vld [vmem:[%s2203_s1 + $0x58] sm:$0xff]   ;;  %v1605_v16 = vld [vmem:[%s2203_s1 + $0x60] sm:$0xff]   ;;  %v1609_v20 = vld [vmem:[%s2203_s1 + $0x68] sm:$0xff]  }
   0x6   :  { %1417 = vmatprep.subr.bf16.mxu1 %v1594_v5  ;;  %v1602_v13 = vld [vmem:[%s2203_s1 + $0xd8] sm:$0xff]   ;;  %v1606_v17 = vld [vmem:[%s2203_s1 + $0xe0] sm:$0xff]   ;;  %v1610_v21 = vld [vmem:[%s2203_s1 + $0xe8] sm:$0xff]  }
   0x7   :  { %v1603_v14 = vld [vmem:[%s2203_s1 + $0x18] sm:$0xff]   ;;  %v1607_v18 = vld [vmem:[%s2203_s1 + $0x20] sm:$0xff]   ;;  %v1611_v22 = vld [vmem:[%s2203_s1 + $0x28] sm:$0xff]  }
   0x8   :  { %1354 = vmatpush3.bf16.msra.mxu0 %v1595_v6  ;;  %v1604_v15 = vld [vmem:[%s2203_s1 + $0x98] sm:$0xff]   ;;  %v1608_v19 = vld [vmem:[%s2203_s1 + $0xa0] sm:$0xff]   ;;  %v1612_v23 = vld [vmem:[%s2203_s1 + $0xa8] sm:$0xff]  }
   0x9   :  { %1418 = vmatpush3.bf16.msra.mxu1 %v1596_v7  ;;  %1355 = vmatprep.subr.bf16.mxu0 %v1597_v8  ;;  %v1613_v24 = vld [vmem:[%s2203_s1 + $0x70] sm:$0xff]   ;;  %v1617_v28 = vld [vmem:[%s2203_s1 + $0x78] sm:$0xff]   ;;  %v1623_v33 = vld [vmem:[%s2204_s0 + $0x4] ss:$28 sps:$4 sm:$0xff]  }
   0xa   :  { %1419 = vmatprep.subr.bf16.mxu1 %v1598_v9  ;;  %v1614_v25 = vld [vmem:[%s2203_s1 + $0xf0] sm:$0xff]   ;;  %v1618_v29 = vld [vmem:[%s2203_s1 + $0xf8] sm:$0xff]   ;;  %v1624_v34 = vld [vmem:[%s2204_s0 + $0x8] ss:$28 sps:$4 sm:$0xff]   ;;  %804 = vmatprep.mubr.bf16.mxu0 %v1623_v33 }
   0xb   :  { %v1615_v26 = vld [vmem:[%s2203_s1 + $0x30] sm:$0xff]   ;;  %v1619_v30 = vld [vmem:[%s2203_s1 + $0x38] sm:$0xff]   ;;  %v1626_v35 = vld [vmem:[%s2204_s0 + $0xc] ss:$28 sps:$4 sm:$0xff]  }
   0xc   :  { %1356 = vmatpush3.bf16.msra.mxu0 %v1599_v10  ;;  %v1616_v27 = vld [vmem:[%s2203_s1 + $0xb0] sm:$0xff]   ;;  %v1620_v31 = vld [vmem:[%s2203_s1 + $0xb8] sm:$0xff]   ;;  %v1627_v36 = vld [vmem:[%s2203_s1 + $0x140] sm:$0xff]   ;;  %900 = vmatprep.mubr.bf16.mxu1 %v1626_v35 }
   0xd   :  { %1420 = vmatpush3.bf16.msra.mxu1 %v1600_v11  ;;  %1357 = vmatprep.subr.bf16.mxu0 %v1601_v12  ;;  %v1621_v32 = vld [vmem:[%s2204_s0] ss:$28 sps:$4 sm:$0xff]   ;;  %v1633_v40 = vld [vmem:[%s2204_s0 + $0x38] ss:$28 sps:$4 sm:$0xff]   ;;  %v1635_v42 = vld [vmem:[%s2203_s1 + $0x148] sm:$0xff]  }
   0xe   :  { %1421 = vmatprep.subr.bf16.mxu1 %v1602_v13  ;;  %v1628_v37 = vld [vmem:[%s2203_s1 + $0x100] sm:$0xff]   ;;  %v1629_v38 = vld [vmem:[%s2204_s0 + $0x3c] ss:$28 sps:$4 sm:$0xff]   ;;  %v1636_v43 = vld [vmem:[%s2203_s1 + $0x108] sm:$0xff]  }
   0xf   :  { %v1631_v39 = vld [vmem:[%s2204_s0 + $0x44] ss:$28 sps:$4 sm:$0xff]   ;;  %v1637_v44 = vld [vmem:[%s2204_s0 + $0x74] ss:$28 sps:$4 sm:$0xff]   ;;  %v1639_v45 = vld [vmem:[%s2204_s0 + $0x7c] ss:$28 sps:$4 sm:$0xff]  }
  0x10   :  { %1358 = vmatpush3.bf16.msra.mxu0 %v1603_v14  ;;  %v1634_v41 = vld [vmem:[%s2204_s0 + $0x40] ss:$28 sps:$4 sm:$0xff]   ;;  %v1643_v46 = vld [vmem:[%s2203_s1 + $0x150] sm:$0xff]   ;;  %v1645_v50 = vld [vmem:[%s2204_s0 + $0xac] ss:$28 sps:$4 sm:$0xff]  }
  0x11   :  { %1422 = vmatpush3.bf16.msra.mxu1 %v1604_v15  ;;  %1359 = vmatprep.subr.bf16.mxu0 %v1605_v16  ;;  %v1644_v47 = vld [vmem:[%s2203_s1 + $0x110] sm:$0xff]   ;;  %v1651_v52 = vld [vmem:[%s2203_s1 + $0x158] sm:$0xff]   ;;  %v1659_v54 = vld [vmem:[%s2203_s1 + $0x160] sm:$0xff]  }
  0x12   :  { %1423 = vmatprep.subr.bf16.mxu1 %v1606_v17  ;;  %v1641_v48 = vld [vmem:[%s2204_s0 + $0x70] ss:$28 sps:$4 sm:$0xff]   ;;  %v1642_v49 = vld [vmem:[%s2204_s0 + $0x78] ss:$28 sps:$4 sm:$0xff]   ;;  %v1660_v55 = vld [vmem:[%s2203_s1 + $0x120] sm:$0xff]  }
  0x13   :  { %v1647_v51 = vld [vmem:[%s2204_s0 + $0xb4] ss:$28 sps:$4 sm:$0xff]   ;;  %v1652_v53 = vld [vmem:[%s2203_s1 + $0x118] sm:$0xff]   ;;  %v1649_v56 = vld [vmem:[%s2204_s0 + $0xa8] ss:$28 sps:$4 sm:$0xff]  }
  0x14   :  { %1360 = vmatpush3.bf16.msra.mxu0 %v1607_v18  ;;  %v1650_v57 = vld [vmem:[%s2204_s0 + $0xb0] ss:$28 sps:$4 sm:$0xff]   ;;  %v1653_v58 = vld [vmem:[%s2204_s0 + $0xe4] ss:$28 sps:$4 sm:$0xff]   ;;  %v1661_v1 = vld [vmem:[%s2204_s0 + $0x11c] ss:$28 sps:$4 sm:$0xff]  }
  0x15   :  { %1424 = vmatpush3.bf16.msra.mxu1 %v1608_v19  ;;  %1361 = vmatprep.subr.bf16.mxu0 %v1609_v20  ;;  %v1655_v59 = vld [vmem:[%s2204_s0 + $0xec] ss:$28 sps:$4 sm:$0xff]   ;;  %v1657_v62 = vld [vmem:[%s2204_s0 + $0xe0] ss:$28 sps:$4 sm:$0xff]   ;;  %v1675_v0 = vld [vmem:[%s2203_s1 + $0x170] sm:$0xff]  }
  0x16   :  { %1425 = vmatprep.subr.bf16.mxu1 %v1610_v21  ;;  %v1667_v60 = vld [vmem:[%s2203_s1 + $0x168] sm:$0xff]   ;;  %v1676_v2 = vld [vmem:[%s2203_s1 + $0x130] sm:$0xff]   ;;  %v1663_v3 = vld [vmem:[%s2204_s0 + $0x124] ss:$28 sps:$4 sm:$0xff]  }
  0x17   :  { %v1668_v61 = vld [vmem:[%s2203_s1 + $0x128] sm:$0xff]   ;;  %v1681_v4 = vld [vmem:[%s2203_s1 + $0x178] sm:$0xff]   ;;  %v1689_v6 = vld [vmem:[%s2203_s1 + $0x180] sm:$0xff]  }
  0x18   :  { %1362 = vmatpush3.bf16.msra.mxu0 %v1611_v22  ;;  %v1658_v63 = vld [vmem:[%s2204_s0 + $0xe8] ss:$28 sps:$4 sm:$0xff]   ;;  %v1682_v5 = vld [vmem:[%s2203_s1 + $0x138] sm:$0xff]   ;;  %v1669_v9 = vld [vmem:[%s2204_s0 + $0x154] ss:$28 sps:$4 sm:$0xff]  }
  0x19   :  { %1426 = vmatpush3.bf16.msra.mxu1 %v1612_v23  ;;  %1363 = vmatprep.subr.bf16.mxu0 %v1613_v24  ;;  %v1665_v7 = vld [vmem:[%s2204_s0 + $0x118] ss:$28 sps:$4 sm:$0xff]   ;;  %v1666_v8 = vld [vmem:[%s2204_s0 + $0x120] ss:$28 sps:$4 sm:$0xff]   ;;  %v74_v11 = vld [vmem:[%s2204_s0 + $0x188] sm:$0xff] }
  0x1a   :  { %1427 = vmatprep.subr.bf16.mxu1 %v1614_v25  ;;  %v1671_v10 = vld [vmem:[%s2204_s0 + $0x15c] ss:$28 sps:$4 sm:$0xff]   ;;  %v75_v12 = vld [vmem:[%s2204_s0 + $0x190] sm:$0xff]  ;;  %v1285_v15 = vcombine.high %v74_v11, %v74_v11  ;;  %v1284_v17 = vcombine.low %v74_v11, %v74_v11  ;;  %v1688_v20 = vld [vmem:[%s2204_s0 + $0x164] ss:$28 sps:$4 sm:$0xff]  }
  0x1b   :  { %v1673_v13 = vld [vmem:[%s2204_s0 + $0x150] ss:$28 sps:$4 sm:$0xff]   ;;  %v1674_v14 = vld [vmem:[%s2204_s0 + $0x158] ss:$28 sps:$4 sm:$0xff]   ;;  %v1287_v16 = vcombine.high %v75_v12, %v75_v12  ;;  %v1286_v18 = vcombine.low %v75_v12, %v75_v12  ;;  %v1686_v23 = vld [vmem:[%s2204_s0 + $0x160] ss:$28 sps:$4 sm:$0xff]  }
  0x1c   :  { %1364 = vmatpush3.bf16.msra.mxu0 %v1615_v26  ;;  %v1685_v19 = vld [vmem:[%s2204_s0 + $0x14] ss:$28 sps:$4 sm:$0xff]   ;;  %v76_v21 = vld [vmem:[%s2204_s0 + $0x198] sm:$0xff]  ;;  %v1690_v24 = vld [vmem:[%s2204_s0 + $0x4c] ss:$28 sps:$4 sm:$0xff]  }
  0x1d   :  { %1428 = vmatpush3.bf16.msra.mxu1 %v1616_v27  ;;  %1365 = vmatprep.subr.bf16.mxu0 %v1617_v28  ;;  %v1683_v22 = vld [vmem:[%s2204_s0 + $0x10] ss:$28 sps:$4 sm:$0xff]   ;;  %v1289_v25 = vcombine.high %v76_v21, %v76_v21  ;;  %v1693_v27 = vld [vmem:[%s2204_s0 + $0x48] ss:$28 sps:$4 sm:$0xff]   ;;  %v1288_v28 = vcombine.low %v76_v21, %v76_v21  ;;  %v1701_v33 = vld [vmem:[%s2204_s0 + $0xbc] ss:$28 sps:$4 sm:$0xff]  }
  0x1e   :  { %1429 = vmatprep.subr.bf16.mxu1 %v1618_v29  ;;  %v1695_v26 = vld [vmem:[%s2203_s1 + $0x188] sm:$0xff]   ;;  %v1696_v29 = vld [vmem:[%s2204_s0 + $0x84] ss:$28 sps:$4 sm:$0xff]   ;;  %v1704_v35 = vld [vmem:[%s2204_s0 + $0xb8] ss:$28 sps:$4 sm:$0xff]  }
  0x20   :  { %1366 = vmatpush3.bf16.msra.mxu0 %v1619_v30  ;;  %v1698_v30 = vld [vmem:[%s2204_s0 + $0x18] ss:$28 sps:$4 sm:$0xff]  }
  0x21   :  { %1430 = vmatpush3.bf16.msra.mxu1 %v1620_v31  ;;  %1479 = vmatprep.subr.bf16.mxu0 %v1627_v36  ;;  %v1699_v31 = vld [vmem:[%s2204_s0 + $0x80] ss:$28 sps:$4 sm:$0xff]  }
  0x22   :  { %1573 = vmatprep.subr.bf16.mxu1 %v1627_v36  ;;  %v1705_v36 = vld [vmem:[%s2204_s0 + $0xc0] ss:$28 sps:$4 sm:$0xff]  }
  0x23   :  { %805 = vmatmul.mubr.bf16.vlgmr.msra.gmra.mrb[0].mxu0 %v1621_v32  ;;  %v1700_v32 = vld [vmem:[%s2204_s0 + $0x50] ss:$28 sps:$4 sm:$0xff]  }
  0x24   :  { %901 = vmatmul.mubr.bf16.vlgmr.msra.gmra.mrb[0].mxu1 %v1624_v34  ;;  %1480 = vmatpush3.bf16.msra.mxu0 %v1628_v37  ;;  %v1703_v34 = vld [vmem:[%s2204_s0 + $0x88] ss:$28 sps:$4 sm:$0xff]  }
  0x25   :  { %1581 = vmatpush3.bf16.msra.mxu1 %v1628_v37  ;;  %812 = vmatprep.mubr.bf16.mxu0 %v1629_v38  ;;  %v1706_v37 = vld [vmem:[%s2204_s0 + $0xf4] ss:$28 sps:$4 sm:$0xff]  }
  0x26   :  { %908 = vmatprep.mubr.bf16.mxu1 %v1631_v39  ;;  %1481 = vmatprep.subr.bf16.mxu0 %v1635_v42  ;;  %v1708_v38 = vld [vmem:[%s2204_s0 + $0xf8] ss:$28 sps:$4 sm:$0xff]   ;;  %v1709_v39 = vld [vmem:[%s2204_s0 + $0xf0] ss:$28 sps:$4 sm:$0xff]  }
  0x27   :  { %1574 = vmatprep.subr.bf16.mxu1 %v1635_v42  ;;  %v1713_v42 = vld [vmem:[%s2204_s0 + $0x168] ss:$28 sps:$4 sm:$0xff]  }
  0x28   :  { %1482 = vmatpush3.bf16.msra.mxu0 %v1636_v43 }
  0x29   :  { %1582 = vmatpush3.bf16.msra.mxu1 %v1636_v43  ;;  %1483 = vmatprep.subr.bf16.mxu0 %v1643_v46  ;;  %v1714_v43 = vld [vmem:[%s2204_s0 + $0x128] ss:$28 sps:$4 sm:$0xff]  }
  0x2a   :  { %1575 = vmatprep.subr.bf16.mxu1 %v1643_v46 }
  0x2b   :  { %813 = vmatmul.mubr.bf16.gmra.mrb[4].mxu0 %v1633_v40  ;;  %v1710_v40 = vld [vmem:[%s2204_s0 + $0x130] ss:$28 sps:$4 sm:$0xff]  }
  0x2c   :  { %909 = vmatmul.mubr.bf16.gmra.mrb[4].mxu1 %v1634_v41  ;;  %820 = vmatprep.mubr.bf16.mxu0 %v1637_v44  ;;  %v1711_v41 = vld [vmem:[%s2204_s0 + $0x12c] ss:$28 sps:$4 sm:$0xff]   ;;  %v1715_v44 = vld [vmem:[%s2204_s0 + $0x1a0] ss:$0 sps:$4 sm:$0xff]  }
  0x2d   :  { %916 = vmatprep.mubr.bf16.mxu1 %v1639_v45  ;;  %1484 = vmatpush3.bf16.msra.mxu0 %v1644_v47 }
  0x2e   :  { %1583 = vmatpush3.bf16.msra.mxu1 %v1644_v47  ;;  %1485 = vmatprep.subr.bf16.mxu0 %v1651_v52 }
  0x2f   :  { %1576 = vmatprep.subr.bf16.mxu1 %v1651_v52 }
  0x31   :  { %1486 = vmatpush3.bf16.msra.mxu0 %v1652_v53 }
  0x32   :  { %1584 = vmatpush3.bf16.msra.mxu1 %v1652_v53  ;;  %1487 = vmatprep.subr.bf16.mxu0 %v1659_v54 }
  0x33   :  { %821 = vmatmul.mubr.bf16.gmra.mrb[8].mxu0 %v1641_v48  ;;  %1577 = vmatprep.subr.bf16.mxu1 %v1659_v54 }
  0x34   :  { %917 = vmatmul.mubr.bf16.gmra.mrb[8].mxu1 %v1642_v49  ;;  %828 = vmatprep.mubr.bf16.mxu0 %v1645_v50 }
  0x35   :  { %924 = vmatprep.mubr.bf16.mxu1 %v1647_v51  ;;  %1488 = vmatpush3.bf16.msra.mxu0 %v1660_v55 }
  0x36   :  { %1585 = vmatpush3.bf16.msra.mxu1 %v1660_v55  ;;  %1489 = vmatprep.subr.bf16.mxu0 %v1667_v60 }
  0x37   :  { %1578 = vmatprep.subr.bf16.mxu1 %v1667_v60 }
  0x39   :  { %1490 = vmatpush3.bf16.msra.mxu0 %v1668_v61 }
  0x3a   :  { %1586 = vmatpush3.bf16.msra.mxu1 %v1668_v61  ;;  %1491 = vmatprep.subr.bf16.mxu0 %v1675_v0 }
  0x3b   :  { %829 = vmatmul.mubr.bf16.gmra.mrb[12].mxu0 %v1649_v56  ;;  %1579 = vmatprep.subr.bf16.mxu1 %v1675_v0 }
  0x3c   :  { %925 = vmatmul.mubr.bf16.gmra.mrb[12].mxu1 %v1650_v57  ;;  %836 = vmatprep.mubr.bf16.mxu0 %v1653_v58 }
  0x3d   :  { %932 = vmatprep.mubr.bf16.mxu1 %v1655_v59  ;;  %1492 = vmatpush3.bf16.msra.mxu0 %v1676_v2 }
  0x3e   :  { %1587 = vmatpush3.bf16.msra.mxu1 %v1676_v2  ;;  %1493 = vmatprep.subr.bf16.mxu0 %v1681_v4 }
  0x3f   :  { %1580 = vmatprep.subr.bf16.mxu1 %v1681_v4 }
  0x41   :  { %1494 = vmatpush3.bf16.msra.mxu0 %v1682_v5 }
  0x42   :  { %1588 = vmatpush3.bf16.msra.mxu1 %v1682_v5 }
  0x43   :  { %837 = vmatmul.mubr.bf16.gmra.mrb[16].mxu0 %v1657_v62  ;;  %1553 = vmatprep.subr.bf16.mxu1 %v1689_v6 }
  0x44   :  { %933 = vmatmul.mubr.bf16.gmra.mrb[16].mxu1 %v1658_v63  ;;  %844 = vmatprep.mubr.bf16.mxu0 %v1661_v1 }
  0x45   :  { %940 = vmatprep.mubr.bf16.mxu1 %v1663_v3 }
  0x4b   :  { %845 = vmatmul.mubr.bf16.gmra.mrb[20].mxu0 %v1665_v7 }
  0x4c   :  { %941 = vmatmul.mubr.bf16.gmra.mrb[20].mxu1 %v1666_v8  ;;  %852 = vmatprep.mubr.bf16.mxu0 %v1669_v9 }
  0x4d   :  { %948 = vmatprep.mubr.bf16.mxu1 %v1671_v10 }
  0x53   :  { %853 = vmatmul.mubr.bf16.gmra.mrb[24].mxu0 %v1673_v13 }
  0x54   :  { %949 = vmatmul.mubr.bf16.gmra.mrb[24].mxu1 %v1674_v14  ;;  %860 = vmatprep.mubr.bf16.mxu0 %v1285_v15 }
  0x55   :  { %956 = vmatprep.mubr.bf16.mxu1 %v1287_v16 }
  0x5b   :  { %861 = vmatmul.mubr.bf16.gmra.mrb[28].mxu0 %v1284_v17 }
  0x5c   :  { %957 = vmatmul.mubr.bf16.gmra.mrb[28].mxu1 %v1286_v18  ;;  %996 = vmatprep.mubr.bf16.mxu0 %v1685_v19 }
  0x5d   :  { %1044 = vmatprep.mubr.bf16.mxu1 %v1688_v20 }
  0x63   :  { %997 = vmatmul.mubr.bf16.vlgmr.msra.gmra.mrb[32].mxu0 %v1683_v22 }
  0x64   :  { %1045 = vmatmul.mubr.bf16.vlgmr.msra.gmra.mrb[32].mxu1 %v1686_v23  ;;  %1004 = vmatprep.mubr.bf16.mxu0 %v1690_v24 }
  0x65   :  { %1554 = vmatpush3.bf16.msra.mxu1 %v1689_v6  ;;  %1052 = vmatprep.mubr.bf16.mxu1 %v1289_v25 }
  0x66   :  { %1555 = vmatprep.subr.bf16.mxu1 %v1695_v26 }
  0x69   :  { %1556 = vmatpush3.bf16.msra.mxu1 %v1695_v26 }
  0x6b   :  { %1005 = vmatmul.mubr.bf16.gmra.mrb[36].mxu0 %v1693_v27 }
  0x6c   :  { %1053 = vmatmul.mubr.bf16.gmra.mrb[36].mxu1 %v1288_v28  ;;  %1012 = vmatprep.mubr.bf16.mxu0 %v1696_v29 }
  0x6d   :  { %1557 = vmatprep.mubr.msk.bf16.mxu1 %vm747_vm0, %v1698_v30 }
  0x73   :  { %1013 = vmatmul.mubr.bf16.gmra.mrb[40].mxu0 %v1699_v31 }
  0x74   :  { %1558 = vmatmul.mubr.msk.bf16.vlgmr.msra.gmra.mrb[40].mxu1 %vm747_vm0, %v1700_v32  ;;  %1020 = vmatprep.mubr.bf16.mxu0 %v1701_v33 }
  0x75   :  { %1561 = vmatprep.mubr.msk.bf16.mxu1 %vm747_vm0, %v1703_v34 }
  0x7b   :  { %1021 = vmatmul.mubr.bf16.gmra.mrb[44].mxu0 %v1704_v35 }
  0x7c   :  { %1562 = vmatmul.mubr.msk.bf16.gmra.mrb[44].mxu1 %vm747_vm0, %v1705_v36  ;;  %1028 = vmatprep.mubr.bf16.mxu0 %v1706_v37 }
  0x7d   :  { %1565 = vmatprep.mubr.msk.bf16.mxu1 %vm747_vm0, %v1708_v38 }
  0x83   :  { %1029 = vmatmul.mubr.bf16.gmra.mrb[48].mxu0 %v1709_v39 }
  0x84   :  { %1566 = vmatmul.mubr.msk.bf16.gmra.mrb[48].mxu1 %vm747_vm0, %v1710_v40  ;;  %1036 = vmatprep.mubr.bf16.mxu0 %v1711_v41 }
  0x85   :  { %1569 = vmatprep.mubr.msk.bf16.mxu1 %vm747_vm0, %v1713_v42 }
  0x8b   :  { %1037 = vmatmul.mubr.bf16.gmra.mrb[52].mxu0 %v1714_v43 }
  0x8c   :  { %1570 = vmatmul.mubr.msk.bf16.gmra.mrb[52].mxu1 %vm747_vm0, %v1715_v44 }
  0xf6   :  { %v1367_v45 = vpop.f32.mrb[0].mxu0 }
  0xf7   :  { %v1431_v46 = vpop.f32.mrb[0].mxu1  ;;  %v1368_v47 = vpop.f32.mrb[1].mxu0 }
  0xf8   :  { %v1369_v48 = vadd.f32 %v1368_v47, %v1367_v45  ;;  %v1432_v49 = vpop.f32.mrb[1].mxu1  ;;  %v1370_v50 = vpop.f32.mrb[2].mxu0 }
  0xf9   :  { %v1433_v51 = vadd.f32 %v1432_v49, %v1431_v46  ;;  %v1434_v52 = vpop.f32.mrb[2].mxu1  ;;  %v1371_v53 = vpop.f32.mrb[3].mxu0 }
  0xfa   :  { %v1372_v54 = vadd.f32 %v1371_v53, %v1370_v50  ;;  %v1435_v55 = vpop.f32.mrb[3].mxu1 }
  0xfb   :  { %v2058_v56 = vadd.f32 %v1433_v51, %v1369_v48  ;;  %v1436_v57 = vadd.f32 %v1435_v55, %v1434_v52 }
  0xfd   :  { %v2060_v58 = vadd.f32 %v1436_v57, %v1372_v54 }
  0xfe   :  { %v1373_v59 = vpop.f32.mrb[4].mxu0 }
  0xff   :  { %v1437_v60 = vpop.f32.mrb[4].mxu1  ;;  %v1374_v61 = vpop.f32.mrb[5].mxu0 }
 0x100   :  { %v1375_v62 = vadd.f32 %v1374_v61, %v1373_v59  ;;  %v1438_v63 = vpop.f32.mrb[5].mxu1  ;;  %v1376_v0 = vpop.f32.mrb[6].mxu0 }
 0x101   :  { %v1439_v1 = vadd.f32 %v1438_v63, %v1437_v60  ;;  %v1440_v2 = vpop.f32.mrb[6].mxu1  ;;  %v1377_v3 = vpop.f32.mrb[7].mxu0 }
 0x102   :  { %v1378_v4 = vadd.f32 %v1377_v3, %v1376_v0  ;;  %v1441_v5 = vpop.f32.mrb[7].mxu1 }
 0x103   :  { %v2062_v6 = vadd.f32 %v1439_v1, %v1375_v62  ;;  %v1442_v7 = vadd.f32 %v1441_v5, %v1440_v2 }
 0x105   :  { %v2064_v8 = vadd.f32 %v1442_v7, %v1378_v4 }
 0x106   :  { %v1379_v9 = vpop.f32.mrb[8].mxu0 }
 0x107   :  { %v1443_v10 = vpop.f32.mrb[8].mxu1  ;;  %v1380_v11 = vpop.f32.mrb[9].mxu0 }
 0x108   :  { %v1381_v12 = vadd.f32 %v1380_v11, %v1379_v9  ;;  %v1444_v13 = vpop.f32.mrb[9].mxu1  ;;  %v1382_v14 = vpop.f32.mrb[10].mxu0 }
 0x109   :  { %v1445_v15 = vadd.f32 %v1444_v13, %v1443_v10  ;;  %v1446_v16 = vpop.f32.mrb[10].mxu1  ;;  %v1383_v17 = vpop.f32.mrb[11].mxu0 }
 0x10a   :  { %v1384_v18 = vadd.f32 %v1383_v17, %v1382_v14  ;;  %v1447_v19 = vpop.f32.mrb[11].mxu1 }
 0x10b   :  { %v2066_v20 = vadd.f32 %v1445_v15, %v1381_v12  ;;  %v1448_v21 = vadd.f32 %v1447_v19, %v1446_v16 }
 0x10d   :  { %v2068_v22 = vadd.f32 %v1448_v21, %v1384_v18 }
 0x10e   :  { %v1385_v23 = vpop.f32.mrb[12].mxu0 }
 0x10f   :  { %v1449_v24 = vpop.f32.mrb[12].mxu1  ;;  %v1386_v25 = vpop.f32.mrb[13].mxu0 }
 0x110   :  { %v1387_v26 = vadd.f32 %v1386_v25, %v1385_v23  ;;  %v1450_v27 = vpop.f32.mrb[13].mxu1  ;;  %v1388_v28 = vpop.f32.mrb[14].mxu0 }
 0x111   :  { %v1451_v29 = vadd.f32 %v1450_v27, %v1449_v24  ;;  %v1452_v30 = vpop.f32.mrb[14].mxu1  ;;  %v1389_v31 = vpop.f32.mrb[15].mxu0 }
 0x112   :  { %v1390_v32 = vadd.f32 %v1389_v31, %v1388_v28  ;;  %v1453_v33 = vpop.f32.mrb[15].mxu1 }
 0x113   :  { %v2070_v34 = vadd.f32 %v1451_v29, %v1387_v26  ;;  %v1454_v35 = vadd.f32 %v1453_v33, %v1452_v30 }
 0x115   :  { %v2072_v36 = vadd.f32 %v1454_v35, %v1390_v32 }
 0x116   :  { %v1391_v37 = vpop.f32.mrb[16].mxu0 }
 0x117   :  { %v1455_v38 = vpop.f32.mrb[16].mxu1  ;;  %v1392_v39 = vpop.f32.mrb[17].mxu0 }
 0x118   :  { %v1393_v40 = vadd.f32 %v1392_v39, %v1391_v37  ;;  %v1456_v41 = vpop.f32.mrb[17].mxu1  ;;  %v1394_v42 = vpop.f32.mrb[18].mxu0 }
 0x119   :  { %v1457_v43 = vadd.f32 %v1456_v41, %v1455_v38  ;;  %v1458_v44 = vpop.f32.mrb[18].mxu1  ;;  %v1395_v45 = vpop.f32.mrb[19].mxu0 }
 0x11a   :  { %v1396_v46 = vadd.f32 %v1395_v45, %v1394_v42  ;;  %v1459_v47 = vpop.f32.mrb[19].mxu1 }
 0x11b   :  { %v2074_v48 = vadd.f32 %v1457_v43, %v1393_v40  ;;  %v1460_v49 = vadd.f32 %v1459_v47, %v1458_v44 }
 0x11d   :  { %v2076_v50 = vadd.f32 %v1460_v49, %v1396_v46 }
 0x11e   :  { %v1397_v51 = vpop.f32.mrb[20].mxu0 }
 0x11f   :  { %v1461_v52 = vpop.f32.mrb[20].mxu1  ;;  %v1398_v53 = vpop.f32.mrb[21].mxu0 }
 0x120   :  { %v1399_v54 = vadd.f32 %v1398_v53, %v1397_v51  ;;  %v1462_v55 = vpop.f32.mrb[21].mxu1  ;;  %v1400_v57 = vpop.f32.mrb[22].mxu0 }
 0x121   :  { %v1463_v59 = vadd.f32 %v1462_v55, %v1461_v52  ;;  %v1464_v60 = vpop.f32.mrb[22].mxu1  ;;  %v1401_v61 = vpop.f32.mrb[23].mxu0 }
 0x122   :  { %v1402_v62 = vadd.f32 %v1401_v61, %v1400_v57  ;;  %v1465_v63 = vpop.f32.mrb[23].mxu1 }
 0x123   :  { %v2078_v0 = vadd.f32 %v1463_v59, %v1399_v54  ;;  %v1466_v1 = vadd.f32 %v1465_v63, %v1464_v60 }
 0x125   :  { %v2080_v2 = vadd.f32 %v1466_v1, %v1402_v62 }
 0x126   :  { %v1403_v3 = vpop.f32.mrb[24].mxu0 }
 0x127   :  { %v1467_v4 = vpop.f32.mrb[24].mxu1  ;;  %v1404_v5 = vpop.f32.mrb[25].mxu0 }
 0x128   :  { %v1405_v7 = vadd.f32 %v1404_v5, %v1403_v3  ;;  %v1468_v9 = vpop.f32.mrb[25].mxu1  ;;  %v1406_v10 = vpop.f32.mrb[26].mxu0 }
 0x129   :  { %v1469_v11 = vadd.f32 %v1468_v9, %v1467_v4  ;;  %v1470_v12 = vpop.f32.mrb[26].mxu1  ;;  %v1407_v13 = vpop.f32.mrb[27].mxu0 }
 0x12a   :  { %v1408_v14 = vadd.f32 %v1407_v13, %v1406_v10  ;;  %v1471_v15 = vpop.f32.mrb[27].mxu1 }
 0x12b   :  { %v951_v16 = vadd.f32 %v1469_v11, %v1405_v7  ;;  %v1472_v17 = vadd.f32 %v1471_v15, %v1470_v12  ;;  %v2095_v7 = vld [vmem:[%s2205_s2] ss:$0 sm:$0xff] }
 0x12d   :  { %v954_v18 = vadd.f32 %v1472_v17, %v1408_v14 }
 0x12e   :  { %v1409_v19 = vpop.f32.mrb[28].mxu0 }
 0x12f   :  { %v1473_v21 = vpop.f32.mrb[28].mxu1  ;;  %v1410_v23 = vpop.f32.mrb[29].mxu0 }
 0x130   :  { %v1411_v24 = vadd.f32 %v1410_v23, %v1409_v19  ;;  %v1474_v25 = vpop.f32.mrb[29].mxu1  ;;  %v1412_v26 = vpop.f32.mrb[30].mxu0 }
 0x131   :  { %v1475_v27 = vadd.f32 %v1474_v25, %v1473_v21  ;;  %v1413_v28 = vpop.f32.mrb[31].mxu0  ;;  %v1476_v29 = vpop.f32.mrb[30].mxu1 }
 0x132   :  { %v1477_v30 = vpop.f32.mrb[31].mxu1 }
 0x133   :  { %v959_v31 = vadd.f32 %v1475_v27, %v1411_v24 }
 0x136   :  { %v1495_v32 = vpop.f32.mrb[32].mxu0 }
 0x137   :  { %v1531_v33 = vpop.f32.mrb[32].mxu1  ;;  %v1496_v35 = vpop.f32.mrb[33].mxu0 }
 0x138   :  { %v1497_v37 = vadd.f32 %v1496_v35, %v1495_v32  ;;  %v1532_v38 = vpop.f32.mrb[33].mxu1  ;;  %v1498_v39 = vpop.f32.mrb[34].mxu0 }
 0x139   :  { %v1533_v40 = vadd.f32 %v1532_v38, %v1531_v33  ;;  %v1534_v41 = vpop.f32.mrb[34].mxu1  ;;  %v1499_v42 = vpop.f32.mrb[35].mxu0 }
 0x13a   :  { %v1500_v43 = vadd.f32 %v1499_v42, %v1498_v39  ;;  %v1535_v44 = vpop.f32.mrb[35].mxu1  ;;  %v999_v45 = vadd.f32 %v1497_v37, %v2058_v56 }
 0x13b   :  { %v1536_v46 = vadd.f32 %v1535_v44, %v1534_v41  ;;  %v2083_v47 = vadd.f32 %v1533_v40, %v951_v16 }
 0x13c   :  { %v1002_v49 = vadd.f32 %v1500_v43, %v2060_v58 }
 0x13d   :  { %v2086_v51 = vadd.f32 %v1536_v46, %v954_v18 }
 0x13e   :  { %v1501_v52 = vpop.f32.mrb[36].mxu0 }
 0x13f   :  { %v1537_v53 = vpop.f32.mrb[36].mxu1  ;;  %v1502_v54 = vpop.f32.mrb[37].mxu0 }
 0x140   :  { %v1503_v55 = vadd.f32 %v1502_v54, %v1501_v52  ;;  %v1538_v57 = vpop.f32.mrb[37].mxu1  ;;  %v1504_v59 = vpop.f32.mrb[38].mxu0 }
 0x141   :  { %v1539_v60 = vadd.f32 %v1538_v57, %v1537_v53  ;;  %v1505_v61 = vpop.f32.mrb[39].mxu0  ;;  %v1540_v62 = vpop.f32.mrb[38].mxu1 }
 0x142   :  { %v1506_v63 = vadd.f32 %v1505_v61, %v1504_v59  ;;  %v1541_v1 = vpop.f32.mrb[39].mxu1  ;;  %v1007_v56 = vadd.f32 %v1503_v55, %v2062_v6  ;;  %v2100_v6 = vld [vmem:[%s2206_s3] ss:$0 sm:$0xff] }
 0x143   :  { %v2089_v3 = vadd.f32 %v1539_v60, %v959_v31 }
 0x144   :  { %v1010_v4 = vadd.f32 %v1506_v63, %v2064_v8 }
 0x146   :  { %v1507_v58 = vpop.f32.mrb[40].mxu0 }
 0x147   :  { %v1559_v5 = vpop.f32.mrb[40].mxu1  ;;  %v1508_v9 = vpop.f32.mrb[41].mxu0 }
 0x148   :  { %v1103_v10 = vadd.f32 %v1559_v5, %v1007_v56  ;;  %v1509_v11 = vadd.f32 %v1508_v9, %v1507_v58  ;;  %v1094_v12 = vpop.f32.mrb[41].mxu1  ;;  %v1510_v13 = vpop.f32.mrb[42].mxu0 }
 0x149   :  { %v1095_v14 = vadd.f32 %v1094_v12, %v999_v45  ;;  %v1560_v15 = vpop.f32.mrb[42].mxu1  ;;  %v1511_v8 = vpop.f32.mrb[43].mxu0 }
 0x14a   :  { %v1165_v16 = vmul.f32 %v2095_v7, %v1103_v10  ;;  %v1106_v17 = vadd.f32 %v1560_v15, %v1010_v4  ;;  %v1512_v18 = vadd.f32 %v1511_v8, %v1510_v13  ;;  %v1097_v19 = vpop.f32.mrb[43].mxu1  ;;  %v1015_v21 = vadd.f32 %v1509_v11, %v2066_v20 }
 0x14b   :  { %v1163_v23 = vmul.f32 %v2095_v7, %v1095_v14  ;;  %v1098_v24 = vadd.f32 %v1097_v19, %v1002_v49 }
 0x14c   :  { %v1187_v25 = vadd.f32 %v2100_v6, %v1165_v16  ;;  %v1166_v26 = vmul.f32 %v2095_v7, %v1106_v17  ;;  %v1018_v27 = vadd.f32 %v1512_v18, %v2068_v22 }
 0x14d   :  { %v1185_v28 = vadd.f32 %v2100_v6, %v1163_v23  ;;  %v1164_v29 = vmul.f32 %v2095_v7, %v1098_v24 }
 0x14e   :  { %v1202_v30 = vmax.f32 %v1187_v25, 0.0  ;;  %v1188_v31 = vadd.f32 %v2100_v6, %v1166_v26  ;;  %v1513_v32 = vpop.f32.mrb[44].mxu0 }
 0x14f   :  { %v1200_v33 = vmax.f32 %v1185_v28, 0.0  ;;  %v1186_v20 = vadd.f32 %v2100_v6, %v1164_v29  ;;  %v1563_v35 = vpop.f32.mrb[44].mxu1  ;;  %v1514_v37 = vpop.f32.mrb[45].mxu0 }
 0x150   :  { %1218 = vst.msk [vmem:[%s2207_s4 + $0x10] sm:$0xff] %vm1215_vm1, %v1202_v30  ;;  %v1203_v22 = vmax.f32 %v1188_v31, 0.0  ;;  %v1515_v38 = vadd.f32 %v1514_v37, %v1513_v32  ;;  %v1110_v39 = vpop.f32.mrb[45].mxu1  ;;  %v1516_v40 = vpop.f32.mrb[46].mxu0 }
 0x151   :  { %1216 = vst.msk [vmem:[%s2207_s4] sm:$0xff] %vm1215_vm1, %v1200_v33  ;;  %v1201_v41 = vmax.f32 %v1186_v20, 0.0  ;;  %v1111_v42 = vadd.f32 %v1110_v39, %v1015_v21  ;;  %v1564_v43 = vpop.f32.mrb[46].mxu1  ;;  %v1517_v44 = vpop.f32.mrb[47].mxu0 }
 0x152   :  { %1219 = vst.msk [vmem:[%s2207_s4 + $0x18] sm:$0xff] %vm1215_vm1, %v1203_v22  ;;  %v1023_v45 = vadd.f32 %v1515_v38, %v2070_v34  ;;  %v1518_v46 = vadd.f32 %v1517_v44, %v1516_v40  ;;  %v1113_v49 = vpop.f32.mrb[47].mxu1 }
 0x153   :  { %1217 = vst.msk [vmem:[%s2207_s4 + $0x8] sm:$0xff] %vm1215_vm1, %v1201_v41  ;;  %v1167_v52 = vmul.f32 %v2095_v7, %v1111_v42  ;;  %v1114_v53 = vadd.f32 %v1113_v49, %v1018_v27 }
 0x154   :  { %v1119_v54 = vadd.f32 %v1563_v35, %v1023_v45  ;;  %v1026_v55 = vadd.f32 %v1518_v46, %v2072_v36 }
 0x155   :  { %v1189_v57 = vadd.f32 %v2100_v6, %v1167_v52  ;;  %v1168_v59 = vmul.f32 %v2095_v7, %v1114_v53 }
 0x156   :  { %v1169_v60 = vmul.f32 %v2095_v7, %v1119_v54  ;;  %v1122_v34 = vadd.f32 %v1564_v43, %v1026_v55  ;;  %v1519_v61 = vpop.f32.mrb[48].mxu0 }
 0x157   :  { %v1204_v62 = vmax.f32 %v1189_v57, 0.0  ;;  %v1190_v63 = vadd.f32 %v2100_v6, %v1168_v59  ;;  %v1520_v1 = vpop.f32.mrb[49].mxu0  ;;  %v1567_v56 = vpop.f32.mrb[48].mxu1 }
 0x158   :  { %v1191_v4 = vadd.f32 %v2100_v6, %v1169_v60  ;;  %v1170_v58 = vmul.f32 %v2095_v7, %v1122_v34  ;;  %v1521_v5 = vadd.f32 %v1520_v1, %v1519_v61  ;;  %v1522_v9 = vpop.f32.mrb[50].mxu0  ;;  %v1126_v36 = vpop.f32.mrb[49].mxu1 }
 0x159   :  { %1220 = vst.msk [vmem:[%s2207_s4 + $0x20] sm:$0xff] %vm1215_vm1, %v1204_v62  ;;  %v1205_v10 = vmax.f32 %v1190_v63, 0.0  ;;  %v1523_v11 = vpop.f32.mrb[51].mxu0  ;;  %v1568_v12 = vpop.f32.mrb[50].mxu1 }
 0x15a   :  { %v1206_v13 = vmax.f32 %v1191_v4, 0.0  ;;  %v1192_v14 = vadd.f32 %v2100_v6, %v1170_v58  ;;  %v1524_v15 = vadd.f32 %v1523_v11, %v1522_v9  ;;  %v1031_v8 = vadd.f32 %v1521_v5, %v2074_v48  ;;  %v1129_v16 = vpop.f32.mrb[51].mxu1 }
 0x15b   :  { %1221 = vst.msk [vmem:[%s2207_s4 + $0x28] sm:$0xff] %vm1215_vm1, %v1205_v10 }
 0x15c   :  { %1222 = vst.msk [vmem:[%s2207_s4 + $0x30] sm:$0xff] %vm1215_vm1, %v1206_v13  ;;  %v1207_v17 = vmax.f32 %v1192_v14, 0.0  ;;  %v1127_v18 = vadd.f32 %v1126_v36, %v1031_v8  ;;  %v1034_v19 = vadd.f32 %v1524_v15, %v2076_v50 }
 0x15e   :  { %1223 = vst.msk [vmem:[%s2207_s4 + $0x38] sm:$0xff] %vm1215_vm1, %v1207_v17  ;;  %v1171_v48 = vmul.f32 %v2095_v7, %v1127_v18  ;;  %v1130_v21 = vadd.f32 %v1129_v16, %v1034_v19  ;;  %v1525_v23 = vpop.f32.mrb[52].mxu0 }
 0x15f   :  { %v1571_v24 = vpop.f32.mrb[52].mxu1  ;;  %v1526_v25 = vpop.f32.mrb[53].mxu0 }
 0x160   :  { %v1193_v26 = vadd.f32 %v2100_v6, %v1171_v48  ;;  %v1172_v27 = vmul.f32 %v2095_v7, %v1130_v21  ;;  %v1151_v28 = vadd.f32 %v1571_v24, %v2089_v3  ;;  %v1527_v29 = vadd.f32 %v1526_v25, %v1525_v23  ;;  %v1142_v30 = vpop.f32.mrb[53].mxu1  ;;  %v1528_v50 = vpop.f32.mrb[54].mxu0 }
 0x161   :  { %v1143_v31 = vadd.f32 %v1142_v30, %v2083_v47  ;;  %v1572_v32 = vpop.f32.mrb[54].mxu1  ;;  %v1529_v33 = vpop.f32.mrb[55].mxu0 }
 0x162   :  { %v1208_v20 = vmax.f32 %v1193_v26, 0.0  ;;  %v1194_v35 = vadd.f32 %v2100_v6, %v1172_v27  ;;  %v1177_v37 = vmul.f32 %v2095_v7, %v1151_v28  ;;  %v1039_v22 = vadd.f32 %v1527_v29, %v2078_v0  ;;  %v1145_v38 = vpop.f32.mrb[55].mxu1 }
 0x163   :  { %v1175_v39 = vmul.f32 %v2095_v7, %v1143_v31  ;;  %v1530_v40 = vadd.f32 %v1529_v33, %v1528_v50  ;;  %v1146_v3 = vadd.f32 %v1145_v38, %v2086_v51 }
 0x164   :  { %1224 = vst.msk [vmem:[%s2207_s4 + $0x40] sm:$0xff] %vm1215_vm1, %v1208_v20  ;;  %v1209_v47 = vmax.f32 %v1194_v35, 0.0  ;;  %v1199_v41 = vadd.f32 %v2100_v6, %v1177_v37  ;;  %v1135_v42 = vadd.f32 %v1567_v56, %v1039_v22 }
 0x165   :  { %v1197_v43 = vadd.f32 %v2100_v6, %v1175_v39  ;;  %v1042_v44 = vadd.f32 %v1530_v40, %v2080_v2  ;;  %v1176_v0 = vmul.f32 %v2095_v7, %v1146_v3 }
 0x166   :  { %1225 = vst.msk [vmem:[%s2207_s4 + $0x48] sm:$0xff] %vm1215_vm1, %v1209_v47  ;;  %v1214_v51 = vmax.f32 %v1199_v41, 0.0  ;;  %v1173_v45 = vmul.f32 %v2095_v7, %v1135_v42 }
 0x167   :  { %v1212_v46 = vmax.f32 %v1197_v43, 0.0  ;;  %v1138_v49 = vadd.f32 %v1568_v12, %v1042_v44  ;;  %v1198_v52 = vadd.f32 %v2100_v6, %v1176_v0 }
 0x168   :  { %1230 = vst.msk [vmem:[%s2207_s4 + $0x70] sm:$0xff] %vm1215_vm1, %v1214_v51  ;;  %v1195_v2 = vadd.f32 %v2100_v6, %v1173_v45 }
 0x169   :  { %1228 = vst.msk [vmem:[%s2207_s4 + $0x60] sm:$0xff] %vm1215_vm1, %v1212_v46  ;;  %v1174_v53 = vmul.f32 %v2095_v7, %v1138_v49  ;;  %v1213_v54 = vmax.f32 %v1198_v52, 0.0 }
 0x16a   :  { %v1210_v55 = vmax.f32 %v1195_v2, 0.0 }
 0x16b   :  { %v1196_v57 = vadd.f32 %v2100_v6, %v1174_v53  ;;  %1229 = vst.msk [vmem:[%s2207_s4 + $0x68] sm:$0xff] %vm1215_vm1, %v1213_v54 }
 0x16c   :  { %1226 = vst.msk [vmem:[%s2207_s4 + $0x50] sm:$0xff] %vm1215_vm1, %v1210_v55 }
 0x16d   :  { %v1211_v59 = vmax.f32 %v1196_v57, 0.0 }
 0x16f   :  { %1227 = vst.msk [vmem:[%s2207_s4 + $0x58] sm:$0xff] %vm1215_vm1, %v1211_v59 }

// kernel: classifier_forward.27
= control target key start
LH: loop header
LB: loop body
LE: loop exit
PB: predicated region body
PF: predicated region fallthrough
CT: control target
= control target key end

     0   :  { %v356_v3 = vmov 0.0   ;;  %vm57_vm0 = vcmask 523264   ;;  %vm262_vm1 = vcmask 7168   ;;  %s559_s1 = inlined_call_operand.vmem [shape: f32[64,256], index: 1, kind: input, shape index: {}]   ;;  %s560_s3 = inlined_call_operand.vmem [shape: f32[256,128], index: 3, kind: input, shape index: {}]   ;;  %s561_s0 = inlined_call_operand.vmem [shape: f32[8,64], index: 0, kind: input, shape index: {}]   ;;  %s562_s2 = inlined_call_operand.vmem [shape: f32[1,256], index: 2, kind: input, shape index: {}]   ;;  %s563_s6 = inlined_call_operand.<no memory space> [shape: f32[1,1], index: 6, kind: input, shape index: {}]   ;;  %s564_s4 = inlined_call_operand.vmem [shape: f32[1,128], index: 4, kind: input, shape index: {}]   ;;  %s565_s5 = inlined_call_operand.vmem [shape: f32[1,128], index: 5, kind: input, shape index: {}]   ;;  %s566_s7 = inlined_call_operand.vmem [shape: f32[8,1], index: 7, kind: output, shape index: {}]  }
   0x1   :  { %v30_v0 = vld [vmem:[%s559_s1 + $0x8] sm:$0xff]  ;;  %v32_v1 = vld [vmem:[%s559_s1 + $0x18] sm:$0xff]  ;;  %v29_v2 = vld [vmem:[%s559_s1] sm:$0xff]  ;;  %125 = vmatprep.mubr.f32.mxu0 %v356_v3 }
   0x2   :  { %v307_v4 = vpack.c.bf16 %v32_v1, %v30_v0  ;;  %v31_v5 = vld [vmem:[%s559_s1 + $0x10] sm:$0xff]  ;;  %v34_v6 = vld [vmem:[%s559_s1 + $0x28] sm:$0xff]  ;;  %v36_v7 = vld [vmem:[%s559_s1 + $0x38] sm:$0xff] }
   0x3   :  { %v309_v8 = vpack.c.bf16 %v31_v5, %v29_v2  ;;  %v311_v9 = vpack.c.bf16 %v36_v7, %v34_v6  ;;  %v33_v10 = vld [vmem:[%s559_s1 + $0x20] sm:$0xff]  ;;  %v35_v11 = vld [vmem:[%s559_s1 + $0x30] sm:$0xff]  ;;  %v38_v12 = vld [vmem:[%s559_s1 + $0x48] sm:$0xff] }
   0x4   :  { %308 = vmatprep.subr.bf16.mxu0 %v307_v4  ;;  %v40_v13 = vld [vmem:[%s559_s1 + $0x58] sm:$0xff]  ;;  %v313_v14 = vpack.c.bf16 %v35_v11, %v33_v10  ;;  %v37_v15 = vld [vmem:[%s559_s1 + $0x40] sm:$0xff]  ;;  %v39_v16 = vld [vmem:[%s559_s1 + $0x50] sm:$0xff]  ;;  %v47_v10 = vlaneseq }
   0x5   :  { %310 = vmatpush1.bf16.msra.mxu0 %v309_v8  ;;  %v315_v17 = vpack.c.bf16 %v40_v13, %v38_v12  ;;  %v42_v18 = vld [vmem:[%s559_s1 + $0x68] sm:$0xff]  ;;  %v44_v19 = vld [vmem:[%s559_s1 + $0x78] sm:$0xff]  ;;  %v150_v20 = vld [vmem:[%s560_s3 + $0x80] sm:$0xff]  ;;  %v317_v29 = vpack.c.bf16 %v39_v16, %v37_v15 }
   0x6   :  { %312 = vmatprep.subr.bf16.mxu0 %v311_v9  ;;  %v151_v21 = vld [vmem:[%s560_s3 + $0x88] sm:$0xff]  ;;  %v134_v22 = vld [vmem:[%s560_s3] sm:$0xff]  ;;  %v152_v26 = vld [vmem:[%s560_s3 + $0x90] sm:$0xff]  ;;  %v319_v34 = vpack.c.bf16 %v44_v19, %v42_v18  ;;  %v48_v11 = vshrl.u32 %v47_v10, 7 }
   0x7   :  { %v135_v23 = vld [vmem:[%s560_s3 + $0x8] sm:$0xff]  ;;  %v323_v24 = vpack.c.bf16 %v151_v21, %v150_v20  ;;  %v153_v27 = vld [vmem:[%s560_s3 + $0x98] sm:$0xff]  ;;  %v136_v28 = vld [vmem:[%s560_s3 + $0x10] sm:$0xff] }
   0x8   :  { %v325_v25 = vpack.c.bf16 %v135_v23, %v134_v22  ;;  %v327_v30 = vpack.c.bf16 %v153_v27, %v152_v26  ;;  %v137_v31 = vld [vmem:[%s560_s3 + $0x18] sm:$0xff]  ;;  %v154_v32 = vld [vmem:[%s560_s3 + $0xa0] sm:$0xff]  ;;  %v155_v33 = vld [vmem:[%s560_s3 + $0xa8] sm:$0xff]  ;;  %v49_v12 = vsub.s32 0, %v48_v11  ;;  %v12_v23 = vstv %s563_s6 }
   0x9   :  { %314 = vmatpush1.bf16.msra.mxu0 %v313_v14  ;;  %v41_v35 = vld [vmem:[%s559_s1 + $0x60] sm:$0xff]  ;;  %v43_v36 = vld [vmem:[%s559_s1 + $0x70] sm:$0xff]  ;;  %324 = vmatprep.subr.bf16.mxu1 %v323_v24  ;;  %v329_v37 = vpack.c.bf16 %v137_v31, %v136_v28  ;;  %v331_v38 = vpack.c.bf16 %v155_v33, %v154_v32  ;;  %v139_v40 = vld [vmem:[%s560_s3 + $0x28] sm:$0xff]  ;;  %v53_v14 = vsub.s32 1, %v48_v11  ;;  %13 = vst [vmem:[#allocation2] sm:$0x1] %v12_v23 }
   0xa   :  { %316 = vmatprep.subr.bf16.mxu0 %v315_v17  ;;  %326 = vmatpush3.bf16.msra.mxu1 %v325_v25  ;;  %v138_v39 = vld [vmem:[%s560_s3 + $0x20] sm:$0xff]  ;;  %v321_v41 = vpack.c.bf16 %v43_v36, %v41_v35  ;;  %v156_v42 = vld [vmem:[%s560_s3 + $0xb0] sm:$0xff]  ;;  %v157_v43 = vld [vmem:[%s560_s3 + $0xb8] sm:$0xff] }
   0xb   :  { %328 = vmatprep.subr.bf16.mxu1 %v327_v30  ;;  %v333_v44 = vpack.c.bf16 %v139_v40, %v138_v39  ;;  %v335_v45 = vpack.c.bf16 %v157_v43, %v156_v42  ;;  %v140_v46 = vld [vmem:[%s560_s3 + $0x30] sm:$0xff]  ;;  %v141_v47 = vld [vmem:[%s560_s3 + $0x38] sm:$0xff]  ;;  %v28_v48 = vld [vmem:[%s561_s0] sm:$0xff] }
   0xc   :  { %v158_v49 = vld [vmem:[%s560_s3 + $0xc0] sm:$0xff]  ;;  %v159_v50 = vld [vmem:[%s560_s3 + $0xc8] sm:$0xff]  ;;  %v337_v51 = vpack.c.bf16 %v141_v47, %v140_v46  ;;  %v160_v55 = vld [vmem:[%s560_s3 + $0xd0] sm:$0xff] }
   0xd   :  { %318 = vmatpush1.bf16.msra.mxu0 %v317_v29  ;;  %v339_v52 = vpack.c.bf16 %v159_v50, %v158_v49  ;;  %v142_v53 = vld [vmem:[%s560_s3 + $0x40] sm:$0xff]  ;;  %v143_v54 = vld [vmem:[%s560_s3 + $0x48] sm:$0xff]  ;;  %v161_v56 = vld [vmem:[%s560_s3 + $0xd8] sm:$0xff] }
   0xe   :  { %320 = vmatprep.subr.bf16.mxu0 %v319_v34  ;;  %330 = vmatpush3.bf16.msra.mxu1 %v329_v37  ;;  %v341_v57 = vpack.c.bf16 %v143_v54, %v142_v53  ;;  %v343_v58 = vpack.c.bf16 %v161_v56, %v160_v55  ;;  %v144_v59 = vld [vmem:[%s560_s3 + $0x50] sm:$0xff]  ;;  %v145_v60 = vld [vmem:[%s560_s3 + $0x58] sm:$0xff]  ;;  %v162_v61 = vld [vmem:[%s560_s3 + $0xe0] sm:$0xff] }
   0xf   :  { %332 = vmatprep.subr.bf16.mxu1 %v331_v38  ;;  %v163_v62 = vld [vmem:[%s560_s3 + $0xe8] sm:$0xff]  ;;  %v345_v63 = vpack.c.bf16 %v145_v60, %v144_v59  ;;  %v146_v1 = vld [vmem:[%s560_s3 + $0x60] sm:$0xff]  ;;  %v164_v4 = vld [vmem:[%s560_s3 + $0xf0] sm:$0xff] }
  0x10   :  { %v347_v0 = vpack.c.bf16 %v163_v62, %v162_v61  ;;  %v147_v2 = vld [vmem:[%s560_s3 + $0x68] sm:$0xff]  ;;  %v165_v5 = vld [vmem:[%s560_s3 + $0xf8] sm:$0xff]  ;;  %v148_v7 = vld [vmem:[%s560_s3 + $0x70] sm:$0xff] }
  0x11   :  { %322 = vmatpush1.bf16.msra.mxu0 %v321_v41  ;;  %v349_v3 = vpack.c.bf16 %v147_v2, %v146_v1  ;;  %v351_v6 = vpack.c.bf16 %v165_v5, %v164_v4  ;;  %v149_v8 = vld [vmem:[%s560_s3 + $0x78] sm:$0xff]  ;;  %v45_v13 = vld [vmem:[%s562_s2] sm:$0x3] }
  0x12   :  { %334 = vmatpush3.bf16.msra.mxu1 %v333_v44  ;;  %v353_v9 = vpack.c.bf16 %v149_v8, %v148_v7  ;;  %v50_v15 = vrot.slane %v45_v13, %v49_v12  ;;  %v54_v16 = vrot.slane %v45_v13, %v53_v14  ;;  %v269_v26 = vld [vmem:[%s564_s4] ss:$0 sm:$0xff] }
  0x13   :  { %336 = vmatprep.subr.bf16.mxu1 %v335_v45  ;;  %v270_v29 = vld [vmem:[%s565_s5] ss:$0 sm:$0xff] }
  0x14   :  { %268 = vmatmul.mubr.msk.f32.vlgmr.msra.gmra.mrb[0].mxu0 %vm57_vm0, %v28_v48  ;;  %v271_v32 = vld [vmem:[#allocation2] ss:$0 sm:$0xff] }
  0x16   :  { %338 = vmatpush3.bf16.msra.mxu1 %v337_v51 }
  0x17   :  { %340 = vmatprep.subr.bf16.mxu1 %v339_v52 }
  0x1a   :  { %342 = vmatpush3.bf16.msra.mxu1 %v341_v57 }
  0x1b   :  { %344 = vmatprep.subr.bf16.mxu1 %v343_v58 }
  0x1e   :  { %346 = vmatpush3.bf16.msra.mxu1 %v345_v63 }
  0x1f   :  { %348 = vmatprep.subr.bf16.mxu1 %v347_v0 }
  0x22   :  { %350 = vmatpush3.bf16.msra.mxu1 %v349_v3 }
  0x23   :  { %352 = vmatprep.subr.bf16.mxu1 %v351_v6 }
  0x26   :  { %354 = vmatpush3.bf16.msra.mxu1 %v353_v9 }
  0xe7   :  { %v127_v17 = vpop.f32.mrb[0].mxu0 }
  0xe8   :  { %v128_v18 = vadd.f32 %v127_v17, %v50_v15  ;;  %v129_v19 = vpop.f32.mrb[1].mxu0 }
  0xe9   :  { %v130_v20 = vadd.f32 %v129_v19, %v54_v16 }
  0xea   :  { %v132_v22 = vmax.f32 %v128_v18, 0.0 }
  0xeb   :  { %v133_v21 = vmax.f32 %v130_v20, 0.0 }
  0xed   :  { %237 = vmatprep.mubr.f32.mxu1 %v133_v21 }
  0xee   :  { %238 = vmatmul.mubr.f32.vlgmr.msra.gmra.mrb[0].mxu1 %v132_v22 }
 0x1c1   :  { %v304_v24 = vpop.f32.mrb[0].mxu1 }
 0x1c2   :  { %v305_v25 = vpop.f32.mrb[1].mxu1 }
 0x1c3   :  { %v306_v27 = vadd.f32 %v305_v25, %v304_v24 }
 0x1c5   :  { %v240_v28 = vadd.f32 %v306_v27, %v269_v26 }
 0x1c7   :  { %v243_v30 = vmax.f32 %v240_v28, 0.0 }
 0x1c9   :  { %v251_v31 = vmul.f32 %v270_v29, %v243_v30 }
 0x1cb   :  { %252 = vadd.xlane.f32.xlu0 %v251_v31 }
 0x258   :  { %v253_v33 = vpop.xlane.xlu0 %252 }
 0x259   :  { %v261_v34 = vadd.f32 %v271_v32, %v253_v33 }
 0x25b   :  { %263 = vst.msk [vmem:[%s566_s7] sm:$0xff] %vm262_vm1, %v261_v34 }

// kernel: classifier_forward.17
= control target key start
LH: loop header
LB: loop body
LE: loop exit
PB: predicated region body
PF: predicated region fallthrough
CT: control target
= control target key end

     0   :  { %v790_v3 = vmov 0   ;;  %vm712_vm0 = vcmask 1041408   ;;  %vm713_vm1 = vcmask 1043458   ;;  %vm715_vm3 = vcmask 1045508   ;;  %s1034_s1 = inlined_call_operand.vmem [shape: bf16[128,1000], index: 1, kind: input, shape index: {}]   ;;  %s1035_s0 = inlined_call_operand.vmem [shape: bf16[2,128], index: 0, kind: input, shape index: {}]   ;;  %s1036_s2 = inlined_call_operand.vmem [shape: f32[1,1000], index: 2, kind: input, shape index: {}]   ;;  %s1037_s3 = inlined_call_operand.vmem [shape: f32[1,1000], index: 3, kind: input, shape index: {}]   ;;  %s1038_s4 = inlined_call_operand.vmem [shape: f32[2,1000], index: 4, kind: output, shape index: {}]  }
   0x1   :  { %v19_v0 = vld [vmem:[%s1034_s1] sm:$0xff]  ;;  %v20_v2 = vld [vmem:[%s1034_s1 + $0x8] sm:$0xff]  ;;  %435 = vmatprep.mubr.bf16.mxu0 %v790_v3  ;;  %476 = vmatprep.mubr.bf16.mxu1 %v790_v3  ;;  %v21_v63 = vld [vmem:[%s1034_s1 + $0x10] sm:$0xff]  ;;  %vm717_vm5 = vcmask 850950  }
   0x2   :  { %v23_v1 = vld [vmem:[%s1034_s1 + $0x20] sm:$0xff]  ;;  %v24_v5 = vld [vmem:[%s1034_s1 + $0x28] sm:$0xff]  ;;  %vm714_vm2 = vmor %vm713_vm1, %vm712_vm0 }
   0x3   :  { %v725_v4 = vcombine.high %v19_v0, %v23_v1  ;;  %v724_v6 = vcombine.low %v19_v0, %v23_v1  ;;  %v27_v7 = vld [vmem:[%s1034_s1 + $0x40] sm:$0xff]  ;;  %v727_v9 = vcombine.high %v20_v2, %v24_v5  ;;  %v726_v10 = vcombine.low %v20_v2, %v24_v5  ;;  %v28_v12 = vld [vmem:[%s1034_s1 + $0x48] sm:$0xff]  ;;  %v25_v0 = vld [vmem:[%s1034_s1 + $0x30] sm:$0xff] }
   0x4   :  { %v31_v8 = vld [vmem:[%s1034_s1 + $0x60] sm:$0xff]  ;;  %v32_v13 = vld [vmem:[%s1034_s1 + $0x68] sm:$0xff]  ;;  %v22_v1 = vld [vmem:[%s1034_s1 + $0x18] sm:$0xff] }
   0x5   :  { %v733_v11 = vcombine.high %v27_v7, %v31_v8  ;;  %v35_v14 = vld [vmem:[%s1034_s1 + $0x80] sm:$0xff]  ;;  %403 = vmatprep.subr.bf16.mxu0 %v725_v4  ;;  %v735_v15 = vcombine.high %v28_v12, %v32_v13  ;;  %v36_v17 = vld [vmem:[%s1034_s1 + $0x88] sm:$0xff]  ;;  %444 = vmatprep.subr.bf16.mxu1 %v727_v9  ;;  %v732_v19 = vcombine.low %v27_v7, %v31_v8  ;;  %v26_v2 = vld [vmem:[%s1034_s1 + $0x38] sm:$0xff] }
   0x6   :  { %v39_v16 = vld [vmem:[%s1034_s1 + $0xa0] sm:$0xff]  ;;  %v40_v18 = vld [vmem:[%s1034_s1 + $0xa8] sm:$0xff]  ;;  %404 = vmatpush1.bf16.msra.mxu0 %v724_v6  ;;  %445 = vmatpush1.bf16.msra.mxu1 %v726_v10  ;;  %v734_v20 = vcombine.low %v28_v12, %v32_v13  ;;  %v729_v6 = vcombine.high %v21_v63, %v25_v0  ;;  %v731_v7 = vcombine.high %v22_v1, %v26_v2  ;;  %v29_v8 = vld [vmem:[%s1034_s1 + $0x50] sm:$0xff] }
   0x7   :  { %405 = vmatprep.subr.bf16.mxu0 %v733_v11  ;;  %v741_v21 = vcombine.high %v35_v14, %v39_v16  ;;  %446 = vmatprep.subr.bf16.mxu1 %v735_v15  ;;  %v743_v22 = vcombine.high %v36_v17, %v40_v18  ;;  %v43_v23 = vld [vmem:[%s1034_s1 + $0xc0] sm:$0xff]  ;;  %v44_v25 = vld [vmem:[%s1034_s1 + $0xc8] sm:$0xff]  ;;  %v740_v27 = vcombine.low %v35_v14, %v39_v16  ;;  %v33_v9 = vld [vmem:[%s1034_s1 + $0x70] sm:$0xff] }
   0x8   :  { %v47_v24 = vld [vmem:[%s1034_s1 + $0xe0] sm:$0xff]  ;;  %v48_v26 = vld [vmem:[%s1034_s1 + $0xe8] sm:$0xff]  ;;  %v742_v28 = vcombine.low %v36_v17, %v40_v18  ;;  %v30_v10 = vld [vmem:[%s1034_s1 + $0x58] sm:$0xff]  ;;  %v728_v13 = vcombine.low %v21_v63, %v25_v0  ;;  %v730_v14 = vcombine.low %v22_v1, %v26_v2  ;;  %v737_v15 = vcombine.high %v29_v8, %v33_v9 }
   0x9   :  { %v749_v29 = vcombine.high %v43_v23, %v47_v24  ;;  %v751_v30 = vcombine.high %v44_v25, %v48_v26  ;;  %v51_v31 = vld [vmem:[%s1034_s1 + $0x100] sm:$0xff]  ;;  %v52_v33 = vld [vmem:[%s1034_s1 + $0x108] sm:$0xff]  ;;  %v748_v35 = vcombine.low %v43_v23, %v47_v24  ;;  %v750_v36 = vcombine.low %v44_v25, %v48_v26  ;;  %v34_v11 = vld [vmem:[%s1034_s1 + $0x78] sm:$0xff] }
   0xa   :  { %406 = vmatpush1.bf16.msra.mxu0 %v732_v19  ;;  %447 = vmatpush1.bf16.msra.mxu1 %v734_v20  ;;  %v55_v32 = vld [vmem:[%s1034_s1 + $0x120] sm:$0xff]  ;;  %v56_v34 = vld [vmem:[%s1034_s1 + $0x128] sm:$0xff]  ;;  %v739_v16 = vcombine.high %v30_v10, %v34_v11  ;;  %v37_v17 = vld [vmem:[%s1034_s1 + $0x90] sm:$0xff]  ;;  %v569_v2 = vlaneseq }
   0xb   :  { %407 = vmatprep.subr.bf16.mxu0 %v741_v21  ;;  %448 = vmatprep.subr.bf16.mxu1 %v743_v22  ;;  %v757_v37 = vcombine.high %v51_v31, %v55_v32  ;;  %v759_v38 = vcombine.high %v52_v33, %v56_v34  ;;  %v59_v39 = vld [vmem:[%s1034_s1 + $0x140] sm:$0xff]  ;;  %v60_v41 = vld [vmem:[%s1034_s1 + $0x148] sm:$0xff]  ;;  %v756_v43 = vcombine.low %v51_v31, %v55_v32  ;;  %v41_v18 = vld [vmem:[%s1034_s1 + $0xb0] sm:$0xff] }
   0xc   :  { %v63_v40 = vld [vmem:[%s1034_s1 + $0x160] sm:$0xff]  ;;  %v64_v42 = vld [vmem:[%s1034_s1 + $0x168] sm:$0xff]  ;;  %v758_v44 = vcombine.low %v52_v33, %v56_v34  ;;  %v38_v19 = vld [vmem:[%s1034_s1 + $0x98] sm:$0xff]  ;;  %v736_v21 = vcombine.low %v29_v8, %v33_v9  ;;  %v738_v22 = vcombine.low %v30_v10, %v34_v11  ;;  %v745_v23 = vcombine.high %v37_v17, %v41_v18 }
   0xd   :  { %v765_v45 = vcombine.high %v59_v39, %v63_v40  ;;  %v767_v46 = vcombine.high %v60_v41, %v64_v42  ;;  %v67_v47 = vld [vmem:[%s1034_s1 + $0x180] sm:$0xff]  ;;  %v68_v49 = vld [vmem:[%s1034_s1 + $0x188] sm:$0xff]  ;;  %v764_v51 = vcombine.low %v59_v39, %v63_v40  ;;  %v766_v52 = vcombine.low %v60_v41, %v64_v42  ;;  %v42_v20 = vld [vmem:[%s1034_s1 + $0xb8] sm:$0xff] }
   0xe   :  { %408 = vmatpush1.bf16.msra.mxu0 %v740_v27  ;;  %449 = vmatpush1.bf16.msra.mxu1 %v742_v28  ;;  %v71_v48 = vld [vmem:[%s1034_s1 + $0x1a0] sm:$0xff]  ;;  %v72_v50 = vld [vmem:[%s1034_s1 + $0x1a8] sm:$0xff]  ;;  %v747_v24 = vcombine.high %v38_v19, %v42_v20  ;;  %v45_v25 = vld [vmem:[%s1034_s1 + $0xd0] sm:$0xff]  ;;  %v791_v11 = vmov 1983009808  }
   0xf   :  { %409 = vmatprep.subr.bf16.mxu0 %v749_v29  ;;  %450 = vmatprep.subr.bf16.mxu1 %v751_v30  ;;  %v773_v53 = vcombine.high %v67_v47, %v71_v48  ;;  %v775_v54 = vcombine.high %v68_v49, %v72_v50  ;;  %v75_v55 = vld [vmem:[%s1034_s1 + $0x1c0] sm:$0xff]  ;;  %v76_v57 = vld [vmem:[%s1034_s1 + $0x1c8] sm:$0xff]  ;;  %v772_v59 = vcombine.low %v67_v47, %v71_v48  ;;  %v49_v26 = vld [vmem:[%s1034_s1 + $0xf0] sm:$0xff] }
  0x10   :  { %v79_v56 = vld [vmem:[%s1034_s1 + $0x1e0] sm:$0xff]  ;;  %v80_v58 = vld [vmem:[%s1034_s1 + $0x1e8] sm:$0xff]  ;;  %v774_v60 = vcombine.low %v68_v49, %v72_v50  ;;  %v46_v27 = vld [vmem:[%s1034_s1 + $0xd8] sm:$0xff]  ;;  %v744_v29 = vcombine.low %v37_v17, %v41_v18  ;;  %v746_v30 = vcombine.low %v38_v19, %v42_v20  ;;  %v753_v31 = vcombine.high %v45_v25, %v49_v26 }
  0x11   :  { %v781_v61 = vcombine.high %v75_v55, %v79_v56  ;;  %v783_v62 = vcombine.high %v76_v57, %v80_v58  ;;  %v780_v4 = vcombine.low %v75_v55, %v79_v56  ;;  %v782_v5 = vcombine.low %v76_v57, %v80_v58  ;;  %v942_v12 = vld [vmem:[%s1035_s0] sm:$0x1]  ;;  %v50_v28 = vld [vmem:[%s1034_s1 + $0xf8] sm:$0xff]  ;;  %v53_v33 = vld [vmem:[%s1034_s1 + $0x110] sm:$0xff] }
  0x12   :  { %410 = vmatpush1.bf16.msra.mxu0 %v748_v35  ;;  %451 = vmatpush1.bf16.msra.mxu1 %v750_v36  ;;  %v755_v32 = vcombine.high %v46_v27, %v50_v28  ;;  %v57_v34 = vld [vmem:[%s1034_s1 + $0x130] sm:$0xff]  ;;  %v58_v35 = vld [vmem:[%s1034_s1 + $0x138] sm:$0xff]  ;;  %v752_v36 = vcombine.low %v45_v25, %v49_v26  ;;  %v617_v10 = vld [vmem:[%s1037_s3] sm:$0xff] }
  0x13   :  { %411 = vmatprep.subr.bf16.mxu0 %v757_v37  ;;  %452 = vmatprep.subr.bf16.mxu1 %v759_v38  ;;  %v754_v37 = vcombine.low %v46_v27, %v50_v28  ;;  %v761_v38 = vcombine.high %v53_v33, %v57_v34  ;;  %v61_v40 = vld [vmem:[%s1034_s1 + $0x150] sm:$0xff]  ;;  %v62_v42 = vld [vmem:[%s1034_s1 + $0x158] sm:$0xff]  ;;  %vm716_vm4 = vmor %vm715_vm3, %vm714_vm2 }
  0x14   :  { %v65_v41 = vld [vmem:[%s1034_s1 + $0x170] sm:$0xff]  ;;  %v70_v50 = vld [vmem:[%s1034_s1 + $0x198] sm:$0xff]  ;;  %vm718_vm6 = vmor %vm717_vm5, %vm716_vm4 }
  0x15   :  { %v69_v48 = vld [vmem:[%s1034_s1 + $0x190] sm:$0xff]  ;;  %v78_v58 = vld [vmem:[%s1034_s1 + $0x1d8] sm:$0xff] }
  0x16   :  { %412 = vmatpush1.bf16.msra.mxu0 %v756_v43  ;;  %453 = vmatpush1.bf16.msra.mxu1 %v758_v44  ;;  %v66_v43 = vld [vmem:[%s1034_s1 + $0x178] sm:$0xff]  ;;  %v760_v44 = vcombine.low %v53_v33, %v57_v34  ;;  %v73_v49 = vld [vmem:[%s1034_s1 + $0x1b0] sm:$0xff] }
  0x17   :  { %413 = vmatprep.subr.bf16.mxu0 %v765_v45  ;;  %454 = vmatprep.subr.bf16.mxu1 %v767_v46  ;;  %v769_v46 = vcombine.high %v61_v40, %v65_v41  ;;  %v771_v47 = vcombine.high %v62_v42, %v66_v43  ;;  %v77_v56 = vld [vmem:[%s1034_s1 + $0x1d0] sm:$0xff] }
  0x18   :  { %v81_v57 = vld [vmem:[%s1034_s1 + $0x1f0] sm:$0xff] }
  0x19   :  { %v784_v0 = vcombine.low %v77_v56, %v81_v57 }
  0x1a   :  { %414 = vmatpush1.bf16.msra.mxu0 %v764_v51  ;;  %455 = vmatpush1.bf16.msra.mxu1 %v766_v52  ;;  %v74_v51 = vld [vmem:[%s1034_s1 + $0x1b8] sm:$0xff]  ;;  %v768_v52 = vcombine.low %v61_v40, %v65_v41 }
  0x1b   :  { %415 = vmatprep.subr.bf16.mxu0 %v773_v53  ;;  %456 = vmatprep.subr.bf16.mxu1 %v775_v54  ;;  %v770_v53 = vcombine.low %v62_v42, %v66_v43  ;;  %v777_v54 = vcombine.high %v69_v48, %v73_v49  ;;  %v779_v55 = vcombine.high %v70_v50, %v74_v51 }
  0x1e   :  { %416 = vmatpush1.bf16.msra.mxu0 %v772_v59  ;;  %457 = vmatpush1.bf16.msra.mxu1 %v774_v60  ;;  %v82_v59 = vld [vmem:[%s1034_s1 + $0x1f8] sm:$0xff]  ;;  %v776_v60 = vcombine.low %v69_v48, %v73_v49 }
  0x1f   :  { %417 = vmatprep.subr.bf16.mxu0 %v781_v61  ;;  %458 = vmatprep.subr.bf16.mxu1 %v783_v62  ;;  %v778_v61 = vcombine.low %v70_v50, %v74_v51  ;;  %v785_v62 = vcombine.high %v77_v56, %v81_v57  ;;  %v787_v63 = vcombine.high %v78_v58, %v82_v59 }
  0x20   :  { %v786_v1 = vcombine.low %v78_v58, %v82_v59 }
  0x22   :  { %418 = vmatpush1.bf16.msra.mxu0 %v780_v4  ;;  %459 = vmatpush1.bf16.msra.mxu1 %v782_v5  ;;  %v570_v4 = vshrl.u32 %v569_v2, 7 }
  0x23   :  { %485 = vmatprep.subr.bf16.mxu0 %v729_v6  ;;  %526 = vmatprep.subr.bf16.mxu1 %v731_v7  ;;  %v567_v6 = vld [vmem:[%s1036_s2] sm:$0xff] }
  0x24   :  { %v571_v5 = vsub.s32 0, %v570_v4  ;;  %v579_v7 = vsub.s32 2, %v570_v4  ;;  %v575_v8 = vsub.s32 1, %v570_v4  ;;  %v583_v9 = vsub.s32 3, %v570_v4 }
  0x25   :  { %436 = vmatmul.mubr.bf16.vlgmr.msra.gmra.mrb[0].mxu0 %v942_v12  ;;  %477 = vmatmul.mubr.bf16.vlgmr.msra.gmra.mrb[0].mxu1 %v942_v12  ;;  %v587_v43 = vsub.s32 4, %v570_v4 }
  0x26   :  { %486 = vmatpush1.bf16.msra.mxu0 %v728_v13  ;;  %527 = vmatpush1.bf16.msra.mxu1 %v730_v14  ;;  %v678_v13 = vunpack.c.l.s4 %v791_v11  ;;  %v572_v14 = vrot.slane %v567_v6, %v571_v5  ;;  %v584_v17 = vrot.slane %v567_v6, %v583_v9  ;;  %v630_v19 = vrot.slane %v617_v10, %v579_v7 }
  0x27   :  { %487 = vmatprep.subr.bf16.mxu0 %v737_v15  ;;  %528 = vmatprep.subr.bf16.mxu1 %v739_v16  ;;  %v580_v15 = vrot.slane %v567_v6, %v579_v7  ;;  %v576_v16 = vrot.slane %v567_v6, %v575_v8  ;;  %v626_v20 = vrot.slane %v617_v10, %v575_v8 }
  0x28   :  { %517 = vmatprep.mubr.bf16.mxu0 %v790_v3  ;;  %558 = vmatprep.mubr.bf16.mxu1 %v790_v3  ;;  %v54_v3 = vld [vmem:[%s1034_s1 + $0x118] sm:$0xff]  ;;  %v634_v25 = vrot.slane %v617_v10, %v583_v9  ;;  %v638_v50 = vrot.slane %v617_v10, %v587_v43 }
  0x29   :  { %v763_v39 = vcombine.high %v54_v3, %v58_v35  ;;  %v762_v45 = vcombine.low %v54_v3, %v58_v35 }
  0x2a   :  { %488 = vmatpush1.bf16.msra.mxu0 %v736_v21  ;;  %529 = vmatpush1.bf16.msra.mxu1 %v738_v22  ;;  %v679_v21 = vunpack.c.0.s8 %v678_v13 }
  0x2b   :  { %489 = vmatprep.subr.bf16.mxu0 %v745_v23  ;;  %530 = vmatprep.subr.bf16.mxu1 %v747_v24 }
  0x2c   :  { %v682_v35 = vsub.s32 %v679_v21, %v570_v4 }
  0x2e   :  { %490 = vmatpush1.bf16.msra.mxu0 %v744_v29  ;;  %531 = vmatpush1.bf16.msra.mxu1 %v746_v30 }
  0x2f   :  { %491 = vmatprep.subr.bf16.mxu0 %v753_v31  ;;  %532 = vmatprep.subr.bf16.mxu1 %v755_v32 }
  0x32   :  { %492 = vmatpush1.bf16.msra.mxu0 %v752_v36  ;;  %533 = vmatpush1.bf16.msra.mxu1 %v754_v37 }
  0x33   :  { %493 = vmatprep.subr.bf16.mxu0 %v761_v38  ;;  %534 = vmatprep.subr.bf16.mxu1 %v763_v39 }
  0x36   :  { %494 = vmatpush1.bf16.msra.mxu0 %v760_v44  ;;  %535 = vmatpush1.bf16.msra.mxu1 %v762_v45  ;;  %v595_v44 = vsub.s32 6, %v570_v4  ;;  %v591_v45 = vsub.s32 5, %v570_v4 }
  0x37   :  { %495 = vmatprep.subr.bf16.mxu0 %v769_v46  ;;  %536 = vmatprep.subr.bf16.mxu1 %v771_v47  ;;  %v599_v46 = vsub.s32 7, %v570_v4  ;;  %v588_v47 = vrot.slane %v567_v6, %v587_v43 }
  0x38   :  { %v596_v48 = vrot.slane %v567_v6, %v595_v44  ;;  %v592_v49 = vrot.slane %v567_v6, %v591_v45 }
  0x39   :  { %v600_v51 = vrot.slane %v567_v6, %v599_v46  ;;  %v650_v58 = vrot.slane %v617_v10, %v599_v46 }
  0x3a   :  { %496 = vmatpush1.bf16.msra.mxu0 %v768_v52  ;;  %537 = vmatpush1.bf16.msra.mxu1 %v770_v53  ;;  %v646_v53 = vrot.slane %v617_v10, %v595_v44 }
  0x3b   :  { %497 = vmatprep.subr.bf16.mxu0 %v777_v54  ;;  %538 = vmatprep.subr.bf16.mxu1 %v779_v55  ;;  %v642_v54 = vrot.slane %v617_v10, %v591_v45 }
  0x3e   :  { %498 = vmatpush1.bf16.msra.mxu0 %v776_v60  ;;  %539 = vmatpush1.bf16.msra.mxu1 %v778_v61 }
  0x3f   :  { %499 = vmatprep.subr.bf16.mxu0 %v785_v62  ;;  %540 = vmatprep.subr.bf16.mxu1 %v787_v63 }
  0x42   :  { %500 = vmatpush1.bf16.msra.mxu0 %v784_v0  ;;  %541 = vmatpush1.bf16.msra.mxu1 %v786_v1 }
  0x45   :  { %518 = vmatmul.mubr.bf16.vlgmr.msra.gmra.mrb[4].mxu0 %v942_v12  ;;  %559 = vmatmul.mubr.bf16.vlgmr.msra.gmra.mrb[4].mxu1 %v942_v12  ;;  %v622_v12 = vrot.slane %v617_v10, %v571_v5 }
  0xf8   :  { %v437_v18 = vpop.f32.mrb[0].mxu0  ;;  %v478_v23 = vpop.f32.mrb[0].mxu1 }
  0xf9   :  { %v609_v22 = vmul.f32 %v572_v14, %v437_v18  ;;  %v439_v24 = vpop.f32.mrb[1].mxu0  ;;  %v611_v26 = vmul.f32 %v580_v15, %v478_v23  ;;  %v480_v28 = vpop.f32.mrb[1].mxu1 }
  0xfa   :  { %v610_v27 = vmul.f32 %v576_v16, %v439_v24  ;;  %v441_v29 = vpop.f32.mrb[2].mxu0  ;;  %v612_v31 = vmul.f32 %v584_v17, %v480_v28  ;;  %v482_v32 = vpop.f32.mrb[2].mxu1 }
  0xfb   :  { %v659_v30 = vadd.f32 %v622_v12, %v609_v22  ;;  %v442_v33 = vpop.f32.mrb[3].mxu0  ;;  %v661_v34 = vadd.f32 %v630_v19, %v611_v26  ;;  %v483_v36 = vpop.f32.mrb[3].mxu1 }
  0xfc   :  { %v660_v3 = vadd.f32 %v626_v20, %v610_v27  ;;  %v662_v37 = vadd.f32 %v634_v25, %v612_v31 }
  0xfe   :  { %v675_v38 = vcombine.low %v659_v30, %v660_v3  ;;  %v676_v39 = vcombine.low %v661_v34, %v662_v37 }
 0x100   :  { %v683_v40 = vrot.slane %v675_v38, %v682_v35  ;;  %v690_v41 = vrot.slane %v676_v39, %v682_v35 }
 0x102   :  { %v691_v42 = vcombine.low %v683_v40, %v690_v41 }
 0x104   :  { %711 = vst [vmem:[%s1038_s4] sm:$0xff] %v691_v42 }
 0x118   :  { %v519_v52 = vpop.f32.mrb[4].mxu0  ;;  %v560_v56 = vpop.f32.mrb[4].mxu1 }
 0x119   :  { %v613_v55 = vmul.f32 %v588_v47, %v519_v52  ;;  %v521_v57 = vpop.f32.mrb[5].mxu0  ;;  %v615_v59 = vmul.f32 %v596_v48, %v560_v56  ;;  %v562_v61 = vpop.f32.mrb[5].mxu1 }
 0x11a   :  { %v614_v60 = vmul.f32 %v592_v49, %v521_v57  ;;  %v523_v62 = vpop.f32.mrb[6].mxu0  ;;  %v616_v0 = vmul.f32 %v600_v51, %v562_v61  ;;  %v564_v1 = vpop.f32.mrb[6].mxu1 }
 0x11b   :  { %v663_v63 = vadd.f32 %v638_v50, %v613_v55  ;;  %v524_v2 = vpop.f32.mrb[7].mxu0  ;;  %v665_v4 = vadd.f32 %v646_v53, %v615_v59  ;;  %v565_v6 = vpop.f32.mrb[7].mxu1 }
 0x11c   :  { %v664_v5 = vadd.f32 %v642_v54, %v614_v60  ;;  %v666_v7 = vadd.f32 %v650_v58, %v616_v0 }
 0x11e   :  { %v692_v8 = vcombine.low %v663_v63, %v664_v5  ;;  %v693_v9 = vcombine.low %v665_v4, %v666_v7 }
 0x120   :  { %v700_v10 = vrot.slane %v692_v8, %v682_v35  ;;  %v707_v11 = vrot.slane %v693_v9, %v682_v35 }
 0x122   :  { %v708_v13 = vcombine.low %v700_v10, %v707_v11 }
 0x124   :  { %719 = vst.msk [vmem:[%s1038_s4 + $0x8] sm:$0xff] %vm718_vm6, %v708_v13 }

// kernel: custom-call.14
= control target key start
LH: loop header
LB: loop body
LE: loop exit
PB: predicated region body
PF: predicated region fallthrough
CT: control target
= control target key end

     0   :  { %s6_s0 = inlined_call_operand.vmem [shape: bf16[7,2,500], index: 0, kind: output, shape index: {}]  }

// kernel: classifier_forward.18
= control target key start
LH: loop header
LB: loop body
LE: loop exit
PB: predicated region body
PF: predicated region fallthrough
CT: control target
= control target key end

     0   :  { %v878_v3 = vmov 0   ;;  %vm217_vm0 = vcmask 261120   ;;  %vm812_vm1 = vcmask 654336   ;;  %vm829_vm2 = vcmask 652288   ;;  %s1206_s1 = inlined_call_operand.vmem [shape: bf16[32,2000], index: 1, kind: input, shape index: {}]   ;;  %s1207_s0 = inlined_call_operand.vmem [shape: bf16[14,32], index: 0, kind: input, shape index: {}]   ;;  %s1208_s2 = inlined_call_operand.vmem [shape: f32[1,2000], index: 2, kind: input, shape index: {}]   ;;  %s1209_s3 = inlined_call_operand.vmem [shape: f32[1,2000], index: 3, kind: input, shape index: {}]   ;;  %s1210_s4 = inlined_call_operand.vmem [shape: f32[14,2000], index: 4, kind: output, shape index: {}]  }
   0x1   :  { %v20_v0 = vld [vmem:[%s1206_s1] sm:$0xff]  ;;  %v21_v2 = vld [vmem:[%s1206_s1 + $0x8] sm:$0xff]  ;;  %253 = vmatprep.mubr.bf16.mxu0 %v878_v3  ;;  %296 = vmatprep.mubr.bf16.mxu1 %v878_v3  ;;  %v22_v15 = vld [vmem:[%s1206_s1 + $0x10] sm:$0xff] }
   0x2   :  { %v28_v1 = vld [vmem:[%s1206_s1 + $0x40] sm:$0xff]  ;;  %v29_v5 = vld [vmem:[%s1206_s1 + $0x48] sm:$0xff]  ;;  %v30_v17 = vld [vmem:[%s1206_s1 + $0x50] sm:$0xff] }
   0x3   :  { %v837_v4 = vcombine.high %v20_v0, %v28_v1  ;;  %v836_v6 = vcombine.low %v20_v0, %v28_v1  ;;  %v36_v7 = vld [vmem:[%s1206_s1 + $0x80] sm:$0xff]  ;;  %v839_v9 = vcombine.high %v21_v2, %v29_v5  ;;  %v838_v10 = vcombine.low %v21_v2, %v29_v5  ;;  %v37_v12 = vld [vmem:[%s1206_s1 + $0x88] sm:$0xff]  ;;  %v23_v18 = vld [vmem:[%s1206_s1 + $0x18] sm:$0xff] }
   0x4   :  { %v44_v8 = vld [vmem:[%s1206_s1 + $0xc0] sm:$0xff]  ;;  %v45_v13 = vld [vmem:[%s1206_s1 + $0xc8] sm:$0xff]  ;;  %v31_v19 = vld [vmem:[%s1206_s1 + $0x58] sm:$0xff]  ;;  %v841_v21 = vcombine.high %v22_v15, %v30_v17  ;;  %v840_v28 = vcombine.low %v22_v15, %v30_v17  ;;  %v569_v2 = vlaneseq }
   0x5   :  { %v853_v11 = vcombine.high %v36_v7, %v44_v8  ;;  %221 = vmatprep.subr.bf16.mxu0 %v837_v4  ;;  %v855_v14 = vcombine.high %v37_v12, %v45_v13  ;;  %264 = vmatprep.subr.bf16.mxu1 %v839_v9  ;;  %v852_v16 = vcombine.low %v36_v7, %v44_v8  ;;  %v38_v23 = vld [vmem:[%s1206_s1 + $0x90] sm:$0xff]  ;;  %v951_v25 = vld [vmem:[%s1207_s0] sm:$0x7f]   ;;  %v39_v26 = vld [vmem:[%s1206_s1 + $0x98] sm:$0xff] }
   0x6   :  { %222 = vmatpush1.bf16.msra.mxu0 %v836_v6  ;;  %265 = vmatpush1.bf16.msra.mxu1 %v838_v10  ;;  %v854_v20 = vcombine.low %v37_v12, %v45_v13  ;;  %v843_v22 = vcombine.high %v23_v18, %v31_v19  ;;  %v46_v24 = vld [vmem:[%s1206_s1 + $0xd0] sm:$0xff]  ;;  %v47_v27 = vld [vmem:[%s1206_s1 + $0xd8] sm:$0xff]  ;;  %v842_v29 = vcombine.low %v23_v18, %v31_v19  ;;  %v24_v32 = vld [vmem:[%s1206_s1 + $0x20] sm:$0xff]  ;;  %v570_v4 = vshrl.u32 %v569_v2, 7 }
   0x7   :  { %223 = vmatprep.subr.bf16.mxu0 %v853_v11  ;;  %266 = vmatprep.subr.bf16.mxu1 %v855_v14  ;;  %v857_v30 = vcombine.high %v38_v23, %v46_v24  ;;  %v859_v31 = vcombine.high %v39_v26, %v47_v27  ;;  %v32_v33 = vld [vmem:[%s1206_s1 + $0x60] sm:$0xff]  ;;  %v25_v34 = vld [vmem:[%s1206_s1 + $0x28] sm:$0xff]  ;;  %v856_v36 = vcombine.low %v38_v23, %v46_v24  ;;  %v26_v48 = vld [vmem:[%s1206_s1 + $0x30] sm:$0xff] }
   0x8   :  { %v33_v35 = vld [vmem:[%s1206_s1 + $0x68] sm:$0xff]  ;;  %v858_v37 = vcombine.low %v39_v26, %v47_v27  ;;  %v845_v38 = vcombine.high %v24_v32, %v32_v33  ;;  %v40_v40 = vld [vmem:[%s1206_s1 + $0xa0] sm:$0xff]  ;;  %v844_v44 = vcombine.low %v24_v32, %v32_v33  ;;  %v34_v49 = vld [vmem:[%s1206_s1 + $0x70] sm:$0xff]  ;;  %v1029_v5 = vsub.s32 0, %v570_v4 }
   0x9   :  { %v847_v39 = vcombine.high %v25_v34, %v33_v35  ;;  %v48_v41 = vld [vmem:[%s1206_s1 + $0xe0] sm:$0xff]  ;;  %v41_v42 = vld [vmem:[%s1206_s1 + $0xa8] sm:$0xff]  ;;  %v846_v45 = vcombine.low %v25_v34, %v33_v35  ;;  %v27_v50 = vld [vmem:[%s1206_s1 + $0x38] sm:$0xff]  ;;  %v849_v54 = vcombine.high %v26_v48, %v34_v49  ;;  %v848_v60 = vcombine.low %v26_v48, %v34_v49 }
   0xa   :  { %224 = vmatpush1.bf16.msra.mxu0 %v852_v16  ;;  %267 = vmatpush1.bf16.msra.mxu1 %v854_v20  ;;  %v49_v43 = vld [vmem:[%s1206_s1 + $0xe8] sm:$0xff]  ;;  %v861_v46 = vcombine.high %v40_v40, %v48_v41  ;;  %v35_v51 = vld [vmem:[%s1206_s1 + $0x78] sm:$0xff]  ;;  %v860_v52 = vcombine.low %v40_v40, %v48_v41  ;;  %v42_v56 = vld [vmem:[%s1206_s1 + $0xb0] sm:$0xff]  ;;  %v1034_v7 = vsub.s32 2, %v570_v4  ;;  %v1036_v8 = vsub.s32 1, %v570_v4 }
   0xb   :  { %307 = vmatprep.subr.bf16.mxu0 %v841_v21  ;;  %350 = vmatprep.subr.bf16.mxu1 %v843_v22  ;;  %v863_v47 = vcombine.high %v41_v42, %v49_v43  ;;  %v862_v53 = vcombine.low %v41_v42, %v49_v43  ;;  %v851_v55 = vcombine.high %v27_v50, %v35_v51  ;;  %v50_v57 = vld [vmem:[%s1206_s1 + $0xf0] sm:$0xff]  ;;  %v43_v58 = vld [vmem:[%s1206_s1 + $0xb8] sm:$0xff]  ;;  %v565_v6 = vld [vmem:[%s1208_s2] sm:$0xff]  ;;  %v1051_v22 = vsub.s32 4, %v570_v4 }
   0xc   :  { %v51_v59 = vld [vmem:[%s1206_s1 + $0xf8] sm:$0xff]  ;;  %v850_v61 = vcombine.low %v27_v50, %v35_v51  ;;  %v865_v62 = vcombine.high %v42_v56, %v50_v57  ;;  %v864_v0 = vcombine.low %v42_v56, %v50_v57  ;;  %v681_v9 = vld [vmem:[%s1209_s3] sm:$0xff]  ;;  %v572_v10 = vrot.slane %v565_v6, %v1029_v5 }
   0xd   :  { %868 = vmatmul.mubr.msk.bf16.vlgmr.msra.gmra.mrb[0].mxu0 %vm217_vm0, %v951_v25  ;;  %869 = vmatmul.mubr.msk.bf16.vlgmr.msra.gmra.mrb[0].mxu1 %vm217_vm0, %v951_v25  ;;  %v867_v63 = vcombine.high %v43_v58, %v51_v59  ;;  %v866_v1 = vcombine.low %v43_v58, %v51_v59  ;;  %v580_v11 = vrot.slane %v565_v6, %v1034_v7  ;;  %v1053_v27 = vsub.s32 6, %v570_v4 }
   0xe   :  { %308 = vmatpush1.bf16.msra.mxu0 %v840_v28  ;;  %351 = vmatpush1.bf16.msra.mxu1 %v842_v29  ;;  %v576_v12 = vrot.slane %v565_v6, %v1036_v8  ;;  %v688_v13 = vrot.slane %v681_v9, %v1029_v5  ;;  %v696_v16 = vrot.slane %v681_v9, %v1034_v7  ;;  %v1055_v28 = vsub.s32 5, %v570_v4 }
   0xf   :  { %309 = vmatprep.subr.bf16.mxu0 %v857_v30  ;;  %352 = vmatprep.subr.bf16.mxu1 %v859_v31  ;;  %v692_v17 = vrot.slane %v681_v9, %v1036_v8  ;;  %v1057_v34 = vsub.s32 7, %v570_v4  ;;  %v588_v43 = vrot.slane %v565_v6, %v1051_v22  ;;  %v704_v49 = vrot.slane %v681_v9, %v1051_v22 }
  0x10   :  { %339 = vmatprep.mubr.bf16.mxu0 %v878_v3  ;;  %382 = vmatprep.mubr.bf16.mxu1 %v878_v3 }
  0x11   :  { %v600_v50 = vrot.slane %v565_v6, %v1057_v34  ;;  %v716_v57 = vrot.slane %v681_v9, %v1057_v34 }
  0x12   :  { %310 = vmatpush1.bf16.msra.mxu0 %v856_v36  ;;  %353 = vmatpush1.bf16.msra.mxu1 %v858_v37 }
  0x13   :  { %393 = vmatprep.subr.bf16.mxu0 %v845_v38  ;;  %436 = vmatprep.subr.bf16.mxu1 %v847_v39 }
  0x15   :  { %870 = vmatmul.mubr.msk.bf16.vlgmr.msra.gmra.mrb[4].mxu0 %vm217_vm0, %v951_v25  ;;  %871 = vmatmul.mubr.msk.bf16.vlgmr.msra.gmra.mrb[4].mxu1 %vm217_vm0, %v951_v25 }
  0x16   :  { %394 = vmatpush1.bf16.msra.mxu0 %v844_v44  ;;  %437 = vmatpush1.bf16.msra.mxu1 %v846_v45 }
  0x17   :  { %395 = vmatprep.subr.bf16.mxu0 %v861_v46  ;;  %438 = vmatprep.subr.bf16.mxu1 %v863_v47  ;;  %v596_v46 = vrot.slane %v565_v6, %v1053_v27  ;;  %v592_v47 = vrot.slane %v565_v6, %v1055_v28 }
  0x18   :  { %425 = vmatprep.mubr.bf16.mxu0 %v878_v3  ;;  %468 = vmatprep.mubr.bf16.mxu1 %v878_v3 }
  0x1a   :  { %396 = vmatpush1.bf16.msra.mxu0 %v860_v52  ;;  %439 = vmatpush1.bf16.msra.mxu1 %v862_v53  ;;  %v712_v52 = vrot.slane %v681_v9, %v1053_v27  ;;  %v708_v53 = vrot.slane %v681_v9, %v1055_v28 }
  0x1b   :  { %479 = vmatprep.subr.bf16.mxu0 %v849_v54  ;;  %522 = vmatprep.subr.bf16.mxu1 %v851_v55 }
  0x1d   :  { %872 = vmatmul.mubr.msk.bf16.vlgmr.msra.gmra.mrb[8].mxu0 %vm217_vm0, %v951_v25  ;;  %873 = vmatmul.mubr.msk.bf16.vlgmr.msra.gmra.mrb[8].mxu1 %vm217_vm0, %v951_v25 }
  0x1e   :  { %480 = vmatpush1.bf16.msra.mxu0 %v848_v60  ;;  %523 = vmatpush1.bf16.msra.mxu1 %v850_v61 }
  0x1f   :  { %481 = vmatprep.subr.bf16.mxu0 %v865_v62  ;;  %524 = vmatprep.subr.bf16.mxu1 %v867_v63  ;;  %v1094_v62 = vld [vmem:[%s1208_s2 + $0x8] sm:$0xff] }
  0x20   :  { %511 = vmatprep.mubr.bf16.mxu0 %v878_v3  ;;  %554 = vmatprep.mubr.bf16.mxu1 %v878_v3  ;;  %v1038_v3 = vsub.s32 3, %v570_v4 }
  0x22   :  { %482 = vmatpush1.bf16.msra.mxu0 %v864_v0  ;;  %525 = vmatpush1.bf16.msra.mxu1 %v866_v1  ;;  %v584_v14 = vrot.slane %v565_v6, %v1038_v3  ;;  %v700_v21 = vrot.slane %v681_v9, %v1038_v3  ;;  %v1099_v9 = vld [vmem:[%s1209_s3 + $0x8] sm:$0xff] }
  0x25   :  { %874 = vmatmul.mubr.msk.bf16.vlgmr.msra.gmra.mrb[12].mxu0 %vm217_vm0, %v951_v25  ;;  %875 = vmatmul.mubr.msk.bf16.vlgmr.msra.gmra.mrb[12].mxu1 %vm217_vm0, %v951_v25 }
  0xe0   :  { %v255_v15 = vpop.f32.mrb[0].mxu0  ;;  %v298_v19 = vpop.f32.mrb[0].mxu1 }
  0xe1   :  { %v649_v18 = vmul.f32 %v572_v10, %v255_v15  ;;  %v257_v20 = vpop.f32.mrb[1].mxu0  ;;  %v651_v23 = vmul.f32 %v580_v11, %v298_v19  ;;  %v300_v25 = vpop.f32.mrb[1].mxu1 }
  0xe2   :  { %v650_v24 = vmul.f32 %v576_v12, %v257_v20  ;;  %v259_v26 = vpop.f32.mrb[2].mxu0  ;;  %v652_v30 = vmul.f32 %v584_v14, %v300_v25  ;;  %v302_v32 = vpop.f32.mrb[2].mxu1  ;;  %v612_v20 = vrot.slane %v1094_v62, %v1034_v7  ;;  %v616_v25 = vrot.slane %v1094_v62, %v1038_v3 }
  0xe3   :  { %v765_v29 = vadd.f32 %v688_v13, %v649_v18  ;;  %v665_v31 = vmul.f32 %v572_v10, %v259_v26  ;;  %v261_v33 = vpop.f32.mrb[3].mxu0  ;;  %v767_v35 = vadd.f32 %v696_v16, %v651_v23  ;;  %v667_v37 = vmul.f32 %v580_v11, %v302_v32  ;;  %v304_v39 = vpop.f32.mrb[3].mxu1 }
  0xe4   :  { %v766_v36 = vadd.f32 %v692_v17, %v650_v24  ;;  %v666_v38 = vmul.f32 %v576_v12, %v261_v33  ;;  %v768_v40 = vadd.f32 %v700_v21, %v652_v30  ;;  %v668_v42 = vmul.f32 %v584_v14, %v304_v39 }
  0xe5   :  { %797 = vst [vmem:[%s1210_s4] sm:$0xff] %v765_v29  ;;  %v781_v41 = vadd.f32 %v688_v13, %v665_v31  ;;  %799 = vst [vmem:[%s1210_s4 + $0x10] sm:$0xff] %v767_v35  ;;  %v783_v44 = vadd.f32 %v696_v16, %v667_v37  ;;  %v720_v24 = vrot.slane %v1099_v9, %v1029_v5 }
  0xe6   :  { %798 = vst [vmem:[%s1210_s4 + $0x8] sm:$0xff] %v766_v36  ;;  %v782_v45 = vadd.f32 %v692_v17, %v666_v38  ;;  %800 = vst [vmem:[%s1210_s4 + $0x18] sm:$0xff] %v768_v40  ;;  %v784_v48 = vadd.f32 %v700_v21, %v668_v42  ;;  %v604_v17 = vrot.slane %v1094_v62, %v1029_v5 }
  0xe7   :  { %814 = vst [vmem:[%s1210_s4 + $0x80] sm:$0x3f] %v781_v41  ;;  %816 = vst [vmem:[%s1210_s4 + $0x90] sm:$0x3f] %v783_v44  ;;  %v608_v21 = vrot.slane %v1094_v62, %v1036_v8  ;;  %v728_v29 = vrot.slane %v1099_v9, %v1034_v7  ;;  %v724_v30 = vrot.slane %v1099_v9, %v1036_v8 }
  0xe8   :  { %815 = vst [vmem:[%s1210_s4 + $0x88] sm:$0x3f] %v782_v45  ;;  %v341_v51 = vpop.f32.mrb[4].mxu0  ;;  %817 = vst [vmem:[%s1210_s4 + $0x98] sm:$0x3f] %v784_v48  ;;  %v384_v55 = vpop.f32.mrb[4].mxu1  ;;  %v732_v33 = vrot.slane %v1099_v9, %v1038_v3 }
  0xe9   :  { %v653_v54 = vmul.f32 %v588_v43, %v341_v51  ;;  %v343_v56 = vpop.f32.mrb[5].mxu0  ;;  %v655_v58 = vmul.f32 %v596_v46, %v384_v55  ;;  %v386_v60 = vpop.f32.mrb[5].mxu1  ;;  %v736_v55 = vrot.slane %v1099_v9, %v1051_v22 }
  0xea   :  { %v654_v59 = vmul.f32 %v592_v47, %v343_v56  ;;  %v345_v61 = vpop.f32.mrb[6].mxu0  ;;  %v656_v0 = vmul.f32 %v600_v50, %v386_v60  ;;  %v388_v2 = vpop.f32.mrb[6].mxu1  ;;  %v632_v56 = vrot.slane %v1094_v62, %v1057_v34 }
  0xeb   :  { %v769_v63 = vadd.f32 %v704_v49, %v653_v54  ;;  %v669_v1 = vmul.f32 %v588_v43, %v345_v61  ;;  %v347_v4 = vpop.f32.mrb[7].mxu0  ;;  %v771_v6 = vadd.f32 %v712_v52, %v655_v58  ;;  %v671_v11 = vmul.f32 %v596_v46, %v388_v2  ;;  %v390_v13 = vpop.f32.mrb[7].mxu1 }
  0xec   :  { %v770_v10 = vadd.f32 %v708_v53, %v654_v59  ;;  %v670_v12 = vmul.f32 %v592_v47, %v347_v4  ;;  %v772_v14 = vadd.f32 %v716_v57, %v656_v0  ;;  %v672_v16 = vmul.f32 %v600_v50, %v390_v13 }
  0xed   :  { %801 = vst [vmem:[%s1210_s4 + $0x20] sm:$0xff] %v769_v63  ;;  %v785_v15 = vadd.f32 %v704_v49, %v669_v1  ;;  %803 = vst [vmem:[%s1210_s4 + $0x30] sm:$0xff] %v771_v6  ;;  %v787_v18 = vadd.f32 %v712_v52, %v671_v11  ;;  %v620_v49 = vrot.slane %v1094_v62, %v1051_v22 }
  0xee   :  { %802 = vst [vmem:[%s1210_s4 + $0x28] sm:$0xff] %v770_v10  ;;  %v786_v19 = vadd.f32 %v708_v53, %v670_v12  ;;  %804 = vst [vmem:[%s1210_s4 + $0x38] sm:$0xff] %v772_v14  ;;  %v788_v23 = vadd.f32 %v716_v57, %v672_v16  ;;  %v628_v52 = vrot.slane %v1094_v62, %v1053_v27 }
  0xef   :  { %818 = vst [vmem:[%s1210_s4 + $0xa0] sm:$0x3f] %v785_v15  ;;  %820 = vst [vmem:[%s1210_s4 + $0xb0] sm:$0x3f] %v787_v18  ;;  %v624_v53 = vrot.slane %v1094_v62, %v1055_v28  ;;  %v744_v58 = vrot.slane %v1099_v9, %v1053_v27  ;;  %v740_v59 = vrot.slane %v1099_v9, %v1055_v28 }
  0xf0   :  { %819 = vst [vmem:[%s1210_s4 + $0xa8] sm:$0x3f] %v786_v19  ;;  %v427_v26 = vpop.f32.mrb[8].mxu0  ;;  %821 = vst [vmem:[%s1210_s4 + $0xb8] sm:$0x3f] %v788_v23  ;;  %v470_v31 = vpop.f32.mrb[8].mxu1  ;;  %v748_v62 = vrot.slane %v1099_v9, %v1057_v34 }
  0xf1   :  { %v657_v5 = vmul.f32 %v604_v17, %v427_v26  ;;  %v429_v32 = vpop.f32.mrb[9].mxu0  ;;  %v659_v35 = vmul.f32 %v612_v20, %v470_v31  ;;  %v472_v37 = vpop.f32.mrb[9].mxu1 }
  0xf2   :  { %v658_v36 = vmul.f32 %v608_v21, %v429_v32  ;;  %v431_v38 = vpop.f32.mrb[10].mxu0  ;;  %v660_v40 = vmul.f32 %v616_v25, %v472_v37  ;;  %v474_v41 = vpop.f32.mrb[10].mxu1 }
  0xf3   :  { %v773_v39 = vadd.f32 %v720_v24, %v657_v5  ;;  %v673_v7 = vmul.f32 %v604_v17, %v431_v38  ;;  %v433_v42 = vpop.f32.mrb[11].mxu0  ;;  %v775_v8 = vadd.f32 %v728_v29, %v659_v35  ;;  %v675_v44 = vmul.f32 %v612_v20, %v474_v41  ;;  %v476_v46 = vpop.f32.mrb[11].mxu1 }
  0xf4   :  { %v774_v43 = vadd.f32 %v724_v30, %v658_v36  ;;  %v674_v45 = vmul.f32 %v608_v21, %v433_v42  ;;  %v776_v47 = vadd.f32 %v732_v33, %v660_v40  ;;  %v676_v48 = vmul.f32 %v616_v25, %v476_v46 }
  0xf5   :  { %805 = vst [vmem:[%s1210_s4 + $0x40] sm:$0xff] %v773_v39  ;;  %v789_v3 = vadd.f32 %v720_v24, %v673_v7  ;;  %807 = vst [vmem:[%s1210_s4 + $0x50] sm:$0xff] %v775_v8  ;;  %v791_v50 = vadd.f32 %v728_v29, %v675_v44 }
  0xf6   :  { %806 = vst [vmem:[%s1210_s4 + $0x48] sm:$0xff] %v774_v43  ;;  %v790_v51 = vadd.f32 %v724_v30, %v674_v45  ;;  %808 = vst [vmem:[%s1210_s4 + $0x58] sm:$0xff] %v776_v47  ;;  %v792_v54 = vadd.f32 %v732_v33, %v676_v48 }
  0xf7   :  { %822 = vst [vmem:[%s1210_s4 + $0xc0] sm:$0x3f] %v789_v3  ;;  %824 = vst [vmem:[%s1210_s4 + $0xd0] sm:$0x3f] %v791_v50 }
  0xf8   :  { %823 = vst [vmem:[%s1210_s4 + $0xc8] sm:$0x3f] %v790_v51  ;;  %v513_v57 = vpop.f32.mrb[12].mxu0  ;;  %825 = vst [vmem:[%s1210_s4 + $0xd8] sm:$0x3f] %v792_v54  ;;  %v556_v60 = vpop.f32.mrb[12].mxu1 }
  0xf9   :  { %v661_v22 = vmul.f32 %v620_v49, %v513_v57  ;;  %v515_v61 = vpop.f32.mrb[13].mxu0  ;;  %v663_v63 = vmul.f32 %v628_v52, %v556_v60  ;;  %v558_v1 = vpop.f32.mrb[13].mxu1 }
  0xfa   :  { %v662_v0 = vmul.f32 %v624_v53, %v515_v61  ;;  %v517_v2 = vpop.f32.mrb[14].mxu0  ;;  %v664_v6 = vmul.f32 %v632_v56, %v558_v1  ;;  %v560_v10 = vpop.f32.mrb[14].mxu1 }
  0xfb   :  { %v777_v4 = vadd.f32 %v736_v55, %v661_v22  ;;  %v677_v27 = vmul.f32 %v620_v49, %v517_v2  ;;  %v519_v28 = vpop.f32.mrb[15].mxu0  ;;  %v779_v11 = vadd.f32 %v744_v58, %v663_v63  ;;  %v679_v13 = vmul.f32 %v628_v52, %v560_v10  ;;  %v562_v15 = vpop.f32.mrb[15].mxu1 }
  0xfc   :  { %v778_v12 = vadd.f32 %v740_v59, %v662_v0  ;;  %v678_v14 = vmul.f32 %v624_v53, %v519_v28  ;;  %v780_v34 = vadd.f32 %v748_v62, %v664_v6  ;;  %v680_v16 = vmul.f32 %v632_v56, %v562_v15 }
  0xfd   :  { %809 = vst [vmem:[%s1210_s4 + $0x60] sm:$0xff] %v777_v4  ;;  %v793_v9 = vadd.f32 %v736_v55, %v677_v27  ;;  %811 = vst [vmem:[%s1210_s4 + $0x70] sm:$0xff] %v779_v11  ;;  %v795_v17 = vadd.f32 %v744_v58, %v679_v13 }
  0xfe   :  { %810 = vst [vmem:[%s1210_s4 + $0x68] sm:$0xff] %v778_v12  ;;  %v794_v18 = vadd.f32 %v740_v59, %v678_v14  ;;  %813 = vst.msk [vmem:[%s1210_s4 + $0x78] sm:$0xff] %vm812_vm1, %v780_v34  ;;  %v796_v19 = vadd.f32 %v748_v62, %v680_v16 }
  0xff   :  { %826 = vst [vmem:[%s1210_s4 + $0xe0] sm:$0x3f] %v793_v9  ;;  %828 = vst [vmem:[%s1210_s4 + $0xf0] sm:$0x3f] %v795_v17 }
 0x100   :  { %827 = vst [vmem:[%s1210_s4 + $0xe8] sm:$0x3f] %v794_v18  ;;  %830 = vst.msk [vmem:[%s1210_s4 + $0xf8] sm:$0x3f] %vm829_vm2, %v796_v19 }

// kernel: classifier_forward.19
= control target key start
LH: loop header
LB: loop body
LE: loop exit
PB: predicated region body
PF: predicated region fallthrough
CT: control target
= control target key end

     0   :  { %vm297_vm0 = vcmask 1041408   ;;  %vm293_vm1 = vcmask 949248   ;;  %vm401_vm2 = vcmask 105472   ;;  %vm403_vm3 = vcmask 103424   ;;  %s676_s1 = inlined_call_operand.vmem [shape: bf16[500,13], index: 1, kind: input, shape index: {}]   ;;  %s677_s0 = inlined_call_operand.vmem [shape: bf16[14,500], index: 0, kind: input, shape index: {}]   ;;  %s678_s2 = inlined_call_operand.vmem [shape: f32[1,13], index: 2, kind: input, shape index: {}]   ;;  %s679_s3 = inlined_call_operand.vmem [shape: f32[1,13], index: 3, kind: input, shape index: {}]   ;;  %s680_s4 = inlined_call_operand.vmem [shape: f32[14,13], index: 4, kind: output, shape index: {}]  }
   0x1   :  { %v493_v0 = vld [vmem:[%s676_s1 + $0x40] sm:$0xff]   ;;  %v497_v4 = vld [vmem:[%s676_s1 + $0x48] sm:$0xff]   ;;  %v501_v8 = vld [vmem:[%s676_s1 + $0x50] sm:$0xff]  }
   0x2   :  { %v494_v1 = vld [vmem:[%s676_s1 + $0xc0] sm:$0xff]   ;;  %448 = vmatprep.subr.bf16.mxu0 %v493_v0  ;;  %v498_v5 = vld [vmem:[%s676_s1 + $0xc8] sm:$0xff]   ;;  %v502_v9 = vld [vmem:[%s676_s1 + $0xd0] sm:$0xff]  }
   0x3   :  { %v495_v2 = vld [vmem:[%s676_s1] sm:$0xff]   ;;  %470 = vmatprep.subr.bf16.mxu1 %v494_v1  ;;  %v499_v6 = vld [vmem:[%s676_s1 + $0x8] sm:$0xff]   ;;  %v503_v10 = vld [vmem:[%s676_s1 + $0x10] sm:$0xff]  }
   0x4   :  { %v496_v3 = vld [vmem:[%s676_s1 + $0x80] sm:$0xff]   ;;  %449 = vmatpush3.bf16.msra.mxu0 %v495_v2  ;;  %v500_v7 = vld [vmem:[%s676_s1 + $0x88] sm:$0xff]   ;;  %v504_v11 = vld [vmem:[%s676_s1 + $0x90] sm:$0xff]  }
   0x5   :  { %471 = vmatpush3.bf16.msra.mxu1 %v496_v3  ;;  %450 = vmatprep.subr.bf16.mxu0 %v497_v4  ;;  %v505_v12 = vld [vmem:[%s676_s1 + $0x58] sm:$0xff]   ;;  %v509_v16 = vld [vmem:[%s676_s1 + $0x60] sm:$0xff]   ;;  %v513_v20 = vld [vmem:[%s676_s1 + $0x68] sm:$0xff]  }
   0x6   :  { %472 = vmatprep.subr.bf16.mxu1 %v498_v5  ;;  %v506_v13 = vld [vmem:[%s676_s1 + $0xd8] sm:$0xff]   ;;  %v510_v17 = vld [vmem:[%s676_s1 + $0xe0] sm:$0xff]   ;;  %v514_v21 = vld [vmem:[%s676_s1 + $0xe8] sm:$0xff]  }
   0x7   :  { %v507_v14 = vld [vmem:[%s676_s1 + $0x18] sm:$0xff]   ;;  %v511_v18 = vld [vmem:[%s676_s1 + $0x20] sm:$0xff]   ;;  %v515_v22 = vld [vmem:[%s676_s1 + $0x28] sm:$0xff]  }
   0x8   :  { %451 = vmatpush3.bf16.msra.mxu0 %v499_v6  ;;  %v508_v15 = vld [vmem:[%s676_s1 + $0x98] sm:$0xff]   ;;  %v512_v19 = vld [vmem:[%s676_s1 + $0xa0] sm:$0xff]   ;;  %v516_v23 = vld [vmem:[%s676_s1 + $0xa8] sm:$0xff]  }
   0x9   :  { %473 = vmatpush3.bf16.msra.mxu1 %v500_v7  ;;  %452 = vmatprep.subr.bf16.mxu0 %v501_v8  ;;  %v517_v24 = vld [vmem:[%s676_s1 + $0x70] sm:$0xff]   ;;  %v521_v28 = vld [vmem:[%s676_s1 + $0x78] sm:$0xff]   ;;  %v446_v45 = vld [vmem:[%s678_s2] ss:$0 sm:$0xff] }
   0xa   :  { %474 = vmatprep.subr.bf16.mxu1 %v502_v9  ;;  %v518_v25 = vld [vmem:[%s676_s1 + $0xf0] sm:$0xff]   ;;  %v522_v29 = vld [vmem:[%s676_s1 + $0xf8] ss:$0 sps:$4 sm:$0x33]   ;;  %v447_v50 = vld [vmem:[%s679_s3] ss:$0 sm:$0xff] }
   0xb   :  { %v519_v26 = vld [vmem:[%s676_s1 + $0x30] sm:$0xff]   ;;  %v523_v30 = vld [vmem:[%s676_s1 + $0x38] sm:$0xff]  }
   0xc   :  { %453 = vmatpush3.bf16.msra.mxu0 %v503_v10  ;;  %v520_v27 = vld [vmem:[%s676_s1 + $0xb0] sm:$0xff]   ;;  %v524_v31 = vld [vmem:[%s676_s1 + $0xb8] sm:$0xff]  }
   0xd   :  { %475 = vmatpush3.bf16.msra.mxu1 %v504_v11  ;;  %454 = vmatprep.subr.bf16.mxu0 %v505_v12  ;;  %v525_v32 = vld [vmem:[%s677_s0] ss:$16 sps:$4 sm:$0x7f]   ;;  %v527_v33 = vld [vmem:[%s677_s0 + $0x4] ss:$16 sps:$4 sm:$0x7f]  }
   0xe   :  { %476 = vmatprep.subr.bf16.mxu1 %v506_v13  ;;  %v528_v34 = vld [vmem:[%s677_s0 + $0x8] ss:$16 sps:$4 sm:$0x7f]   ;;  %v530_v35 = vld [vmem:[%s677_s0 + $0xc] ss:$16 sps:$4 sm:$0x7f]   ;;  %333 = vmatprep.mubr.bf16.mxu0 %v527_v33 }
   0xf   :  { %445 = vmatprep.mubr.msk.bf16.mxu1 %vm293_vm1, %v530_v35 }
  0x10   :  { %455 = vmatpush3.bf16.msra.mxu0 %v507_v14 }
  0x11   :  { %477 = vmatpush3.bf16.msra.mxu1 %v508_v15  ;;  %456 = vmatprep.subr.bf16.mxu0 %v509_v16 }
  0x12   :  { %478 = vmatprep.subr.bf16.mxu1 %v510_v17 }
  0x14   :  { %457 = vmatpush3.bf16.msra.mxu0 %v511_v18 }
  0x15   :  { %479 = vmatpush3.bf16.msra.mxu1 %v512_v19  ;;  %458 = vmatprep.subr.bf16.mxu0 %v513_v20 }
  0x16   :  { %480 = vmatprep.subr.bf16.mxu1 %v514_v21 }
  0x18   :  { %459 = vmatpush3.bf16.msra.mxu0 %v515_v22 }
  0x19   :  { %481 = vmatpush3.bf16.msra.mxu1 %v516_v23  ;;  %460 = vmatprep.subr.bf16.mxu0 %v517_v24 }
  0x1a   :  { %482 = vmatprep.subr.bf16.mxu1 %v518_v25 }
  0x1c   :  { %461 = vmatpush3.bf16.msra.mxu0 %v519_v26 }
  0x1d   :  { %483 = vmatpush3.bf16.msra.mxu1 %v520_v27  ;;  %462 = vmatprep.subr.bf16.mxu0 %v521_v28 }
  0x1e   :  { %492 = vmatprep.subr.msk.bf16.mxu1 %vm297_vm0, %v522_v29 }
  0x20   :  { %463 = vmatpush3.bf16.msra.mxu0 %v523_v30 }
  0x21   :  { %485 = vmatpush3.bf16.msra.mxu1 %v524_v31 }
  0x23   :  { %334 = vmatmul.mubr.bf16.vlgmr.msra.gmra.mrb[0].mxu0 %v525_v32 }
  0x24   :  { %375 = vmatmul.mubr.bf16.vlgmr.msra.gmra.mrb[0].mxu1 %v528_v34 }
  0xf6   :  { %v464_v36 = vpop.f32.mrb[0].mxu0 }
  0xf7   :  { %v486_v37 = vpop.f32.mrb[0].mxu1  ;;  %v465_v38 = vpop.f32.mrb[1].mxu0 }
  0xf8   :  { %v466_v39 = vadd.f32 %v465_v38, %v464_v36  ;;  %v487_v40 = vpop.f32.mrb[1].mxu1  ;;  %v467_v41 = vpop.f32.mrb[2].mxu0 }
  0xf9   :  { %v488_v42 = vadd.f32 %v487_v40, %v486_v37  ;;  %v489_v43 = vpop.f32.mrb[2].mxu1  ;;  %v468_v44 = vpop.f32.mrb[3].mxu0 }
  0xfa   :  { %v469_v46 = vadd.f32 %v468_v44, %v467_v41  ;;  %v490_v47 = vpop.f32.mrb[3].mxu1 }
  0xfb   :  { %v377_v48 = vadd.f32 %v488_v42, %v466_v39  ;;  %v491_v49 = vadd.f32 %v490_v47, %v489_v43 }
  0xfd   :  { %v390_v51 = vmul.f32 %v446_v45, %v377_v48  ;;  %v380_v52 = vadd.f32 %v491_v49, %v469_v46 }
  0xff   :  { %v399_v53 = vadd.f32 %v447_v50, %v390_v51  ;;  %v391_v54 = vmul.f32 %v446_v45, %v380_v52 }
 0x101   :  { %402 = vst.msk [vmem:[%s680_s4] sm:$0xff] %vm401_vm2, %v399_v53  ;;  %v400_v55 = vadd.f32 %v447_v50, %v391_v54 }
 0x103   :  { %404 = vst.msk [vmem:[%s680_s4 + $0x8] sm:$0x3f] %vm403_vm3, %v400_v55 }

</bundles_post_ra>
